<compile_context>
chip_gen: v7x
topology: tpu7x:2x2x1
jax: 0.10.0
libtpu: 0.0.40
codegen_flags: <defaults>
</compile_context>

<pallas_src>
import functools

import jax
import jax.numpy as jnp
from jax import lax
from jax.experimental import pallas as pl
from jax.experimental.pallas import tpu as pltpu


def _round_up(x, m):
    return (x + m - 1) // m * m


def _vmem_capacity_bytes():
    """Physical VMEM per TensorCore (v5e/v6e: 128 MiB, v7x: 64 MiB)."""
    try:
        info = pltpu.get_tpu_info()
        for attr in ("vmem_capacity_bytes", "vmem_bytes"):
            v = getattr(info, attr, None)
            if v:
                return int(v)
    except Exception:
        pass
    return 64 * 1024 * 1024  # conservative default that fits every generation


# ---------------------------------------------------------------------------
# Fused bidirectional LSTM kernel: one grid step == one time chunk, both dirs.
# ---------------------------------------------------------------------------
def _bilstm_kernel(
    xf_ref, xb_ref,
    wih_f_ref, whh_f_ref, bias_f_ref,
    wih_b_ref, whh_b_ref, bias_b_ref,
    outf_ref, outb_ref,
    ginf_ref, ginb_ref, hf_ref, cf_ref, hb_ref, cb_ref,
    *, chunk_t, sub_t, batch_p, seq_len, hp, needs_mask,
):
    """xf_ref/xb_ref : (chunk_t*batch_p, D_pad) bf16  (fwd chunk i / bwd chunk N-1-i)
       wih_*        : (D_pad, 4*hp) bf16,  whh_* : (hp, 4*hp) bf16
       bias_*       : (1, 4*hp) f32  (b_ih + b_hh)
       outf/outb    : (chunk_t, batch_p, hp) bf16 output blocks
       gin*_ref     : (chunk_t*batch_p, 4*hp) f32 scratch (projected gate inputs)
       h*/c*_ref    : (batch_p, hp) f32 scratch carried across chunks
       Packed gate layout: [i | f | o | g] (three sigmoid gates contiguous)."""
    i = pl.program_id(0)
    n = pl.num_programs(0)
    n_sub = chunk_t // sub_t
    rows = sub_t * batch_p

    @pl.when(i == 0)
    def _init():
        hf_ref[...] = jnp.zeros_like(hf_ref)
        cf_ref[...] = jnp.zeros_like(cf_ref)
        hb_ref[...] = jnp.zeros_like(hb_ref)
        cb_ref[...] = jnp.zeros_like(cb_ref)

    def project(x_ref, wih_ref, bias_ref, gin_ref, sub_idx):
        # Input projection of one sub_t-step sub-block: x @ W_ih + bias.
        off = sub_idx * rows
        if not isinstance(sub_idx, int):
            off = pl.multiple_of(off, rows)
        gin_ref[pl.ds(off, rows), :] = (
            jnp.dot(x_ref[pl.ds(off, rows), :], wih_ref[...],
                    preferred_element_type=jnp.float32)
            + bias_ref[...])

    def lstm_cell(h, c, gin, whh_ref):
        gates = (
            jnp.dot(h.astype(jnp.bfloat16), whh_ref[...],
                    preferred_element_type=jnp.float32)
            + gin
        )  # (batch_p, 4*hp); every gate slice is 128-lane aligned.
        sig = jax.nn.sigmoid(gates[:, : 3 * hp])          # one wide EUP launch: i,f,o
        i_g = sig[:, 0 * hp:1 * hp]
        f_g = sig[:, 1 * hp:2 * hp]
        o_g = sig[:, 2 * hp:3 * hp]
        g_g = jnp.tanh(gates[:, 3 * hp:4 * hp])
        c_new = f_g * c + i_g * g_g
        h_new = o_g * jnp.tanh(c_new)
        return h_new, c_new

    base_f = i * chunk_t                 # global time of local step 0 (forward)
    base_b = (n - 1 - i) * chunk_t       # global time base of the backward chunk

    # ---- prologue: project the first two sub-blocks each direction consumes ----
    project(xf_ref, wih_f_ref, bias_f_ref, ginf_ref, 0)
    project(xb_ref, wih_b_ref, bias_b_ref, ginb_ref, n_sub - 1)
    if n_sub > 1:
        project(xf_ref, wih_f_ref, bias_f_ref, ginf_ref, 1)
        project(xb_ref, wih_b_ref, bias_b_ref, ginb_ref, n_sub - 2)

    def make_outer(masked):
        def outer(j, carry):
            hf, cf, hb, cb = carry
            # sub_t recurrence steps, fully unrolled: together with the look-ahead
            # projections below they form one basic block, so the LLO scheduler can
            # overlap the projection MXU work with the EUP/latency-bound step chain.
            for k in range(sub_t):
                s = j * sub_t + k
                sb = chunk_t - 1 - s     # backward walks the chunk reversed
                row_f = pl.multiple_of(s * batch_p, batch_p)
                row_b = pl.multiple_of(sb * batch_p, batch_p)
                gin_f = ginf_ref[pl.ds(row_f, batch_p), :]
                gin_b = ginb_ref[pl.ds(row_b, batch_p), :]

                hf_new, cf_new = lstm_cell(hf, cf, gin_f, whh_f_ref)
                hb_new, cb_new = lstm_cell(hb, cb, gin_b, whh_b_ref)

                if masked:
                    ok_f = (base_f + s) < seq_len
                    ok_b = (base_b + sb) < seq_len
                    hf = jnp.where(ok_f, hf_new, hf)
                    cf = jnp.where(ok_f, cf_new, cf)
                    hb = jnp.where(ok_b, hb_new, hb)
                    cb = jnp.where(ok_b, cb_new, cb)
                else:
                    hf, cf, hb, cb = hf_new, cf_new, hb_new, cb_new

                outf_ref[s] = hf.astype(outf_ref.dtype)    # full-width lane stores
                outb_ref[sb] = hb.astype(outb_ref.dtype)

            # Software pipeline: project the sub-blocks consumed TWO outer
            # iterations ahead (clamped; the final rewrites store identical
            # values).  Depends only on x / W_ih, so it hides under the
            # recurrence above.
            project(xf_ref, wih_f_ref, bias_f_ref, ginf_ref,
                    jnp.minimum(j + 2, n_sub - 1))
            project(xb_ref, wih_b_ref, bias_b_ref, ginb_ref,
                    jnp.maximum(n_sub - 3 - j, 0))
            return hf, cf, hb, cb
        return outer

    carry0 = (hf_ref[...], cf_ref[...], hb_ref[...], cb_ref[...])

    def run(masked):
        hf, cf, hb, cb = lax.fori_loop(0, n_sub, make_outer(masked), carry0)
        hf_ref[...] = hf
        cf_ref[...] = cf
        hb_ref[...] = hb
        cb_ref[...] = cb

    if not needs_mask:
        run(False)                       # no padded steps: masking never traced
    else:
        # Padded steps live only in the last time chunk: forward sees it at
        # i == n-1, backward (reversed chunk order) sees it at i == 0.
        boundary = jnp.logical_or(i == 0, i == n - 1)

        @pl.when(boundary)
        def _tail():
            run(True)

        @pl.when(jnp.logical_not(boundary))
        def _interior():
            run(False)


# ---------------------------------------------------------------------------
# Weight packing: PyTorch layout -> padded, transposed, bf16, gate order [i,f,o,g].
# ---------------------------------------------------------------------------
_GATE_DST = (0, 1, 3, 2)   # PyTorch gate order [i, f, g, o] -> packed [i, f, o, g]


def _pack_direction(w_ih, w_hh, b_ih, b_hh, hp, dp):
    four_h, d = w_ih.shape
    h = four_h // 4
    wih = jnp.zeros((dp, 4 * hp), jnp.float32)
    whh = jnp.zeros((hp, 4 * hp), jnp.float32)
    bias = jnp.zeros((1, 4 * hp), jnp.float32)
    for src, dst in enumerate(_GATE_DST):
        wih = wih.at[:d, dst * hp:dst * hp + h].set(w_ih[src * h:(src + 1) * h, :].T)
        whh = whh.at[:h, dst * hp:dst * hp + h].set(w_hh[src * h:(src + 1) * h, :].T)
        bias = bias.at[0, dst * hp:dst * hp + h].set(
            b_ih[src * h:(src + 1) * h] + b_hh[src * h:(src + 1) * h])
    return wih.astype(jnp.bfloat16), whh.astype(jnp.bfloat16), bias


# ---------------------------------------------------------------------------
# RNNEncoder.forward (lengths=None, hidden=None).
# ---------------------------------------------------------------------------
def rnn_encoder_forward(x, params, *, single_buffer_weights=True):
    batch, seq, d_in = x.shape
    h = params["weight_hh_l0"].shape[1]            # cell_size

    hp = _round_up(h, 128)                         # lane-padded cell size
    dp = _round_up(d_in, 128)
    bp = _round_up(batch, 8)
    sub_t = 8                                      # projection/recurrence sub-block

    budget = int(0.75 * _vmem_capacity_bytes())    # headroom for Mosaic scratch

    def vmem_need(ct):
        x_blk = 2 * 2 * ct * bp * dp * 2                      # bf16, double-buffered
        out_blk = 2 * 2 * ct * bp * hp * 2                    # bf16, double-buffered
        w_buf = 1 if single_buffer_weights else 2
        weights = w_buf * 2 * ((dp + hp) * 4 * hp * 2 + 4 * hp * 4)
        gin = 2 * ct * bp * 4 * hp * 4                        # f32 scratch
        hc = 4 * bp * hp * 4
        return x_blk + out_blk + weights + gin + hc

    # Pick the largest chunk the VMEM budget allows (up to 256 steps), then re-fit
    # it to the sequence length to minimize time padding.
    chunk_t = min(256, _round_up(seq, sub_t))
    while chunk_t > sub_t and vmem_need(chunk_t) > budget:
        nxt = _round_up(chunk_t // 2, sub_t)
        if nxt >= chunk_t:
            break
        chunk_t = nxt
    n_chunks = -(-seq // chunk_t)
    chunk_t = _round_up(-(-seq // n_chunks), sub_t)
    t_pad = chunk_t * n_chunks
    needs_mask = (t_pad != seq)
    vmem_limit = int(min(budget,
                         max(16 * 1024 * 1024, vmem_need(chunk_t) + (4 << 20))))

    # One cheap bf16 layout pass on x (no f32 detour, no reverses, no per-dir copies).
    x_tm = jnp.transpose(x.astype(jnp.bfloat16), (1, 0, 2))             # (T, B, D)
    x_tm = jnp.pad(x_tm, ((0, t_pad - seq), (0, bp - batch), (0, dp - d_in)))
    x_flat = x_tm.reshape(t_pad * bp, dp)                               # (T_pad*Bp, Dp)

    wih_f, whh_f, b_f = _pack_direction(
        params["weight_ih_l0"], params["weight_hh_l0"],
        params["bias_ih_l0"], params["bias_hh_l0"], hp, dp)
    wih_b, whh_b, b_b = _pack_direction(
        params["weight_ih_l0_reverse"], params["weight_hh_l0_reverse"],
        params["bias_ih_l0_reverse"], params["bias_hh_l0_reverse"], hp, dp)

    def _const_spec(shape):
        idx = lambda i: tuple(0 for _ in shape)
        if single_buffer_weights:
            try:
                # Constant index_map: double-buffering these is pure VMEM waste.
                return pl.BlockSpec(shape, idx, pipeline_mode=pl.Buffered(1))
            except Exception:
                pass
        return pl.BlockSpec(shape, idx)

    kernel = functools.partial(
        _bilstm_kernel, chunk_t=chunk_t, sub_t=sub_t, batch_p=bp,
        seq_len=seq, hp=hp, needs_mask=needs_mask)

    out_f, out_b = pl.pallas_call(
        kernel,
        out_shape=(
            jax.ShapeDtypeStruct((t_pad, bp, hp), jnp.bfloat16),
            jax.ShapeDtypeStruct((t_pad, bp, hp), jnp.bfloat16),
        ),
        grid=(n_chunks,),
        in_specs=[
            # Same x array passed twice: forward chunk order / reversed chunk order.
            pl.BlockSpec((chunk_t * bp, dp), lambda i: (i, 0)),
            pl.BlockSpec((chunk_t * bp, dp), lambda i: (n_chunks - 1 - i, 0)),
            _const_spec((dp, 4 * hp)),
            _const_spec((hp, 4 * hp)),
            _const_spec((1, 4 * hp)),
            _const_spec((dp, 4 * hp)),
            _const_spec((hp, 4 * hp)),
            _const_spec((1, 4 * hp)),
        ],
        out_specs=(
            pl.BlockSpec((chunk_t, bp, hp), lambda i: (i, 0, 0)),
            pl.BlockSpec((chunk_t, bp, hp), lambda i: (n_chunks - 1 - i, 0, 0)),
        ),
        scratch_shapes=[
            pltpu.VMEM((chunk_t * bp, 4 * hp), jnp.float32),   # gin forward
            pltpu.VMEM((chunk_t * bp, 4 * hp), jnp.float32),   # gin backward
            pltpu.VMEM((bp, hp), jnp.float32),                 # h forward
            pltpu.VMEM((bp, hp), jnp.float32),                 # c forward
            pltpu.VMEM((bp, hp), jnp.float32),                 # h backward
            pltpu.VMEM((bp, hp), jnp.float32),                 # c backward
        ],
        compiler_params=pltpu.CompilerParams(
            dimension_semantics=("arbitrary",),   # recurrence is serial over chunks
            vmem_limit_bytes=vmem_limit,
        ),
    )(x_flat, x_flat, wih_f, whh_f, b_f, wih_b, whh_b, b_b)

    # Slice/stitch in bf16 (half the HBM traffic of the layout pass), cast at the end.
    of = out_f[:seq, :batch, :h]                                         # (T, B, H)
    ob = out_b[:seq, :batch, :h]
    outputs = jnp.transpose(jnp.concatenate([of, ob], axis=-1),
                            (1, 0, 2)).astype(jnp.float32)               # (B, T, 2H)
    last_hidden = jnp.concatenate([of[seq - 1], ob[0]],
                                  axis=-1).astype(jnp.float32)           # (B, 2H)
    return outputs, last_hidden


# ---------------------------------------------------------------------------
# Deterministic parameters (PyTorch layout; orthogonal init on 2-D weights).
# ---------------------------------------------------------------------------
def _orthogonal(key, shape):
    rows, cols = shape
    a = jax.random.normal(key, (max(rows, cols), min(rows, cols)), jnp.float32)
    q, _ = jnp.linalg.qr(a)
    if rows < cols:
        q = q.T
    return q[:rows, :cols]


def make_params(key, input_size, cell_size):
    h = cell_size
    ks = jax.random.split(key, 8)
    bound = 1.0 / float(h) ** 0.5

    def bias(k):
        return jax.random.uniform(k, (4 * h,), jnp.float32, -bound, bound)

    return {
        "weight_ih_l0": _orthogonal(ks[0], (4 * h, input_size)),
        "weight_hh_l0": _orthogonal(ks[1], (4 * h, h)),
        "bias_ih_l0": bias(ks[2]),
        "bias_hh_l0": bias(ks[3]),
        "weight_ih_l0_reverse": _orthogonal(ks[4], (4 * h, input_size)),
        "weight_hh_l0_reverse": _orthogonal(ks[5], (4 * h, h)),
        "bias_ih_l0_reverse": bias(ks[6]),
        "bias_hh_l0_reverse": bias(ks[7]),
    }


# ---------------------------------------------------------------------------
# Pure-JAX reference (mirrors the kernel's bf16 MXU / bf16 output rounding).
# ---------------------------------------------------------------------------
def _reference_bilstm(x, params):
    def rnd(a):
        return a.astype(jnp.bfloat16).astype(jnp.float32)

    def run_dir(x32, w_ih, w_hh, b_ih, b_hh, reverse):
        b_, t_, _ = x32.shape
        h_ = w_hh.shape[1]
        wih_t = rnd(w_ih).T
        whh_t = rnd(w_hh).T
        bias = (b_ih + b_hh)[None, :]
        h = jnp.zeros((b_, h_), jnp.float32)
        c = jnp.zeros((b_, h_), jnp.float32)
        outs = [None] * t_
        order = range(t_ - 1, -1, -1) if reverse else range(t_)
        for t in order:
            gates = rnd(x32[:, t, :]) @ wih_t + rnd(h) @ whh_t + bias
            i_g = jax.nn.sigmoid(gates[:, 0 * h_:1 * h_])
            f_g = jax.nn.sigmoid(gates[:, 1 * h_:2 * h_])
            g_g = jnp.tanh(gates[:, 2 * h_:3 * h_])
            o_g = jax.nn.sigmoid(gates[:, 3 * h_:4 * h_])
            c = f_g * c + i_g * g_g
            h = o_g * jnp.tanh(c)
            outs[t] = rnd(h)            # kernel stores its outputs in bf16
        return jnp.stack(outs, axis=1)

    x32 = x.astype(jnp.float32)
    of = run_dir(x32, params["weight_ih_l0"], params["weight_hh_l0"],
                 params["bias_ih_l0"], params["bias_hh_l0"], False)
    ob = run_dir(x32, params["weight_ih_l0_reverse"],
                 params["weight_hh_l0_reverse"],
                 params["bias_ih_l0_reverse"], params["bias_hh_l0_reverse"], True)
    outputs = jnp.concatenate([of, ob], -1)
    last_hidden = jnp.concatenate([of[:, -1, :], ob[:, 0, :]], -1)
    return outputs, last_hidden


if __name__ == "__main__":
    # Small shapes consistent with the module: batch=2, seq=8, input_size=16,
    # hidden_size=32  ->  cell_size=16 (bidirectional).
    batch, seq, input_size, hidden_size = 2, 8, 16, 32
    cell_size = hidden_size // 2

    key = jax.random.PRNGKey(0)
    k_x, k_p = jax.random.split(key)
    x = jax.random.normal(k_x, (batch, seq, input_size), jnp.float32)
    params = make_params(k_p, input_size, cell_size)

    def run(single_buffer):
        fn = jax.jit(functools.partial(rnn_encoder_forward,
                                       single_buffer_weights=single_buffer))
        out, last = fn(x, params)
        return jax.block_until_ready(out), jax.block_until_ready(last)

    try:
        outputs, last_hidden = run(True)
    except Exception:
        # Fallback in case this JAX build rejects pipeline_mode=pl.Buffered(1).
        outputs, last_hidden = run(False)

    assert outputs.shape == (batch, seq, hidden_size), outputs.shape
    assert last_hidden.shape == (batch, hidden_size), last_hidden.shape

    # last_hidden must equal [fwd output at t=T-1 | bwd output at t=0].
    recon = jnp.concatenate(
        [outputs[:, -1, :cell_size], outputs[:, 0, cell_size:]], axis=-1)
    assert jnp.allclose(recon, last_hidden, atol=1e-5), "last_hidden mismatch"

    # Cross-check against the pure-JAX bidirectional-LSTM reference.
    ref_out, ref_last = _reference_bilstm(x, params)
    err_o = float(jnp.max(jnp.abs(outputs - ref_out)))
    err_h = float(jnp.max(jnp.abs(last_hidden - ref_last)))
    assert err_o < 1e-2, "outputs mismatch, max |diff| = %g" % err_o
    assert err_h < 1e-2, "last_hidden mismatch, max |diff| = %g" % err_h

    print("KERNEL_OK")
</pallas_src>

<mosaic_0001>
module attributes {stable_mosaic.version = 11 : i64} {
  func.func @_bilstm_kernel(%arg0: i32, %arg1: memref<64x128xbf16, #tpu.memory_space<vmem>>, %arg2: memref<64x128xbf16, #tpu.memory_space<vmem>>, %arg3: memref<128x512xbf16, #tpu.memory_space<vmem>>, %arg4: memref<128x512xbf16, #tpu.memory_space<vmem>>, %arg5: memref<1x512xf32, #tpu.memory_space<vmem>>, %arg6: memref<128x512xbf16, #tpu.memory_space<vmem>>, %arg7: memref<128x512xbf16, #tpu.memory_space<vmem>>, %arg8: memref<1x512xf32, #tpu.memory_space<vmem>>, %arg9: memref<8x8x128xbf16, #tpu.memory_space<vmem>>, %arg10: memref<8x8x128xbf16, #tpu.memory_space<vmem>>, %arg11: memref<64x512xf32, #tpu.memory_space<vmem>>, %arg12: memref<64x512xf32, #tpu.memory_space<vmem>>, %arg13: memref<8x128xf32, #tpu.memory_space<vmem>>, %arg14: memref<8x128xf32, #tpu.memory_space<vmem>>, %arg15: memref<8x128xf32, #tpu.memory_space<vmem>>, %arg16: memref<8x128xf32, #tpu.memory_space<vmem>>) attributes {dimension_semantics = [#tpu.dimension_semantics<arbitrary>], iteration_bounds = array<i64: 1>, scalar_prefetch = 0 : i64, scratch_operands = 6 : i64, tpu.core_type = #tpu.core_type<tc>, window_params = [{transform_indices = @transform_0, window_bounds = array<i64: 64, 128>}, {transform_indices = @transform_1, window_bounds = array<i64: 64, 128>}, {pipeline_mode = #tpu.pipeline_mode<synchronous>, transform_indices = @transform_2, window_bounds = array<i64: 128, 512>}, {pipeline_mode = #tpu.pipeline_mode<synchronous>, transform_indices = @transform_3, window_bounds = array<i64: 128, 512>}, {pipeline_mode = #tpu.pipeline_mode<synchronous>, transform_indices = @transform_4, window_bounds = array<i64: 1, 512>}, {pipeline_mode = #tpu.pipeline_mode<synchronous>, transform_indices = @transform_5, window_bounds = array<i64: 128, 512>}, {pipeline_mode = #tpu.pipeline_mode<synchronous>, transform_indices = @transform_6, window_bounds = array<i64: 128, 512>}, {pipeline_mode = #tpu.pipeline_mode<synchronous>, transform_indices = @transform_7, window_bounds = array<i64: 1, 512>}, {transform_indices = @transform_8, window_bounds = array<i64: 8, 8, 128>}, {transform_indices = @transform_9, window_bounds = array<i64: 8, 8, 128>}]} {
    %c0_i32 = arith.constant 0 : i32
    %0 = arith.cmpi eq, %arg0, %c0_i32 : i32
    %1 = arith.extui %0 : i1 to i32
    %c0_i32_0 = arith.constant 0 : i32
    %2 = arith.cmpi ne, %1, %c0_i32_0 : i32
    scf.if %2 {
      %cst_197 = arith.constant 0.000000e+00 : f32
      %539 = vector.broadcast %cst_197 : f32 to vector<8x128xf32>
      %c0_198 = arith.constant 0 : index
      %c0_199 = arith.constant 0 : index
      %540 = vector.load %arg13[%c0_198, %c0_199] : memref<8x128xf32, #tpu.memory_space<vmem>>, vector<8x128xf32>
      tpu.vector_store %arg13[%c0_198, %c0_199], %539 {strides = array<i32>} : memref<8x128xf32, #tpu.memory_space<vmem>>, vector<8x128xf32>,
      %cst_200 = arith.constant 0.000000e+00 : f32
      %541 = vector.broadcast %cst_200 : f32 to vector<8x128xf32>
      %c0_201 = arith.constant 0 : index
      %c0_202 = arith.constant 0 : index
      %542 = vector.load %arg14[%c0_201, %c0_202] : memref<8x128xf32, #tpu.memory_space<vmem>>, vector<8x128xf32>
      tpu.vector_store %arg14[%c0_201, %c0_202], %541 {strides = array<i32>} : memref<8x128xf32, #tpu.memory_space<vmem>>, vector<8x128xf32>,
      %cst_203 = arith.constant 0.000000e+00 : f32
      %543 = vector.broadcast %cst_203 : f32 to vector<8x128xf32>
      %c0_204 = arith.constant 0 : index
      %c0_205 = arith.constant 0 : index
      %544 = vector.load %arg15[%c0_204, %c0_205] : memref<8x128xf32, #tpu.memory_space<vmem>>, vector<8x128xf32>
      tpu.vector_store %arg15[%c0_204, %c0_205], %543 {strides = array<i32>} : memref<8x128xf32, #tpu.memory_space<vmem>>, vector<8x128xf32>,
      %cst_206 = arith.constant 0.000000e+00 : f32
      %545 = vector.broadcast %cst_206 : f32 to vector<8x128xf32>
      %c0_207 = arith.constant 0 : index
      %c0_208 = arith.constant 0 : index
      %546 = vector.load %arg16[%c0_207, %c0_208] : memref<8x128xf32, #tpu.memory_space<vmem>>, vector<8x128xf32>
      tpu.vector_store %arg16[%c0_207, %c0_208], %545 {strides = array<i32>} : memref<8x128xf32, #tpu.memory_space<vmem>>, vector<8x128xf32>,
    } else {
    }
    %c0 = arith.constant 0 : index
    %c0_1 = arith.constant 0 : index
    %3 = vector.load %arg1[%c0, %c0_1] : memref<64x128xbf16, #tpu.memory_space<vmem>>, vector<64x128xbf16>
    %c0_2 = arith.constant 0 : index
    %c0_3 = arith.constant 0 : index
    %4 = vector.load %arg3[%c0_2, %c0_3] : memref<128x512xbf16, #tpu.memory_space<vmem>>, vector<128x512xbf16>
    %cst = arith.constant dense<0.000000e+00> : vector<64x512xf32>
    %5 = tpu.matmul %3, %4, %cst {dimension_numbers = #tpu.dot_dimension_numbers<[1], [0], [0], [1], [0, 0, 1, 1], [], []>} : vector<64x128xbf16>, vector<128x512xbf16>, vector<64x512xf32> -> vector<64x512xf32>
    %c0_4 = arith.constant 0 : index
    %c0_5 = arith.constant 0 : index
    %6 = vector.load %arg5[%c0_4, %c0_5] : memref<1x512xf32, #tpu.memory_space<vmem>>, vector<1x512xf32>
    %7 = vector.broadcast %6 : vector<1x512xf32> to vector<64x512xf32>
    %8 = arith.addf %5, %7 : vector<64x512xf32>
    %c0_6 = arith.constant 0 : index
    %c0_7 = arith.constant 0 : index
    %9 = vector.load %arg11[%c0_6, %c0_7] : memref<64x512xf32, #tpu.memory_space<vmem>>, vector<64x512xf32>
    tpu.vector_store %arg11[%c0_6, %c0_7], %8 {strides = array<i32>} : memref<64x512xf32, #tpu.memory_space<vmem>>, vector<64x512xf32>,
    %c0_8 = arith.constant 0 : index
    %c0_9 = arith.constant 0 : index
    %10 = vector.load %arg2[%c0_8, %c0_9] : memref<64x128xbf16, #tpu.memory_space<vmem>>, vector<64x128xbf16>
    %c0_10 = arith.constant 0 : index
    %c0_11 = arith.constant 0 : index
    %11 = vector.load %arg6[%c0_10, %c0_11] : memref<128x512xbf16, #tpu.memory_space<vmem>>, vector<128x512xbf16>
    %cst_12 = arith.constant dense<0.000000e+00> : vector<64x512xf32>
    %12 = tpu.matmul %10, %11, %cst_12 {dimension_numbers = #tpu.dot_dimension_numbers<[1], [0], [0], [1], [0, 0, 1, 1], [], []>} : vector<64x128xbf16>, vector<128x512xbf16>, vector<64x512xf32> -> vector<64x512xf32>
    %c0_13 = arith.constant 0 : index
    %c0_14 = arith.constant 0 : index
    %13 = vector.load %arg8[%c0_13, %c0_14] : memref<1x512xf32, #tpu.memory_space<vmem>>, vector<1x512xf32>
    %14 = vector.broadcast %13 : vector<1x512xf32> to vector<64x512xf32>
    %15 = arith.addf %12, %14 : vector<64x512xf32>
    %c0_15 = arith.constant 0 : index
    %c0_16 = arith.constant 0 : index
    %16 = vector.load %arg12[%c0_15, %c0_16] : memref<64x512xf32, #tpu.memory_space<vmem>>, vector<64x512xf32>
    tpu.vector_store %arg12[%c0_15, %c0_16], %15 {strides = array<i32>} : memref<64x512xf32, #tpu.memory_space<vmem>>, vector<64x512xf32>,
    %c0_17 = arith.constant 0 : index
    %c0_18 = arith.constant 0 : index
    %17 = vector.load %arg13[%c0_17, %c0_18] : memref<8x128xf32, #tpu.memory_space<vmem>>, vector<8x128xf32>
    %c0_19 = arith.constant 0 : index
    %c0_20 = arith.constant 0 : index
    %18 = vector.load %arg14[%c0_19, %c0_20] : memref<8x128xf32, #tpu.memory_space<vmem>>, vector<8x128xf32>
    %c0_21 = arith.constant 0 : index
    %c0_22 = arith.constant 0 : index
    %19 = vector.load %arg15[%c0_21, %c0_22] : memref<8x128xf32, #tpu.memory_space<vmem>>, vector<8x128xf32>
    %c0_23 = arith.constant 0 : index
    %c0_24 = arith.constant 0 : index
    %20 = vector.load %arg16[%c0_23, %c0_24] : memref<8x128xf32, #tpu.memory_space<vmem>>, vector<8x128xf32>
    %c0_i32_25 = arith.constant 0 : i32
    %c8_i32 = arith.constant 8 : i32
    %21 = arith.muli %c0_i32_25, %c8_i32 : i32
    %c0_i32_26 = arith.constant 0 : i32
    %22 = arith.addi %21, %c0_i32_26 : i32
    %c7_i32 = arith.constant 7 : i32
    %23 = arith.subi %c7_i32, %22 : i32
    %c8_i32_27 = arith.constant 8 : i32
    %24 = arith.muli %22, %c8_i32_27 : i32
    %25 = tpu.assume_multiple %24, 8 : i32
    %c8_i32_28 = arith.constant 8 : i32
    %26 = arith.muli %23, %c8_i32_28 : i32
    %27 = tpu.assume_multiple %26, 8 : i32
    %28 = arith.index_cast %25 : i32 to index
    %c0_29 = arith.constant 0 : index
    %29 = vector.load %arg11[%28, %c0_29] : memref<64x512xf32, #tpu.memory_space<vmem>>, vector<8x512xf32>
    %30 = arith.index_cast %27 : i32 to index
    %c0_30 = arith.constant 0 : index
    %31 = vector.load %arg12[%30, %c0_30] : memref<64x512xf32, #tpu.memory_space<vmem>>, vector<8x512xf32>
    %32 = arith.truncf %17 : vector<8x128xf32> to vector<8x128xbf16>
    %c0_31 = arith.constant 0 : index
    %c0_32 = arith.constant 0 : index
    %33 = vector.load %arg4[%c0_31, %c0_32] : memref<128x512xbf16, #tpu.memory_space<vmem>>, vector<128x512xbf16>
    %cst_33 = arith.constant dense<0.000000e+00> : vector<8x512xf32>
    %34 = tpu.matmul %32, %33, %cst_33 {dimension_numbers = #tpu.dot_dimension_numbers<[1], [0], [0], [1], [0, 0, 1, 1], [], []>} : vector<8x128xbf16>, vector<128x512xbf16>, vector<8x512xf32> -> vector<8x512xf32>
    %35 = arith.addf %34, %29 : vector<8x512xf32>
    %36 = vector.extract_strided_slice %35 {offsets = [0, 0], sizes = [8, 384], strides = [1, 1]} : vector<8x512xf32> to vector<8x384xf32>
    %37 = arith.negf %36 : vector<8x384xf32>
    %38 = math.exp %37 : vector<8x384xf32>
    %cst_34 = arith.constant 1.000000e+00 : f32
    %39 = vector.broadcast %cst_34 : f32 to vector<8x384xf32>
    %40 = arith.addf %39, %38 : vector<8x384xf32>
    %41 = arith.divf %39, %40 : vector<8x384xf32>
    %42 = vector.extract_strided_slice %41 {offsets = [0, 0], sizes = [8, 128], strides = [1, 1]} : vector<8x384xf32> to vector<8x128xf32>
    %43 = vector.extract_strided_slice %41 {offsets = [0, 128], sizes = [8, 128], strides = [1, 1]} : vector<8x384xf32> to vector<8x128xf32>
    %44 = vector.extract_strided_slice %41 {offsets = [0, 256], sizes = [8, 128], strides = [1, 1]} : vector<8x384xf32> to vector<8x128xf32>
    %45 = vector.extract_strided_slice %35 {offsets = [0, 384], sizes = [8, 128], strides = [1, 1]} : vector<8x512xf32> to vector<8x128xf32>
    %46 = math.tanh %45 : vector<8x128xf32>
    %47 = arith.mulf %43, %18 : vector<8x128xf32>
    %48 = arith.mulf %42, %46 : vector<8x128xf32>
    %49 = arith.addf %47, %48 : vector<8x128xf32>
    %50 = math.tanh %49 : vector<8x128xf32>
    %51 = arith.mulf %44, %50 : vector<8x128xf32>
    %52 = arith.truncf %19 : vector<8x128xf32> to vector<8x128xbf16>
    %c0_35 = arith.constant 0 : index
    %c0_36 = arith.constant 0 : index
    %53 = vector.load %arg7[%c0_35, %c0_36] : memref<128x512xbf16, #tpu.memory_space<vmem>>, vector<128x512xbf16>
    %cst_37 = arith.constant dense<0.000000e+00> : vector<8x512xf32>
    %54 = tpu.matmul %52, %53, %cst_37 {dimension_numbers = #tpu.dot_dimension_numbers<[1], [0], [0], [1], [0, 0, 1, 1], [], []>} : vector<8x128xbf16>, vector<128x512xbf16>, vector<8x512xf32> -> vector<8x512xf32>
    %55 = arith.addf %54, %31 : vector<8x512xf32>
    %56 = vector.extract_strided_slice %55 {offsets = [0, 0], sizes = [8, 384], strides = [1, 1]} : vector<8x512xf32> to vector<8x384xf32>
    %57 = arith.negf %56 : vector<8x384xf32>
    %58 = math.exp %57 : vector<8x384xf32>
    %cst_38 = arith.constant 1.000000e+00 : f32
    %59 = vector.broadcast %cst_38 : f32 to vector<8x384xf32>
    %60 = arith.addf %59, %58 : vector<8x384xf32>
    %61 = arith.divf %59, %60 : vector<8x384xf32>
    %62 = vector.extract_strided_slice %61 {offsets = [0, 0], sizes = [8, 128], strides = [1, 1]} : vector<8x384xf32> to vector<8x128xf32>
    %63 = vector.extract_strided_slice %61 {offsets = [0, 128], sizes = [8, 128], strides = [1, 1]} : vector<8x384xf32> to vector<8x128xf32>
    %64 = vector.extract_strided_slice %61 {offsets = [0, 256], sizes = [8, 128], strides = [1, 1]} : vector<8x384xf32> to vector<8x128xf32>
    %65 = vector.extract_strided_slice %55 {offsets = [0, 384], sizes = [8, 128], strides = [1, 1]} : vector<8x512xf32> to vector<8x128xf32>
    %66 = math.tanh %65 : vector<8x128xf32>
    %67 = arith.mulf %63, %20 : vector<8x128xf32>
    %68 = arith.mulf %62, %66 : vector<8x128xf32>
    %69 = arith.addf %67, %68 : vector<8x128xf32>
    %70 = math.tanh %69 : vector<8x128xf32>
    %71 = arith.mulf %64, %70 : vector<8x128xf32>
    %72 = arith.truncf %51 : vector<8x128xf32> to vector<8x128xbf16>
    %73 = arith.index_cast %22 : i32 to index
    %c0_39 = arith.constant 0 : index
    %c0_40 = arith.constant 0 : index
    %74 = vector.load %arg9[%73, %c0_39, %c0_40] : memref<8x8x128xbf16, #tpu.memory_space<vmem>>, vector<1x8x128xbf16>
    %75 = vector.shape_cast %74 : vector<1x8x128xbf16> to vector<8x128xbf16>
    %76 = vector.shape_cast %72 : vector<8x128xbf16> to vector<1x8x128xbf16>
    tpu.vector_store %arg9[%73, %c0_39, %c0_40], %76 {strides = array<i32>} : memref<8x8x128xbf16, #tpu.memory_space<vmem>>, vector<1x8x128xbf16>,
    %77 = arith.truncf %71 : vector<8x128xf32> to vector<8x128xbf16>
    %78 = arith.index_cast %23 : i32 to index
    %c0_41 = arith.constant 0 : index
    %c0_42 = arith.constant 0 : index
    %79 = vector.load %arg10[%78, %c0_41, %c0_42] : memref<8x8x128xbf16, #tpu.memory_space<vmem>>, vector<1x8x128xbf16>
    %80 = vector.shape_cast %79 : vector<1x8x128xbf16> to vector<8x128xbf16>
    %81 = vector.shape_cast %77 : vector<8x128xbf16> to vector<1x8x128xbf16>
    tpu.vector_store %arg10[%78, %c0_41, %c0_42], %81 {strides = array<i32>} : memref<8x8x128xbf16, #tpu.memory_space<vmem>>, vector<1x8x128xbf16>,
    %c8_i32_43 = arith.constant 8 : i32
    %82 = arith.muli %c0_i32_25, %c8_i32_43 : i32
    %c1_i32 = arith.constant 1 : i32
    %83 = arith.addi %82, %c1_i32 : i32
    %c7_i32_44 = arith.constant 7 : i32
    %84 = arith.subi %c7_i32_44, %83 : i32
    %c8_i32_45 = arith.constant 8 : i32
    %85 = arith.muli %83, %c8_i32_45 : i32
    %86 = tpu.assume_multiple %85, 8 : i32
    %c8_i32_46 = arith.constant 8 : i32
    %87 = arith.muli %84, %c8_i32_46 : i32
    %88 = tpu.assume_multiple %87, 8 : i32
    %89 = arith.index_cast %86 : i32 to index
    %c0_47 = arith.constant 0 : index
    %90 = vector.load %arg11[%89, %c0_47] : memref<64x512xf32, #tpu.memory_space<vmem>>, vector<8x512xf32>
    %91 = arith.index_cast %88 : i32 to index
    %c0_48 = arith.constant 0 : index
    %92 = vector.load %arg12[%91, %c0_48] : memref<64x512xf32, #tpu.memory_space<vmem>>, vector<8x512xf32>
    %93 = arith.truncf %51 : vector<8x128xf32> to vector<8x128xbf16>
    %c0_49 = arith.constant 0 : index
    %c0_50 = arith.constant 0 : index
    %94 = vector.load %arg4[%c0_49, %c0_50] : memref<128x512xbf16, #tpu.memory_space<vmem>>, vector<128x512xbf16>
    %cst_51 = arith.constant dense<0.000000e+00> : vector<8x512xf32>
    %95 = tpu.matmul %93, %94, %cst_51 {dimension_numbers = #tpu.dot_dimension_numbers<[1], [0], [0], [1], [0, 0, 1, 1], [], []>} : vector<8x128xbf16>, vector<128x512xbf16>, vector<8x512xf32> -> vector<8x512xf32>
    %96 = arith.addf %95, %90 : vector<8x512xf32>
    %97 = vector.extract_strided_slice %96 {offsets = [0, 0], sizes = [8, 384], strides = [1, 1]} : vector<8x512xf32> to vector<8x384xf32>
    %98 = arith.negf %97 : vector<8x384xf32>
    %99 = math.exp %98 : vector<8x384xf32>
    %cst_52 = arith.constant 1.000000e+00 : f32
    %100 = vector.broadcast %cst_52 : f32 to vector<8x384xf32>
    %101 = arith.addf %100, %99 : vector<8x384xf32>
    %102 = arith.divf %100, %101 : vector<8x384xf32>
    %103 = vector.extract_strided_slice %102 {offsets = [0, 0], sizes = [8, 128], strides = [1, 1]} : vector<8x384xf32> to vector<8x128xf32>
    %104 = vector.extract_strided_slice %102 {offsets = [0, 128], sizes = [8, 128], strides = [1, 1]} : vector<8x384xf32> to vector<8x128xf32>
    %105 = vector.extract_strided_slice %102 {offsets = [0, 256], sizes = [8, 128], strides = [1, 1]} : vector<8x384xf32> to vector<8x128xf32>
    %106 = vector.extract_strided_slice %96 {offsets = [0, 384], sizes = [8, 128], strides = [1, 1]} : vector<8x512xf32> to vector<8x128xf32>
    %107 = math.tanh %106 : vector<8x128xf32>
    %108 = arith.mulf %104, %49 : vector<8x128xf32>
    %109 = arith.mulf %103, %107 : vector<8x128xf32>
    %110 = arith.addf %108, %109 : vector<8x128xf32>
    %111 = math.tanh %110 : vector<8x128xf32>
    %112 = arith.mulf %105, %111 : vector<8x128xf32>
    %113 = arith.truncf %71 : vector<8x128xf32> to vector<8x128xbf16>
    %c0_53 = arith.constant 0 : index
    %c0_54 = arith.constant 0 : index
    %114 = vector.load %arg7[%c0_53, %c0_54] : memref<128x512xbf16, #tpu.memory_space<vmem>>, vector<128x512xbf16>
    %cst_55 = arith.constant dense<0.000000e+00> : vector<8x512xf32>
    %115 = tpu.matmul %113, %114, %cst_55 {dimension_numbers = #tpu.dot_dimension_numbers<[1], [0], [0], [1], [0, 0, 1, 1], [], []>} : vector<8x128xbf16>, vector<128x512xbf16>, vector<8x512xf32> -> vector<8x512xf32>
    %116 = arith.addf %115, %92 : vector<8x512xf32>
    %117 = vector.extract_strided_slice %116 {offsets = [0, 0], sizes = [8, 384], strides = [1, 1]} : vector<8x512xf32> to vector<8x384xf32>
    %118 = arith.negf %117 : vector<8x384xf32>
    %119 = math.exp %118 : vector<8x384xf32>
    %cst_56 = arith.constant 1.000000e+00 : f32
    %120 = vector.broadcast %cst_56 : f32 to vector<8x384xf32>
    %121 = arith.addf %120, %119 : vector<8x384xf32>
    %122 = arith.divf %120, %121 : vector<8x384xf32>
    %123 = vector.extract_strided_slice %122 {offsets = [0, 0], sizes = [8, 128], strides = [1, 1]} : vector<8x384xf32> to vector<8x128xf32>
    %124 = vector.extract_strided_slice %122 {offsets = [0, 128], sizes = [8, 128], strides = [1, 1]} : vector<8x384xf32> to vector<8x128xf32>
    %125 = vector.extract_strided_slice %122 {offsets = [0, 256], sizes = [8, 128], strides = [1, 1]} : vector<8x384xf32> to vector<8x128xf32>
    %126 = vector.extract_strided_slice %116 {offsets = [0, 384], sizes = [8, 128], strides = [1, 1]} : vector<8x512xf32> to vector<8x128xf32>
    %127 = math.tanh %126 : vector<8x128xf32>
    %128 = arith.mulf %124, %69 : vector<8x128xf32>
    %129 = arith.mulf %123, %127 : vector<8x128xf32>
    %130 = arith.addf %128, %129 : vector<8x128xf32>
    %131 = math.tanh %130 : vector<8x128xf32>
    %132 = arith.mulf %125, %131 : vector<8x128xf32>
    %133 = arith.truncf %112 : vector<8x128xf32> to vector<8x128xbf16>
    %134 = arith.index_cast %83 : i32 to index
    %c0_57 = arith.constant 0 : index
    %c0_58 = arith.constant 0 : index
    %135 = vector.load %arg9[%134, %c0_57, %c0_58] : memref<8x8x128xbf16, #tpu.memory_space<vmem>>, vector<1x8x128xbf16>
    %136 = vector.shape_cast %135 : vector<1x8x128xbf16> to vector<8x128xbf16>
    %137 = vector.shape_cast %133 : vector<8x128xbf16> to vector<1x8x128xbf16>
    tpu.vector_store %arg9[%134, %c0_57, %c0_58], %137 {strides = array<i32>} : memref<8x8x128xbf16, #tpu.memory_space<vmem>>, vector<1x8x128xbf16>,
    %138 = arith.truncf %132 : vector<8x128xf32> to vector<8x128xbf16>
    %139 = arith.index_cast %84 : i32 to index
    %c0_59 = arith.constant 0 : index
    %c0_60 = arith.constant 0 : index
    %140 = vector.load %arg10[%139, %c0_59, %c0_60] : memref<8x8x128xbf16, #tpu.memory_space<vmem>>, vector<1x8x128xbf16>
    %141 = vector.shape_cast %140 : vector<1x8x128xbf16> to vector<8x128xbf16>
    %142 = vector.shape_cast %138 : vector<8x128xbf16> to vector<1x8x128xbf16>
    tpu.vector_store %arg10[%139, %c0_59, %c0_60], %142 {strides = array<i32>} : memref<8x8x128xbf16, #tpu.memory_space<vmem>>, vector<1x8x128xbf16>,
    %c8_i32_61 = arith.constant 8 : i32
    %143 = arith.muli %c0_i32_25, %c8_i32_61 : i32
    %c2_i32 = arith.constant 2 : i32
    %144 = arith.addi %143, %c2_i32 : i32
    %c7_i32_62 = arith.constant 7 : i32
    %145 = arith.subi %c7_i32_62, %144 : i32
    %c8_i32_63 = arith.constant 8 : i32
    %146 = arith.muli %144, %c8_i32_63 : i32
    %147 = tpu.assume_multiple %146, 8 : i32
    %c8_i32_64 = arith.constant 8 : i32
    %148 = arith.muli %145, %c8_i32_64 : i32
    %149 = tpu.assume_multiple %148, 8 : i32
    %150 = arith.index_cast %147 : i32 to index
    %c0_65 = arith.constant 0 : index
    %151 = vector.load %arg11[%150, %c0_65] : memref<64x512xf32, #tpu.memory_space<vmem>>, vector<8x512xf32>
    %152 = arith.index_cast %149 : i32 to index
    %c0_66 = arith.constant 0 : index
    %153 = vector.load %arg12[%152, %c0_66] : memref<64x512xf32, #tpu.memory_space<vmem>>, vector<8x512xf32>
    %154 = arith.truncf %112 : vector<8x128xf32> to vector<8x128xbf16>
    %c0_67 = arith.constant 0 : index
    %c0_68 = arith.constant 0 : index
    %155 = vector.load %arg4[%c0_67, %c0_68] : memref<128x512xbf16, #tpu.memory_space<vmem>>, vector<128x512xbf16>
    %cst_69 = arith.constant dense<0.000000e+00> : vector<8x512xf32>
    %156 = tpu.matmul %154, %155, %cst_69 {dimension_numbers = #tpu.dot_dimension_numbers<[1], [0], [0], [1], [0, 0, 1, 1], [], []>} : vector<8x128xbf16>, vector<128x512xbf16>, vector<8x512xf32> -> vector<8x512xf32>
    %157 = arith.addf %156, %151 : vector<8x512xf32>
    %158 = vector.extract_strided_slice %157 {offsets = [0, 0], sizes = [8, 384], strides = [1, 1]} : vector<8x512xf32> to vector<8x384xf32>
    %159 = arith.negf %158 : vector<8x384xf32>
    %160 = math.exp %159 : vector<8x384xf32>
    %cst_70 = arith.constant 1.000000e+00 : f32
    %161 = vector.broadcast %cst_70 : f32 to vector<8x384xf32>
    %162 = arith.addf %161, %160 : vector<8x384xf32>
    %163 = arith.divf %161, %162 : vector<8x384xf32>
    %164 = vector.extract_strided_slice %163 {offsets = [0, 0], sizes = [8, 128], strides = [1, 1]} : vector<8x384xf32> to vector<8x128xf32>
    %165 = vector.extract_strided_slice %163 {offsets = [0, 128], sizes = [8, 128], strides = [1, 1]} : vector<8x384xf32> to vector<8x128xf32>
    %166 = vector.extract_strided_slice %163 {offsets = [0, 256], sizes = [8, 128], strides = [1, 1]} : vector<8x384xf32> to vector<8x128xf32>
    %167 = vector.extract_strided_slice %157 {offsets = [0, 384], sizes = [8, 128], strides = [1, 1]} : vector<8x512xf32> to vector<8x128xf32>
    %168 = math.tanh %167 : vector<8x128xf32>
    %169 = arith.mulf %165, %110 : vector<8x128xf32>
    %170 = arith.mulf %164, %168 : vector<8x128xf32>
    %171 = arith.addf %169, %170 : vector<8x128xf32>
    %172 = math.tanh %171 : vector<8x128xf32>
    %173 = arith.mulf %166, %172 : vector<8x128xf32>
    %174 = arith.truncf %132 : vector<8x128xf32> to vector<8x128xbf16>
    %c0_71 = arith.constant 0 : index
    %c0_72 = arith.constant 0 : index
    %175 = vector.load %arg7[%c0_71, %c0_72] : memref<128x512xbf16, #tpu.memory_space<vmem>>, vector<128x512xbf16>
    %cst_73 = arith.constant dense<0.000000e+00> : vector<8x512xf32>
    %176 = tpu.matmul %174, %175, %cst_73 {dimension_numbers = #tpu.dot_dimension_numbers<[1], [0], [0], [1], [0, 0, 1, 1], [], []>} : vector<8x128xbf16>, vector<128x512xbf16>, vector<8x512xf32> -> vector<8x512xf32>
    %177 = arith.addf %176, %153 : vector<8x512xf32>
    %178 = vector.extract_strided_slice %177 {offsets = [0, 0], sizes = [8, 384], strides = [1, 1]} : vector<8x512xf32> to vector<8x384xf32>
    %179 = arith.negf %178 : vector<8x384xf32>
    %180 = math.exp %179 : vector<8x384xf32>
    %cst_74 = arith.constant 1.000000e+00 : f32
    %181 = vector.broadcast %cst_74 : f32 to vector<8x384xf32>
    %182 = arith.addf %181, %180 : vector<8x384xf32>
    %183 = arith.divf %181, %182 : vector<8x384xf32>
    %184 = vector.extract_strided_slice %183 {offsets = [0, 0], sizes = [8, 128], strides = [1, 1]} : vector<8x384xf32> to vector<8x128xf32>
    %185 = vector.extract_strided_slice %183 {offsets = [0, 128], sizes = [8, 128], strides = [1, 1]} : vector<8x384xf32> to vector<8x128xf32>
    %186 = vector.extract_strided_slice %183 {offsets = [0, 256], sizes = [8, 128], strides = [1, 1]} : vector<8x384xf32> to vector<8x128xf32>
    %187 = vector.extract_strided_slice %177 {offsets = [0, 384], sizes = [8, 128], strides = [1, 1]} : vector<8x512xf32> to vector<8x128xf32>
    %188 = math.tanh %187 : vector<8x128xf32>
    %189 = arith.mulf %185, %130 : vector<8x128xf32>
    %190 = arith.mulf %184, %188 : vector<8x128xf32>
    %191 = arith.addf %189, %190 : vector<8x128xf32>
    %192 = math.tanh %191 : vector<8x128xf32>
    %193 = arith.mulf %186, %192 : vector<8x128xf32>
    %194 = arith.truncf %173 : vector<8x128xf32> to vector<8x128xbf16>
    %195 = arith.index_cast %144 : i32 to index
    %c0_75 = arith.constant 0 : index
    %c0_76 = arith.constant 0 : index
    %196 = vector.load %arg9[%195, %c0_75, %c0_76] : memref<8x8x128xbf16, #tpu.memory_space<vmem>>, vector<1x8x128xbf16>
    %197 = vector.shape_cast %196 : vector<1x8x128xbf16> to vector<8x128xbf16>
    %198 = vector.shape_cast %194 : vector<8x128xbf16> to vector<1x8x128xbf16>
    tpu.vector_store %arg9[%195, %c0_75, %c0_76], %198 {strides = array<i32>} : memref<8x8x128xbf16, #tpu.memory_space<vmem>>, vector<1x8x128xbf16>,
    %199 = arith.truncf %193 : vector<8x128xf32> to vector<8x128xbf16>
    %200 = arith.index_cast %145 : i32 to index
    %c0_77 = arith.constant 0 : index
    %c0_78 = arith.constant 0 : index
    %201 = vector.load %arg10[%200, %c0_77, %c0_78] : memref<8x8x128xbf16, #tpu.memory_space<vmem>>, vector<1x8x128xbf16>
    %202 = vector.shape_cast %201 : vector<1x8x128xbf16> to vector<8x128xbf16>
    %203 = vector.shape_cast %199 : vector<8x128xbf16> to vector<1x8x128xbf16>
    tpu.vector_store %arg10[%200, %c0_77, %c0_78], %203 {strides = array<i32>} : memref<8x8x128xbf16, #tpu.memory_space<vmem>>, vector<1x8x128xbf16>,
    %c8_i32_79 = arith.constant 8 : i32
    %204 = arith.muli %c0_i32_25, %c8_i32_79 : i32
    %c3_i32 = arith.constant 3 : i32
    %205 = arith.addi %204, %c3_i32 : i32
    %c7_i32_80 = arith.constant 7 : i32
    %206 = arith.subi %c7_i32_80, %205 : i32
    %c8_i32_81 = arith.constant 8 : i32
    %207 = arith.muli %205, %c8_i32_81 : i32
    %208 = tpu.assume_multiple %207, 8 : i32
    %c8_i32_82 = arith.constant 8 : i32
    %209 = arith.muli %206, %c8_i32_82 : i32
    %210 = tpu.assume_multiple %209, 8 : i32
    %211 = arith.index_cast %208 : i32 to index
    %c0_83 = arith.constant 0 : index
    %212 = vector.load %arg11[%211, %c0_83] : memref<64x512xf32, #tpu.memory_space<vmem>>, vector<8x512xf32>
    %213 = arith.index_cast %210 : i32 to index
    %c0_84 = arith.constant 0 : index
    %214 = vector.load %arg12[%213, %c0_84] : memref<64x512xf32, #tpu.memory_space<vmem>>, vector<8x512xf32>
    %215 = arith.truncf %173 : vector<8x128xf32> to vector<8x128xbf16>
    %c0_85 = arith.constant 0 : index
    %c0_86 = arith.constant 0 : index
    %216 = vector.load %arg4[%c0_85, %c0_86] : memref<128x512xbf16, #tpu.memory_space<vmem>>, vector<128x512xbf16>
    %cst_87 = arith.constant dense<0.000000e+00> : vector<8x512xf32>
    %217 = tpu.matmul %215, %216, %cst_87 {dimension_numbers = #tpu.dot_dimension_numbers<[1], [0], [0], [1], [0, 0, 1, 1], [], []>} : vector<8x128xbf16>, vector<128x512xbf16>, vector<8x512xf32> -> vector<8x512xf32>
    %218 = arith.addf %217, %212 : vector<8x512xf32>
    %219 = vector.extract_strided_slice %218 {offsets = [0, 0], sizes = [8, 384], strides = [1, 1]} : vector<8x512xf32> to vector<8x384xf32>
    %220 = arith.negf %219 : vector<8x384xf32>
    %221 = math.exp %220 : vector<8x384xf32>
    %cst_88 = arith.constant 1.000000e+00 : f32
    %222 = vector.broadcast %cst_88 : f32 to vector<8x384xf32>
    %223 = arith.addf %222, %221 : vector<8x384xf32>
    %224 = arith.divf %222, %223 : vector<8x384xf32>
    %225 = vector.extract_strided_slice %224 {offsets = [0, 0], sizes = [8, 128], strides = [1, 1]} : vector<8x384xf32> to vector<8x128xf32>
    %226 = vector.extract_strided_slice %224 {offsets = [0, 128], sizes = [8, 128], strides = [1, 1]} : vector<8x384xf32> to vector<8x128xf32>
    %227 = vector.extract_strided_slice %224 {offsets = [0, 256], sizes = [8, 128], strides = [1, 1]} : vector<8x384xf32> to vector<8x128xf32>
    %228 = vector.extract_strided_slice %218 {offsets = [0, 384], sizes = [8, 128], strides = [1, 1]} : vector<8x512xf32> to vector<8x128xf32>
    %229 = math.tanh %228 : vector<8x128xf32>
    %230 = arith.mulf %226, %171 : vector<8x128xf32>
    %231 = arith.mulf %225, %229 : vector<8x128xf32>
    %232 = arith.addf %230, %231 : vector<8x128xf32>
    %233 = math.tanh %232 : vector<8x128xf32>
    %234 = arith.mulf %227, %233 : vector<8x128xf32>
    %235 = arith.truncf %193 : vector<8x128xf32> to vector<8x128xbf16>
    %c0_89 = arith.constant 0 : index
    %c0_90 = arith.constant 0 : index
    %236 = vector.load %arg7[%c0_89, %c0_90] : memref<128x512xbf16, #tpu.memory_space<vmem>>, vector<128x512xbf16>
    %cst_91 = arith.constant dense<0.000000e+00> : vector<8x512xf32>
    %237 = tpu.matmul %235, %236, %cst_91 {dimension_numbers = #tpu.dot_dimension_numbers<[1], [0], [0], [1], [0, 0, 1, 1], [], []>} : vector<8x128xbf16>, vector<128x512xbf16>, vector<8x512xf32> -> vector<8x512xf32>
    %238 = arith.addf %237, %214 : vector<8x512xf32>
    %239 = vector.extract_strided_slice %238 {offsets = [0, 0], sizes = [8, 384], strides = [1, 1]} : vector<8x512xf32> to vector<8x384xf32>
    %240 = arith.negf %239 : vector<8x384xf32>
    %241 = math.exp %240 : vector<8x384xf32>
    %cst_92 = arith.constant 1.000000e+00 : f32
    %242 = vector.broadcast %cst_92 : f32 to vector<8x384xf32>
    %243 = arith.addf %242, %241 : vector<8x384xf32>
    %244 = arith.divf %242, %243 : vector<8x384xf32>
    %245 = vector.extract_strided_slice %244 {offsets = [0, 0], sizes = [8, 128], strides = [1, 1]} : vector<8x384xf32> to vector<8x128xf32>
    %246 = vector.extract_strided_slice %244 {offsets = [0, 128], sizes = [8, 128], strides = [1, 1]} : vector<8x384xf32> to vector<8x128xf32>
    %247 = vector.extract_strided_slice %244 {offsets = [0, 256], sizes = [8, 128], strides = [1, 1]} : vector<8x384xf32> to vector<8x128xf32>
    %248 = vector.extract_strided_slice %238 {offsets = [0, 384], sizes = [8, 128], strides = [1, 1]} : vector<8x512xf32> to vector<8x128xf32>
    %249 = math.tanh %248 : vector<8x128xf32>
    %250 = arith.mulf %246, %191 : vector<8x128xf32>
    %251 = arith.mulf %245, %249 : vector<8x128xf32>
    %252 = arith.addf %250, %251 : vector<8x128xf32>
    %253 = math.tanh %252 : vector<8x128xf32>
    %254 = arith.mulf %247, %253 : vector<8x128xf32>
    %255 = arith.truncf %234 : vector<8x128xf32> to vector<8x128xbf16>
    %256 = arith.index_cast %205 : i32 to index
    %c0_93 = arith.constant 0 : index
    %c0_94 = arith.constant 0 : index
    %257 = vector.load %arg9[%256, %c0_93, %c0_94] : memref<8x8x128xbf16, #tpu.memory_space<vmem>>, vector<1x8x128xbf16>
    %258 = vector.shape_cast %257 : vector<1x8x128xbf16> to vector<8x128xbf16>
    %259 = vector.shape_cast %255 : vector<8x128xbf16> to vector<1x8x128xbf16>
    tpu.vector_store %arg9[%256, %c0_93, %c0_94], %259 {strides = array<i32>} : memref<8x8x128xbf16, #tpu.memory_space<vmem>>, vector<1x8x128xbf16>,
    %260 = arith.truncf %254 : vector<8x128xf32> to vector<8x128xbf16>
    %261 = arith.index_cast %206 : i32 to index
    %c0_95 = arith.constant 0 : index
    %c0_96 = arith.constant 0 : index
    %262 = vector.load %arg10[%261, %c0_95, %c0_96] : memref<8x8x128xbf16, #tpu.memory_space<vmem>>, vector<1x8x128xbf16>
    %263 = vector.shape_cast %262 : vector<1x8x128xbf16> to vector<8x128xbf16>
    %264 = vector.shape_cast %260 : vector<8x128xbf16> to vector<1x8x128xbf16>
    tpu.vector_store %arg10[%261, %c0_95, %c0_96], %264 {strides = array<i32>} : memref<8x8x128xbf16, #tpu.memory_space<vmem>>, vector<1x8x128xbf16>,
    %c8_i32_97 = arith.constant 8 : i32
    %265 = arith.muli %c0_i32_25, %c8_i32_97 : i32
    %c4_i32 = arith.constant 4 : i32
    %266 = arith.addi %265, %c4_i32 : i32
    %c7_i32_98 = arith.constant 7 : i32
    %267 = arith.subi %c7_i32_98, %266 : i32
    %c8_i32_99 = arith.constant 8 : i32
    %268 = arith.muli %266, %c8_i32_99 : i32
    %269 = tpu.assume_multiple %268, 8 : i32
    %c8_i32_100 = arith.constant 8 : i32
    %270 = arith.muli %267, %c8_i32_100 : i32
    %271 = tpu.assume_multiple %270, 8 : i32
    %272 = arith.index_cast %269 : i32 to index
    %c0_101 = arith.constant 0 : index
    %273 = vector.load %arg11[%272, %c0_101] : memref<64x512xf32, #tpu.memory_space<vmem>>, vector<8x512xf32>
    %274 = arith.index_cast %271 : i32 to index
    %c0_102 = arith.constant 0 : index
    %275 = vector.load %arg12[%274, %c0_102] : memref<64x512xf32, #tpu.memory_space<vmem>>, vector<8x512xf32>
    %276 = arith.truncf %234 : vector<8x128xf32> to vector<8x128xbf16>
    %c0_103 = arith.constant 0 : index
    %c0_104 = arith.constant 0 : index
    %277 = vector.load %arg4[%c0_103, %c0_104] : memref<128x512xbf16, #tpu.memory_space<vmem>>, vector<128x512xbf16>
    %cst_105 = arith.constant dense<0.000000e+00> : vector<8x512xf32>
    %278 = tpu.matmul %276, %277, %cst_105 {dimension_numbers = #tpu.dot_dimension_numbers<[1], [0], [0], [1], [0, 0, 1, 1], [], []>} : vector<8x128xbf16>, vector<128x512xbf16>, vector<8x512xf32> -> vector<8x512xf32>
    %279 = arith.addf %278, %273 : vector<8x512xf32>
    %280 = vector.extract_strided_slice %279 {offsets = [0, 0], sizes = [8, 384], strides = [1, 1]} : vector<8x512xf32> to vector<8x384xf32>
    %281 = arith.negf %280 : vector<8x384xf32>
    %282 = math.exp %281 : vector<8x384xf32>
    %cst_106 = arith.constant 1.000000e+00 : f32
    %283 = vector.broadcast %cst_106 : f32 to vector<8x384xf32>
    %284 = arith.addf %283, %282 : vector<8x384xf32>
    %285 = arith.divf %283, %284 : vector<8x384xf32>
    %286 = vector.extract_strided_slice %285 {offsets = [0, 0], sizes = [8, 128], strides = [1, 1]} : vector<8x384xf32> to vector<8x128xf32>
    %287 = vector.extract_strided_slice %285 {offsets = [0, 128], sizes = [8, 128], strides = [1, 1]} : vector<8x384xf32> to vector<8x128xf32>
    %288 = vector.extract_strided_slice %285 {offsets = [0, 256], sizes = [8, 128], strides = [1, 1]} : vector<8x384xf32> to vector<8x128xf32>
    %289 = vector.extract_strided_slice %279 {offsets = [0, 384], sizes = [8, 128], strides = [1, 1]} : vector<8x512xf32> to vector<8x128xf32>
    %290 = math.tanh %289 : vector<8x128xf32>
    %291 = arith.mulf %287, %232 : vector<8x128xf32>
    %292 = arith.mulf %286, %290 : vector<8x128xf32>
    %293 = arith.addf %291, %292 : vector<8x128xf32>
    %294 = math.tanh %293 : vector<8x128xf32>
    %295 = arith.mulf %288, %294 : vector<8x128xf32>
    %296 = arith.truncf %254 : vector<8x128xf32> to vector<8x128xbf16>
    %c0_107 = arith.constant 0 : index
    %c0_108 = arith.constant 0 : index
    %297 = vector.load %arg7[%c0_107, %c0_108] : memref<128x512xbf16, #tpu.memory_space<vmem>>, vector<128x512xbf16>
    %cst_109 = arith.constant dense<0.000000e+00> : vector<8x512xf32>
    %298 = tpu.matmul %296, %297, %cst_109 {dimension_numbers = #tpu.dot_dimension_numbers<[1], [0], [0], [1], [0, 0, 1, 1], [], []>} : vector<8x128xbf16>, vector<128x512xbf16>, vector<8x512xf32> -> vector<8x512xf32>
    %299 = arith.addf %298, %275 : vector<8x512xf32>
    %300 = vector.extract_strided_slice %299 {offsets = [0, 0], sizes = [8, 384], strides = [1, 1]} : vector<8x512xf32> to vector<8x384xf32>
    %301 = arith.negf %300 : vector<8x384xf32>
    %302 = math.exp %301 : vector<8x384xf32>
    %cst_110 = arith.constant 1.000000e+00 : f32
    %303 = vector.broadcast %cst_110 : f32 to vector<8x384xf32>
    %304 = arith.addf %303, %302 : vector<8x384xf32>
    %305 = arith.divf %303, %304 : vector<8x384xf32>
    %306 = vector.extract_strided_slice %305 {offsets = [0, 0], sizes = [8, 128], strides = [1, 1]} : vector<8x384xf32> to vector<8x128xf32>
    %307 = vector.extract_strided_slice %305 {offsets = [0, 128], sizes = [8, 128], strides = [1, 1]} : vector<8x384xf32> to vector<8x128xf32>
    %308 = vector.extract_strided_slice %305 {offsets = [0, 256], sizes = [8, 128], strides = [1, 1]} : vector<8x384xf32> to vector<8x128xf32>
    %309 = vector.extract_strided_slice %299 {offsets = [0, 384], sizes = [8, 128], strides = [1, 1]} : vector<8x512xf32> to vector<8x128xf32>
    %310 = math.tanh %309 : vector<8x128xf32>
    %311 = arith.mulf %307, %252 : vector<8x128xf32>
    %312 = arith.mulf %306, %310 : vector<8x128xf32>
    %313 = arith.addf %311, %312 : vector<8x128xf32>
    %314 = math.tanh %313 : vector<8x128xf32>
    %315 = arith.mulf %308, %314 : vector<8x128xf32>
    %316 = arith.truncf %295 : vector<8x128xf32> to vector<8x128xbf16>
    %317 = arith.index_cast %266 : i32 to index
    %c0_111 = arith.constant 0 : index
    %c0_112 = arith.constant 0 : index
    %318 = vector.load %arg9[%317, %c0_111, %c0_112] : memref<8x8x128xbf16, #tpu.memory_space<vmem>>, vector<1x8x128xbf16>
    %319 = vector.shape_cast %318 : vector<1x8x128xbf16> to vector<8x128xbf16>
    %320 = vector.shape_cast %316 : vector<8x128xbf16> to vector<1x8x128xbf16>
    tpu.vector_store %arg9[%317, %c0_111, %c0_112], %320 {strides = array<i32>} : memref<8x8x128xbf16, #tpu.memory_space<vmem>>, vector<1x8x128xbf16>,
    %321 = arith.truncf %315 : vector<8x128xf32> to vector<8x128xbf16>
    %322 = arith.index_cast %267 : i32 to index
    %c0_113 = arith.constant 0 : index
    %c0_114 = arith.constant 0 : index
    %323 = vector.load %arg10[%322, %c0_113, %c0_114] : memref<8x8x128xbf16, #tpu.memory_space<vmem>>, vector<1x8x128xbf16>
    %324 = vector.shape_cast %323 : vector<1x8x128xbf16> to vector<8x128xbf16>
    %325 = vector.shape_cast %321 : vector<8x128xbf16> to vector<1x8x128xbf16>
    tpu.vector_store %arg10[%322, %c0_113, %c0_114], %325 {strides = array<i32>} : memref<8x8x128xbf16, #tpu.memory_space<vmem>>, vector<1x8x128xbf16>,
    %c8_i32_115 = arith.constant 8 : i32
    %326 = arith.muli %c0_i32_25, %c8_i32_115 : i32
    %c5_i32 = arith.constant 5 : i32
    %327 = arith.addi %326, %c5_i32 : i32
    %c7_i32_116 = arith.constant 7 : i32
    %328 = arith.subi %c7_i32_116, %327 : i32
    %c8_i32_117 = arith.constant 8 : i32
    %329 = arith.muli %327, %c8_i32_117 : i32
    %330 = tpu.assume_multiple %329, 8 : i32
    %c8_i32_118 = arith.constant 8 : i32
    %331 = arith.muli %328, %c8_i32_118 : i32
    %332 = tpu.assume_multiple %331, 8 : i32
    %333 = arith.index_cast %330 : i32 to index
    %c0_119 = arith.constant 0 : index
    %334 = vector.load %arg11[%333, %c0_119] : memref<64x512xf32, #tpu.memory_space<vmem>>, vector<8x512xf32>
    %335 = arith.index_cast %332 : i32 to index
    %c0_120 = arith.constant 0 : index
    %336 = vector.load %arg12[%335, %c0_120] : memref<64x512xf32, #tpu.memory_space<vmem>>, vector<8x512xf32>
    %337 = arith.truncf %295 : vector<8x128xf32> to vector<8x128xbf16>
    %c0_121 = arith.constant 0 : index
    %c0_122 = arith.constant 0 : index
    %338 = vector.load %arg4[%c0_121, %c0_122] : memref<128x512xbf16, #tpu.memory_space<vmem>>, vector<128x512xbf16>
    %cst_123 = arith.constant dense<0.000000e+00> : vector<8x512xf32>
    %339 = tpu.matmul %337, %338, %cst_123 {dimension_numbers = #tpu.dot_dimension_numbers<[1], [0], [0], [1], [0, 0, 1, 1], [], []>} : vector<8x128xbf16>, vector<128x512xbf16>, vector<8x512xf32> -> vector<8x512xf32>
    %340 = arith.addf %339, %334 : vector<8x512xf32>
    %341 = vector.extract_strided_slice %340 {offsets = [0, 0], sizes = [8, 384], strides = [1, 1]} : vector<8x512xf32> to vector<8x384xf32>
    %342 = arith.negf %341 : vector<8x384xf32>
    %343 = math.exp %342 : vector<8x384xf32>
    %cst_124 = arith.constant 1.000000e+00 : f32
    %344 = vector.broadcast %cst_124 : f32 to vector<8x384xf32>
    %345 = arith.addf %344, %343 : vector<8x384xf32>
    %346 = arith.divf %344, %345 : vector<8x384xf32>
    %347 = vector.extract_strided_slice %346 {offsets = [0, 0], sizes = [8, 128], strides = [1, 1]} : vector<8x384xf32> to vector<8x128xf32>
    %348 = vector.extract_strided_slice %346 {offsets = [0, 128], sizes = [8, 128], strides = [1, 1]} : vector<8x384xf32> to vector<8x128xf32>
    %349 = vector.extract_strided_slice %346 {offsets = [0, 256], sizes = [8, 128], strides = [1, 1]} : vector<8x384xf32> to vector<8x128xf32>
    %350 = vector.extract_strided_slice %340 {offsets = [0, 384], sizes = [8, 128], strides = [1, 1]} : vector<8x512xf32> to vector<8x128xf32>
    %351 = math.tanh %350 : vector<8x128xf32>
    %352 = arith.mulf %348, %293 : vector<8x128xf32>
    %353 = arith.mulf %347, %351 : vector<8x128xf32>
    %354 = arith.addf %352, %353 : vector<8x128xf32>
    %355 = math.tanh %354 : vector<8x128xf32>
    %356 = arith.mulf %349, %355 : vector<8x128xf32>
    %357 = arith.truncf %315 : vector<8x128xf32> to vector<8x128xbf16>
    %c0_125 = arith.constant 0 : index
    %c0_126 = arith.constant 0 : index
    %358 = vector.load %arg7[%c0_125, %c0_126] : memref<128x512xbf16, #tpu.memory_space<vmem>>, vector<128x512xbf16>
    %cst_127 = arith.constant dense<0.000000e+00> : vector<8x512xf32>
    %359 = tpu.matmul %357, %358, %cst_127 {dimension_numbers = #tpu.dot_dimension_numbers<[1], [0], [0], [1], [0, 0, 1, 1], [], []>} : vector<8x128xbf16>, vector<128x512xbf16>, vector<8x512xf32> -> vector<8x512xf32>
    %360 = arith.addf %359, %336 : vector<8x512xf32>
    %361 = vector.extract_strided_slice %360 {offsets = [0, 0], sizes = [8, 384], strides = [1, 1]} : vector<8x512xf32> to vector<8x384xf32>
    %362 = arith.negf %361 : vector<8x384xf32>
    %363 = math.exp %362 : vector<8x384xf32>
    %cst_128 = arith.constant 1.000000e+00 : f32
    %364 = vector.broadcast %cst_128 : f32 to vector<8x384xf32>
    %365 = arith.addf %364, %363 : vector<8x384xf32>
    %366 = arith.divf %364, %365 : vector<8x384xf32>
    %367 = vector.extract_strided_slice %366 {offsets = [0, 0], sizes = [8, 128], strides = [1, 1]} : vector<8x384xf32> to vector<8x128xf32>
    %368 = vector.extract_strided_slice %366 {offsets = [0, 128], sizes = [8, 128], strides = [1, 1]} : vector<8x384xf32> to vector<8x128xf32>
    %369 = vector.extract_strided_slice %366 {offsets = [0, 256], sizes = [8, 128], strides = [1, 1]} : vector<8x384xf32> to vector<8x128xf32>
    %370 = vector.extract_strided_slice %360 {offsets = [0, 384], sizes = [8, 128], strides = [1, 1]} : vector<8x512xf32> to vector<8x128xf32>
    %371 = math.tanh %370 : vector<8x128xf32>
    %372 = arith.mulf %368, %313 : vector<8x128xf32>
    %373 = arith.mulf %367, %371 : vector<8x128xf32>
    %374 = arith.addf %372, %373 : vector<8x128xf32>
    %375 = math.tanh %374 : vector<8x128xf32>
    %376 = arith.mulf %369, %375 : vector<8x128xf32>
    %377 = arith.truncf %356 : vector<8x128xf32> to vector<8x128xbf16>
    %378 = arith.index_cast %327 : i32 to index
    %c0_129 = arith.constant 0 : index
    %c0_130 = arith.constant 0 : index
    %379 = vector.load %arg9[%378, %c0_129, %c0_130] : memref<8x8x128xbf16, #tpu.memory_space<vmem>>, vector<1x8x128xbf16>
    %380 = vector.shape_cast %379 : vector<1x8x128xbf16> to vector<8x128xbf16>
    %381 = vector.shape_cast %377 : vector<8x128xbf16> to vector<1x8x128xbf16>
    tpu.vector_store %arg9[%378, %c0_129, %c0_130], %381 {strides = array<i32>} : memref<8x8x128xbf16, #tpu.memory_space<vmem>>, vector<1x8x128xbf16>,
    %382 = arith.truncf %376 : vector<8x128xf32> to vector<8x128xbf16>
    %383 = arith.index_cast %328 : i32 to index
    %c0_131 = arith.constant 0 : index
    %c0_132 = arith.constant 0 : index
    %384 = vector.load %arg10[%383, %c0_131, %c0_132] : memref<8x8x128xbf16, #tpu.memory_space<vmem>>, vector<1x8x128xbf16>
    %385 = vector.shape_cast %384 : vector<1x8x128xbf16> to vector<8x128xbf16>
    %386 = vector.shape_cast %382 : vector<8x128xbf16> to vector<1x8x128xbf16>
    tpu.vector_store %arg10[%383, %c0_131, %c0_132], %386 {strides = array<i32>} : memref<8x8x128xbf16, #tpu.memory_space<vmem>>, vector<1x8x128xbf16>,
    %c8_i32_133 = arith.constant 8 : i32
    %387 = arith.muli %c0_i32_25, %c8_i32_133 : i32
    %c6_i32 = arith.constant 6 : i32
    %388 = arith.addi %387, %c6_i32 : i32
    %c7_i32_134 = arith.constant 7 : i32
    %389 = arith.subi %c7_i32_134, %388 : i32
    %c8_i32_135 = arith.constant 8 : i32
    %390 = arith.muli %388, %c8_i32_135 : i32
    %391 = tpu.assume_multiple %390, 8 : i32
    %c8_i32_136 = arith.constant 8 : i32
    %392 = arith.muli %389, %c8_i32_136 : i32
    %393 = tpu.assume_multiple %392, 8 : i32
    %394 = arith.index_cast %391 : i32 to index
    %c0_137 = arith.constant 0 : index
    %395 = vector.load %arg11[%394, %c0_137] : memref<64x512xf32, #tpu.memory_space<vmem>>, vector<8x512xf32>
    %396 = arith.index_cast %393 : i32 to index
    %c0_138 = arith.constant 0 : index
    %397 = vector.load %arg12[%396, %c0_138] : memref<64x512xf32, #tpu.memory_space<vmem>>, vector<8x512xf32>
    %398 = arith.truncf %356 : vector<8x128xf32> to vector<8x128xbf16>
    %c0_139 = arith.constant 0 : index
    %c0_140 = arith.constant 0 : index
    %399 = vector.load %arg4[%c0_139, %c0_140] : memref<128x512xbf16, #tpu.memory_space<vmem>>, vector<128x512xbf16>
    %cst_141 = arith.constant dense<0.000000e+00> : vector<8x512xf32>
    %400 = tpu.matmul %398, %399, %cst_141 {dimension_numbers = #tpu.dot_dimension_numbers<[1], [0], [0], [1], [0, 0, 1, 1], [], []>} : vector<8x128xbf16>, vector<128x512xbf16>, vector<8x512xf32> -> vector<8x512xf32>
    %401 = arith.addf %400, %395 : vector<8x512xf32>
    %402 = vector.extract_strided_slice %401 {offsets = [0, 0], sizes = [8, 384], strides = [1, 1]} : vector<8x512xf32> to vector<8x384xf32>
    %403 = arith.negf %402 : vector<8x384xf32>
    %404 = math.exp %403 : vector<8x384xf32>
    %cst_142 = arith.constant 1.000000e+00 : f32
    %405 = vector.broadcast %cst_142 : f32 to vector<8x384xf32>
    %406 = arith.addf %405, %404 : vector<8x384xf32>
    %407 = arith.divf %405, %406 : vector<8x384xf32>
    %408 = vector.extract_strided_slice %407 {offsets = [0, 0], sizes = [8, 128], strides = [1, 1]} : vector<8x384xf32> to vector<8x128xf32>
    %409 = vector.extract_strided_slice %407 {offsets = [0, 128], sizes = [8, 128], strides = [1, 1]} : vector<8x384xf32> to vector<8x128xf32>
    %410 = vector.extract_strided_slice %407 {offsets = [0, 256], sizes = [8, 128], strides = [1, 1]} : vector<8x384xf32> to vector<8x128xf32>
    %411 = vector.extract_strided_slice %401 {offsets = [0, 384], sizes = [8, 128], strides = [1, 1]} : vector<8x512xf32> to vector<8x128xf32>
    %412 = math.tanh %411 : vector<8x128xf32>
    %413 = arith.mulf %409, %354 : vector<8x128xf32>
    %414 = arith.mulf %408, %412 : vector<8x128xf32>
    %415 = arith.addf %413, %414 : vector<8x128xf32>
    %416 = math.tanh %415 : vector<8x128xf32>
    %417 = arith.mulf %410, %416 : vector<8x128xf32>
    %418 = arith.truncf %376 : vector<8x128xf32> to vector<8x128xbf16>
    %c0_143 = arith.constant 0 : index
    %c0_144 = arith.constant 0 : index
    %419 = vector.load %arg7[%c0_143, %c0_144] : memref<128x512xbf16, #tpu.memory_space<vmem>>, vector<128x512xbf16>
    %cst_145 = arith.constant dense<0.000000e+00> : vector<8x512xf32>
    %420 = tpu.matmul %418, %419, %cst_145 {dimension_numbers = #tpu.dot_dimension_numbers<[1], [0], [0], [1], [0, 0, 1, 1], [], []>} : vector<8x128xbf16>, vector<128x512xbf16>, vector<8x512xf32> -> vector<8x512xf32>
    %421 = arith.addf %420, %397 : vector<8x512xf32>
    %422 = vector.extract_strided_slice %421 {offsets = [0, 0], sizes = [8, 384], strides = [1, 1]} : vector<8x512xf32> to vector<8x384xf32>
    %423 = arith.negf %422 : vector<8x384xf32>
    %424 = math.exp %423 : vector<8x384xf32>
    %cst_146 = arith.constant 1.000000e+00 : f32
    %425 = vector.broadcast %cst_146 : f32 to vector<8x384xf32>
    %426 = arith.addf %425, %424 : vector<8x384xf32>
    %427 = arith.divf %425, %426 : vector<8x384xf32>
    %428 = vector.extract_strided_slice %427 {offsets = [0, 0], sizes = [8, 128], strides = [1, 1]} : vector<8x384xf32> to vector<8x128xf32>
    %429 = vector.extract_strided_slice %427 {offsets = [0, 128], sizes = [8, 128], strides = [1, 1]} : vector<8x384xf32> to vector<8x128xf32>
    %430 = vector.extract_strided_slice %427 {offsets = [0, 256], sizes = [8, 128], strides = [1, 1]} : vector<8x384xf32> to vector<8x128xf32>
    %431 = vector.extract_strided_slice %421 {offsets = [0, 384], sizes = [8, 128], strides = [1, 1]} : vector<8x512xf32> to vector<8x128xf32>
    %432 = math.tanh %431 : vector<8x128xf32>
    %433 = arith.mulf %429, %374 : vector<8x128xf32>
    %434 = arith.mulf %428, %432 : vector<8x128xf32>
    %435 = arith.addf %433, %434 : vector<8x128xf32>
    %436 = math.tanh %435 : vector<8x128xf32>
    %437 = arith.mulf %430, %436 : vector<8x128xf32>
    %438 = arith.truncf %417 : vector<8x128xf32> to vector<8x128xbf16>
    %439 = arith.index_cast %388 : i32 to index
    %c0_147 = arith.constant 0 : index
    %c0_148 = arith.constant 0 : index
    %440 = vector.load %arg9[%439, %c0_147, %c0_148] : memref<8x8x128xbf16, #tpu.memory_space<vmem>>, vector<1x8x128xbf16>
    %441 = vector.shape_cast %440 : vector<1x8x128xbf16> to vector<8x128xbf16>
    %442 = vector.shape_cast %438 : vector<8x128xbf16> to vector<1x8x128xbf16>
    tpu.vector_store %arg9[%439, %c0_147, %c0_148], %442 {strides = array<i32>} : memref<8x8x128xbf16, #tpu.memory_space<vmem>>, vector<1x8x128xbf16>,
    %443 = arith.truncf %437 : vector<8x128xf32> to vector<8x128xbf16>
    %444 = arith.index_cast %389 : i32 to index
    %c0_149 = arith.constant 0 : index
    %c0_150 = arith.constant 0 : index
    %445 = vector.load %arg10[%444, %c0_149, %c0_150] : memref<8x8x128xbf16, #tpu.memory_space<vmem>>, vector<1x8x128xbf16>
    %446 = vector.shape_cast %445 : vector<1x8x128xbf16> to vector<8x128xbf16>
    %447 = vector.shape_cast %443 : vector<8x128xbf16> to vector<1x8x128xbf16>
    tpu.vector_store %arg10[%444, %c0_149, %c0_150], %447 {strides = array<i32>} : memref<8x8x128xbf16, #tpu.memory_space<vmem>>, vector<1x8x128xbf16>,
    %c8_i32_151 = arith.constant 8 : i32
    %448 = arith.muli %c0_i32_25, %c8_i32_151 : i32
    %c7_i32_152 = arith.constant 7 : i32
    %449 = arith.addi %448, %c7_i32_152 : i32
    %c7_i32_153 = arith.constant 7 : i32
    %450 = arith.subi %c7_i32_153, %449 : i32
    %c8_i32_154 = arith.constant 8 : i32
    %451 = arith.muli %449, %c8_i32_154 : i32
    %452 = tpu.assume_multiple %451, 8 : i32
    %c8_i32_155 = arith.constant 8 : i32
    %453 = arith.muli %450, %c8_i32_155 : i32
    %454 = tpu.assume_multiple %453, 8 : i32
    %455 = arith.index_cast %452 : i32 to index
    %c0_156 = arith.constant 0 : index
    %456 = vector.load %arg11[%455, %c0_156] : memref<64x512xf32, #tpu.memory_space<vmem>>, vector<8x512xf32>
    %457 = arith.index_cast %454 : i32 to index
    %c0_157 = arith.constant 0 : index
    %458 = vector.load %arg12[%457, %c0_157] : memref<64x512xf32, #tpu.memory_space<vmem>>, vector<8x512xf32>
    %459 = arith.truncf %417 : vector<8x128xf32> to vector<8x128xbf16>
    %c0_158 = arith.constant 0 : index
    %c0_159 = arith.constant 0 : index
    %460 = vector.load %arg4[%c0_158, %c0_159] : memref<128x512xbf16, #tpu.memory_space<vmem>>, vector<128x512xbf16>
    %cst_160 = arith.constant dense<0.000000e+00> : vector<8x512xf32>
    %461 = tpu.matmul %459, %460, %cst_160 {dimension_numbers = #tpu.dot_dimension_numbers<[1], [0], [0], [1], [0, 0, 1, 1], [], []>} : vector<8x128xbf16>, vector<128x512xbf16>, vector<8x512xf32> -> vector<8x512xf32>
    %462 = arith.addf %461, %456 : vector<8x512xf32>
    %463 = vector.extract_strided_slice %462 {offsets = [0, 0], sizes = [8, 384], strides = [1, 1]} : vector<8x512xf32> to vector<8x384xf32>
    %464 = arith.negf %463 : vector<8x384xf32>
    %465 = math.exp %464 : vector<8x384xf32>
    %cst_161 = arith.constant 1.000000e+00 : f32
    %466 = vector.broadcast %cst_161 : f32 to vector<8x384xf32>
    %467 = arith.addf %466, %465 : vector<8x384xf32>
    %468 = arith.divf %466, %467 : vector<8x384xf32>
    %469 = vector.extract_strided_slice %468 {offsets = [0, 0], sizes = [8, 128], strides = [1, 1]} : vector<8x384xf32> to vector<8x128xf32>
    %470 = vector.extract_strided_slice %468 {offsets = [0, 128], sizes = [8, 128], strides = [1, 1]} : vector<8x384xf32> to vector<8x128xf32>
    %471 = vector.extract_strided_slice %468 {offsets = [0, 256], sizes = [8, 128], strides = [1, 1]} : vector<8x384xf32> to vector<8x128xf32>
    %472 = vector.extract_strided_slice %462 {offsets = [0, 384], sizes = [8, 128], strides = [1, 1]} : vector<8x512xf32> to vector<8x128xf32>
    %473 = math.tanh %472 : vector<8x128xf32>
    %474 = arith.mulf %470, %415 : vector<8x128xf32>
    %475 = arith.mulf %469, %473 : vector<8x128xf32>
    %476 = arith.addf %474, %475 : vector<8x128xf32>
    %477 = math.tanh %476 : vector<8x128xf32>
    %478 = arith.mulf %471, %477 : vector<8x128xf32>
    %479 = arith.truncf %437 : vector<8x128xf32> to vector<8x128xbf16>
    %c0_162 = arith.constant 0 : index
    %c0_163 = arith.constant 0 : index
    %480 = vector.load %arg7[%c0_162, %c0_163] : memref<128x512xbf16, #tpu.memory_space<vmem>>, vector<128x512xbf16>
    %cst_164 = arith.constant dense<0.000000e+00> : vector<8x512xf32>
    %481 = tpu.matmul %479, %480, %cst_164 {dimension_numbers = #tpu.dot_dimension_numbers<[1], [0], [0], [1], [0, 0, 1, 1], [], []>} : vector<8x128xbf16>, vector<128x512xbf16>, vector<8x512xf32> -> vector<8x512xf32>
    %482 = arith.addf %481, %458 : vector<8x512xf32>
    %483 = vector.extract_strided_slice %482 {offsets = [0, 0], sizes = [8, 384], strides = [1, 1]} : vector<8x512xf32> to vector<8x384xf32>
    %484 = arith.negf %483 : vector<8x384xf32>
    %485 = math.exp %484 : vector<8x384xf32>
    %cst_165 = arith.constant 1.000000e+00 : f32
    %486 = vector.broadcast %cst_165 : f32 to vector<8x384xf32>
    %487 = arith.addf %486, %485 : vector<8x384xf32>
    %488 = arith.divf %486, %487 : vector<8x384xf32>
    %489 = vector.extract_strided_slice %488 {offsets = [0, 0], sizes = [8, 128], strides = [1, 1]} : vector<8x384xf32> to vector<8x128xf32>
    %490 = vector.extract_strided_slice %488 {offsets = [0, 128], sizes = [8, 128], strides = [1, 1]} : vector<8x384xf32> to vector<8x128xf32>
    %491 = vector.extract_strided_slice %488 {offsets = [0, 256], sizes = [8, 128], strides = [1, 1]} : vector<8x384xf32> to vector<8x128xf32>
    %492 = vector.extract_strided_slice %482 {offsets = [0, 384], sizes = [8, 128], strides = [1, 1]} : vector<8x512xf32> to vector<8x128xf32>
    %493 = math.tanh %492 : vector<8x128xf32>
    %494 = arith.mulf %490, %435 : vector<8x128xf32>
    %495 = arith.mulf %489, %493 : vector<8x128xf32>
    %496 = arith.addf %494, %495 : vector<8x128xf32>
    %497 = math.tanh %496 : vector<8x128xf32>
    %498 = arith.mulf %491, %497 : vector<8x128xf32>
    %499 = arith.truncf %478 : vector<8x128xf32> to vector<8x128xbf16>
    %500 = arith.index_cast %449 : i32 to index
    %c0_166 = arith.constant 0 : index
    %c0_167 = arith.constant 0 : index
    %501 = vector.load %arg9[%500, %c0_166, %c0_167] : memref<8x8x128xbf16, #tpu.memory_space<vmem>>, vector<1x8x128xbf16>
    %502 = vector.shape_cast %501 : vector<1x8x128xbf16> to vector<8x128xbf16>
    %503 = vector.shape_cast %499 : vector<8x128xbf16> to vector<1x8x128xbf16>
    tpu.vector_store %arg9[%500, %c0_166, %c0_167], %503 {strides = array<i32>} : memref<8x8x128xbf16, #tpu.memory_space<vmem>>, vector<1x8x128xbf16>,
    %504 = arith.truncf %498 : vector<8x128xf32> to vector<8x128xbf16>
    %505 = arith.index_cast %450 : i32 to index
    %c0_168 = arith.constant 0 : index
    %c0_169 = arith.constant 0 : index
    %506 = vector.load %arg10[%505, %c0_168, %c0_169] : memref<8x8x128xbf16, #tpu.memory_space<vmem>>, vector<1x8x128xbf16>
    %507 = vector.shape_cast %506 : vector<1x8x128xbf16> to vector<8x128xbf16>
    %508 = vector.shape_cast %504 : vector<8x128xbf16> to vector<1x8x128xbf16>
    tpu.vector_store %arg10[%505, %c0_168, %c0_169], %508 {strides = array<i32>} : memref<8x8x128xbf16, #tpu.memory_space<vmem>>, vector<1x8x128xbf16>,
    %c2_i32_170 = arith.constant 2 : i32
    %509 = arith.addi %c0_i32_25, %c2_i32_170 : i32
    %c0_i32_171 = arith.constant 0 : i32
    %510 = arith.minsi %509, %c0_i32_171 : i32
    %c64_i32 = arith.constant 64 : i32
    %511 = arith.muli %510, %c64_i32 : i32
    %512 = tpu.assume_multiple %511, 64 : i32
    %513 = arith.index_cast %512 : i32 to index
    %c0_172 = arith.constant 0 : index
    %514 = vector.load %arg1[%513, %c0_172] : memref<64x128xbf16, #tpu.memory_space<vmem>>, vector<64x128xbf16>
    %c0_173 = arith.constant 0 : index
    %c0_174 = arith.constant 0 : index
    %515 = vector.load %arg3[%c0_173, %c0_174] : memref<128x512xbf16, #tpu.memory_space<vmem>>, vector<128x512xbf16>
    %cst_175 = arith.constant dense<0.000000e+00> : vector<64x512xf32>
    %516 = tpu.matmul %514, %515, %cst_175 {dimension_numbers = #tpu.dot_dimension_numbers<[1], [0], [0], [1], [0, 0, 1, 1], [], []>} : vector<64x128xbf16>, vector<128x512xbf16>, vector<64x512xf32> -> vector<64x512xf32>
    %c0_176 = arith.constant 0 : index
    %c0_177 = arith.constant 0 : index
    %517 = vector.load %arg5[%c0_176, %c0_177] : memref<1x512xf32, #tpu.memory_space<vmem>>, vector<1x512xf32>
    %518 = vector.broadcast %517 : vector<1x512xf32> to vector<64x512xf32>
    %519 = arith.addf %516, %518 : vector<64x512xf32>
    %520 = arith.index_cast %512 : i32 to index
    %c0_178 = arith.constant 0 : index
    %521 = vector.load %arg11[%520, %c0_178] : memref<64x512xf32, #tpu.memory_space<vmem>>, vector<64x512xf32>
    tpu.vector_store %arg11[%520, %c0_178], %519 {strides = array<i32>} : memref<64x512xf32, #tpu.memory_space<vmem>>, vector<64x512xf32>,
    %c-2_i32 = arith.constant -2 : i32
    %522 = arith.subi %c-2_i32, %c0_i32_25 : i32
    %c0_i32_179 = arith.constant 0 : i32
    %523 = arith.maxsi %522, %c0_i32_179 : i32
    %c64_i32_180 = arith.constant 64 : i32
    %524 = arith.muli %523, %c64_i32_180 : i32
    %525 = tpu.assume_multiple %524, 64 : i32
    %526 = arith.index_cast %525 : i32 to index
    %c0_181 = arith.constant 0 : index
    %527 = vector.load %arg2[%526, %c0_181] : memref<64x128xbf16, #tpu.memory_space<vmem>>, vector<64x128xbf16>
    %c0_182 = arith.constant 0 : index
    %c0_183 = arith.constant 0 : index
    %528 = vector.load %arg6[%c0_182, %c0_183] : memref<128x512xbf16, #tpu.memory_space<vmem>>, vector<128x512xbf16>
    %cst_184 = arith.constant dense<0.000000e+00> : vector<64x512xf32>
    %529 = tpu.matmul %527, %528, %cst_184 {dimension_numbers = #tpu.dot_dimension_numbers<[1], [0], [0], [1], [0, 0, 1, 1], [], []>} : vector<64x128xbf16>, vector<128x512xbf16>, vector<64x512xf32> -> vector<64x512xf32>
    %c0_185 = arith.constant 0 : index
    %c0_186 = arith.constant 0 : index
    %530 = vector.load %arg8[%c0_185, %c0_186] : memref<1x512xf32, #tpu.memory_space<vmem>>, vector<1x512xf32>
    %531 = vector.broadcast %530 : vector<1x512xf32> to vector<64x512xf32>
    %532 = arith.addf %529, %531 : vector<64x512xf32>
    %533 = arith.index_cast %525 : i32 to index
    %c0_187 = arith.constant 0 : index
    %534 = vector.load %arg12[%533, %c0_187] : memref<64x512xf32, #tpu.memory_space<vmem>>, vector<64x512xf32>
    tpu.vector_store %arg12[%533, %c0_187], %532 {strides = array<i32>} : memref<64x512xf32, #tpu.memory_space<vmem>>, vector<64x512xf32>,
    %c1_i32_188 = arith.constant 1 : i32
    %c0_189 = arith.constant 0 : index
    %c0_190 = arith.constant 0 : index
    %535 = vector.load %arg13[%c0_189, %c0_190] : memref<8x128xf32, #tpu.memory_space<vmem>>, vector<8x128xf32>
    tpu.vector_store %arg13[%c0_189, %c0_190], %478 {strides = array<i32>} : memref<8x128xf32, #tpu.memory_space<vmem>>, vector<8x128xf32>,
    %c0_191 = arith.constant 0 : index
    %c0_192 = arith.constant 0 : index
    %536 = vector.load %arg14[%c0_191, %c0_192] : memref<8x128xf32, #tpu.memory_space<vmem>>, vector<8x128xf32>
    tpu.vector_store %arg14[%c0_191, %c0_192], %476 {strides = array<i32>} : memref<8x128xf32, #tpu.memory_space<vmem>>, vector<8x128xf32>,
    %c0_193 = arith.constant 0 : index
    %c0_194 = arith.constant 0 : index
    %537 = vector.load %arg15[%c0_193, %c0_194] : memref<8x128xf32, #tpu.memory_space<vmem>>, vector<8x128xf32>
    tpu.vector_store %arg15[%c0_193, %c0_194], %498 {strides = array<i32>} : memref<8x128xf32, #tpu.memory_space<vmem>>, vector<8x128xf32>,
    %c0_195 = arith.constant 0 : index
    %c0_196 = arith.constant 0 : index
    %538 = vector.load %arg16[%c0_195, %c0_196] : memref<8x128xf32, #tpu.memory_space<vmem>>, vector<8x128xf32>
    tpu.vector_store %arg16[%c0_195, %c0_196], %496 {strides = array<i32>} : memref<8x128xf32, #tpu.memory_space<vmem>>, vector<8x128xf32>,
    return
  }
  func.func @transform_0(%arg0: i32) -> (i32, i32) {
    %c0_i32 = arith.constant 0 : i32
    %c0_i32_0 = arith.constant 0 : i32
    return %arg0, %c0_i32 : i32, i32
  }
  func.func @transform_1(%arg0: i32) -> (i32, i32) {
    %c0_i32 = arith.constant 0 : i32
    %0 = arith.subi %c0_i32, %arg0 : i32
    %c0_i32_0 = arith.constant 0 : i32
    %c0_i32_1 = arith.constant 0 : i32
    return %0, %c0_i32_0 : i32, i32
  }
  func.func @transform_2(%arg0: i32) -> (i32, i32) {
    %c0_i32 = arith.constant 0 : i32
    %c0_i32_0 = arith.constant 0 : i32
    %c0_i32_1 = arith.constant 0 : i32
    return %c0_i32, %c0_i32_0 : i32, i32
  }
  func.func @transform_3(%arg0: i32) -> (i32, i32) {
    %c0_i32 = arith.constant 0 : i32
    %c0_i32_0 = arith.constant 0 : i32
    %c0_i32_1 = arith.constant 0 : i32
    return %c0_i32, %c0_i32_0 : i32, i32
  }
  func.func @transform_4(%arg0: i32) -> (i32, i32) {
    %c0_i32 = arith.constant 0 : i32
    %c0_i32_0 = arith.constant 0 : i32
    %c0_i32_1 = arith.constant 0 : i32
    return %c0_i32, %c0_i32_0 : i32, i32
  }
  func.func @transform_5(%arg0: i32) -> (i32, i32) {
    %c0_i32 = arith.constant 0 : i32
    %c0_i32_0 = arith.constant 0 : i32
    %c0_i32_1 = arith.constant 0 : i32
    return %c0_i32, %c0_i32_0 : i32, i32
  }
  func.func @transform_6(%arg0: i32) -> (i32, i32) {
    %c0_i32 = arith.constant 0 : i32
    %c0_i32_0 = arith.constant 0 : i32
    %c0_i32_1 = arith.constant 0 : i32
    return %c0_i32, %c0_i32_0 : i32, i32
  }
  func.func @transform_7(%arg0: i32) -> (i32, i32) {
    %c0_i32 = arith.constant 0 : i32
    %c0_i32_0 = arith.constant 0 : i32
    %c0_i32_1 = arith.constant 0 : i32
    return %c0_i32, %c0_i32_0 : i32, i32
  }
  func.func @transform_8(%arg0: i32) -> (i32, i32, i32) {
    %c0_i32 = arith.constant 0 : i32
    %c0_i32_0 = arith.constant 0 : i32
    %c0_i32_1 = arith.constant 0 : i32
    return %arg0, %c0_i32, %c0_i32_0 : i32, i32, i32
  }
  func.func @transform_9(%arg0: i32) -> (i32, i32, i32) {
    %c0_i32 = arith.constant 0 : i32
    %0 = arith.subi %c0_i32, %arg0 : i32
    %c0_i32_0 = arith.constant 0 : i32
    %c0_i32_1 = arith.constant 0 : i32
    %c0_i32_2 = arith.constant 0 : i32
    return %0, %c0_i32_0, %c0_i32_1 : i32, i32, i32
  }
}

module attributes {stable_mosaic.version = 11 : i64} {
  func.func @_bilstm_kernel(%arg0: i32, %arg1: memref<64x128xbf16, #tpu.memory_space<vmem>>, %arg2: memref<64x128xbf16, #tpu.memory_space<vmem>>, %arg3: memref<128x512xbf16, #tpu.memory_space<vmem>>, %arg4: memref<128x512xbf16, #tpu.memory_space<vmem>>, %arg5: memref<1x512xf32, #tpu.memory_space<vmem>>, %arg6: memref<128x512xbf16, #tpu.memory_space<vmem>>, %arg7: memref<128x512xbf16, #tpu.memory_space<vmem>>, %arg8: memref<1x512xf32, #tpu.memory_space<vmem>>, %arg9: memref<8x8x128xbf16, #tpu.memory_space<vmem>>, %arg10: memref<8x8x128xbf16, #tpu.memory_space<vmem>>, %arg11: memref<64x512xf32, #tpu.memory_space<vmem>>, %arg12: memref<64x512xf32, #tpu.memory_space<vmem>>, %arg13: memref<8x128xf32, #tpu.memory_space<vmem>>, %arg14: memref<8x128xf32, #tpu.memory_space<vmem>>, %arg15: memref<8x128xf32, #tpu.memory_space<vmem>>, %arg16: memref<8x128xf32, #tpu.memory_space<vmem>>) attributes {dimension_semantics = [#tpu.dimension_semantics<arbitrary>], iteration_bounds = array<i64: 1>, scalar_prefetch = 0 : i64, scratch_operands = 6 : i64, tpu.core_type = #tpu.core_type<tc>, window_params = [{transform_indices = @transform_0, window_bounds = array<i64: 64, 128>}, {transform_indices = @transform_1, window_bounds = array<i64: 64, 128>}, {pipeline_mode = #tpu.pipeline_mode<synchronous>, transform_indices = @transform_2, window_bounds = array<i64: 128, 512>}, {pipeline_mode = #tpu.pipeline_mode<synchronous>, transform_indices = @transform_3, window_bounds = array<i64: 128, 512>}, {pipeline_mode = #tpu.pipeline_mode<synchronous>, transform_indices = @transform_4, window_bounds = array<i64: 1, 512>}, {pipeline_mode = #tpu.pipeline_mode<synchronous>, transform_indices = @transform_5, window_bounds = array<i64: 128, 512>}, {pipeline_mode = #tpu.pipeline_mode<synchronous>, transform_indices = @transform_6, window_bounds = array<i64: 128, 512>}, {pipeline_mode = #tpu.pipeline_mode<synchronous>, transform_indices = @transform_7, window_bounds = array<i64: 1, 512>}, {transform_indices = @transform_8, window_bounds = array<i64: 8, 8, 128>}, {transform_indices = @transform_9, window_bounds = array<i64: 8, 8, 128>}]} {
    %c0_i32 = arith.constant 0 : i32
    %0 = arith.cmpi eq, %arg0, %c0_i32 : i32
    %1 = arith.extui %0 : i1 to i32
    %c0_i32_0 = arith.constant 0 : i32
    %2 = arith.cmpi ne, %1, %c0_i32_0 : i32
    scf.if %2 {
      %cst_197 = arith.constant 0.000000e+00 : f32
      %539 = vector.broadcast %cst_197 : f32 to vector<8x128xf32>
      %c0_198 = arith.constant 0 : index
      %c0_199 = arith.constant 0 : index
      %540 = vector.load %arg13[%c0_198, %c0_199] : memref<8x128xf32, #tpu.memory_space<vmem>>, vector<8x128xf32>
      tpu.vector_store %arg13[%c0_198, %c0_199], %539 {strides = array<i32>} : memref<8x128xf32, #tpu.memory_space<vmem>>, vector<8x128xf32>,
      %cst_200 = arith.constant 0.000000e+00 : f32
      %541 = vector.broadcast %cst_200 : f32 to vector<8x128xf32>
      %c0_201 = arith.constant 0 : index
      %c0_202 = arith.constant 0 : index
      %542 = vector.load %arg14[%c0_201, %c0_202] : memref<8x128xf32, #tpu.memory_space<vmem>>, vector<8x128xf32>
      tpu.vector_store %arg14[%c0_201, %c0_202], %541 {strides = array<i32>} : memref<8x128xf32, #tpu.memory_space<vmem>>, vector<8x128xf32>,
      %cst_203 = arith.constant 0.000000e+00 : f32
      %543 = vector.broadcast %cst_203 : f32 to vector<8x128xf32>
      %c0_204 = arith.constant 0 : index
      %c0_205 = arith.constant 0 : index
      %544 = vector.load %arg15[%c0_204, %c0_205] : memref<8x128xf32, #tpu.memory_space<vmem>>, vector<8x128xf32>
      tpu.vector_store %arg15[%c0_204, %c0_205], %543 {strides = array<i32>} : memref<8x128xf32, #tpu.memory_space<vmem>>, vector<8x128xf32>,
      %cst_206 = arith.constant 0.000000e+00 : f32
      %545 = vector.broadcast %cst_206 : f32 to vector<8x128xf32>
      %c0_207 = arith.constant 0 : index
      %c0_208 = arith.constant 0 : index
      %546 = vector.load %arg16[%c0_207, %c0_208] : memref<8x128xf32, #tpu.memory_space<vmem>>, vector<8x128xf32>
      tpu.vector_store %arg16[%c0_207, %c0_208], %545 {strides = array<i32>} : memref<8x128xf32, #tpu.memory_space<vmem>>, vector<8x128xf32>,
    } else {
    }
    %c0 = arith.constant 0 : index
    %c0_1 = arith.constant 0 : index
    %3 = vector.load %arg1[%c0, %c0_1] : memref<64x128xbf16, #tpu.memory_space<vmem>>, vector<64x128xbf16>
    %c0_2 = arith.constant 0 : index
    %c0_3 = arith.constant 0 : index
    %4 = vector.load %arg3[%c0_2, %c0_3] : memref<128x512xbf16, #tpu.memory_space<vmem>>, vector<128x512xbf16>
    %cst = arith.constant dense<0.000000e+00> : vector<64x512xf32>
    %5 = tpu.matmul %3, %4, %cst {dimension_numbers = #tpu.dot_dimension_numbers<[1], [0], [0], [1], [0, 0, 1, 1], [], []>} : vector<64x128xbf16>, vector<128x512xbf16>, vector<64x512xf32> -> vector<64x512xf32>
    %c0_4 = arith.constant 0 : index
    %c0_5 = arith.constant 0 : index
    %6 = vector.load %arg5[%c0_4, %c0_5] : memref<1x512xf32, #tpu.memory_space<vmem>>, vector<1x512xf32>
    %7 = vector.broadcast %6 : vector<1x512xf32> to vector<64x512xf32>
    %8 = arith.addf %5, %7 : vector<64x512xf32>
    %c0_6 = arith.constant 0 : index
    %c0_7 = arith.constant 0 : index
    %9 = vector.load %arg11[%c0_6, %c0_7] : memref<64x512xf32, #tpu.memory_space<vmem>>, vector<64x512xf32>
    tpu.vector_store %arg11[%c0_6, %c0_7], %8 {strides = array<i32>} : memref<64x512xf32, #tpu.memory_space<vmem>>, vector<64x512xf32>,
    %c0_8 = arith.constant 0 : index
    %c0_9 = arith.constant 0 : index
    %10 = vector.load %arg2[%c0_8, %c0_9] : memref<64x128xbf16, #tpu.memory_space<vmem>>, vector<64x128xbf16>
    %c0_10 = arith.constant 0 : index
    %c0_11 = arith.constant 0 : index
    %11 = vector.load %arg6[%c0_10, %c0_11] : memref<128x512xbf16, #tpu.memory_space<vmem>>, vector<128x512xbf16>
    %cst_12 = arith.constant dense<0.000000e+00> : vector<64x512xf32>
    %12 = tpu.matmul %10, %11, %cst_12 {dimension_numbers = #tpu.dot_dimension_numbers<[1], [0], [0], [1], [0, 0, 1, 1], [], []>} : vector<64x128xbf16>, vector<128x512xbf16>, vector<64x512xf32> -> vector<64x512xf32>
    %c0_13 = arith.constant 0 : index
    %c0_14 = arith.constant 0 : index
    %13 = vector.load %arg8[%c0_13, %c0_14] : memref<1x512xf32, #tpu.memory_space<vmem>>, vector<1x512xf32>
    %14 = vector.broadcast %13 : vector<1x512xf32> to vector<64x512xf32>
    %15 = arith.addf %12, %14 : vector<64x512xf32>
    %c0_15 = arith.constant 0 : index
    %c0_16 = arith.constant 0 : index
    %16 = vector.load %arg12[%c0_15, %c0_16] : memref<64x512xf32, #tpu.memory_space<vmem>>, vector<64x512xf32>
    tpu.vector_store %arg12[%c0_15, %c0_16], %15 {strides = array<i32>} : memref<64x512xf32, #tpu.memory_space<vmem>>, vector<64x512xf32>,
    %c0_17 = arith.constant 0 : index
    %c0_18 = arith.constant 0 : index
    %17 = vector.load %arg13[%c0_17, %c0_18] : memref<8x128xf32, #tpu.memory_space<vmem>>, vector<8x128xf32>
    %c0_19 = arith.constant 0 : index
    %c0_20 = arith.constant 0 : index
    %18 = vector.load %arg14[%c0_19, %c0_20] : memref<8x128xf32, #tpu.memory_space<vmem>>, vector<8x128xf32>
    %c0_21 = arith.constant 0 : index
    %c0_22 = arith.constant 0 : index
    %19 = vector.load %arg15[%c0_21, %c0_22] : memref<8x128xf32, #tpu.memory_space<vmem>>, vector<8x128xf32>
    %c0_23 = arith.constant 0 : index
    %c0_24 = arith.constant 0 : index
    %20 = vector.load %arg16[%c0_23, %c0_24] : memref<8x128xf32, #tpu.memory_space<vmem>>, vector<8x128xf32>
    %c0_i32_25 = arith.constant 0 : i32
    %c8_i32 = arith.constant 8 : i32
    %21 = arith.muli %c0_i32_25, %c8_i32 : i32
    %c0_i32_26 = arith.constant 0 : i32
    %22 = arith.addi %21, %c0_i32_26 : i32
    %c7_i32 = arith.constant 7 : i32
    %23 = arith.subi %c7_i32, %22 : i32
    %c8_i32_27 = arith.constant 8 : i32
    %24 = arith.muli %22, %c8_i32_27 : i32
    %25 = tpu.assume_multiple %24, 8 : i32
    %c8_i32_28 = arith.constant 8 : i32
    %26 = arith.muli %23, %c8_i32_28 : i32
    %27 = tpu.assume_multiple %26, 8 : i32
    %28 = arith.index_cast %25 : i32 to index
    %c0_29 = arith.constant 0 : index
    %29 = vector.load %arg11[%28, %c0_29] : memref<64x512xf32, #tpu.memory_space<vmem>>, vector<8x512xf32>
    %30 = arith.index_cast %27 : i32 to index
    %c0_30 = arith.constant 0 : index
    %31 = vector.load %arg12[%30, %c0_30] : memref<64x512xf32, #tpu.memory_space<vmem>>, vector<8x512xf32>
    %32 = arith.truncf %17 : vector<8x128xf32> to vector<8x128xbf16>
    %c0_31 = arith.constant 0 : index
    %c0_32 = arith.constant 0 : index
    %33 = vector.load %arg4[%c0_31, %c0_32] : memref<128x512xbf16, #tpu.memory_space<vmem>>, vector<128x512xbf16>
    %cst_33 = arith.constant dense<0.000000e+00> : vector<8x512xf32>
    %34 = tpu.matmul %32, %33, %cst_33 {dimension_numbers = #tpu.dot_dimension_numbers<[1], [0], [0], [1], [0, 0, 1, 1], [], []>} : vector<8x128xbf16>, vector<128x512xbf16>, vector<8x512xf32> -> vector<8x512xf32>
    %35 = arith.addf %34, %29 : vector<8x512xf32>
    %36 = vector.extract_strided_slice %35 {offsets = [0, 0], sizes = [8, 384], strides = [1, 1]} : vector<8x512xf32> to vector<8x384xf32>
    %37 = arith.negf %36 : vector<8x384xf32>
    %38 = math.exp %37 : vector<8x384xf32>
    %cst_34 = arith.constant 1.000000e+00 : f32
    %39 = vector.broadcast %cst_34 : f32 to vector<8x384xf32>
    %40 = arith.addf %39, %38 : vector<8x384xf32>
    %41 = arith.divf %39, %40 : vector<8x384xf32>
    %42 = vector.extract_strided_slice %41 {offsets = [0, 0], sizes = [8, 128], strides = [1, 1]} : vector<8x384xf32> to vector<8x128xf32>
    %43 = vector.extract_strided_slice %41 {offsets = [0, 128], sizes = [8, 128], strides = [1, 1]} : vector<8x384xf32> to vector<8x128xf32>
    %44 = vector.extract_strided_slice %41 {offsets = [0, 256], sizes = [8, 128], strides = [1, 1]} : vector<8x384xf32> to vector<8x128xf32>
    %45 = vector.extract_strided_slice %35 {offsets = [0, 384], sizes = [8, 128], strides = [1, 1]} : vector<8x512xf32> to vector<8x128xf32>
    %46 = math.tanh %45 : vector<8x128xf32>
    %47 = arith.mulf %43, %18 : vector<8x128xf32>
    %48 = arith.mulf %42, %46 : vector<8x128xf32>
    %49 = arith.addf %47, %48 : vector<8x128xf32>
    %50 = math.tanh %49 : vector<8x128xf32>
    %51 = arith.mulf %44, %50 : vector<8x128xf32>
    %52 = arith.truncf %19 : vector<8x128xf32> to vector<8x128xbf16>
    %c0_35 = arith.constant 0 : index
    %c0_36 = arith.constant 0 : index
    %53 = vector.load %arg7[%c0_35, %c0_36] : memref<128x512xbf16, #tpu.memory_space<vmem>>, vector<128x512xbf16>
    %cst_37 = arith.constant dense<0.000000e+00> : vector<8x512xf32>
    %54 = tpu.matmul %52, %53, %cst_37 {dimension_numbers = #tpu.dot_dimension_numbers<[1], [0], [0], [1], [0, 0, 1, 1], [], []>} : vector<8x128xbf16>, vector<128x512xbf16>, vector<8x512xf32> -> vector<8x512xf32>
    %55 = arith.addf %54, %31 : vector<8x512xf32>
    %56 = vector.extract_strided_slice %55 {offsets = [0, 0], sizes = [8, 384], strides = [1, 1]} : vector<8x512xf32> to vector<8x384xf32>
    %57 = arith.negf %56 : vector<8x384xf32>
    %58 = math.exp %57 : vector<8x384xf32>
    %cst_38 = arith.constant 1.000000e+00 : f32
    %59 = vector.broadcast %cst_38 : f32 to vector<8x384xf32>
    %60 = arith.addf %59, %58 : vector<8x384xf32>
    %61 = arith.divf %59, %60 : vector<8x384xf32>
    %62 = vector.extract_strided_slice %61 {offsets = [0, 0], sizes = [8, 128], strides = [1, 1]} : vector<8x384xf32> to vector<8x128xf32>
    %63 = vector.extract_strided_slice %61 {offsets = [0, 128], sizes = [8, 128], strides = [1, 1]} : vector<8x384xf32> to vector<8x128xf32>
    %64 = vector.extract_strided_slice %61 {offsets = [0, 256], sizes = [8, 128], strides = [1, 1]} : vector<8x384xf32> to vector<8x128xf32>
    %65 = vector.extract_strided_slice %55 {offsets = [0, 384], sizes = [8, 128], strides = [1, 1]} : vector<8x512xf32> to vector<8x128xf32>
    %66 = math.tanh %65 : vector<8x128xf32>
    %67 = arith.mulf %63, %20 : vector<8x128xf32>
    %68 = arith.mulf %62, %66 : vector<8x128xf32>
    %69 = arith.addf %67, %68 : vector<8x128xf32>
    %70 = math.tanh %69 : vector<8x128xf32>
    %71 = arith.mulf %64, %70 : vector<8x128xf32>
    %72 = arith.truncf %51 : vector<8x128xf32> to vector<8x128xbf16>
    %73 = arith.index_cast %22 : i32 to index
    %c0_39 = arith.constant 0 : index
    %c0_40 = arith.constant 0 : index
    %74 = vector.load %arg9[%73, %c0_39, %c0_40] : memref<8x8x128xbf16, #tpu.memory_space<vmem>>, vector<1x8x128xbf16>
    %75 = vector.shape_cast %74 : vector<1x8x128xbf16> to vector<8x128xbf16>
    %76 = vector.shape_cast %72 : vector<8x128xbf16> to vector<1x8x128xbf16>
    tpu.vector_store %arg9[%73, %c0_39, %c0_40], %76 {strides = array<i32>} : memref<8x8x128xbf16, #tpu.memory_space<vmem>>, vector<1x8x128xbf16>,
    %77 = arith.truncf %71 : vector<8x128xf32> to vector<8x128xbf16>
    %78 = arith.index_cast %23 : i32 to index
    %c0_41 = arith.constant 0 : index
    %c0_42 = arith.constant 0 : index
    %79 = vector.load %arg10[%78, %c0_41, %c0_42] : memref<8x8x128xbf16, #tpu.memory_space<vmem>>, vector<1x8x128xbf16>
    %80 = vector.shape_cast %79 : vector<1x8x128xbf16> to vector<8x128xbf16>
    %81 = vector.shape_cast %77 : vector<8x128xbf16> to vector<1x8x128xbf16>
    tpu.vector_store %arg10[%78, %c0_41, %c0_42], %81 {strides = array<i32>} : memref<8x8x128xbf16, #tpu.memory_space<vmem>>, vector<1x8x128xbf16>,
    %c8_i32_43 = arith.constant 8 : i32
    %82 = arith.muli %c0_i32_25, %c8_i32_43 : i32
    %c1_i32 = arith.constant 1 : i32
    %83 = arith.addi %82, %c1_i32 : i32
    %c7_i32_44 = arith.constant 7 : i32
    %84 = arith.subi %c7_i32_44, %83 : i32
    %c8_i32_45 = arith.constant 8 : i32
    %85 = arith.muli %83, %c8_i32_45 : i32
    %86 = tpu.assume_multiple %85, 8 : i32
    %c8_i32_46 = arith.constant 8 : i32
    %87 = arith.muli %84, %c8_i32_46 : i32
    %88 = tpu.assume_multiple %87, 8 : i32
    %89 = arith.index_cast %86 : i32 to index
    %c0_47 = arith.constant 0 : index
    %90 = vector.load %arg11[%89, %c0_47] : memref<64x512xf32, #tpu.memory_space<vmem>>, vector<8x512xf32>
    %91 = arith.index_cast %88 : i32 to index
    %c0_48 = arith.constant 0 : index
    %92 = vector.load %arg12[%91, %c0_48] : memref<64x512xf32, #tpu.memory_space<vmem>>, vector<8x512xf32>
    %93 = arith.truncf %51 : vector<8x128xf32> to vector<8x128xbf16>
    %c0_49 = arith.constant 0 : index
    %c0_50 = arith.constant 0 : index
    %94 = vector.load %arg4[%c0_49, %c0_50] : memref<128x512xbf16, #tpu.memory_space<vmem>>, vector<128x512xbf16>
    %cst_51 = arith.constant dense<0.000000e+00> : vector<8x512xf32>
    %95 = tpu.matmul %93, %94, %cst_51 {dimension_numbers = #tpu.dot_dimension_numbers<[1], [0], [0], [1], [0, 0, 1, 1], [], []>} : vector<8x128xbf16>, vector<128x512xbf16>, vector<8x512xf32> -> vector<8x512xf32>
    %96 = arith.addf %95, %90 : vector<8x512xf32>
    %97 = vector.extract_strided_slice %96 {offsets = [0, 0], sizes = [8, 384], strides = [1, 1]} : vector<8x512xf32> to vector<8x384xf32>
    %98 = arith.negf %97 : vector<8x384xf32>
    %99 = math.exp %98 : vector<8x384xf32>
    %cst_52 = arith.constant 1.000000e+00 : f32
    %100 = vector.broadcast %cst_52 : f32 to vector<8x384xf32>
    %101 = arith.addf %100, %99 : vector<8x384xf32>
    %102 = arith.divf %100, %101 : vector<8x384xf32>
    %103 = vector.extract_strided_slice %102 {offsets = [0, 0], sizes = [8, 128], strides = [1, 1]} : vector<8x384xf32> to vector<8x128xf32>
    %104 = vector.extract_strided_slice %102 {offsets = [0, 128], sizes = [8, 128], strides = [1, 1]} : vector<8x384xf32> to vector<8x128xf32>
    %105 = vector.extract_strided_slice %102 {offsets = [0, 256], sizes = [8, 128], strides = [1, 1]} : vector<8x384xf32> to vector<8x128xf32>
    %106 = vector.extract_strided_slice %96 {offsets = [0, 384], sizes = [8, 128], strides = [1, 1]} : vector<8x512xf32> to vector<8x128xf32>
    %107 = math.tanh %106 : vector<8x128xf32>
    %108 = arith.mulf %104, %49 : vector<8x128xf32>
    %109 = arith.mulf %103, %107 : vector<8x128xf32>
    %110 = arith.addf %108, %109 : vector<8x128xf32>
    %111 = math.tanh %110 : vector<8x128xf32>
    %112 = arith.mulf %105, %111 : vector<8x128xf32>
    %113 = arith.truncf %71 : vector<8x128xf32> to vector<8x128xbf16>
    %c0_53 = arith.constant 0 : index
    %c0_54 = arith.constant 0 : index
    %114 = vector.load %arg7[%c0_53, %c0_54] : memref<128x512xbf16, #tpu.memory_space<vmem>>, vector<128x512xbf16>
    %cst_55 = arith.constant dense<0.000000e+00> : vector<8x512xf32>
    %115 = tpu.matmul %113, %114, %cst_55 {dimension_numbers = #tpu.dot_dimension_numbers<[1], [0], [0], [1], [0, 0, 1, 1], [], []>} : vector<8x128xbf16>, vector<128x512xbf16>, vector<8x512xf32> -> vector<8x512xf32>
    %116 = arith.addf %115, %92 : vector<8x512xf32>
    %117 = vector.extract_strided_slice %116 {offsets = [0, 0], sizes = [8, 384], strides = [1, 1]} : vector<8x512xf32> to vector<8x384xf32>
    %118 = arith.negf %117 : vector<8x384xf32>
    %119 = math.exp %118 : vector<8x384xf32>
    %cst_56 = arith.constant 1.000000e+00 : f32
    %120 = vector.broadcast %cst_56 : f32 to vector<8x384xf32>
    %121 = arith.addf %120, %119 : vector<8x384xf32>
    %122 = arith.divf %120, %121 : vector<8x384xf32>
    %123 = vector.extract_strided_slice %122 {offsets = [0, 0], sizes = [8, 128], strides = [1, 1]} : vector<8x384xf32> to vector<8x128xf32>
    %124 = vector.extract_strided_slice %122 {offsets = [0, 128], sizes = [8, 128], strides = [1, 1]} : vector<8x384xf32> to vector<8x128xf32>
    %125 = vector.extract_strided_slice %122 {offsets = [0, 256], sizes = [8, 128], strides = [1, 1]} : vector<8x384xf32> to vector<8x128xf32>
    %126 = vector.extract_strided_slice %116 {offsets = [0, 384], sizes = [8, 128], strides = [1, 1]} : vector<8x512xf32> to vector<8x128xf32>
    %127 = math.tanh %126 : vector<8x128xf32>
    %128 = arith.mulf %124, %69 : vector<8x128xf32>
    %129 = arith.mulf %123, %127 : vector<8x128xf32>
    %130 = arith.addf %128, %129 : vector<8x128xf32>
    %131 = math.tanh %130 : vector<8x128xf32>
    %132 = arith.mulf %125, %131 : vector<8x128xf32>
    %133 = arith.truncf %112 : vector<8x128xf32> to vector<8x128xbf16>
    %134 = arith.index_cast %83 : i32 to index
    %c0_57 = arith.constant 0 : index
    %c0_58 = arith.constant 0 : index
    %135 = vector.load %arg9[%134, %c0_57, %c0_58] : memref<8x8x128xbf16, #tpu.memory_space<vmem>>, vector<1x8x128xbf16>
    %136 = vector.shape_cast %135 : vector<1x8x128xbf16> to vector<8x128xbf16>
    %137 = vector.shape_cast %133 : vector<8x128xbf16> to vector<1x8x128xbf16>
    tpu.vector_store %arg9[%134, %c0_57, %c0_58], %137 {strides = array<i32>} : memref<8x8x128xbf16, #tpu.memory_space<vmem>>, vector<1x8x128xbf16>,
    %138 = arith.truncf %132 : vector<8x128xf32> to vector<8x128xbf16>
    %139 = arith.index_cast %84 : i32 to index
    %c0_59 = arith.constant 0 : index
    %c0_60 = arith.constant 0 : index
    %140 = vector.load %arg10[%139, %c0_59, %c0_60] : memref<8x8x128xbf16, #tpu.memory_space<vmem>>, vector<1x8x128xbf16>
    %141 = vector.shape_cast %140 : vector<1x8x128xbf16> to vector<8x128xbf16>
    %142 = vector.shape_cast %138 : vector<8x128xbf16> to vector<1x8x128xbf16>
    tpu.vector_store %arg10[%139, %c0_59, %c0_60], %142 {strides = array<i32>} : memref<8x8x128xbf16, #tpu.memory_space<vmem>>, vector<1x8x128xbf16>,
    %c8_i32_61 = arith.constant 8 : i32
    %143 = arith.muli %c0_i32_25, %c8_i32_61 : i32
    %c2_i32 = arith.constant 2 : i32
    %144 = arith.addi %143, %c2_i32 : i32
    %c7_i32_62 = arith.constant 7 : i32
    %145 = arith.subi %c7_i32_62, %144 : i32
    %c8_i32_63 = arith.constant 8 : i32
    %146 = arith.muli %144, %c8_i32_63 : i32
    %147 = tpu.assume_multiple %146, 8 : i32
    %c8_i32_64 = arith.constant 8 : i32
    %148 = arith.muli %145, %c8_i32_64 : i32
    %149 = tpu.assume_multiple %148, 8 : i32
    %150 = arith.index_cast %147 : i32 to index
    %c0_65 = arith.constant 0 : index
    %151 = vector.load %arg11[%150, %c0_65] : memref<64x512xf32, #tpu.memory_space<vmem>>, vector<8x512xf32>
    %152 = arith.index_cast %149 : i32 to index
    %c0_66 = arith.constant 0 : index
    %153 = vector.load %arg12[%152, %c0_66] : memref<64x512xf32, #tpu.memory_space<vmem>>, vector<8x512xf32>
    %154 = arith.truncf %112 : vector<8x128xf32> to vector<8x128xbf16>
    %c0_67 = arith.constant 0 : index
    %c0_68 = arith.constant 0 : index
    %155 = vector.load %arg4[%c0_67, %c0_68] : memref<128x512xbf16, #tpu.memory_space<vmem>>, vector<128x512xbf16>
    %cst_69 = arith.constant dense<0.000000e+00> : vector<8x512xf32>
    %156 = tpu.matmul %154, %155, %cst_69 {dimension_numbers = #tpu.dot_dimension_numbers<[1], [0], [0], [1], [0, 0, 1, 1], [], []>} : vector<8x128xbf16>, vector<128x512xbf16>, vector<8x512xf32> -> vector<8x512xf32>
    %157 = arith.addf %156, %151 : vector<8x512xf32>
    %158 = vector.extract_strided_slice %157 {offsets = [0, 0], sizes = [8, 384], strides = [1, 1]} : vector<8x512xf32> to vector<8x384xf32>
    %159 = arith.negf %158 : vector<8x384xf32>
    %160 = math.exp %159 : vector<8x384xf32>
    %cst_70 = arith.constant 1.000000e+00 : f32
    %161 = vector.broadcast %cst_70 : f32 to vector<8x384xf32>
    %162 = arith.addf %161, %160 : vector<8x384xf32>
    %163 = arith.divf %161, %162 : vector<8x384xf32>
    %164 = vector.extract_strided_slice %163 {offsets = [0, 0], sizes = [8, 128], strides = [1, 1]} : vector<8x384xf32> to vector<8x128xf32>
    %165 = vector.extract_strided_slice %163 {offsets = [0, 128], sizes = [8, 128], strides = [1, 1]} : vector<8x384xf32> to vector<8x128xf32>
    %166 = vector.extract_strided_slice %163 {offsets = [0, 256], sizes = [8, 128], strides = [1, 1]} : vector<8x384xf32> to vector<8x128xf32>
    %167 = vector.extract_strided_slice %157 {offsets = [0, 384], sizes = [8, 128], strides = [1, 1]} : vector<8x512xf32> to vector<8x128xf32>
    %168 = math.tanh %167 : vector<8x128xf32>
    %169 = arith.mulf %165, %110 : vector<8x128xf32>
    %170 = arith.mulf %164, %168 : vector<8x128xf32>
    %171 = arith.addf %169, %170 : vector<8x128xf32>
    %172 = math.tanh %171 : vector<8x128xf32>
    %173 = arith.mulf %166, %172 : vector<8x128xf32>
    %174 = arith.truncf %132 : vector<8x128xf32> to vector<8x128xbf16>
    %c0_71 = arith.constant 0 : index
    %c0_72 = arith.constant 0 : index
    %175 = vector.load %arg7[%c0_71, %c0_72] : memref<128x512xbf16, #tpu.memory_space<vmem>>, vector<128x512xbf16>
    %cst_73 = arith.constant dense<0.000000e+00> : vector<8x512xf32>
    %176 = tpu.matmul %174, %175, %cst_73 {dimension_numbers = #tpu.dot_dimension_numbers<[1], [0], [0], [1], [0, 0, 1, 1], [], []>} : vector<8x128xbf16>, vector<128x512xbf16>, vector<8x512xf32> -> vector<8x512xf32>
    %177 = arith.addf %176, %153 : vector<8x512xf32>
    %178 = vector.extract_strided_slice %177 {offsets = [0, 0], sizes = [8, 384], strides = [1, 1]} : vector<8x512xf32> to vector<8x384xf32>
    %179 = arith.negf %178 : vector<8x384xf32>
    %180 = math.exp %179 : vector<8x384xf32>
    %cst_74 = arith.constant 1.000000e+00 : f32
    %181 = vector.broadcast %cst_74 : f32 to vector<8x384xf32>
    %182 = arith.addf %181, %180 : vector<8x384xf32>
    %183 = arith.divf %181, %182 : vector<8x384xf32>
    %184 = vector.extract_strided_slice %183 {offsets = [0, 0], sizes = [8, 128], strides = [1, 1]} : vector<8x384xf32> to vector<8x128xf32>
    %185 = vector.extract_strided_slice %183 {offsets = [0, 128], sizes = [8, 128], strides = [1, 1]} : vector<8x384xf32> to vector<8x128xf32>
    %186 = vector.extract_strided_slice %183 {offsets = [0, 256], sizes = [8, 128], strides = [1, 1]} : vector<8x384xf32> to vector<8x128xf32>
    %187 = vector.extract_strided_slice %177 {offsets = [0, 384], sizes = [8, 128], strides = [1, 1]} : vector<8x512xf32> to vector<8x128xf32>
    %188 = math.tanh %187 : vector<8x128xf32>
    %189 = arith.mulf %185, %130 : vector<8x128xf32>
    %190 = arith.mulf %184, %188 : vector<8x128xf32>
    %191 = arith.addf %189, %190 : vector<8x128xf32>
    %192 = math.tanh %191 : vector<8x128xf32>
    %193 = arith.mulf %186, %192 : vector<8x128xf32>
    %194 = arith.truncf %173 : vector<8x128xf32> to vector<8x128xbf16>
    %195 = arith.index_cast %144 : i32 to index
    %c0_75 = arith.constant 0 : index
    %c0_76 = arith.constant 0 : index
    %196 = vector.load %arg9[%195, %c0_75, %c0_76] : memref<8x8x128xbf16, #tpu.memory_space<vmem>>, vector<1x8x128xbf16>
    %197 = vector.shape_cast %196 : vector<1x8x128xbf16> to vector<8x128xbf16>
    %198 = vector.shape_cast %194 : vector<8x128xbf16> to vector<1x8x128xbf16>
    tpu.vector_store %arg9[%195, %c0_75, %c0_76], %198 {strides = array<i32>} : memref<8x8x128xbf16, #tpu.memory_space<vmem>>, vector<1x8x128xbf16>,
    %199 = arith.truncf %193 : vector<8x128xf32> to vector<8x128xbf16>
    %200 = arith.index_cast %145 : i32 to index
    %c0_77 = arith.constant 0 : index
    %c0_78 = arith.constant 0 : index
    %201 = vector.load %arg10[%200, %c0_77, %c0_78] : memref<8x8x128xbf16, #tpu.memory_space<vmem>>, vector<1x8x128xbf16>
    %202 = vector.shape_cast %201 : vector<1x8x128xbf16> to vector<8x128xbf16>
    %203 = vector.shape_cast %199 : vector<8x128xbf16> to vector<1x8x128xbf16>
    tpu.vector_store %arg10[%200, %c0_77, %c0_78], %203 {strides = array<i32>} : memref<8x8x128xbf16, #tpu.memory_space<vmem>>, vector<1x8x128xbf16>,
    %c8_i32_79 = arith.constant 8 : i32
    %204 = arith.muli %c0_i32_25, %c8_i32_79 : i32
    %c3_i32 = arith.constant 3 : i32
    %205 = arith.addi %204, %c3_i32 : i32
    %c7_i32_80 = arith.constant 7 : i32
    %206 = arith.subi %c7_i32_80, %205 : i32
    %c8_i32_81 = arith.constant 8 : i32
    %207 = arith.muli %205, %c8_i32_81 : i32
    %208 = tpu.assume_multiple %207, 8 : i32
    %c8_i32_82 = arith.constant 8 : i32
    %209 = arith.muli %206, %c8_i32_82 : i32
    %210 = tpu.assume_multiple %209, 8 : i32
    %211 = arith.index_cast %208 : i32 to index
    %c0_83 = arith.constant 0 : index
    %212 = vector.load %arg11[%211, %c0_83] : memref<64x512xf32, #tpu.memory_space<vmem>>, vector<8x512xf32>
    %213 = arith.index_cast %210 : i32 to index
    %c0_84 = arith.constant 0 : index
    %214 = vector.load %arg12[%213, %c0_84] : memref<64x512xf32, #tpu.memory_space<vmem>>, vector<8x512xf32>
    %215 = arith.truncf %173 : vector<8x128xf32> to vector<8x128xbf16>
    %c0_85 = arith.constant 0 : index
    %c0_86 = arith.constant 0 : index
    %216 = vector.load %arg4[%c0_85, %c0_86] : memref<128x512xbf16, #tpu.memory_space<vmem>>, vector<128x512xbf16>
    %cst_87 = arith.constant dense<0.000000e+00> : vector<8x512xf32>
    %217 = tpu.matmul %215, %216, %cst_87 {dimension_numbers = #tpu.dot_dimension_numbers<[1], [0], [0], [1], [0, 0, 1, 1], [], []>} : vector<8x128xbf16>, vector<128x512xbf16>, vector<8x512xf32> -> vector<8x512xf32>
    %218 = arith.addf %217, %212 : vector<8x512xf32>
    %219 = vector.extract_strided_slice %218 {offsets = [0, 0], sizes = [8, 384], strides = [1, 1]} : vector<8x512xf32> to vector<8x384xf32>
    %220 = arith.negf %219 : vector<8x384xf32>
    %221 = math.exp %220 : vector<8x384xf32>
    %cst_88 = arith.constant 1.000000e+00 : f32
    %222 = vector.broadcast %cst_88 : f32 to vector<8x384xf32>
    %223 = arith.addf %222, %221 : vector<8x384xf32>
    %224 = arith.divf %222, %223 : vector<8x384xf32>
    %225 = vector.extract_strided_slice %224 {offsets = [0, 0], sizes = [8, 128], strides = [1, 1]} : vector<8x384xf32> to vector<8x128xf32>
    %226 = vector.extract_strided_slice %224 {offsets = [0, 128], sizes = [8, 128], strides = [1, 1]} : vector<8x384xf32> to vector<8x128xf32>
    %227 = vector.extract_strided_slice %224 {offsets = [0, 256], sizes = [8, 128], strides = [1, 1]} : vector<8x384xf32> to vector<8x128xf32>
    %228 = vector.extract_strided_slice %218 {offsets = [0, 384], sizes = [8, 128], strides = [1, 1]} : vector<8x512xf32> to vector<8x128xf32>
    %229 = math.tanh %228 : vector<8x128xf32>
    %230 = arith.mulf %226, %171 : vector<8x128xf32>
    %231 = arith.mulf %225, %229 : vector<8x128xf32>
    %232 = arith.addf %230, %231 : vector<8x128xf32>
    %233 = math.tanh %232 : vector<8x128xf32>
    %234 = arith.mulf %227, %233 : vector<8x128xf32>
    %235 = arith.truncf %193 : vector<8x128xf32> to vector<8x128xbf16>
    %c0_89 = arith.constant 0 : index
    %c0_90 = arith.constant 0 : index
    %236 = vector.load %arg7[%c0_89, %c0_90] : memref<128x512xbf16, #tpu.memory_space<vmem>>, vector<128x512xbf16>
    %cst_91 = arith.constant dense<0.000000e+00> : vector<8x512xf32>
    %237 = tpu.matmul %235, %236, %cst_91 {dimension_numbers = #tpu.dot_dimension_numbers<[1], [0], [0], [1], [0, 0, 1, 1], [], []>} : vector<8x128xbf16>, vector<128x512xbf16>, vector<8x512xf32> -> vector<8x512xf32>
    %238 = arith.addf %237, %214 : vector<8x512xf32>
    %239 = vector.extract_strided_slice %238 {offsets = [0, 0], sizes = [8, 384], strides = [1, 1]} : vector<8x512xf32> to vector<8x384xf32>
    %240 = arith.negf %239 : vector<8x384xf32>
    %241 = math.exp %240 : vector<8x384xf32>
    %cst_92 = arith.constant 1.000000e+00 : f32
    %242 = vector.broadcast %cst_92 : f32 to vector<8x384xf32>
    %243 = arith.addf %242, %241 : vector<8x384xf32>
    %244 = arith.divf %242, %243 : vector<8x384xf32>
    %245 = vector.extract_strided_slice %244 {offsets = [0, 0], sizes = [8, 128], strides = [1, 1]} : vector<8x384xf32> to vector<8x128xf32>
    %246 = vector.extract_strided_slice %244 {offsets = [0, 128], sizes = [8, 128], strides = [1, 1]} : vector<8x384xf32> to vector<8x128xf32>
    %247 = vector.extract_strided_slice %244 {offsets = [0, 256], sizes = [8, 128], strides = [1, 1]} : vector<8x384xf32> to vector<8x128xf32>
    %248 = vector.extract_strided_slice %238 {offsets = [0, 384], sizes = [8, 128], strides = [1, 1]} : vector<8x512xf32> to vector<8x128xf32>
    %249 = math.tanh %248 : vector<8x128xf32>
    %250 = arith.mulf %246, %191 : vector<8x128xf32>
    %251 = arith.mulf %245, %249 : vector<8x128xf32>
    %252 = arith.addf %250, %251 : vector<8x128xf32>
    %253 = math.tanh %252 : vector<8x128xf32>
    %254 = arith.mulf %247, %253 : vector<8x128xf32>
    %255 = arith.truncf %234 : vector<8x128xf32> to vector<8x128xbf16>
    %256 = arith.index_cast %205 : i32 to index
    %c0_93 = arith.constant 0 : index
    %c0_94 = arith.constant 0 : index
    %257 = vector.load %arg9[%256, %c0_93, %c0_94] : memref<8x8x128xbf16, #tpu.memory_space<vmem>>, vector<1x8x128xbf16>
    %258 = vector.shape_cast %257 : vector<1x8x128xbf16> to vector<8x128xbf16>
    %259 = vector.shape_cast %255 : vector<8x128xbf16> to vector<1x8x128xbf16>
    tpu.vector_store %arg9[%256, %c0_93, %c0_94], %259 {strides = array<i32>} : memref<8x8x128xbf16, #tpu.memory_space<vmem>>, vector<1x8x128xbf16>,
    %260 = arith.truncf %254 : vector<8x128xf32> to vector<8x128xbf16>
    %261 = arith.index_cast %206 : i32 to index
    %c0_95 = arith.constant 0 : index
    %c0_96 = arith.constant 0 : index
    %262 = vector.load %arg10[%261, %c0_95, %c0_96] : memref<8x8x128xbf16, #tpu.memory_space<vmem>>, vector<1x8x128xbf16>
    %263 = vector.shape_cast %262 : vector<1x8x128xbf16> to vector<8x128xbf16>
    %264 = vector.shape_cast %260 : vector<8x128xbf16> to vector<1x8x128xbf16>
    tpu.vector_store %arg10[%261, %c0_95, %c0_96], %264 {strides = array<i32>} : memref<8x8x128xbf16, #tpu.memory_space<vmem>>, vector<1x8x128xbf16>,
    %c8_i32_97 = arith.constant 8 : i32
    %265 = arith.muli %c0_i32_25, %c8_i32_97 : i32
    %c4_i32 = arith.constant 4 : i32
    %266 = arith.addi %265, %c4_i32 : i32
    %c7_i32_98 = arith.constant 7 : i32
    %267 = arith.subi %c7_i32_98, %266 : i32
    %c8_i32_99 = arith.constant 8 : i32
    %268 = arith.muli %266, %c8_i32_99 : i32
    %269 = tpu.assume_multiple %268, 8 : i32
    %c8_i32_100 = arith.constant 8 : i32
    %270 = arith.muli %267, %c8_i32_100 : i32
    %271 = tpu.assume_multiple %270, 8 : i32
    %272 = arith.index_cast %269 : i32 to index
    %c0_101 = arith.constant 0 : index
    %273 = vector.load %arg11[%272, %c0_101] : memref<64x512xf32, #tpu.memory_space<vmem>>, vector<8x512xf32>
    %274 = arith.index_cast %271 : i32 to index
    %c0_102 = arith.constant 0 : index
    %275 = vector.load %arg12[%274, %c0_102] : memref<64x512xf32, #tpu.memory_space<vmem>>, vector<8x512xf32>
    %276 = arith.truncf %234 : vector<8x128xf32> to vector<8x128xbf16>
    %c0_103 = arith.constant 0 : index
    %c0_104 = arith.constant 0 : index
    %277 = vector.load %arg4[%c0_103, %c0_104] : memref<128x512xbf16, #tpu.memory_space<vmem>>, vector<128x512xbf16>
    %cst_105 = arith.constant dense<0.000000e+00> : vector<8x512xf32>
    %278 = tpu.matmul %276, %277, %cst_105 {dimension_numbers = #tpu.dot_dimension_numbers<[1], [0], [0], [1], [0, 0, 1, 1], [], []>} : vector<8x128xbf16>, vector<128x512xbf16>, vector<8x512xf32> -> vector<8x512xf32>
    %279 = arith.addf %278, %273 : vector<8x512xf32>
    %280 = vector.extract_strided_slice %279 {offsets = [0, 0], sizes = [8, 384], strides = [1, 1]} : vector<8x512xf32> to vector<8x384xf32>
    %281 = arith.negf %280 : vector<8x384xf32>
    %282 = math.exp %281 : vector<8x384xf32>
    %cst_106 = arith.constant 1.000000e+00 : f32
    %283 = vector.broadcast %cst_106 : f32 to vector<8x384xf32>
    %284 = arith.addf %283, %282 : vector<8x384xf32>
    %285 = arith.divf %283, %284 : vector<8x384xf32>
    %286 = vector.extract_strided_slice %285 {offsets = [0, 0], sizes = [8, 128], strides = [1, 1]} : vector<8x384xf32> to vector<8x128xf32>
    %287 = vector.extract_strided_slice %285 {offsets = [0, 128], sizes = [8, 128], strides = [1, 1]} : vector<8x384xf32> to vector<8x128xf32>
    %288 = vector.extract_strided_slice %285 {offsets = [0, 256], sizes = [8, 128], strides = [1, 1]} : vector<8x384xf32> to vector<8x128xf32>
    %289 = vector.extract_strided_slice %279 {offsets = [0, 384], sizes = [8, 128], strides = [1, 1]} : vector<8x512xf32> to vector<8x128xf32>
    %290 = math.tanh %289 : vector<8x128xf32>
    %291 = arith.mulf %287, %232 : vector<8x128xf32>
    %292 = arith.mulf %286, %290 : vector<8x128xf32>
    %293 = arith.addf %291, %292 : vector<8x128xf32>
    %294 = math.tanh %293 : vector<8x128xf32>
    %295 = arith.mulf %288, %294 : vector<8x128xf32>
    %296 = arith.truncf %254 : vector<8x128xf32> to vector<8x128xbf16>
    %c0_107 = arith.constant 0 : index
    %c0_108 = arith.constant 0 : index
    %297 = vector.load %arg7[%c0_107, %c0_108] : memref<128x512xbf16, #tpu.memory_space<vmem>>, vector<128x512xbf16>
    %cst_109 = arith.constant dense<0.000000e+00> : vector<8x512xf32>
    %298 = tpu.matmul %296, %297, %cst_109 {dimension_numbers = #tpu.dot_dimension_numbers<[1], [0], [0], [1], [0, 0, 1, 1], [], []>} : vector<8x128xbf16>, vector<128x512xbf16>, vector<8x512xf32> -> vector<8x512xf32>
    %299 = arith.addf %298, %275 : vector<8x512xf32>
    %300 = vector.extract_strided_slice %299 {offsets = [0, 0], sizes = [8, 384], strides = [1, 1]} : vector<8x512xf32> to vector<8x384xf32>
    %301 = arith.negf %300 : vector<8x384xf32>
    %302 = math.exp %301 : vector<8x384xf32>
    %cst_110 = arith.constant 1.000000e+00 : f32
    %303 = vector.broadcast %cst_110 : f32 to vector<8x384xf32>
    %304 = arith.addf %303, %302 : vector<8x384xf32>
    %305 = arith.divf %303, %304 : vector<8x384xf32>
    %306 = vector.extract_strided_slice %305 {offsets = [0, 0], sizes = [8, 128], strides = [1, 1]} : vector<8x384xf32> to vector<8x128xf32>
    %307 = vector.extract_strided_slice %305 {offsets = [0, 128], sizes = [8, 128], strides = [1, 1]} : vector<8x384xf32> to vector<8x128xf32>
    %308 = vector.extract_strided_slice %305 {offsets = [0, 256], sizes = [8, 128], strides = [1, 1]} : vector<8x384xf32> to vector<8x128xf32>
    %309 = vector.extract_strided_slice %299 {offsets = [0, 384], sizes = [8, 128], strides = [1, 1]} : vector<8x512xf32> to vector<8x128xf32>
    %310 = math.tanh %309 : vector<8x128xf32>
    %311 = arith.mulf %307, %252 : vector<8x128xf32>
    %312 = arith.mulf %306, %310 : vector<8x128xf32>
    %313 = arith.addf %311, %312 : vector<8x128xf32>
    %314 = math.tanh %313 : vector<8x128xf32>
    %315 = arith.mulf %308, %314 : vector<8x128xf32>
    %316 = arith.truncf %295 : vector<8x128xf32> to vector<8x128xbf16>
    %317 = arith.index_cast %266 : i32 to index
    %c0_111 = arith.constant 0 : index
    %c0_112 = arith.constant 0 : index
    %318 = vector.load %arg9[%317, %c0_111, %c0_112] : memref<8x8x128xbf16, #tpu.memory_space<vmem>>, vector<1x8x128xbf16>
    %319 = vector.shape_cast %318 : vector<1x8x128xbf16> to vector<8x128xbf16>
    %320 = vector.shape_cast %316 : vector<8x128xbf16> to vector<1x8x128xbf16>
    tpu.vector_store %arg9[%317, %c0_111, %c0_112], %320 {strides = array<i32>} : memref<8x8x128xbf16, #tpu.memory_space<vmem>>, vector<1x8x128xbf16>,
    %321 = arith.truncf %315 : vector<8x128xf32> to vector<8x128xbf16>
    %322 = arith.index_cast %267 : i32 to index
    %c0_113 = arith.constant 0 : index
    %c0_114 = arith.constant 0 : index
    %323 = vector.load %arg10[%322, %c0_113, %c0_114] : memref<8x8x128xbf16, #tpu.memory_space<vmem>>, vector<1x8x128xbf16>
    %324 = vector.shape_cast %323 : vector<1x8x128xbf16> to vector<8x128xbf16>
    %325 = vector.shape_cast %321 : vector<8x128xbf16> to vector<1x8x128xbf16>
    tpu.vector_store %arg10[%322, %c0_113, %c0_114], %325 {strides = array<i32>} : memref<8x8x128xbf16, #tpu.memory_space<vmem>>, vector<1x8x128xbf16>,
    %c8_i32_115 = arith.constant 8 : i32
    %326 = arith.muli %c0_i32_25, %c8_i32_115 : i32
    %c5_i32 = arith.constant 5 : i32
    %327 = arith.addi %326, %c5_i32 : i32
    %c7_i32_116 = arith.constant 7 : i32
    %328 = arith.subi %c7_i32_116, %327 : i32
    %c8_i32_117 = arith.constant 8 : i32
    %329 = arith.muli %327, %c8_i32_117 : i32
    %330 = tpu.assume_multiple %329, 8 : i32
    %c8_i32_118 = arith.constant 8 : i32
    %331 = arith.muli %328, %c8_i32_118 : i32
    %332 = tpu.assume_multiple %331, 8 : i32
    %333 = arith.index_cast %330 : i32 to index
    %c0_119 = arith.constant 0 : index
    %334 = vector.load %arg11[%333, %c0_119] : memref<64x512xf32, #tpu.memory_space<vmem>>, vector<8x512xf32>
    %335 = arith.index_cast %332 : i32 to index
    %c0_120 = arith.constant 0 : index
    %336 = vector.load %arg12[%335, %c0_120] : memref<64x512xf32, #tpu.memory_space<vmem>>, vector<8x512xf32>
    %337 = arith.truncf %295 : vector<8x128xf32> to vector<8x128xbf16>
    %c0_121 = arith.constant 0 : index
    %c0_122 = arith.constant 0 : index
    %338 = vector.load %arg4[%c0_121, %c0_122] : memref<128x512xbf16, #tpu.memory_space<vmem>>, vector<128x512xbf16>
    %cst_123 = arith.constant dense<0.000000e+00> : vector<8x512xf32>
    %339 = tpu.matmul %337, %338, %cst_123 {dimension_numbers = #tpu.dot_dimension_numbers<[1], [0], [0], [1], [0, 0, 1, 1], [], []>} : vector<8x128xbf16>, vector<128x512xbf16>, vector<8x512xf32> -> vector<8x512xf32>
    %340 = arith.addf %339, %334 : vector<8x512xf32>
    %341 = vector.extract_strided_slice %340 {offsets = [0, 0], sizes = [8, 384], strides = [1, 1]} : vector<8x512xf32> to vector<8x384xf32>
    %342 = arith.negf %341 : vector<8x384xf32>
    %343 = math.exp %342 : vector<8x384xf32>
    %cst_124 = arith.constant 1.000000e+00 : f32
    %344 = vector.broadcast %cst_124 : f32 to vector<8x384xf32>
    %345 = arith.addf %344, %343 : vector<8x384xf32>
    %346 = arith.divf %344, %345 : vector<8x384xf32>
    %347 = vector.extract_strided_slice %346 {offsets = [0, 0], sizes = [8, 128], strides = [1, 1]} : vector<8x384xf32> to vector<8x128xf32>
    %348 = vector.extract_strided_slice %346 {offsets = [0, 128], sizes = [8, 128], strides = [1, 1]} : vector<8x384xf32> to vector<8x128xf32>
    %349 = vector.extract_strided_slice %346 {offsets = [0, 256], sizes = [8, 128], strides = [1, 1]} : vector<8x384xf32> to vector<8x128xf32>
    %350 = vector.extract_strided_slice %340 {offsets = [0, 384], sizes = [8, 128], strides = [1, 1]} : vector<8x512xf32> to vector<8x128xf32>
    %351 = math.tanh %350 : vector<8x128xf32>
    %352 = arith.mulf %348, %293 : vector<8x128xf32>
    %353 = arith.mulf %347, %351 : vector<8x128xf32>
    %354 = arith.addf %352, %353 : vector<8x128xf32>
    %355 = math.tanh %354 : vector<8x128xf32>
    %356 = arith.mulf %349, %355 : vector<8x128xf32>
    %357 = arith.truncf %315 : vector<8x128xf32> to vector<8x128xbf16>
    %c0_125 = arith.constant 0 : index
    %c0_126 = arith.constant 0 : index
    %358 = vector.load %arg7[%c0_125, %c0_126] : memref<128x512xbf16, #tpu.memory_space<vmem>>, vector<128x512xbf16>
    %cst_127 = arith.constant dense<0.000000e+00> : vector<8x512xf32>
    %359 = tpu.matmul %357, %358, %cst_127 {dimension_numbers = #tpu.dot_dimension_numbers<[1], [0], [0], [1], [0, 0, 1, 1], [], []>} : vector<8x128xbf16>, vector<128x512xbf16>, vector<8x512xf32> -> vector<8x512xf32>
    %360 = arith.addf %359, %336 : vector<8x512xf32>
    %361 = vector.extract_strided_slice %360 {offsets = [0, 0], sizes = [8, 384], strides = [1, 1]} : vector<8x512xf32> to vector<8x384xf32>
    %362 = arith.negf %361 : vector<8x384xf32>
    %363 = math.exp %362 : vector<8x384xf32>
    %cst_128 = arith.constant 1.000000e+00 : f32
    %364 = vector.broadcast %cst_128 : f32 to vector<8x384xf32>
    %365 = arith.addf %364, %363 : vector<8x384xf32>
    %366 = arith.divf %364, %365 : vector<8x384xf32>
    %367 = vector.extract_strided_slice %366 {offsets = [0, 0], sizes = [8, 128], strides = [1, 1]} : vector<8x384xf32> to vector<8x128xf32>
    %368 = vector.extract_strided_slice %366 {offsets = [0, 128], sizes = [8, 128], strides = [1, 1]} : vector<8x384xf32> to vector<8x128xf32>
    %369 = vector.extract_strided_slice %366 {offsets = [0, 256], sizes = [8, 128], strides = [1, 1]} : vector<8x384xf32> to vector<8x128xf32>
    %370 = vector.extract_strided_slice %360 {offsets = [0, 384], sizes = [8, 128], strides = [1, 1]} : vector<8x512xf32> to vector<8x128xf32>
    %371 = math.tanh %370 : vector<8x128xf32>
    %372 = arith.mulf %368, %313 : vector<8x128xf32>
    %373 = arith.mulf %367, %371 : vector<8x128xf32>
    %374 = arith.addf %372, %373 : vector<8x128xf32>
    %375 = math.tanh %374 : vector<8x128xf32>
    %376 = arith.mulf %369, %375 : vector<8x128xf32>
    %377 = arith.truncf %356 : vector<8x128xf32> to vector<8x128xbf16>
    %378 = arith.index_cast %327 : i32 to index
    %c0_129 = arith.constant 0 : index
    %c0_130 = arith.constant 0 : index
    %379 = vector.load %arg9[%378, %c0_129, %c0_130] : memref<8x8x128xbf16, #tpu.memory_space<vmem>>, vector<1x8x128xbf16>
    %380 = vector.shape_cast %379 : vector<1x8x128xbf16> to vector<8x128xbf16>
    %381 = vector.shape_cast %377 : vector<8x128xbf16> to vector<1x8x128xbf16>
    tpu.vector_store %arg9[%378, %c0_129, %c0_130], %381 {strides = array<i32>} : memref<8x8x128xbf16, #tpu.memory_space<vmem>>, vector<1x8x128xbf16>,
    %382 = arith.truncf %376 : vector<8x128xf32> to vector<8x128xbf16>
    %383 = arith.index_cast %328 : i32 to index
    %c0_131 = arith.constant 0 : index
    %c0_132 = arith.constant 0 : index
    %384 = vector.load %arg10[%383, %c0_131, %c0_132] : memref<8x8x128xbf16, #tpu.memory_space<vmem>>, vector<1x8x128xbf16>
    %385 = vector.shape_cast %384 : vector<1x8x128xbf16> to vector<8x128xbf16>
    %386 = vector.shape_cast %382 : vector<8x128xbf16> to vector<1x8x128xbf16>
    tpu.vector_store %arg10[%383, %c0_131, %c0_132], %386 {strides = array<i32>} : memref<8x8x128xbf16, #tpu.memory_space<vmem>>, vector<1x8x128xbf16>,
    %c8_i32_133 = arith.constant 8 : i32
    %387 = arith.muli %c0_i32_25, %c8_i32_133 : i32
    %c6_i32 = arith.constant 6 : i32
    %388 = arith.addi %387, %c6_i32 : i32
    %c7_i32_134 = arith.constant 7 : i32
    %389 = arith.subi %c7_i32_134, %388 : i32
    %c8_i32_135 = arith.constant 8 : i32
    %390 = arith.muli %388, %c8_i32_135 : i32
    %391 = tpu.assume_multiple %390, 8 : i32
    %c8_i32_136 = arith.constant 8 : i32
    %392 = arith.muli %389, %c8_i32_136 : i32
    %393 = tpu.assume_multiple %392, 8 : i32
    %394 = arith.index_cast %391 : i32 to index
    %c0_137 = arith.constant 0 : index
    %395 = vector.load %arg11[%394, %c0_137] : memref<64x512xf32, #tpu.memory_space<vmem>>, vector<8x512xf32>
    %396 = arith.index_cast %393 : i32 to index
    %c0_138 = arith.constant 0 : index
    %397 = vector.load %arg12[%396, %c0_138] : memref<64x512xf32, #tpu.memory_space<vmem>>, vector<8x512xf32>
    %398 = arith.truncf %356 : vector<8x128xf32> to vector<8x128xbf16>
    %c0_139 = arith.constant 0 : index
    %c0_140 = arith.constant 0 : index
    %399 = vector.load %arg4[%c0_139, %c0_140] : memref<128x512xbf16, #tpu.memory_space<vmem>>, vector<128x512xbf16>
    %cst_141 = arith.constant dense<0.000000e+00> : vector<8x512xf32>
    %400 = tpu.matmul %398, %399, %cst_141 {dimension_numbers = #tpu.dot_dimension_numbers<[1], [0], [0], [1], [0, 0, 1, 1], [], []>} : vector<8x128xbf16>, vector<128x512xbf16>, vector<8x512xf32> -> vector<8x512xf32>
    %401 = arith.addf %400, %395 : vector<8x512xf32>
    %402 = vector.extract_strided_slice %401 {offsets = [0, 0], sizes = [8, 384], strides = [1, 1]} : vector<8x512xf32> to vector<8x384xf32>
    %403 = arith.negf %402 : vector<8x384xf32>
    %404 = math.exp %403 : vector<8x384xf32>
    %cst_142 = arith.constant 1.000000e+00 : f32
    %405 = vector.broadcast %cst_142 : f32 to vector<8x384xf32>
    %406 = arith.addf %405, %404 : vector<8x384xf32>
    %407 = arith.divf %405, %406 : vector<8x384xf32>
    %408 = vector.extract_strided_slice %407 {offsets = [0, 0], sizes = [8, 128], strides = [1, 1]} : vector<8x384xf32> to vector<8x128xf32>
    %409 = vector.extract_strided_slice %407 {offsets = [0, 128], sizes = [8, 128], strides = [1, 1]} : vector<8x384xf32> to vector<8x128xf32>
    %410 = vector.extract_strided_slice %407 {offsets = [0, 256], sizes = [8, 128], strides = [1, 1]} : vector<8x384xf32> to vector<8x128xf32>
    %411 = vector.extract_strided_slice %401 {offsets = [0, 384], sizes = [8, 128], strides = [1, 1]} : vector<8x512xf32> to vector<8x128xf32>
    %412 = math.tanh %411 : vector<8x128xf32>
    %413 = arith.mulf %409, %354 : vector<8x128xf32>
    %414 = arith.mulf %408, %412 : vector<8x128xf32>
    %415 = arith.addf %413, %414 : vector<8x128xf32>
    %416 = math.tanh %415 : vector<8x128xf32>
    %417 = arith.mulf %410, %416 : vector<8x128xf32>
    %418 = arith.truncf %376 : vector<8x128xf32> to vector<8x128xbf16>
    %c0_143 = arith.constant 0 : index
    %c0_144 = arith.constant 0 : index
    %419 = vector.load %arg7[%c0_143, %c0_144] : memref<128x512xbf16, #tpu.memory_space<vmem>>, vector<128x512xbf16>
    %cst_145 = arith.constant dense<0.000000e+00> : vector<8x512xf32>
    %420 = tpu.matmul %418, %419, %cst_145 {dimension_numbers = #tpu.dot_dimension_numbers<[1], [0], [0], [1], [0, 0, 1, 1], [], []>} : vector<8x128xbf16>, vector<128x512xbf16>, vector<8x512xf32> -> vector<8x512xf32>
    %421 = arith.addf %420, %397 : vector<8x512xf32>
    %422 = vector.extract_strided_slice %421 {offsets = [0, 0], sizes = [8, 384], strides = [1, 1]} : vector<8x512xf32> to vector<8x384xf32>
    %423 = arith.negf %422 : vector<8x384xf32>
    %424 = math.exp %423 : vector<8x384xf32>
    %cst_146 = arith.constant 1.000000e+00 : f32
    %425 = vector.broadcast %cst_146 : f32 to vector<8x384xf32>
    %426 = arith.addf %425, %424 : vector<8x384xf32>
    %427 = arith.divf %425, %426 : vector<8x384xf32>
    %428 = vector.extract_strided_slice %427 {offsets = [0, 0], sizes = [8, 128], strides = [1, 1]} : vector<8x384xf32> to vector<8x128xf32>
    %429 = vector.extract_strided_slice %427 {offsets = [0, 128], sizes = [8, 128], strides = [1, 1]} : vector<8x384xf32> to vector<8x128xf32>
    %430 = vector.extract_strided_slice %427 {offsets = [0, 256], sizes = [8, 128], strides = [1, 1]} : vector<8x384xf32> to vector<8x128xf32>
    %431 = vector.extract_strided_slice %421 {offsets = [0, 384], sizes = [8, 128], strides = [1, 1]} : vector<8x512xf32> to vector<8x128xf32>
    %432 = math.tanh %431 : vector<8x128xf32>
    %433 = arith.mulf %429, %374 : vector<8x128xf32>
    %434 = arith.mulf %428, %432 : vector<8x128xf32>
    %435 = arith.addf %433, %434 : vector<8x128xf32>
    %436 = math.tanh %435 : vector<8x128xf32>
    %437 = arith.mulf %430, %436 : vector<8x128xf32>
    %438 = arith.truncf %417 : vector<8x128xf32> to vector<8x128xbf16>
    %439 = arith.index_cast %388 : i32 to index
    %c0_147 = arith.constant 0 : index
    %c0_148 = arith.constant 0 : index
    %440 = vector.load %arg9[%439, %c0_147, %c0_148] : memref<8x8x128xbf16, #tpu.memory_space<vmem>>, vector<1x8x128xbf16>
    %441 = vector.shape_cast %440 : vector<1x8x128xbf16> to vector<8x128xbf16>
    %442 = vector.shape_cast %438 : vector<8x128xbf16> to vector<1x8x128xbf16>
    tpu.vector_store %arg9[%439, %c0_147, %c0_148], %442 {strides = array<i32>} : memref<8x8x128xbf16, #tpu.memory_space<vmem>>, vector<1x8x128xbf16>,
    %443 = arith.truncf %437 : vector<8x128xf32> to vector<8x128xbf16>
    %444 = arith.index_cast %389 : i32 to index
    %c0_149 = arith.constant 0 : index
    %c0_150 = arith.constant 0 : index
    %445 = vector.load %arg10[%444, %c0_149, %c0_150] : memref<8x8x128xbf16, #tpu.memory_space<vmem>>, vector<1x8x128xbf16>
    %446 = vector.shape_cast %445 : vector<1x8x128xbf16> to vector<8x128xbf16>
    %447 = vector.shape_cast %443 : vector<8x128xbf16> to vector<1x8x128xbf16>
    tpu.vector_store %arg10[%444, %c0_149, %c0_150], %447 {strides = array<i32>} : memref<8x8x128xbf16, #tpu.memory_space<vmem>>, vector<1x8x128xbf16>,
    %c8_i32_151 = arith.constant 8 : i32
    %448 = arith.muli %c0_i32_25, %c8_i32_151 : i32
    %c7_i32_152 = arith.constant 7 : i32
    %449 = arith.addi %448, %c7_i32_152 : i32
    %c7_i32_153 = arith.constant 7 : i32
    %450 = arith.subi %c7_i32_153, %449 : i32
    %c8_i32_154 = arith.constant 8 : i32
    %451 = arith.muli %449, %c8_i32_154 : i32
    %452 = tpu.assume_multiple %451, 8 : i32
    %c8_i32_155 = arith.constant 8 : i32
    %453 = arith.muli %450, %c8_i32_155 : i32
    %454 = tpu.assume_multiple %453, 8 : i32
    %455 = arith.index_cast %452 : i32 to index
    %c0_156 = arith.constant 0 : index
    %456 = vector.load %arg11[%455, %c0_156] : memref<64x512xf32, #tpu.memory_space<vmem>>, vector<8x512xf32>
    %457 = arith.index_cast %454 : i32 to index
    %c0_157 = arith.constant 0 : index
    %458 = vector.load %arg12[%457, %c0_157] : memref<64x512xf32, #tpu.memory_space<vmem>>, vector<8x512xf32>
    %459 = arith.truncf %417 : vector<8x128xf32> to vector<8x128xbf16>
    %c0_158 = arith.constant 0 : index
    %c0_159 = arith.constant 0 : index
    %460 = vector.load %arg4[%c0_158, %c0_159] : memref<128x512xbf16, #tpu.memory_space<vmem>>, vector<128x512xbf16>
    %cst_160 = arith.constant dense<0.000000e+00> : vector<8x512xf32>
    %461 = tpu.matmul %459, %460, %cst_160 {dimension_numbers = #tpu.dot_dimension_numbers<[1], [0], [0], [1], [0, 0, 1, 1], [], []>} : vector<8x128xbf16>, vector<128x512xbf16>, vector<8x512xf32> -> vector<8x512xf32>
    %462 = arith.addf %461, %456 : vector<8x512xf32>
    %463 = vector.extract_strided_slice %462 {offsets = [0, 0], sizes = [8, 384], strides = [1, 1]} : vector<8x512xf32> to vector<8x384xf32>
    %464 = arith.negf %463 : vector<8x384xf32>
    %465 = math.exp %464 : vector<8x384xf32>
    %cst_161 = arith.constant 1.000000e+00 : f32
    %466 = vector.broadcast %cst_161 : f32 to vector<8x384xf32>
    %467 = arith.addf %466, %465 : vector<8x384xf32>
    %468 = arith.divf %466, %467 : vector<8x384xf32>
    %469 = vector.extract_strided_slice %468 {offsets = [0, 0], sizes = [8, 128], strides = [1, 1]} : vector<8x384xf32> to vector<8x128xf32>
    %470 = vector.extract_strided_slice %468 {offsets = [0, 128], sizes = [8, 128], strides = [1, 1]} : vector<8x384xf32> to vector<8x128xf32>
    %471 = vector.extract_strided_slice %468 {offsets = [0, 256], sizes = [8, 128], strides = [1, 1]} : vector<8x384xf32> to vector<8x128xf32>
    %472 = vector.extract_strided_slice %462 {offsets = [0, 384], sizes = [8, 128], strides = [1, 1]} : vector<8x512xf32> to vector<8x128xf32>
    %473 = math.tanh %472 : vector<8x128xf32>
    %474 = arith.mulf %470, %415 : vector<8x128xf32>
    %475 = arith.mulf %469, %473 : vector<8x128xf32>
    %476 = arith.addf %474, %475 : vector<8x128xf32>
    %477 = math.tanh %476 : vector<8x128xf32>
    %478 = arith.mulf %471, %477 : vector<8x128xf32>
    %479 = arith.truncf %437 : vector<8x128xf32> to vector<8x128xbf16>
    %c0_162 = arith.constant 0 : index
    %c0_163 = arith.constant 0 : index
    %480 = vector.load %arg7[%c0_162, %c0_163] : memref<128x512xbf16, #tpu.memory_space<vmem>>, vector<128x512xbf16>
    %cst_164 = arith.constant dense<0.000000e+00> : vector<8x512xf32>
    %481 = tpu.matmul %479, %480, %cst_164 {dimension_numbers = #tpu.dot_dimension_numbers<[1], [0], [0], [1], [0, 0, 1, 1], [], []>} : vector<8x128xbf16>, vector<128x512xbf16>, vector<8x512xf32> -> vector<8x512xf32>
    %482 = arith.addf %481, %458 : vector<8x512xf32>
    %483 = vector.extract_strided_slice %482 {offsets = [0, 0], sizes = [8, 384], strides = [1, 1]} : vector<8x512xf32> to vector<8x384xf32>
    %484 = arith.negf %483 : vector<8x384xf32>
    %485 = math.exp %484 : vector<8x384xf32>
    %cst_165 = arith.constant 1.000000e+00 : f32
    %486 = vector.broadcast %cst_165 : f32 to vector<8x384xf32>
    %487 = arith.addf %486, %485 : vector<8x384xf32>
    %488 = arith.divf %486, %487 : vector<8x384xf32>
    %489 = vector.extract_strided_slice %488 {offsets = [0, 0], sizes = [8, 128], strides = [1, 1]} : vector<8x384xf32> to vector<8x128xf32>
    %490 = vector.extract_strided_slice %488 {offsets = [0, 128], sizes = [8, 128], strides = [1, 1]} : vector<8x384xf32> to vector<8x128xf32>
    %491 = vector.extract_strided_slice %488 {offsets = [0, 256], sizes = [8, 128], strides = [1, 1]} : vector<8x384xf32> to vector<8x128xf32>
    %492 = vector.extract_strided_slice %482 {offsets = [0, 384], sizes = [8, 128], strides = [1, 1]} : vector<8x512xf32> to vector<8x128xf32>
    %493 = math.tanh %492 : vector<8x128xf32>
    %494 = arith.mulf %490, %435 : vector<8x128xf32>
    %495 = arith.mulf %489, %493 : vector<8x128xf32>
    %496 = arith.addf %494, %495 : vector<8x128xf32>
    %497 = math.tanh %496 : vector<8x128xf32>
    %498 = arith.mulf %491, %497 : vector<8x128xf32>
    %499 = arith.truncf %478 : vector<8x128xf32> to vector<8x128xbf16>
    %500 = arith.index_cast %449 : i32 to index
    %c0_166 = arith.constant 0 : index
    %c0_167 = arith.constant 0 : index
    %501 = vector.load %arg9[%500, %c0_166, %c0_167] : memref<8x8x128xbf16, #tpu.memory_space<vmem>>, vector<1x8x128xbf16>
    %502 = vector.shape_cast %501 : vector<1x8x128xbf16> to vector<8x128xbf16>
    %503 = vector.shape_cast %499 : vector<8x128xbf16> to vector<1x8x128xbf16>
    tpu.vector_store %arg9[%500, %c0_166, %c0_167], %503 {strides = array<i32>} : memref<8x8x128xbf16, #tpu.memory_space<vmem>>, vector<1x8x128xbf16>,
    %504 = arith.truncf %498 : vector<8x128xf32> to vector<8x128xbf16>
    %505 = arith.index_cast %450 : i32 to index
    %c0_168 = arith.constant 0 : index
    %c0_169 = arith.constant 0 : index
    %506 = vector.load %arg10[%505, %c0_168, %c0_169] : memref<8x8x128xbf16, #tpu.memory_space<vmem>>, vector<1x8x128xbf16>
    %507 = vector.shape_cast %506 : vector<1x8x128xbf16> to vector<8x128xbf16>
    %508 = vector.shape_cast %504 : vector<8x128xbf16> to vector<1x8x128xbf16>
    tpu.vector_store %arg10[%505, %c0_168, %c0_169], %508 {strides = array<i32>} : memref<8x8x128xbf16, #tpu.memory_space<vmem>>, vector<1x8x128xbf16>,
    %c2_i32_170 = arith.constant 2 : i32
    %509 = arith.addi %c0_i32_25, %c2_i32_170 : i32
    %c0_i32_171 = arith.constant 0 : i32
    %510 = arith.minsi %509, %c0_i32_171 : i32
    %c64_i32 = arith.constant 64 : i32
    %511 = arith.muli %510, %c64_i32 : i32
    %512 = tpu.assume_multiple %511, 64 : i32
    %513 = arith.index_cast %512 : i32 to index
    %c0_172 = arith.constant 0 : index
    %514 = vector.load %arg1[%513, %c0_172] : memref<64x128xbf16, #tpu.memory_space<vmem>>, vector<64x128xbf16>
    %c0_173 = arith.constant 0 : index
    %c0_174 = arith.constant 0 : index
    %515 = vector.load %arg3[%c0_173, %c0_174] : memref<128x512xbf16, #tpu.memory_space<vmem>>, vector<128x512xbf16>
    %cst_175 = arith.constant dense<0.000000e+00> : vector<64x512xf32>
    %516 = tpu.matmul %514, %515, %cst_175 {dimension_numbers = #tpu.dot_dimension_numbers<[1], [0], [0], [1], [0, 0, 1, 1], [], []>} : vector<64x128xbf16>, vector<128x512xbf16>, vector<64x512xf32> -> vector<64x512xf32>
    %c0_176 = arith.constant 0 : index
    %c0_177 = arith.constant 0 : index
    %517 = vector.load %arg5[%c0_176, %c0_177] : memref<1x512xf32, #tpu.memory_space<vmem>>, vector<1x512xf32>
    %518 = vector.broadcast %517 : vector<1x512xf32> to vector<64x512xf32>
    %519 = arith.addf %516, %518 : vector<64x512xf32>
    %520 = arith.index_cast %512 : i32 to index
    %c0_178 = arith.constant 0 : index
    %521 = vector.load %arg11[%520, %c0_178] : memref<64x512xf32, #tpu.memory_space<vmem>>, vector<64x512xf32>
    tpu.vector_store %arg11[%520, %c0_178], %519 {strides = array<i32>} : memref<64x512xf32, #tpu.memory_space<vmem>>, vector<64x512xf32>,
    %c-2_i32 = arith.constant -2 : i32
    %522 = arith.subi %c-2_i32, %c0_i32_25 : i32
    %c0_i32_179 = arith.constant 0 : i32
    %523 = arith.maxsi %522, %c0_i32_179 : i32
    %c64_i32_180 = arith.constant 64 : i32
    %524 = arith.muli %523, %c64_i32_180 : i32
    %525 = tpu.assume_multiple %524, 64 : i32
    %526 = arith.index_cast %525 : i32 to index
    %c0_181 = arith.constant 0 : index
    %527 = vector.load %arg2[%526, %c0_181] : memref<64x128xbf16, #tpu.memory_space<vmem>>, vector<64x128xbf16>
    %c0_182 = arith.constant 0 : index
    %c0_183 = arith.constant 0 : index
    %528 = vector.load %arg6[%c0_182, %c0_183] : memref<128x512xbf16, #tpu.memory_space<vmem>>, vector<128x512xbf16>
    %cst_184 = arith.constant dense<0.000000e+00> : vector<64x512xf32>
    %529 = tpu.matmul %527, %528, %cst_184 {dimension_numbers = #tpu.dot_dimension_numbers<[1], [0], [0], [1], [0, 0, 1, 1], [], []>} : vector<64x128xbf16>, vector<128x512xbf16>, vector<64x512xf32> -> vector<64x512xf32>
    %c0_185 = arith.constant 0 : index
    %c0_186 = arith.constant 0 : index
    %530 = vector.load %arg8[%c0_185, %c0_186] : memref<1x512xf32, #tpu.memory_space<vmem>>, vector<1x512xf32>
    %531 = vector.broadcast %530 : vector<1x512xf32> to vector<64x512xf32>
    %532 = arith.addf %529, %531 : vector<64x512xf32>
    %533 = arith.index_cast %525 : i32 to index
    %c0_187 = arith.constant 0 : index
    %534 = vector.load %arg12[%533, %c0_187] : memref<64x512xf32, #tpu.memory_space<vmem>>, vector<64x512xf32>
    tpu.vector_store %arg12[%533, %c0_187], %532 {strides = array<i32>} : memref<64x512xf32, #tpu.memory_space<vmem>>, vector<64x512xf32>,
    %c1_i32_188 = arith.constant 1 : i32
    %c0_189 = arith.constant 0 : index
    %c0_190 = arith.constant 0 : index
    %535 = vector.load %arg13[%c0_189, %c0_190] : memref<8x128xf32, #tpu.memory_space<vmem>>, vector<8x128xf32>
    tpu.vector_store %arg13[%c0_189, %c0_190], %478 {strides = array<i32>} : memref<8x128xf32, #tpu.memory_space<vmem>>, vector<8x128xf32>,
    %c0_191 = arith.constant 0 : index
    %c0_192 = arith.constant 0 : index
    %536 = vector.load %arg14[%c0_191, %c0_192] : memref<8x128xf32, #tpu.memory_space<vmem>>, vector<8x128xf32>
    tpu.vector_store %arg14[%c0_191, %c0_192], %476 {strides = array<i32>} : memref<8x128xf32, #tpu.memory_space<vmem>>, vector<8x128xf32>,
    %c0_193 = arith.constant 0 : index
    %c0_194 = arith.constant 0 : index
    %537 = vector.load %arg15[%c0_193, %c0_194] : memref<8x128xf32, #tpu.memory_space<vmem>>, vector<8x128xf32>
    tpu.vector_store %arg15[%c0_193, %c0_194], %498 {strides = array<i32>} : memref<8x128xf32, #tpu.memory_space<vmem>>, vector<8x128xf32>,
    %c0_195 = arith.constant 0 : index
    %c0_196 = arith.constant 0 : index
    %538 = vector.load %arg16[%c0_195, %c0_196] : memref<8x128xf32, #tpu.memory_space<vmem>>, vector<8x128xf32>
    tpu.vector_store %arg16[%c0_195, %c0_196], %496 {strides = array<i32>} : memref<8x128xf32, #tpu.memory_space<vmem>>, vector<8x128xf32>,
    return
  }
  func.func @transform_0(%arg0: i32) -> (i32, i32) {
    %c0_i32 = arith.constant 0 : i32
    %c0_i32_0 = arith.constant 0 : i32
    return %arg0, %c0_i32 : i32, i32
  }
  func.func @transform_1(%arg0: i32) -> (i32, i32) {
    %c0_i32 = arith.constant 0 : i32
    %0 = arith.subi %c0_i32, %arg0 : i32
    %c0_i32_0 = arith.constant 0 : i32
    %c0_i32_1 = arith.constant 0 : i32
    return %0, %c0_i32_0 : i32, i32
  }
  func.func @transform_2(%arg0: i32) -> (i32, i32) {
    %c0_i32 = arith.constant 0 : i32
    %c0_i32_0 = arith.constant 0 : i32
    %c0_i32_1 = arith.constant 0 : i32
    return %c0_i32, %c0_i32_0 : i32, i32
  }
  func.func @transform_3(%arg0: i32) -> (i32, i32) {
    %c0_i32 = arith.constant 0 : i32
    %c0_i32_0 = arith.constant 0 : i32
    %c0_i32_1 = arith.constant 0 : i32
    return %c0_i32, %c0_i32_0 : i32, i32
  }
  func.func @transform_4(%arg0: i32) -> (i32, i32) {
    %c0_i32 = arith.constant 0 : i32
    %c0_i32_0 = arith.constant 0 : i32
    %c0_i32_1 = arith.constant 0 : i32
    return %c0_i32, %c0_i32_0 : i32, i32
  }
  func.func @transform_5(%arg0: i32) -> (i32, i32) {
    %c0_i32 = arith.constant 0 : i32
    %c0_i32_0 = arith.constant 0 : i32
    %c0_i32_1 = arith.constant 0 : i32
    return %c0_i32, %c0_i32_0 : i32, i32
  }
  func.func @transform_6(%arg0: i32) -> (i32, i32) {
    %c0_i32 = arith.constant 0 : i32
    %c0_i32_0 = arith.constant 0 : i32
    %c0_i32_1 = arith.constant 0 : i32
    return %c0_i32, %c0_i32_0 : i32, i32
  }
  func.func @transform_7(%arg0: i32) -> (i32, i32) {
    %c0_i32 = arith.constant 0 : i32
    %c0_i32_0 = arith.constant 0 : i32
    %c0_i32_1 = arith.constant 0 : i32
    return %c0_i32, %c0_i32_0 : i32, i32
  }
  func.func @transform_8(%arg0: i32) -> (i32, i32, i32) {
    %c0_i32 = arith.constant 0 : i32
    %c0_i32_0 = arith.constant 0 : i32
    %c0_i32_1 = arith.constant 0 : i32
    return %arg0, %c0_i32, %c0_i32_0 : i32, i32, i32
  }
  func.func @transform_9(%arg0: i32) -> (i32, i32, i32) {
    %c0_i32 = arith.constant 0 : i32
    %0 = arith.subi %c0_i32, %arg0 : i32
    %c0_i32_0 = arith.constant 0 : i32
    %c0_i32_1 = arith.constant 0 : i32
    %c0_i32_2 = arith.constant 0 : i32
    return %0, %c0_i32_0, %c0_i32_1 : i32, i32, i32
  }
}

</mosaic_0001>

<bundles_post_ra>
// kernel: rnn_encoder_forward.1
= control target key start
LH: loop header
LB: loop body
LE: loop exit
PB: predicated region body
PF: predicated region fallthrough
CT: control target
= control target key end

     0   :  { %v11065_v1 = vmov 0   ;;  %s11055_s2 = inlined_call_operand.vmem [shape: bf16[128,512], index: 2, kind: input, shape index: {}]   ;;  %s11056_s0 = inlined_call_operand.vmem [shape: bf16[64,128], index: 0, kind: input, shape index: {}, may-alias: {0,1}]   ;;  %s11057_s5 = inlined_call_operand.vmem [shape: bf16[128,512], index: 5, kind: input, shape index: {}]   ;;  %s11058_s1 = inlined_call_operand.vmem [shape: bf16[64,128], index: 1, kind: input, shape index: {}, may-alias: {0,1}]   ;;  %s11059_s3 = inlined_call_operand.vmem [shape: bf16[128,512], index: 3, kind: input, shape index: {}]   ;;  %s11060_s6 = inlined_call_operand.vmem [shape: bf16[128,512], index: 6, kind: input, shape index: {}]   ;;  %s11061_s4 = inlined_call_operand.vmem [shape: f32[1,512], index: 4, kind: input, shape index: {}]   ;;  %s11062_s7 = inlined_call_operand.vmem [shape: f32[1,512], index: 7, kind: input, shape index: {}]   ;;  %s11063_s8 = inlined_call_operand.vmem [shape: bf16[8,8,128], index: 8, kind: output, shape index: {0}]   ;;  %s11064_s9 = inlined_call_operand.vmem [shape: bf16[8,8,128], index: 9, kind: output, shape index: {1}]  }
   0x1   :  { %v7475_v0 = vld [vmem:[%s11055_s2 + $0x4] ss:$16 sps:$4 sm:$0xff]   ;;  %354 = vmatprep.mubr.bf16.mxu0 %v11065_v1  ;;  %427 = vmatprep.mubr.bf16.mxu1 %v11065_v1  ;;  %v7477_v2 = vld [vmem:[%s11055_s2 + $0xc] ss:$16 sps:$4 sm:$0xff]   ;;  %v7479_v3 = vld [vmem:[%s11055_s2] ss:$16 sps:$4 sm:$0xff]  }
   0x2   :  { %322 = vmatprep.subr.bf16.mxu0 %v7475_v0  ;;  %v7480_v4 = vld [vmem:[%s11055_s2 + $0x8] ss:$16 sps:$4 sm:$0xff]   ;;  %395 = vmatprep.subr.bf16.mxu1 %v7477_v2  ;;  %v7481_v5 = vld [vmem:[%s11055_s2 + $0x24] ss:$16 sps:$4 sm:$0xff]   ;;  %v7483_v6 = vld [vmem:[%s11055_s2 + $0x2c] ss:$16 sps:$4 sm:$0xff]  }
   0x3   :  { %323 = vmatpush1.bf16.msra.mxu0 %v7479_v3  ;;  %396 = vmatpush1.bf16.msra.mxu1 %v7480_v4  ;;  %v7485_v7 = vld [vmem:[%s11055_s2 + $0x20] ss:$16 sps:$4 sm:$0xff]   ;;  %v7486_v8 = vld [vmem:[%s11055_s2 + $0x28] ss:$16 sps:$4 sm:$0xff]   ;;  %v7487_v9 = vld [vmem:[%s11055_s2 + $0x44] ss:$16 sps:$4 sm:$0xff]  }
   0x4   :  { %324 = vmatprep.subr.bf16.mxu0 %v7481_v5  ;;  %397 = vmatprep.subr.bf16.mxu1 %v7483_v6  ;;  %v7489_v10 = vld [vmem:[%s11055_s2 + $0x4c] ss:$16 sps:$4 sm:$0xff]   ;;  %v7491_v11 = vld [vmem:[%s11055_s2 + $0x40] ss:$16 sps:$4 sm:$0xff]   ;;  %v7492_v12 = vld [vmem:[%s11055_s2 + $0x48] ss:$16 sps:$4 sm:$0xff]  }
   0x5   :  { %v7493_v13 = vld [vmem:[%s11055_s2 + $0x64] ss:$16 sps:$4 sm:$0xff]   ;;  %v7495_v14 = vld [vmem:[%s11055_s2 + $0x6c] ss:$16 sps:$4 sm:$0xff]   ;;  %v7497_v15 = vld [vmem:[%s11055_s2 + $0x60] ss:$16 sps:$4 sm:$0xff]  }
   0x6   :  { %v7498_v16 = vld [vmem:[%s11055_s2 + $0x68] ss:$16 sps:$4 sm:$0xff]   ;;  %v7499_v17 = vld [vmem:[%s11055_s2 + $0x84] ss:$16 sps:$4 sm:$0xff]   ;;  %v7501_v18 = vld [vmem:[%s11055_s2 + $0x8c] ss:$16 sps:$4 sm:$0xff]  }
   0x7   :  { %325 = vmatpush1.bf16.msra.mxu0 %v7485_v7  ;;  %398 = vmatpush1.bf16.msra.mxu1 %v7486_v8  ;;  %v7503_v19 = vld [vmem:[%s11055_s2 + $0x80] ss:$16 sps:$4 sm:$0xff]   ;;  %v7504_v20 = vld [vmem:[%s11055_s2 + $0x88] ss:$16 sps:$4 sm:$0xff]   ;;  %v7505_v21 = vld [vmem:[%s11055_s2 + $0xa4] ss:$16 sps:$4 sm:$0xff]  }
   0x8   :  { %326 = vmatprep.subr.bf16.mxu0 %v7487_v9  ;;  %399 = vmatprep.subr.bf16.mxu1 %v7489_v10  ;;  %v7507_v22 = vld [vmem:[%s11055_s2 + $0xac] ss:$16 sps:$4 sm:$0xff]   ;;  %v7509_v23 = vld [vmem:[%s11055_s2 + $0xa0] ss:$16 sps:$4 sm:$0xff]   ;;  %v7510_v24 = vld [vmem:[%s11055_s2 + $0xa8] ss:$16 sps:$4 sm:$0xff]  }
   0x9   :  { %v7511_v25 = vld [vmem:[%s11055_s2 + $0xc4] ss:$16 sps:$4 sm:$0xff]   ;;  %v7513_v26 = vld [vmem:[%s11055_s2 + $0xcc] ss:$16 sps:$4 sm:$0xff]   ;;  %v7515_v27 = vld [vmem:[%s11055_s2 + $0xc0] ss:$16 sps:$4 sm:$0xff]  }
   0xa   :  { %v7516_v28 = vld [vmem:[%s11055_s2 + $0xc8] ss:$16 sps:$4 sm:$0xff]   ;;  %v7517_v29 = vld [vmem:[%s11055_s2 + $0xe4] ss:$16 sps:$4 sm:$0xff]   ;;  %v7519_v30 = vld [vmem:[%s11055_s2 + $0xec] ss:$16 sps:$4 sm:$0xff]  }
   0xb   :  { %327 = vmatpush1.bf16.msra.mxu0 %v7491_v11  ;;  %400 = vmatpush1.bf16.msra.mxu1 %v7492_v12  ;;  %v7521_v31 = vld [vmem:[%s11055_s2 + $0xe0] ss:$16 sps:$4 sm:$0xff]   ;;  %v7522_v32 = vld [vmem:[%s11055_s2 + $0xe8] ss:$16 sps:$4 sm:$0xff]   ;;  %v7526_v33 = vld [vmem:[%s11057_s5 + $0x4] ss:$16 sps:$4 sm:$0xff]  }
   0xc   :  { %328 = vmatprep.subr.bf16.mxu0 %v7493_v13  ;;  %401 = vmatprep.subr.bf16.mxu1 %v7495_v14  ;;  %v7529_v34 = vld [vmem:[%s11057_s5 + $0xc] ss:$16 sps:$4 sm:$0xff]   ;;  %v7523_v35 = vld [vmem:[%s11056_s0] sm:$0xff]   ;;  %v7527_v37 = vld [vmem:[%s11057_s5 + $0x8] ss:$16 sps:$4 sm:$0xff]  }
   0xd   :  { %v7524_v36 = vld [vmem:[%s11057_s5] ss:$16 sps:$4 sm:$0xff]   ;;  %v7532_v38 = vld [vmem:[%s11057_s5 + $0x24] ss:$16 sps:$4 sm:$0xff]   ;;  %v7535_v39 = vld [vmem:[%s11057_s5 + $0x2c] ss:$16 sps:$4 sm:$0xff]  }
   0xe   :  { %v7530_v40 = vld [vmem:[%s11057_s5 + $0x20] ss:$16 sps:$4 sm:$0xff]   ;;  %v7533_v41 = vld [vmem:[%s11057_s5 + $0x28] ss:$16 sps:$4 sm:$0xff]   ;;  %v7539_v42 = vld [vmem:[%s11057_s5 + $0x44] ss:$16 sps:$4 sm:$0xff]  }
   0xf   :  { %329 = vmatpush1.bf16.msra.mxu0 %v7497_v15  ;;  %402 = vmatpush1.bf16.msra.mxu1 %v7498_v16  ;;  %v7542_v43 = vld [vmem:[%s11057_s5 + $0x4c] ss:$16 sps:$4 sm:$0xff]   ;;  %v7537_v45 = vld [vmem:[%s11057_s5 + $0x40] ss:$16 sps:$4 sm:$0xff]   ;;  %v7540_v46 = vld [vmem:[%s11057_s5 + $0x48] ss:$16 sps:$4 sm:$0xff]  }
  0x10   :  { %330 = vmatprep.subr.bf16.mxu0 %v7499_v17  ;;  %403 = vmatprep.subr.bf16.mxu1 %v7501_v18  ;;  %v7536_v44 = vld [vmem:[%s11056_s0 + $0x8] sm:$0xff]   ;;  %v7545_v47 = vld [vmem:[%s11057_s5 + $0x64] ss:$16 sps:$4 sm:$0xff]   ;;  %v7543_v49 = vld [vmem:[%s11057_s5 + $0x60] ss:$16 sps:$4 sm:$0xff]  }
  0x11   :  { %v7548_v48 = vld [vmem:[%s11057_s5 + $0x6c] ss:$16 sps:$4 sm:$0xff]   ;;  %v7546_v50 = vld [vmem:[%s11057_s5 + $0x68] ss:$16 sps:$4 sm:$0xff]   ;;  %v7552_v51 = vld [vmem:[%s11057_s5 + $0x84] ss:$16 sps:$4 sm:$0xff]  }
  0x12   :  { %v7555_v52 = vld [vmem:[%s11057_s5 + $0x8c] ss:$16 sps:$4 sm:$0xff]   ;;  %v7549_v53 = vld [vmem:[%s11056_s0 + $0x10] sm:$0xff]   ;;  %v7553_v55 = vld [vmem:[%s11057_s5 + $0x88] ss:$16 sps:$4 sm:$0xff]  }
  0x13   :  { %331 = vmatpush1.bf16.msra.mxu0 %v7503_v19  ;;  %404 = vmatpush1.bf16.msra.mxu1 %v7504_v20  ;;  %v7550_v54 = vld [vmem:[%s11057_s5 + $0x80] ss:$16 sps:$4 sm:$0xff]   ;;  %v7558_v56 = vld [vmem:[%s11057_s5 + $0xa4] ss:$16 sps:$4 sm:$0xff]   ;;  %v7561_v57 = vld [vmem:[%s11057_s5 + $0xac] ss:$16 sps:$4 sm:$0xff]  }
  0x14   :  { %332 = vmatprep.subr.bf16.mxu0 %v7505_v21  ;;  %405 = vmatprep.subr.bf16.mxu1 %v7507_v22  ;;  %v7556_v58 = vld [vmem:[%s11057_s5 + $0xa0] ss:$16 sps:$4 sm:$0xff]   ;;  %v7559_v59 = vld [vmem:[%s11057_s5 + $0xa8] ss:$16 sps:$4 sm:$0xff]   ;;  %v7565_v60 = vld [vmem:[%s11057_s5 + $0xc4] ss:$16 sps:$4 sm:$0xff]  }
  0x15   :  { %v7568_v61 = vld [vmem:[%s11057_s5 + $0xcc] ss:$16 sps:$4 sm:$0xff]   ;;  %v7563_v63 = vld [vmem:[%s11057_s5 + $0xc0] ss:$16 sps:$4 sm:$0xff]   ;;  %v7566_v0 = vld [vmem:[%s11057_s5 + $0xc8] ss:$16 sps:$4 sm:$0xff]  }
  0x16   :  { %v7562_v62 = vld [vmem:[%s11056_s0 + $0x18] sm:$0xff]   ;;  %v7571_v2 = vld [vmem:[%s11057_s5 + $0xe4] ss:$16 sps:$4 sm:$0xff]   ;;  %v7569_v4 = vld [vmem:[%s11057_s5 + $0xe0] ss:$16 sps:$4 sm:$0xff]  }
  0x17   :  { %333 = vmatpush1.bf16.msra.mxu0 %v7509_v23  ;;  %406 = vmatpush1.bf16.msra.mxu1 %v7510_v24  ;;  %v7574_v3 = vld [vmem:[%s11057_s5 + $0xec] ss:$16 sps:$4 sm:$0xff]   ;;  %v7572_v5 = vld [vmem:[%s11057_s5 + $0xe8] ss:$16 sps:$4 sm:$0xff]   ;;  %v8614_v6 = vld [vmem:[%s11059_s3 + $0x4] ss:$16 sps:$4 sm:$0xff]  }
  0x18   :  { %334 = vmatprep.subr.bf16.mxu0 %v7511_v25  ;;  %407 = vmatprep.subr.bf16.mxu1 %v7513_v26  ;;  %v8619_v7 = vld [vmem:[%s11059_s3 + $0xc] ss:$16 sps:$4 sm:$0xff]   ;;  %v7575_v8 = vld [vmem:[%s11058_s1] sm:$0xff]   ;;  %v8634_v10 = vld [vmem:[%s11059_s3 + $0x8] ss:$16 sps:$4 sm:$0xff]  }
  0x19   :  { %v8629_v9 = vld [vmem:[%s11059_s3] ss:$16 sps:$4 sm:$0xff]   ;;  %v8641_v11 = vld [vmem:[%s11059_s3 + $0x24] ss:$16 sps:$4 sm:$0xff]   ;;  %v8646_v12 = vld [vmem:[%s11059_s3 + $0x2c] ss:$16 sps:$4 sm:$0xff]  }
  0x1a   :  { %v8651_v13 = vld [vmem:[%s11059_s3 + $0x20] ss:$16 sps:$4 sm:$0xff]   ;;  %v8656_v14 = vld [vmem:[%s11059_s3 + $0x28] ss:$16 sps:$4 sm:$0xff]   ;;  %v8663_v15 = vld [vmem:[%s11059_s3 + $0x44] ss:$16 sps:$4 sm:$0xff]  }
  0x1b   :  { %335 = vmatpush1.bf16.msra.mxu0 %v7515_v27  ;;  %408 = vmatpush1.bf16.msra.mxu1 %v7516_v28  ;;  %v8670_v16 = vld [vmem:[%s11059_s3 + $0x4c] ss:$16 sps:$4 sm:$0xff]   ;;  %v8680_v18 = vld [vmem:[%s11059_s3 + $0x40] ss:$16 sps:$4 sm:$0xff]   ;;  %v8685_v19 = vld [vmem:[%s11059_s3 + $0x48] ss:$16 sps:$4 sm:$0xff]  }
  0x1c   :  { %336 = vmatprep.subr.bf16.mxu0 %v7517_v29  ;;  %409 = vmatprep.subr.bf16.mxu1 %v7519_v30  ;;  %v7588_v17 = vld [vmem:[%s11058_s1 + $0x8] sm:$0xff]   ;;  %v8692_v20 = vld [vmem:[%s11059_s3 + $0x64] ss:$16 sps:$4 sm:$0xff]   ;;  %v8704_v22 = vld [vmem:[%s11059_s3 + $0x60] ss:$16 sps:$4 sm:$0xff]  }
  0x1d   :  { %v8699_v21 = vld [vmem:[%s11059_s3 + $0x6c] ss:$16 sps:$4 sm:$0xff]   ;;  %v8709_v23 = vld [vmem:[%s11059_s3 + $0x68] ss:$16 sps:$4 sm:$0xff]   ;;  %v8716_v24 = vld [vmem:[%s11059_s3 + $0x84] ss:$16 sps:$4 sm:$0xff]  }
  0x1e   :  { %v8723_v25 = vld [vmem:[%s11059_s3 + $0x8c] ss:$16 sps:$4 sm:$0xff]   ;;  %v7601_v26 = vld [vmem:[%s11058_s1 + $0x10] sm:$0xff]   ;;  %v8738_v28 = vld [vmem:[%s11059_s3 + $0x88] ss:$16 sps:$4 sm:$0xff]  }
  0x1f   :  { %337 = vmatpush1.bf16.msra.mxu0 %v7521_v31  ;;  %410 = vmatpush1.bf16.msra.mxu1 %v7522_v32  ;;  %v8733_v27 = vld [vmem:[%s11059_s3 + $0x80] ss:$16 sps:$4 sm:$0xff]   ;;  %v8745_v29 = vld [vmem:[%s11059_s3 + $0xa4] ss:$16 sps:$4 sm:$0xff]   ;;  %v8752_v30 = vld [vmem:[%s11059_s3 + $0xac] ss:$16 sps:$4 sm:$0xff]  }
  0x20   :  { %746 = vmatprep.subr.bf16.mxu0 %v7526_v33  ;;  %819 = vmatprep.subr.bf16.mxu1 %v7529_v34  ;;  %v8757_v31 = vld [vmem:[%s11059_s3 + $0xa0] ss:$16 sps:$4 sm:$0xff]   ;;  %v8762_v32 = vld [vmem:[%s11059_s3 + $0xa8] ss:$16 sps:$4 sm:$0xff]   ;;  %v8769_v33 = vld [vmem:[%s11059_s3 + $0xc4] ss:$16 sps:$4 sm:$0xff]  }
  0x21   :  { %v8776_v34 = vld [vmem:[%s11059_s3 + $0xcc] ss:$16 sps:$4 sm:$0xff]  }
  0x22   :  { %355 = vmatmul.mubr.bf16.vlgmr.msra.gmra.mrb[0].mxu0 %v7523_v35  ;;  %428 = vmatmul.mubr.bf16.vlgmr.msra.gmra.mrb[0].mxu1 %v7523_v35  ;;  %v7614_v35 = vld [vmem:[%s11058_s1 + $0x18] sm:$0xff]  }
  0x23   :  { %747 = vmatpush1.bf16.msra.mxu0 %v7524_v36  ;;  %820 = vmatpush1.bf16.msra.mxu1 %v7527_v37  ;;  %v8786_v36 = vld [vmem:[%s11059_s3 + $0xc0] ss:$16 sps:$4 sm:$0xff]   ;;  %v8791_v37 = vld [vmem:[%s11059_s3 + $0xc8] ss:$16 sps:$4 sm:$0xff]  }
  0x24   :  { %748 = vmatprep.subr.bf16.mxu0 %v7532_v38  ;;  %821 = vmatprep.subr.bf16.mxu1 %v7535_v39  ;;  %v8798_v38 = vld [vmem:[%s11059_s3 + $0xe4] ss:$16 sps:$4 sm:$0xff]   ;;  %v8805_v39 = vld [vmem:[%s11059_s3 + $0xec] ss:$16 sps:$4 sm:$0xff]  }
  0x25   :  { %364 = vmatprep.mubr.bf16.mxu0 %v11065_v1  ;;  %437 = vmatprep.mubr.bf16.mxu1 %v11065_v1 }
  0x27   :  { %749 = vmatpush1.bf16.msra.mxu0 %v7530_v40  ;;  %822 = vmatpush1.bf16.msra.mxu1 %v7533_v41  ;;  %v8810_v40 = vld [vmem:[%s11059_s3 + $0xe0] ss:$16 sps:$4 sm:$0xff]   ;;  %v8817_v41 = vld [vmem:[%s11059_s3 + $0xe8] ss:$16 sps:$4 sm:$0xff]  }
  0x28   :  { %750 = vmatprep.subr.bf16.mxu0 %v7539_v42  ;;  %823 = vmatprep.subr.bf16.mxu1 %v7542_v43  ;;  %v8824_v42 = vld [vmem:[%s11060_s6 + $0x4] ss:$16 sps:$4 sm:$0xff]   ;;  %v8829_v43 = vld [vmem:[%s11060_s6 + $0xc] ss:$16 sps:$4 sm:$0xff]  }
  0x2a   :  { %365 = vmatmul.mubr.bf16.gmra.mrb[4].mxu0 %v7536_v44  ;;  %438 = vmatmul.mubr.bf16.gmra.mrb[4].mxu1 %v7536_v44  ;;  %v7627_v44 = vld [vmem:[%s11060_s6] ss:$16 sps:$4 sm:$0xff]  }
  0x2b   :  { %751 = vmatpush1.bf16.msra.mxu0 %v7537_v45  ;;  %824 = vmatpush1.bf16.msra.mxu1 %v7540_v46  ;;  %v7630_v45 = vld [vmem:[%s11060_s6 + $0x8] ss:$16 sps:$4 sm:$0xff]   ;;  %v7635_v46 = vld [vmem:[%s11060_s6 + $0x24] ss:$16 sps:$4 sm:$0xff]  }
  0x2c   :  { %752 = vmatprep.subr.bf16.mxu0 %v7545_v47  ;;  %825 = vmatprep.subr.bf16.mxu1 %v7548_v48  ;;  %v7638_v47 = vld [vmem:[%s11060_s6 + $0x2c] ss:$16 sps:$4 sm:$0xff]   ;;  %v7633_v48 = vld [vmem:[%s11060_s6 + $0x20] ss:$16 sps:$4 sm:$0xff]  }
  0x2d   :  { %374 = vmatprep.mubr.bf16.mxu0 %v11065_v1  ;;  %447 = vmatprep.mubr.bf16.mxu1 %v11065_v1 }
  0x2f   :  { %753 = vmatpush1.bf16.msra.mxu0 %v7543_v49  ;;  %826 = vmatpush1.bf16.msra.mxu1 %v7546_v50  ;;  %v7636_v49 = vld [vmem:[%s11060_s6 + $0x28] ss:$16 sps:$4 sm:$0xff]   ;;  %v8348_v50 = vmov 0.0|0.0  }
  0x30   :  { %754 = vmatprep.subr.bf16.mxu0 %v7552_v51  ;;  %827 = vmatprep.subr.bf16.mxu1 %v7555_v52  ;;  %v7641_v51 = vld [vmem:[%s11060_s6 + $0x44] ss:$16 sps:$4 sm:$0xff]   ;;  %v7644_v52 = vld [vmem:[%s11060_s6 + $0x4c] ss:$16 sps:$4 sm:$0xff]  }
  0x32   :  { %375 = vmatmul.mubr.bf16.gmra.mrb[8].mxu0 %v7549_v53  ;;  %448 = vmatmul.mubr.bf16.gmra.mrb[8].mxu1 %v7549_v53  ;;  %v7639_v53 = vld [vmem:[%s11060_s6 + $0x40] ss:$16 sps:$4 sm:$0xff]  }
  0x33   :  { %755 = vmatpush1.bf16.msra.mxu0 %v7550_v54  ;;  %828 = vmatpush1.bf16.msra.mxu1 %v7553_v55  ;;  %v7642_v54 = vld [vmem:[%s11060_s6 + $0x48] ss:$16 sps:$4 sm:$0xff]   ;;  %v7647_v55 = vld [vmem:[%s11060_s6 + $0x64] ss:$16 sps:$4 sm:$0xff]  }
  0x34   :  { %756 = vmatprep.subr.bf16.mxu0 %v7558_v56  ;;  %829 = vmatprep.subr.bf16.mxu1 %v7561_v57  ;;  %v7650_v56 = vld [vmem:[%s11060_s6 + $0x6c] ss:$16 sps:$4 sm:$0xff]   ;;  %v7645_v57 = vld [vmem:[%s11060_s6 + $0x60] ss:$16 sps:$4 sm:$0xff]  }
  0x35   :  { %384 = vmatprep.mubr.bf16.mxu0 %v11065_v1  ;;  %457 = vmatprep.mubr.bf16.mxu1 %v11065_v1 }
  0x37   :  { %757 = vmatpush1.bf16.msra.mxu0 %v7556_v58  ;;  %830 = vmatpush1.bf16.msra.mxu1 %v7559_v59  ;;  %v7648_v58 = vld [vmem:[%s11060_s6 + $0x68] ss:$16 sps:$4 sm:$0xff]   ;;  %v7653_v59 = vld [vmem:[%s11060_s6 + $0x84] ss:$16 sps:$4 sm:$0xff]  }
  0x38   :  { %758 = vmatprep.subr.bf16.mxu0 %v7565_v60  ;;  %831 = vmatprep.subr.bf16.mxu1 %v7568_v61  ;;  %v7656_v60 = vld [vmem:[%s11060_s6 + $0x8c] ss:$16 sps:$4 sm:$0xff]   ;;  %v7651_v61 = vld [vmem:[%s11060_s6 + $0x80] ss:$16 sps:$4 sm:$0xff]  }
  0x3a   :  { %385 = vmatmul.mubr.bf16.gmra.mrb[12].mxu0 %v7562_v62  ;;  %458 = vmatmul.mubr.bf16.gmra.mrb[12].mxu1 %v7562_v62  ;;  %v7654_v62 = vld [vmem:[%s11060_s6 + $0x88] ss:$16 sps:$4 sm:$0xff]  }
  0x3b   :  { %759 = vmatpush1.bf16.msra.mxu0 %v7563_v63  ;;  %832 = vmatpush1.bf16.msra.mxu1 %v7566_v0  ;;  %v7659_v63 = vld [vmem:[%s11060_s6 + $0xa4] ss:$16 sps:$4 sm:$0xff]   ;;  %v7662_v0 = vld [vmem:[%s11060_s6 + $0xac] ss:$16 sps:$4 sm:$0xff]  }
  0x3c   :  { %760 = vmatprep.subr.bf16.mxu0 %v7571_v2  ;;  %833 = vmatprep.subr.bf16.mxu1 %v7574_v3  ;;  %v7657_v2 = vld [vmem:[%s11060_s6 + $0xa0] ss:$16 sps:$4 sm:$0xff]   ;;  %v7660_v3 = vld [vmem:[%s11060_s6 + $0xa8] ss:$16 sps:$4 sm:$0xff]  }
  0x3d   :  { %778 = vmatprep.mubr.bf16.mxu0 %v11065_v1  ;;  %851 = vmatprep.mubr.bf16.mxu1 %v11065_v1 }
  0x3f   :  { %761 = vmatpush1.bf16.msra.mxu0 %v7569_v4  ;;  %834 = vmatpush1.bf16.msra.mxu1 %v7572_v5  ;;  %v7665_v4 = vld [vmem:[%s11060_s6 + $0xc4] ss:$16 sps:$4 sm:$0xff]   ;;  %v7668_v5 = vld [vmem:[%s11060_s6 + $0xcc] ss:$16 sps:$4 sm:$0xff]  }
  0x40   :  { %1135 = vmatprep.subr.bf16.mxu0 %v8614_v6  ;;  %1176 = vmatprep.subr.bf16.mxu1 %v8619_v7 }
  0x42   :  { %779 = vmatmul.mubr.bf16.vlgmr.msra.gmra.mrb[16].mxu0 %v7575_v8  ;;  %852 = vmatmul.mubr.bf16.vlgmr.msra.gmra.mrb[16].mxu1 %v7575_v8  ;;  %v8914_v8 = vld [vmem:[%s11060_s6 + $0xc0] ss:$16 sps:$4 sm:$0xff]  }
  0x43   :  { %1136 = vmatpush1.bf16.msra.mxu0 %v8629_v9  ;;  %1177 = vmatpush1.bf16.msra.mxu1 %v8634_v10 }
  0x44   :  { %1137 = vmatprep.subr.bf16.mxu0 %v8641_v11  ;;  %1178 = vmatprep.subr.bf16.mxu1 %v8646_v12 }
  0x45   :  { %788 = vmatprep.mubr.bf16.mxu0 %v11065_v1  ;;  %861 = vmatprep.mubr.bf16.mxu1 %v11065_v1 }
  0x47   :  { %1138 = vmatpush1.bf16.msra.mxu0 %v8651_v13  ;;  %1179 = vmatpush1.bf16.msra.mxu1 %v8656_v14 }
  0x48   :  { %1139 = vmatprep.subr.bf16.mxu0 %v8663_v15  ;;  %1180 = vmatprep.subr.bf16.mxu1 %v8670_v16 }
  0x4a   :  { %789 = vmatmul.mubr.bf16.gmra.mrb[20].mxu0 %v7588_v17  ;;  %862 = vmatmul.mubr.bf16.gmra.mrb[20].mxu1 %v7588_v17  ;;  %v8919_v17 = vld [vmem:[%s11060_s6 + $0xc8] ss:$16 sps:$4 sm:$0xff]  }
  0x4b   :  { %1140 = vmatpush1.bf16.msra.mxu0 %v8680_v18  ;;  %1181 = vmatpush1.bf16.msra.mxu1 %v8685_v19 }
  0x4c   :  { %1141 = vmatprep.subr.bf16.mxu0 %v8692_v20  ;;  %1182 = vmatprep.subr.bf16.mxu1 %v8699_v21 }
  0x4d   :  { %798 = vmatprep.mubr.bf16.mxu0 %v11065_v1  ;;  %871 = vmatprep.mubr.bf16.mxu1 %v11065_v1 }
  0x4f   :  { %1142 = vmatpush1.bf16.msra.mxu0 %v8704_v22  ;;  %1183 = vmatpush1.bf16.msra.mxu1 %v8709_v23 }
  0x50   :  { %1143 = vmatprep.subr.bf16.mxu0 %v8716_v24  ;;  %1184 = vmatprep.subr.bf16.mxu1 %v8723_v25 }
  0x52   :  { %799 = vmatmul.mubr.bf16.gmra.mrb[24].mxu0 %v7601_v26  ;;  %872 = vmatmul.mubr.bf16.gmra.mrb[24].mxu1 %v7601_v26  ;;  %v8924_v26 = vld [vmem:[%s11060_s6 + $0xe4] ss:$16 sps:$4 sm:$0xff]  }
  0x53   :  { %1144 = vmatpush1.bf16.msra.mxu0 %v8733_v27  ;;  %1185 = vmatpush1.bf16.msra.mxu1 %v8738_v28 }
  0x54   :  { %1145 = vmatprep.subr.bf16.mxu0 %v8745_v29  ;;  %1186 = vmatprep.subr.bf16.mxu1 %v8752_v30 }
  0x55   :  { %808 = vmatprep.mubr.bf16.mxu0 %v11065_v1  ;;  %881 = vmatprep.mubr.bf16.mxu1 %v11065_v1 }
  0x57   :  { %1146 = vmatpush1.bf16.msra.mxu0 %v8757_v31  ;;  %1187 = vmatpush1.bf16.msra.mxu1 %v8762_v32 }
  0x58   :  { %1147 = vmatprep.subr.bf16.mxu0 %v8769_v33  ;;  %1188 = vmatprep.subr.bf16.mxu1 %v8776_v34 }
  0x5a   :  { %809 = vmatmul.mubr.bf16.gmra.mrb[28].mxu0 %v7614_v35  ;;  %882 = vmatmul.mubr.bf16.gmra.mrb[28].mxu1 %v7614_v35  ;;  %v8929_v35 = vld [vmem:[%s11060_s6 + $0xec] ss:$16 sps:$4 sm:$0xff]  }
  0x5b   :  { %1148 = vmatpush1.bf16.msra.mxu0 %v8786_v36  ;;  %1189 = vmatpush1.bf16.msra.mxu1 %v8791_v37 }
  0x5c   :  { %1149 = vmatprep.subr.bf16.mxu0 %v8798_v38  ;;  %1190 = vmatprep.subr.bf16.mxu1 %v8805_v39 }
  0x5d   :  { %1167 = vmatprep.mubr.bf16.mxu0 %v11065_v1  ;;  %1208 = vmatprep.mubr.bf16.mxu1 %v11065_v1 }
  0x5f   :  { %1150 = vmatpush1.bf16.msra.mxu0 %v8810_v40  ;;  %1191 = vmatpush1.bf16.msra.mxu1 %v8817_v41 }
  0x60   :  { %1434 = vmatprep.subr.bf16.mxu0 %v8824_v42  ;;  %1475 = vmatprep.subr.bf16.mxu1 %v8829_v43 }
  0x62   :  { %1168 = vmatmul.mubr.bf16.vlgmr.msra.gmra.mrb[32].mxu0 %v8348_v50  ;;  %1209 = vmatmul.mubr.bf16.vlgmr.msra.gmra.mrb[32].mxu1 %v8348_v50 }
  0x63   :  { %1435 = vmatpush1.bf16.msra.mxu0 %v7627_v44  ;;  %1476 = vmatpush1.bf16.msra.mxu1 %v7630_v45  ;;  %v8934_v44 = vld [vmem:[%s11060_s6 + $0xe0] ss:$16 sps:$4 sm:$0xff]   ;;  %v8939_v45 = vld [vmem:[%s11060_s6 + $0xe8] ss:$16 sps:$4 sm:$0xff]  }
  0x64   :  { %1436 = vmatprep.subr.bf16.mxu0 %v7635_v46  ;;  %1477 = vmatprep.subr.bf16.mxu1 %v7638_v47 }
  0x65   :  { %1466 = vmatprep.mubr.bf16.mxu0 %v11065_v1  ;;  %1507 = vmatprep.mubr.bf16.mxu1 %v11065_v1 }
  0x67   :  { %1437 = vmatpush1.bf16.msra.mxu0 %v7633_v48  ;;  %1478 = vmatpush1.bf16.msra.mxu1 %v7636_v49 }
  0x68   :  { %1438 = vmatprep.subr.bf16.mxu0 %v7641_v51  ;;  %1479 = vmatprep.subr.bf16.mxu1 %v7644_v52 }
  0x6b   :  { %1439 = vmatpush1.bf16.msra.mxu0 %v7639_v53  ;;  %1480 = vmatpush1.bf16.msra.mxu1 %v7642_v54 }
  0x6c   :  { %1440 = vmatprep.subr.bf16.mxu0 %v7647_v55  ;;  %1481 = vmatprep.subr.bf16.mxu1 %v7650_v56 }
  0x6f   :  { %1441 = vmatpush1.bf16.msra.mxu0 %v7645_v57  ;;  %1482 = vmatpush1.bf16.msra.mxu1 %v7648_v58 }
  0x70   :  { %1442 = vmatprep.subr.bf16.mxu0 %v7653_v59  ;;  %1483 = vmatprep.subr.bf16.mxu1 %v7656_v60 }
  0x73   :  { %1443 = vmatpush1.bf16.msra.mxu0 %v7651_v61  ;;  %1484 = vmatpush1.bf16.msra.mxu1 %v7654_v62 }
  0x74   :  { %1444 = vmatprep.subr.bf16.mxu0 %v7659_v63  ;;  %1485 = vmatprep.subr.bf16.mxu1 %v7662_v0 }
  0x77   :  { %1445 = vmatpush1.bf16.msra.mxu0 %v7657_v2  ;;  %1486 = vmatpush1.bf16.msra.mxu1 %v7660_v3 }
  0x78   :  { %1446 = vmatprep.subr.bf16.mxu0 %v7665_v4  ;;  %1487 = vmatprep.subr.bf16.mxu1 %v7668_v5 }
  0x7b   :  { %1447 = vmatpush1.bf16.msra.mxu0 %v8914_v8  ;;  %1488 = vmatpush1.bf16.msra.mxu1 %v8919_v17 }
  0x7c   :  { %1448 = vmatprep.subr.bf16.mxu0 %v8924_v26  ;;  %1489 = vmatprep.subr.bf16.mxu1 %v8929_v35 }
  0x7f   :  { %1449 = vmatpush1.bf16.msra.mxu0 %v8934_v44  ;;  %1490 = vmatpush1.bf16.msra.mxu1 %v8939_v45 }
  0x80   :  { %1751 = vmatprep.subr.bf16.mxu0 %v8614_v6  ;;  %1792 = vmatprep.subr.bf16.mxu1 %v8619_v7  ;;  %v118_v6 = vlaneseq }
  0x82   :  { %1467 = vmatmul.mubr.bf16.vlgmr.msra.gmra.mrb[36].mxu0 %v8348_v50  ;;  %1508 = vmatmul.mubr.bf16.vlgmr.msra.gmra.mrb[36].mxu1 %v8348_v50  ;;  %v8983_v7 = vshrl.u32 %v118_v6, 7 }
  0x83   :  { %1752 = vmatpush1.bf16.msra.mxu0 %v8629_v9  ;;  %1793 = vmatpush1.bf16.msra.mxu1 %v8634_v10 }
  0x84   :  { %1753 = vmatprep.subr.bf16.mxu0 %v8641_v11  ;;  %1794 = vmatprep.subr.bf16.mxu1 %v8646_v12  ;;  %v128_v9 = vsub.s32 2, %v8983_v7  ;;  %v132_v10 = vsub.s32 3, %v8983_v7  ;;  %v120_v11 = vsub.s32 0, %v8983_v7  ;;  %v116_v12 = vld [vmem:[%s11061_s4] sm:$0xf] }
  0x85   :  { %1783 = vmatprep.mubr.bf16.mxu0 %v11065_v1  ;;  %1824 = vmatprep.mubr.bf16.mxu1 %v11065_v1 }
  0x87   :  { %1754 = vmatpush1.bf16.msra.mxu0 %v8651_v13  ;;  %1795 = vmatpush1.bf16.msra.mxu1 %v8656_v14  ;;  %v124_v13 = vsub.s32 1, %v8983_v7  ;;  %v8994_v14 = vrot.slane %v116_v12, %v128_v9 }
  0x88   :  { %1755 = vmatprep.subr.bf16.mxu0 %v8663_v15  ;;  %1796 = vmatprep.subr.bf16.mxu1 %v8670_v16 }
  0x8b   :  { %1756 = vmatpush1.bf16.msra.mxu0 %v8680_v18  ;;  %1797 = vmatpush1.bf16.msra.mxu1 %v8685_v19  ;;  %v9002_v18 = vrot.slane %v116_v12, %v132_v10  ;;  %v9006_v19 = vrot.slane %v116_v12, %v120_v11 }
  0x8c   :  { %1757 = vmatprep.subr.bf16.mxu0 %v8692_v20  ;;  %1798 = vmatprep.subr.bf16.mxu1 %v8699_v21 }
  0x8f   :  { %1758 = vmatpush1.bf16.msra.mxu0 %v8704_v22  ;;  %1799 = vmatpush1.bf16.msra.mxu1 %v8709_v23  ;;  %v9014_v22 = vrot.slane %v116_v12, %v124_v13 }
  0x90   :  { %1759 = vmatprep.subr.bf16.mxu0 %v8716_v24  ;;  %1800 = vmatprep.subr.bf16.mxu1 %v8723_v25 }
  0x93   :  { %1760 = vmatpush1.bf16.msra.mxu0 %v8733_v27  ;;  %1801 = vmatpush1.bf16.msra.mxu1 %v8738_v28 }
  0x94   :  { %1761 = vmatprep.subr.bf16.mxu0 %v8745_v29  ;;  %1802 = vmatprep.subr.bf16.mxu1 %v8752_v30 }
  0x97   :  { %1762 = vmatpush1.bf16.msra.mxu0 %v8757_v31  ;;  %1803 = vmatpush1.bf16.msra.mxu1 %v8762_v32 }
  0x98   :  { %1763 = vmatprep.subr.bf16.mxu0 %v8769_v33  ;;  %1804 = vmatprep.subr.bf16.mxu1 %v8776_v34 }
  0x9b   :  { %1764 = vmatpush1.bf16.msra.mxu0 %v8786_v36  ;;  %1805 = vmatpush1.bf16.msra.mxu1 %v8791_v37 }
  0x9c   :  { %1765 = vmatprep.subr.bf16.mxu0 %v8798_v38  ;;  %1806 = vmatprep.subr.bf16.mxu1 %v8805_v39 }
  0x9f   :  { %1766 = vmatpush1.bf16.msra.mxu0 %v8810_v40  ;;  %1807 = vmatpush1.bf16.msra.mxu1 %v8817_v41 }
  0xa0   :  { %2049 = vmatprep.subr.bf16.mxu0 %v8824_v42  ;;  %2090 = vmatprep.subr.bf16.mxu1 %v8829_v43 }
  0xf5   :  { %v8996_v15 = vpop.f32.mrb[0].mxu0  ;;  %v8998_v16 = vpop.f32.mrb[0].mxu1 }
  0xf6   :  { %v9008_v20 = vpop.f32.mrb[1].mxu0  ;;  %v9010_v21 = vpop.f32.mrb[1].mxu1 }
  0xf7   :  { %v360_v23 = vpop.f32.mrb[2].mxu0  ;;  %v433_v24 = vpop.f32.mrb[2].mxu1 }
  0xf8   :  { %v9017_v25 = vadd.f32 %v360_v23, %v9006_v19  ;;  %v362_v27 = vpop.f32.mrb[3].mxu0  ;;  %v9020_v28 = vadd.f32 %v433_v24, %v8994_v14  ;;  %v435_v29 = vpop.f32.mrb[3].mxu1 }
  0xf9   :  { %v9023_v30 = vadd.f32 %v362_v27, %v9014_v22  ;;  %v9026_v31 = vadd.f32 %v435_v29, %v9002_v18 }
  0xfd   :  { %v366_v32 = vpop.f32.mrb[4].mxu0  ;;  %v439_v33 = vpop.f32.mrb[4].mxu1 }
  0xfe   :  { %v9029_v34 = vadd.f32 %v366_v32, %v9006_v19  ;;  %v368_v36 = vpop.f32.mrb[5].mxu0  ;;  %v9032_v37 = vadd.f32 %v439_v33, %v8994_v14  ;;  %v441_v38 = vpop.f32.mrb[5].mxu1  ;;  %v540_v32 = vld [vmem:[%s11062_s7] sm:$0xf] }
  0xff   :  { %v9035_v39 = vadd.f32 %v368_v36, %v9014_v22  ;;  %v370_v40 = vpop.f32.mrb[6].mxu0  ;;  %v9038_v41 = vadd.f32 %v441_v38, %v9002_v18  ;;  %v443_v42 = vpop.f32.mrb[6].mxu1 }
 0x100   :  { %v9041_v43 = vadd.f32 %v370_v40, %v9006_v19  ;;  %v372_v46 = vpop.f32.mrb[7].mxu0  ;;  %v9044_v47 = vadd.f32 %v443_v42, %v8994_v14  ;;  %v445_v48 = vpop.f32.mrb[7].mxu1 }
 0x101   :  { %11090 = vst [vmem:[#allocation8_spill] sm:$0xff] %v9035_v39  ;;  %11091 = vst [vmem:[#allocation9_spill] sm:$0xff] %v9038_v41  ;;  %v9047_v49 = vadd.f32 %v372_v46, %v9014_v22  ;;  %v9050_v50 = vadd.f32 %v445_v48, %v9002_v18 }
 0x102   :  { %11092 = vst [vmem:[#allocation10_spill] sm:$0xff] %v9041_v43  ;;  %11093 = vst [vmem:[#allocation11_spill] sm:$0xff] %v9044_v47 }
 0x103   :  { %11094 = vst [vmem:[#allocation12_spill] sm:$0xff] %v9047_v49  ;;  %11095 = vst [vmem:[#allocation13_spill] sm:$0xff] %v9050_v50 }
 0x105   :  { %v376_v51 = vpop.f32.mrb[8].mxu0  ;;  %v449_v52 = vpop.f32.mrb[8].mxu1 }
 0x106   :  { %v9053_v53 = vadd.f32 %v376_v51, %v9006_v19  ;;  %v378_v54 = vpop.f32.mrb[9].mxu0  ;;  %v9056_v55 = vadd.f32 %v449_v52, %v8994_v14  ;;  %v451_v56 = vpop.f32.mrb[9].mxu1  ;;  %v9105_v52 = vrot.slane %v540_v32, %v120_v11 }
 0x107   :  { %v9059_v57 = vadd.f32 %v378_v54, %v9014_v22  ;;  %v380_v58 = vpop.f32.mrb[10].mxu0  ;;  %v9062_v59 = vadd.f32 %v451_v56, %v9002_v18  ;;  %v453_v60 = vpop.f32.mrb[10].mxu1  ;;  %v9109_v54 = vrot.slane %v540_v32, %v128_v9  ;;  %v9113_v56 = vrot.slane %v540_v32, %v124_v13 }
 0x108   :  { %11096 = vst [vmem:[#allocation14_spill] sm:$0xff] %v9053_v53  ;;  %11097 = vst [vmem:[#allocation15_spill] sm:$0xff] %v9056_v55  ;;  %v9065_v61 = vadd.f32 %v380_v58, %v9006_v19  ;;  %v382_v62 = vpop.f32.mrb[11].mxu0  ;;  %v9068_v63 = vadd.f32 %v453_v60, %v8994_v14  ;;  %v455_v0 = vpop.f32.mrb[11].mxu1  ;;  %v9117_v58 = vrot.slane %v540_v32, %v132_v10 }
 0x109   :  { %11098 = vst [vmem:[#allocation16_spill] sm:$0xff] %v9059_v57  ;;  %11099 = vst [vmem:[#allocation17_spill] sm:$0xff] %v9062_v59  ;;  %v9071_v2 = vadd.f32 %v382_v62, %v9014_v22  ;;  %v9074_v3 = vadd.f32 %v455_v0, %v9002_v18 }
 0x10a   :  { %11100 = vst [vmem:[#allocation18_spill] sm:$0xff] %v9065_v61  ;;  %11101 = vst [vmem:[#allocation19_spill] sm:$0xff] %v9068_v63 }
 0x10b   :  { %11102 = vst [vmem:[#allocation20_spill] sm:$0xff] %v9071_v2  ;;  %11103 = vst [vmem:[#allocation21_spill] sm:$0xff] %v9074_v3 }
 0x10d   :  { %v386_v4 = vpop.f32.mrb[12].mxu0  ;;  %v459_v5 = vpop.f32.mrb[12].mxu1 }
 0x10e   :  { %v9077_v6 = vadd.f32 %v386_v4, %v9006_v19  ;;  %v388_v12 = vpop.f32.mrb[13].mxu0  ;;  %v9080_v23 = vadd.f32 %v459_v5, %v8994_v14  ;;  %v461_v24 = vpop.f32.mrb[13].mxu1 }
 0x10f   :  { %v9083_v27 = vadd.f32 %v388_v12, %v9014_v22  ;;  %v390_v29 = vpop.f32.mrb[14].mxu0  ;;  %v9089_v33 = vadd.f32 %v461_v24, %v9002_v18  ;;  %v463_v36 = vpop.f32.mrb[14].mxu1 }
 0x110   :  { %11104 = vst [vmem:[#allocation22_spill] sm:$0xff] %v9077_v6  ;;  %11105 = vst [vmem:[#allocation23_spill] sm:$0xff] %v9080_v23  ;;  %v9092_v38 = vadd.f32 %v390_v29, %v9006_v19  ;;  %v392_v40 = vpop.f32.mrb[15].mxu0  ;;  %v9095_v42 = vadd.f32 %v463_v36, %v8994_v14  ;;  %v465_v46 = vpop.f32.mrb[15].mxu1 }
 0x111   :  { %11106 = vst [vmem:[#allocation24_spill] sm:$0xff] %v9083_v27  ;;  %11107 = vst [vmem:[#allocation25_spill] sm:$0xff] %v9089_v33  ;;  %v9098_v48 = vadd.f32 %v392_v40, %v9014_v22  ;;  %v9101_v51 = vadd.f32 %v465_v46, %v9002_v18 }
 0x112   :  { %11108 = vst [vmem:[#allocation26_spill] sm:$0xff] %v9092_v38  ;;  %11109 = vst [vmem:[#allocation27_spill] sm:$0xff] %v9095_v42 }
 0x113   :  { %11110 = vst [vmem:[#allocation28_spill] sm:$0xff] %v9098_v48  ;;  %11111 = vst [vmem:[#allocation29_spill] sm:$0xff] %v9101_v51 }
 0x115   :  { %v780_v60 = vpop.f32.mrb[16].mxu0  ;;  %v853_v62 = vpop.f32.mrb[16].mxu1 }
 0x116   :  { %v9120_v0 = vadd.f32 %v780_v60, %v9105_v52  ;;  %v782_v4 = vpop.f32.mrb[17].mxu0  ;;  %v9123_v11 = vadd.f32 %v853_v62, %v9109_v54  ;;  %v855_v5 = vpop.f32.mrb[17].mxu1 }
 0x117   :  { %v9126_v9 = vadd.f32 %v782_v4, %v9113_v56  ;;  %v784_v12 = vpop.f32.mrb[18].mxu0  ;;  %v9129_v13 = vadd.f32 %v855_v5, %v9117_v58  ;;  %v857_v7 = vpop.f32.mrb[18].mxu1 }
 0x118   :  { %11112 = vst [vmem:[#allocation30_spill] sm:$0xff] %v9120_v0  ;;  %11113 = vst [vmem:[#allocation31_spill] sm:$0xff] %v9123_v11  ;;  %v9132_v10 = vadd.f32 %v784_v12, %v9105_v52  ;;  %v786_v24 = vpop.f32.mrb[19].mxu0  ;;  %v9135_v29 = vadd.f32 %v857_v7, %v9109_v54  ;;  %v859_v32 = vpop.f32.mrb[19].mxu1 }
 0x119   :  { %11114 = vst [vmem:[#allocation32_spill] sm:$0xff] %v9126_v9  ;;  %11115 = vst [vmem:[#allocation33_spill] sm:$0xff] %v9129_v13  ;;  %v9138_v36 = vadd.f32 %v786_v24, %v9113_v56  ;;  %v9141_v40 = vadd.f32 %v859_v32, %v9117_v58 }
 0x11a   :  { %11116 = vst [vmem:[#allocation34_spill] sm:$0xff] %v9132_v10  ;;  %11117 = vst [vmem:[#allocation35_spill] sm:$0xff] %v9135_v29 }
 0x11b   :  { %11118 = vst [vmem:[#allocation36_spill] sm:$0xff] %v9138_v36  ;;  %11119 = vst [vmem:[#allocation37_spill] sm:$0xff] %v9141_v40 }
 0x11d   :  { %v790_v46 = vpop.f32.mrb[20].mxu0  ;;  %v863_v60 = vpop.f32.mrb[20].mxu1 }
 0x11e   :  { %v9144_v62 = vadd.f32 %v790_v46, %v9105_v52  ;;  %v792_v4 = vpop.f32.mrb[21].mxu0  ;;  %v9147_v5 = vadd.f32 %v863_v60, %v9109_v54  ;;  %v865_v12 = vpop.f32.mrb[21].mxu1 }
 0x11f   :  { %v9150_v7 = vadd.f32 %v792_v4, %v9113_v56  ;;  %v794_v1 = vpop.f32.mrb[22].mxu0  ;;  %v9153_v24 = vadd.f32 %v865_v12, %v9117_v58  ;;  %v867_v13 = vpop.f32.mrb[22].mxu1 }
 0x120   :  { %11120 = vst [vmem:[#allocation38_spill] sm:$0xff] %v9144_v62  ;;  %11121 = vst [vmem:[#allocation39_spill] sm:$0xff] %v9147_v5  ;;  %v9156_v32 = vadd.f32 %v794_v1, %v9105_v52  ;;  %v796_v9 = vpop.f32.mrb[23].mxu0  ;;  %v9159_v46 = vadd.f32 %v867_v13, %v9109_v54  ;;  %v869_v11 = vpop.f32.mrb[23].mxu1  ;;  %v357_v5 = vadd.f32 %v8996_v15, %v9006_v19 }
 0x121   :  { %11122 = vst [vmem:[#allocation40_spill] sm:$0xff] %v9150_v7  ;;  %11123 = vst [vmem:[#allocation41_spill] sm:$0xff] %v9153_v24  ;;  %v9162_v60 = vadd.f32 %v796_v9, %v9113_v56  ;;  %v9165_v0 = vadd.f32 %v869_v11, %v9117_v58 }
 0x122   :  { %11124 = vst [vmem:[#allocation42_spill] sm:$0xff] %v9156_v32  ;;  %11125 = vst [vmem:[#allocation43_spill] sm:$0xff] %v9159_v46 }
 0x123   :  { %11126 = vst [vmem:[#allocation44_spill] sm:$0xff] %v9162_v60  ;;  %11127 = vst [vmem:[#allocation45_spill] sm:$0xff] %v9165_v0 }
 0x125   :  { %v800_v4 = vpop.f32.mrb[24].mxu0  ;;  %v873_v51 = vpop.f32.mrb[24].mxu1 }
 0x126   :  { %v9168_v12 = vadd.f32 %v800_v4, %v9105_v52  ;;  %v802_v48 = vpop.f32.mrb[25].mxu0  ;;  %v9171_v1 = vadd.f32 %v873_v51, %v9109_v54  ;;  %v875_v42 = vpop.f32.mrb[25].mxu1 }
 0x127   :  { %v9174_v13 = vadd.f32 %v802_v48, %v9113_v56  ;;  %v804_v38 = vpop.f32.mrb[26].mxu0  ;;  %v9177_v9 = vadd.f32 %v875_v42, %v9117_v58  ;;  %v877_v40 = vpop.f32.mrb[26].mxu1 }
 0x128   :  { %11128 = vst [vmem:[#allocation46_spill] sm:$0xff] %v9168_v12  ;;  %11129 = vst [vmem:[#allocation47_spill] sm:$0xff] %v9171_v1  ;;  %v9180_v11 = vadd.f32 %v804_v38, %v9105_v52  ;;  %v806_v36 = vpop.f32.mrb[27].mxu0  ;;  %v9183_v4 = vadd.f32 %v877_v40, %v9109_v54  ;;  %v879_v29 = vpop.f32.mrb[27].mxu1 }
 0x129   :  { %11130 = vst [vmem:[#allocation48_spill] sm:$0xff] %v9174_v13  ;;  %11131 = vst [vmem:[#allocation49_spill] sm:$0xff] %v9177_v9  ;;  %v9186_v51 = vadd.f32 %v806_v36, %v9113_v56  ;;  %v9189_v10 = vadd.f32 %v879_v29, %v9117_v58 }
 0x12a   :  { %11132 = vst [vmem:[#allocation50_spill] sm:$0xff] %v9180_v11  ;;  %11133 = vst [vmem:[#allocation51_spill] sm:$0xff] %v9183_v4 }
 0x12b   :  { %11134 = vst [vmem:[#allocation52_spill] sm:$0xff] %v9186_v51  ;;  %11135 = vst [vmem:[#allocation53_spill] sm:$0xff] %v9189_v10 }
 0x12d   :  { %v810_v48 = vpop.f32.mrb[28].mxu0  ;;  %v883_v33 = vpop.f32.mrb[28].mxu1 }
 0x12e   :  { %v9192_v42 = vadd.f32 %v810_v48, %v9105_v52  ;;  %v812_v27 = vpop.f32.mrb[29].mxu0  ;;  %v9195_v38 = vadd.f32 %v883_v33, %v9109_v54  ;;  %v885_v23 = vpop.f32.mrb[29].mxu1  ;;  %v430_v48 = vadd.f32 %v8998_v16, %v8994_v14  ;;  %v359_v33 = vadd.f32 %v9008_v20, %v9014_v22 }
 0x12f   :  { %v9198_v40 = vadd.f32 %v812_v27, %v9113_v56  ;;  %v814_v6 = vpop.f32.mrb[30].mxu0  ;;  %v9201_v36 = vadd.f32 %v885_v23, %v9117_v58  ;;  %v887_v24 = vpop.f32.mrb[30].mxu1  ;;  %v432_v27 = vadd.f32 %v9010_v21, %v9002_v18 }
 0x130   :  { %v816_v29 = vpop.f32.mrb[31].mxu0  ;;  %v889_v7 = vpop.f32.mrb[31].mxu1 }
 0x135   :  { %v1169_v62 = vpop.f32.mrb[32].mxu0  ;;  %v1210_v3 = vpop.f32.mrb[32].mxu1 }
 0x136   :  { %v1170_v2 = vadd.f32 %v1169_v62, %v357_v5  ;;  %v1211_v23 = vadd.f32 %v1210_v3, %v430_v48  ;;  %v1171_v63 = vpop.f32.mrb[33].mxu0  ;;  %v1212_v61 = vpop.f32.mrb[33].mxu1 }
 0x137   :  { %v1172_v0 = vadd.f32 %v1171_v63, %v359_v33  ;;  %v1213_v60 = vadd.f32 %v1212_v61, %v432_v27  ;;  %v1173_v46 = vpop.f32.mrb[34].mxu0  ;;  %v1214_v32 = vpop.f32.mrb[34].mxu1 }
 0x138   :  { %v6859_v15 = vmul.f32 -1.442695, %v1170_v2  ;;  %v1174_v19 = vpop.f32.mrb[35].mxu0  ;;  %v1215_v59 = vpop.f32.mrb[35].mxu1  ;;  %v6861_v16 = vmul.f32 -1.442695, %v1211_v23  ;;  %v817_v46 = vadd.f32 %v816_v29, %v9113_v56 }
 0x139   :  { %v6860_v14 = vmul.f32 -1.442695, %v1172_v0  ;;  %v815_v59 = vadd.f32 %v814_v6, %v9105_v52  ;;  %v888_v0 = vadd.f32 %v887_v24, %v9109_v54 }
 0x13a   :  { %8067 = vpow2.f32 %v6859_v15 }
 0x13b   :  { %8069 = vpow2.f32 %v6860_v14 }
 0x13c   :  { %8071 = vtanh.f32 %v1213_v60  ;;  %v890_v60 = vadd.f32 %v889_v7, %v9117_v58 }
 0x13d   :  { %8073 = vpow2.f32 %v6861_v16 }
 0x144   :  { %v8068_v20 = vpop.eup %8067 }
 0x145   :  { %v1226_v22 = vadd.f32 1.0, %v8068_v20  ;;  %v8070_v18 = vpop.eup %8069 }
 0x146   :  { %v1227_v21 = vadd.f32 1.0, %v8070_v18  ;;  %v8072_v3 = vpop.eup %8071 }
 0x147   :  { %8075 = vrcp.f32 %v1226_v22  ;;  %v8074_v63 = vpop.eup %8073 }
 0x148   :  { %8077 = vrcp.f32 %v1227_v21  ;;  %v1228_v2 = vadd.f32 1.0, %v8074_v63 }
 0x14a   :  { %8079 = vrcp.f32 %v1228_v2  ;;  %v8324_v2 = vld [vmem:[%s11060_s6 + $0x8] ss:$16 sps:$4 sm:$0xff]  }
 0x151   :  { %v8076_v61 = vpop.eup %8075 }
 0x152   :  { %v1237_v62 = vmul.f32 %v8076_v61, %v8072_v3  ;;  %v8078_v5 = vpop.eup %8077 }
 0x153   :  { %v1236_v32 = vmul.f32 0.0, %v8078_v5  ;;  %v8323_v5 = vld [vmem:[%s11060_s6] ss:$16 sps:$4 sm:$0xff]  }
 0x154   :  { %v8080_v58 = vpop.eup %8079 }
 0x155   :  { %v1468_v48 = vpop.f32.mrb[36].mxu0  ;;  %v1509_v33 = vpop.f32.mrb[36].mxu1  ;;  %v9215_v27 = vadd.f32 %v1237_v62, %v1236_v32  ;;  %v11136_v32 = vmov 0  }
 0x156   :  { %v1469_v23 = vadd.f32 %v1468_v48, %v815_v59  ;;  %v1510_v15 = vadd.f32 %v1509_v33, %v888_v0  ;;  %v1470_v19 = vpop.f32.mrb[37].mxu0  ;;  %v1511_v14 = vpop.f32.mrb[37].mxu1  ;;  %v8325_v59 = vld [vmem:[%s11060_s6 + $0x24] ss:$16 sps:$4 sm:$0xff]   ;;  %v8326_v0 = vld [vmem:[%s11060_s6 + $0x2c] ss:$16 sps:$4 sm:$0xff]  }
 0x157   :  { %v1471_v16 = vadd.f32 %v1470_v19, %v817_v46  ;;  %v1512_v20 = vadd.f32 %v1511_v14, %v890_v60  ;;  %v1472_v22 = vpop.f32.mrb[38].mxu0  ;;  %v1513_v6 = vpop.f32.mrb[38].mxu1  ;;  %8081 = vtanh.f32 %v9215_v27  ;;  %v8327_v46 = vld [vmem:[%s11060_s6 + $0x20] ss:$16 sps:$4 sm:$0xff]   ;;  %v8328_v60 = vld [vmem:[%s11060_s6 + $0x28] ss:$16 sps:$4 sm:$0xff]  }
 0x158   :  { %v6894_v52 = vmul.f32 -1.442695, %v1469_v23  ;;  %v1473_v54 = vpop.f32.mrb[39].mxu0  ;;  %v1514_v56 = vpop.f32.mrb[39].mxu1  ;;  %v6896_v29 = vmul.f32 -1.442695, %v1510_v15 }
 0x159   :  { %v6895_v24 = vmul.f32 -1.442695, %v1471_v16  ;;  %v8329_v48 = vld [vmem:[%s11060_s6 + $0x44] ss:$16 sps:$4 sm:$0xff]   ;;  %v8330_v33 = vld [vmem:[%s11060_s6 + $0x4c] ss:$16 sps:$4 sm:$0xff]  }
 0x15a   :  { %8083 = vpow2.f32 %v6894_v52  ;;  %v8331_v19 = vld [vmem:[%s11060_s6 + $0x40] ss:$16 sps:$4 sm:$0xff]   ;;  %v8332_v14 = vld [vmem:[%s11060_s6 + $0x48] ss:$16 sps:$4 sm:$0xff]   ;;  %v8334_v22 = vld [vmem:[%s11060_s6 + $0x6c] ss:$16 sps:$4 sm:$0xff]  }
 0x15b   :  { %8085 = vpow2.f32 %v6895_v24  ;;  %v8335_v24 = vld [vmem:[%s11060_s6 + $0x60] ss:$16 sps:$4 sm:$0xff]  }
 0x15c   :  { %8087 = vtanh.f32 %v1512_v20  ;;  %v8333_v20 = vld [vmem:[%s11060_s6 + $0x64] ss:$16 sps:$4 sm:$0xff]  }
 0x15d   :  { %8089 = vpow2.f32 %v6896_v29  ;;  %v8338_v29 = vld [vmem:[%s11060_s6 + $0x8c] ss:$16 sps:$4 sm:$0xff]  }
 0x161   :  { %v8082_v7 = vpop.eup %8081 }
 0x162   :  { %v1240_v18 = vmul.f32 %v8082_v7, %v8080_v58  ;;  %v8336_v58 = vld [vmem:[%s11060_s6 + $0x68] ss:$16 sps:$4 sm:$0xff]   ;;  %v8337_v7 = vld [vmem:[%s11060_s6 + $0x84] ss:$16 sps:$4 sm:$0xff]  }
 0x164   :  { %v8084_v21 = vpop.eup %8083  ;;  %v1540_v63 = vpack.c.bf16 %v1240_v18, %v1240_v18 }
 0x165   :  { %v1525_v3 = vadd.f32 1.0, %v8084_v21  ;;  %v8086_v61 = vpop.eup %8085  ;;  %v8339_v21 = vld [vmem:[%s11060_s6 + $0x80] ss:$16 sps:$4 sm:$0xff]  }
 0x166   :  { %v1526_v62 = vadd.f32 1.0, %v8086_v61  ;;  %1541 = vst [vmem:[%s11063_s8] sm:$0xf] %v1540_v63  ;;  %1784 = vmatmul.mubr.bf16.vlgmr.msra.gmra.mrb[40].mxu0 %v1540_v63  ;;  %1825 = vmatmul.mubr.bf16.vlgmr.msra.gmra.mrb[40].mxu1 %v1540_v63  ;;  %v8088_v23 = vpop.eup %8087  ;;  %v8341_v63 = vld [vmem:[%s11060_s6 + $0xa4] ss:$16 sps:$4 sm:$0xff]   ;;  %v8342_v61 = vld [vmem:[%s11060_s6 + $0xac] ss:$16 sps:$4 sm:$0xff]  }
 0x167   :  { %8091 = vrcp.f32 %v1525_v3  ;;  %2050 = vmatpush1.bf16.msra.mxu0 %v8323_v5  ;;  %2091 = vmatpush1.bf16.msra.mxu1 %v8324_v2  ;;  %v8090_v15 = vpop.eup %8089  ;;  %v8340_v3 = vld [vmem:[%s11060_s6 + $0x88] ss:$16 sps:$4 sm:$0xff]   ;;  %v8345_v2 = vld [vmem:[%s11060_s6 + $0xc4] ss:$16 sps:$4 sm:$0xff]  }
 0x168   :  { %8093 = vrcp.f32 %v1526_v62  ;;  %2051 = vmatprep.subr.bf16.mxu0 %v8325_v59  ;;  %2092 = vmatprep.subr.bf16.mxu1 %v8326_v0  ;;  %v1527_v54 = vadd.f32 1.0, %v8090_v15  ;;  %v8343_v62 = vld [vmem:[%s11060_s6 + $0xa0] ss:$16 sps:$4 sm:$0xff]   ;;  %v8344_v5 = vld [vmem:[%s11060_s6 + $0xa8] ss:$16 sps:$4 sm:$0xff]  }
 0x169   :  { %2081 = vmatprep.mubr.bf16.mxu0 %v11136_v32  ;;  %2122 = vmatprep.mubr.bf16.mxu1 %v11136_v32  ;;  %v8346_v59 = vld [vmem:[%s11060_s6 + $0xcc] ss:$16 sps:$4 sm:$0xff]   ;;  %v9360_v15 = vld [vmem:[%s11059_s3 + $0x44] ss:$16 sps:$4 sm:$0xff]  }
 0x16a   :  { %8095 = vrcp.f32 %v1527_v54  ;;  %v9408_v54 = vld [vmem:[%s11059_s3 + $0x84] ss:$16 sps:$4 sm:$0xff]  }
 0x16b   :  { %2052 = vmatpush1.bf16.msra.mxu0 %v8327_v46  ;;  %2093 = vmatpush1.bf16.msra.mxu1 %v8328_v60 }
 0x16c   :  { %2053 = vmatprep.subr.bf16.mxu0 %v8329_v48  ;;  %2094 = vmatprep.subr.bf16.mxu1 %v8330_v33  ;;  %v9346_v33 = vld [vmem:[%s11059_s3 + $0x20] ss:$16 sps:$4 sm:$0xff]  }
 0x16f   :  { %2054 = vmatpush1.bf16.msra.mxu0 %v8331_v19  ;;  %2095 = vmatpush1.bf16.msra.mxu1 %v8332_v14  ;;  %v9365_v19 = vld [vmem:[%s11059_s3 + $0x4c] ss:$16 sps:$4 sm:$0xff]   ;;  %v9370_v14 = vld [vmem:[%s11059_s3 + $0x40] ss:$16 sps:$4 sm:$0xff]  }
 0x170   :  { %2055 = vmatprep.subr.bf16.mxu0 %v8333_v20  ;;  %2096 = vmatprep.subr.bf16.mxu1 %v8334_v22  ;;  %v9384_v20 = vld [vmem:[%s11059_s3 + $0x64] ss:$16 sps:$4 sm:$0xff]   ;;  %v9389_v22 = vld [vmem:[%s11059_s3 + $0x6c] ss:$16 sps:$4 sm:$0xff]  }
 0x171   :  { %v8092_v16 = vpop.eup %8091 }
 0x172   :  { %v1536_v6 = vmul.f32 %v8092_v16, %v8088_v23  ;;  %v8094_v52 = vpop.eup %8093  ;;  %v9351_v23 = vld [vmem:[%s11059_s3 + $0x28] ss:$16 sps:$4 sm:$0xff]  }
 0x173   :  { %v1535_v56 = vmul.f32 0.0, %v8094_v52  ;;  %2056 = vmatpush1.bf16.msra.mxu0 %v8335_v24  ;;  %2097 = vmatpush1.bf16.msra.mxu1 %v8336_v58  ;;  %v9375_v16 = vld [vmem:[%s11059_s3 + $0x48] ss:$16 sps:$4 sm:$0xff]   ;;  %v9418_v24 = vld [vmem:[%s11059_s3 + $0x80] ss:$16 sps:$4 sm:$0xff]  }
 0x174   :  { %2057 = vmatprep.subr.bf16.mxu0 %v8337_v7  ;;  %2098 = vmatprep.subr.bf16.mxu1 %v8338_v29  ;;  %v8096_v0 = vpop.eup %8095  ;;  %v9399_v52 = vld [vmem:[%s11059_s3 + $0x68] ss:$16 sps:$4 sm:$0xff]   ;;  %v9432_v7 = vld [vmem:[%s11059_s3 + $0xa4] ss:$16 sps:$4 sm:$0xff]   ;;  %v9437_v29 = vld [vmem:[%s11059_s3 + $0xac] ss:$16 sps:$4 sm:$0xff]  }
 0x175   :  { %v9271_v18 = vadd.f32 %v1536_v6, %v1535_v56  ;;  %v9394_v6 = vld [vmem:[%s11059_s3 + $0x60] ss:$16 sps:$4 sm:$0xff]   ;;  %v9413_v56 = vld [vmem:[%s11059_s3 + $0x8c] ss:$16 sps:$4 sm:$0xff]   ;;  %v9423_v58 = vld [vmem:[%s11059_s3 + $0x88] ss:$16 sps:$4 sm:$0xff]  }
 0x177   :  { %8097 = vtanh.f32 %v9271_v18  ;;  %2058 = vmatpush1.bf16.msra.mxu0 %v8339_v21  ;;  %2099 = vmatpush1.bf16.msra.mxu1 %v8340_v3  ;;  %v9442_v21 = vld [vmem:[%s11059_s3 + $0xa0] ss:$16 sps:$4 sm:$0xff]   ;;  %v9447_v3 = vld [vmem:[%s11059_s3 + $0xa8] ss:$16 sps:$4 sm:$0xff]  }
 0x178   :  { %2059 = vmatprep.subr.bf16.mxu0 %v8341_v63  ;;  %2100 = vmatprep.subr.bf16.mxu1 %v8342_v61  ;;  %v9456_v63 = vld [vmem:[%s11059_s3 + $0xc4] ss:$16 sps:$4 sm:$0xff]   ;;  %v9461_v61 = vld [vmem:[%s11059_s3 + $0xcc] ss:$16 sps:$4 sm:$0xff]  }
 0x17b   :  { %2060 = vmatpush1.bf16.msra.mxu0 %v8343_v62  ;;  %2101 = vmatpush1.bf16.msra.mxu1 %v8344_v5  ;;  %v9466_v62 = vld [vmem:[%s11059_s3 + $0xc0] ss:$16 sps:$4 sm:$0xff]   ;;  %v9471_v5 = vld [vmem:[%s11059_s3 + $0xc8] ss:$16 sps:$4 sm:$0xff]  }
 0x17c   :  { %2061 = vmatprep.subr.bf16.mxu0 %v8345_v2  ;;  %2102 = vmatprep.subr.bf16.mxu1 %v8346_v59  ;;  %v9480_v2 = vld [vmem:[%s11059_s3 + $0xe4] ss:$16 sps:$4 sm:$0xff]   ;;  %v9485_v59 = vld [vmem:[%s11059_s3 + $0xec] ss:$16 sps:$4 sm:$0xff]  }
 0x17f   :  { %2062 = vmatpush1.bf16.msra.mxu0 %v8914_v8  ;;  %2103 = vmatpush1.bf16.msra.mxu1 %v8919_v17  ;;  %v9312_v8 = vld [vmem:[%s11059_s3 + $0x4] ss:$16 sps:$4 sm:$0xff]   ;;  %v9317_v17 = vld [vmem:[%s11059_s3 + $0xc] ss:$16 sps:$4 sm:$0xff]  }
 0x180   :  { %2063 = vmatprep.subr.bf16.mxu0 %v8924_v26  ;;  %2104 = vmatprep.subr.bf16.mxu1 %v8929_v35  ;;  %v9322_v26 = vld [vmem:[%s11059_s3] ss:$16 sps:$4 sm:$0xff]   ;;  %v9327_v35 = vld [vmem:[%s11059_s3 + $0x8] ss:$16 sps:$4 sm:$0xff]  }
 0x181   :  { %v8098_v46 = vpop.eup %8097 }
 0x182   :  { %v1539_v60 = vmul.f32 %v8098_v46, %v8096_v0  ;;  %v9490_v0 = vld [vmem:[%s11059_s3 + $0xe0] ss:$16 sps:$4 sm:$0xff]   ;;  %v9495_v46 = vld [vmem:[%s11059_s3 + $0xe8] ss:$16 sps:$4 sm:$0xff]  }
 0x183   :  { %2064 = vmatpush1.bf16.msra.mxu0 %v8934_v44  ;;  %2105 = vmatpush1.bf16.msra.mxu1 %v8939_v45  ;;  %v9336_v44 = vld [vmem:[%s11059_s3 + $0x24] ss:$16 sps:$4 sm:$0xff]   ;;  %v9341_v45 = vld [vmem:[%s11059_s3 + $0x2c] ss:$16 sps:$4 sm:$0xff]  }
 0x184   :  { %v1542_v48 = vpack.c.bf16 %v1539_v60, %v1539_v60  ;;  %2367 = vmatprep.subr.bf16.mxu0 %v9312_v8  ;;  %2408 = vmatprep.subr.bf16.mxu1 %v9317_v17  ;;  %v9504_v60 = vld [vmem:[%s11060_s6 + $0x4] ss:$16 sps:$4 sm:$0xff]  }
 0x186   :  { %6897 = vst [vmem:[%s11064_s9 + $0x1c] sm:$0xf] %v1542_v48  ;;  %2082 = vmatmul.mubr.bf16.vlgmr.msra.gmra.mrb[44].mxu0 %v1542_v48  ;;  %2123 = vmatmul.mubr.bf16.vlgmr.msra.gmra.mrb[44].mxu1 %v1542_v48  ;;  %v9509_v48 = vld [vmem:[%s11060_s6 + $0xc] ss:$16 sps:$4 sm:$0xff]  }
 0x187   :  { %2399 = vmatprep.mubr.bf16.mxu0 %v11136_v32  ;;  %2440 = vmatprep.mubr.bf16.mxu1 %v11136_v32 }
 0x188   :  { %2368 = vmatpush1.bf16.msra.mxu0 %v9322_v26  ;;  %2409 = vmatpush1.bf16.msra.mxu1 %v9327_v35 }
 0x189   :  { %2369 = vmatprep.subr.bf16.mxu0 %v9336_v44  ;;  %2410 = vmatprep.subr.bf16.mxu1 %v9341_v45 }
 0x18c   :  { %2370 = vmatpush1.bf16.msra.mxu0 %v9346_v33  ;;  %2411 = vmatpush1.bf16.msra.mxu1 %v9351_v23 }
 0x18d   :  { %2371 = vmatprep.subr.bf16.mxu0 %v9360_v15  ;;  %2412 = vmatprep.subr.bf16.mxu1 %v9365_v19 }
 0x190   :  { %2372 = vmatpush1.bf16.msra.mxu0 %v9370_v14  ;;  %2413 = vmatpush1.bf16.msra.mxu1 %v9375_v16 }
 0x191   :  { %2373 = vmatprep.subr.bf16.mxu0 %v9384_v20  ;;  %2414 = vmatprep.subr.bf16.mxu1 %v9389_v22 }
 0x194   :  { %2374 = vmatpush1.bf16.msra.mxu0 %v9394_v6  ;;  %2415 = vmatpush1.bf16.msra.mxu1 %v9399_v52 }
 0x195   :  { %2375 = vmatprep.subr.bf16.mxu0 %v9408_v54  ;;  %2416 = vmatprep.subr.bf16.mxu1 %v9413_v56 }
 0x198   :  { %2376 = vmatpush1.bf16.msra.mxu0 %v9418_v24  ;;  %2417 = vmatpush1.bf16.msra.mxu1 %v9423_v58 }
 0x199   :  { %2377 = vmatprep.subr.bf16.mxu0 %v9432_v7  ;;  %2418 = vmatprep.subr.bf16.mxu1 %v9437_v29 }
 0x19c   :  { %2378 = vmatpush1.bf16.msra.mxu0 %v9442_v21  ;;  %2419 = vmatpush1.bf16.msra.mxu1 %v9447_v3 }
 0x19d   :  { %2379 = vmatprep.subr.bf16.mxu0 %v9456_v63  ;;  %2420 = vmatprep.subr.bf16.mxu1 %v9461_v61 }
 0x1a0   :  { %2380 = vmatpush1.bf16.msra.mxu0 %v9466_v62  ;;  %2421 = vmatpush1.bf16.msra.mxu1 %v9471_v5 }
 0x1a1   :  { %2381 = vmatprep.subr.bf16.mxu0 %v9480_v2  ;;  %2422 = vmatprep.subr.bf16.mxu1 %v9485_v59 }
 0x1a4   :  { %2382 = vmatpush1.bf16.msra.mxu0 %v9490_v0  ;;  %2423 = vmatpush1.bf16.msra.mxu1 %v9495_v46 }
 0x1a5   :  { %2665 = vmatprep.subr.bf16.mxu0 %v9504_v60  ;;  %2706 = vmatprep.subr.bf16.mxu1 %v9509_v48 }
 0x239   :  { %v1785_v57 = vpop.f32.mrb[40].mxu0  ;;  %v1826_v55 = vpop.f32.mrb[40].mxu1 }
 0x23a   :  { %v1786_v53 = vadd.f32 %v1785_v57, %v9017_v25  ;;  %v1827_v9 = vadd.f32 %v1826_v55, %v9020_v28  ;;  %v1787_v13 = vpop.f32.mrb[41].mxu0  ;;  %v1828_v1 = vpop.f32.mrb[41].mxu1 }
 0x23b   :  { %v1788_v12 = vadd.f32 %v1787_v13, %v9023_v30  ;;  %v1829_v50 = vadd.f32 %v1828_v1, %v9026_v31  ;;  %v1789_v49 = vpop.f32.mrb[42].mxu0  ;;  %v1830_v47 = vpop.f32.mrb[42].mxu1 }
 0x23c   :  { %v6930_v43 = vmul.f32 -1.442695, %v1786_v53  ;;  %v1790_v10 = vpop.f32.mrb[43].mxu0  ;;  %v1831_v51 = vpop.f32.mrb[43].mxu1  ;;  %v6932_v11 = vmul.f32 -1.442695, %v1827_v9 }
 0x23d   :  { %v6931_v4 = vmul.f32 -1.442695, %v1788_v12 }
 0x23e   :  { %8099 = vpow2.f32 %v6930_v43 }
 0x23f   :  { %8101 = vpow2.f32 %v6931_v4 }
 0x240   :  { %8103 = vtanh.f32 %v1829_v50 }
 0x241   :  { %8105 = vpow2.f32 %v6932_v11 }
 0x248   :  { %v8100_v41 = vpop.eup %8099 }
 0x249   :  { %v1842_v39 = vadd.f32 1.0, %v8100_v41  ;;  %v8102_v25 = vpop.eup %8101 }
 0x24a   :  { %v1843_v28 = vadd.f32 1.0, %v8102_v25  ;;  %v8104_v30 = vpop.eup %8103 }
 0x24b   :  { %8107 = vrcp.f32 %v1842_v39  ;;  %v8106_v55 = vpop.eup %8105 }
 0x24c   :  { %8109 = vrcp.f32 %v1843_v28  ;;  %v1844_v53 = vadd.f32 1.0, %v8106_v55 }
 0x24e   :  { %8111 = vrcp.f32 %v1844_v53  ;;  %v9538_v53 = vld [vmem:[%s11060_s6 + $0x24] ss:$16 sps:$4 sm:$0xff]  }
 0x255   :  { %v8108_v31 = vpop.eup %8107 }
 0x256   :  { %v1853_v49 = vmul.f32 %v8108_v31, %v8104_v30  ;;  %v8110_v47 = vpop.eup %8109 }
 0x257   :  { %v1852_v57 = vmul.f32 %v8110_v47, %v9215_v27 }
 0x259   :  { %v2083_v10 = vpop.f32.mrb[44].mxu0  ;;  %v2124_v43 = vpop.f32.mrb[44].mxu1  ;;  %v9518_v12 = vadd.f32 %v1853_v49, %v1852_v57  ;;  %v9543_v57 = vld [vmem:[%s11060_s6 + $0x2c] ss:$16 sps:$4 sm:$0xff]  }
 0x25a   :  { %v2084_v41 = vadd.f32 %v2083_v10, %v9192_v42  ;;  %v2125_v50 = vadd.f32 %v2124_v43, %v9195_v38  ;;  %v2085_v1 = vpop.f32.mrb[45].mxu0  ;;  %v2126_v39 = vpop.f32.mrb[45].mxu1 }
 0x25b   :  { %v2086_v13 = vadd.f32 %v2085_v1, %v9198_v40  ;;  %v2127_v9 = vadd.f32 %v2126_v39, %v9201_v36  ;;  %v2087_v11 = vpop.f32.mrb[46].mxu0  ;;  %v2128_v4 = vpop.f32.mrb[46].mxu1  ;;  %8113 = vtanh.f32 %v9518_v12  ;;  %v9528_v40 = vld [vmem:[%s11060_s6] ss:$16 sps:$4 sm:$0xff]   ;;  %v9533_v36 = vld [vmem:[%s11060_s6 + $0x8] ss:$16 sps:$4 sm:$0xff]  }
 0x25c   :  { %v6965_v51 = vmul.f32 -1.442695, %v2084_v41  ;;  %v2088_v27 = vpop.f32.mrb[47].mxu0  ;;  %v2129_v25 = vpop.f32.mrb[47].mxu1  ;;  %v6967_v38 = vmul.f32 -1.442695, %v2125_v50 }
 0x25d   :  { %v6966_v28 = vmul.f32 -1.442695, %v2086_v13  ;;  %v8112_v42 = vpop.eup %8111  ;;  %v9553_v41 = vld [vmem:[%s11060_s6 + $0x20] ss:$16 sps:$4 sm:$0xff]   ;;  %v9558_v50 = vld [vmem:[%s11060_s6 + $0x28] ss:$16 sps:$4 sm:$0xff]  }
 0x25e   :  { %8115 = vpow2.f32 %v6965_v51  ;;  %v9565_v1 = vld [vmem:[%s11060_s6 + $0x44] ss:$16 sps:$4 sm:$0xff]   ;;  %v9570_v39 = vld [vmem:[%s11060_s6 + $0x4c] ss:$16 sps:$4 sm:$0xff]   ;;  %v9579_v13 = vld [vmem:[%s11060_s6 + $0x40] ss:$16 sps:$4 sm:$0xff]  }
 0x25f   :  { %8117 = vpow2.f32 %v6966_v28  ;;  %v9591_v11 = vld [vmem:[%s11060_s6 + $0x64] ss:$16 sps:$4 sm:$0xff]   ;;  %v9596_v4 = vld [vmem:[%s11060_s6 + $0x6c] ss:$16 sps:$4 sm:$0xff]   ;;  %v9603_v25 = vld [vmem:[%s11060_s6 + $0x60] ss:$16 sps:$4 sm:$0xff]  }
 0x260   :  { %8119 = vtanh.f32 %v2127_v9  ;;  %v9584_v9 = vld [vmem:[%s11060_s6 + $0x48] ss:$16 sps:$4 sm:$0xff]  }
 0x261   :  { %8121 = vpow2.f32 %v6967_v38  ;;  %v9608_v28 = vld [vmem:[%s11060_s6 + $0x68] ss:$16 sps:$4 sm:$0xff]   ;;  %v9620_v38 = vld [vmem:[%s11060_s6 + $0x8c] ss:$16 sps:$4 sm:$0xff]  }
 0x265   :  { %v8114_v30 = vpop.eup %8113 }
 0x266   :  { %v1856_v55 = vmul.f32 %v8114_v30, %v8112_v42  ;;  %v9615_v30 = vld [vmem:[%s11060_s6 + $0x84] ss:$16 sps:$4 sm:$0xff]  }
 0x268   :  { %v8116_v31 = vpop.eup %8115  ;;  %v2155_v47 = vpack.c.bf16 %v1856_v55, %v1856_v55 }
 0x269   :  { %v2140_v49 = vadd.f32 1.0, %v8116_v31  ;;  %v8118_v10 = vpop.eup %8117 }
 0x26a   :  { %v2141_v43 = vadd.f32 1.0, %v8118_v10  ;;  %6968 = vst [vmem:[%s11063_s8 + $0x4] sm:$0xf] %v2155_v47  ;;  %2400 = vmatmul.mubr.bf16.vlgmr.msra.gmra.mrb[48].mxu0 %v2155_v47  ;;  %2441 = vmatmul.mubr.bf16.vlgmr.msra.gmra.mrb[48].mxu1 %v2155_v47  ;;  %v8120_v51 = vpop.eup %8119  ;;  %v9628_v10 = vld [vmem:[%s11060_s6 + $0x80] ss:$16 sps:$4 sm:$0xff]  }
 0x26b   :  { %8123 = vrcp.f32 %v2140_v49  ;;  %2666 = vmatpush1.bf16.msra.mxu0 %v9528_v40  ;;  %2707 = vmatpush1.bf16.msra.mxu1 %v9533_v36  ;;  %v8122_v27 = vpop.eup %8121  ;;  %11137 = vst [vmem:[#allocation54_spill] sm:$0xff] %v9628_v10 }
 0x26c   :  { %8125 = vrcp.f32 %v2141_v43  ;;  %2667 = vmatprep.subr.bf16.mxu0 %v9538_v53  ;;  %2708 = vmatprep.subr.bf16.mxu1 %v9543_v57  ;;  %v2142_v49 = vadd.f32 1.0, %v8122_v27  ;;  %v9633_v43 = vld [vmem:[%s11060_s6 + $0x88] ss:$16 sps:$4 sm:$0xff]  }
 0x26d   :  { %2697 = vmatprep.mubr.bf16.mxu0 %v11136_v32  ;;  %2738 = vmatprep.mubr.bf16.mxu1 %v11136_v32  ;;  %11138 = vst [vmem:[#allocation55_spill] sm:$0xff] %v9633_v43 }
 0x26e   :  { %8127 = vrcp.f32 %v2142_v49  ;;  %v9672_v49 = vld [vmem:[%s11060_s6 + $0xcc] ss:$16 sps:$4 sm:$0xff]  }
 0x26f   :  { %2668 = vmatpush1.bf16.msra.mxu0 %v9553_v41  ;;  %2709 = vmatpush1.bf16.msra.mxu1 %v9558_v50  ;;  %11144 = vst [vmem:[#allocation61_spill] sm:$0xff] %v9672_v49 }
 0x270   :  { %2669 = vmatprep.subr.bf16.mxu0 %v9565_v1  ;;  %2710 = vmatprep.subr.bf16.mxu1 %v9570_v39 }
 0x273   :  { %2670 = vmatpush1.bf16.msra.mxu0 %v9579_v13  ;;  %2711 = vmatpush1.bf16.msra.mxu1 %v9584_v9 }
 0x274   :  { %2671 = vmatprep.subr.bf16.mxu0 %v9591_v11  ;;  %2712 = vmatprep.subr.bf16.mxu1 %v9596_v4 }
 0x275   :  { %v8124_v42 = vpop.eup %8123 }
 0x276   :  { %v2151_v55 = vmul.f32 %v8124_v42, %v8120_v51  ;;  %v8126_v31 = vpop.eup %8125  ;;  %v9645_v51 = vld [vmem:[%s11060_s6 + $0xac] ss:$16 sps:$4 sm:$0xff]   ;;  %v9655_v42 = vld [vmem:[%s11060_s6 + $0xa0] ss:$16 sps:$4 sm:$0xff]  }
 0x277   :  { %v2150_v47 = vmul.f32 %v8126_v31, %v9271_v18  ;;  %2672 = vmatpush1.bf16.msra.mxu0 %v9603_v25  ;;  %2713 = vmatpush1.bf16.msra.mxu1 %v9608_v28  ;;  %v9640_v18 = vld [vmem:[%s11060_s6 + $0xa4] ss:$16 sps:$4 sm:$0xff]   ;;  %11140 = vst [vmem:[#allocation57_spill] sm:$0xff] %v9645_v51  ;;  %11141 = vst [vmem:[#allocation58_spill] sm:$0xff] %v9655_v42  ;;  %v9660_v31 = vld [vmem:[%s11060_s6 + $0xa8] ss:$16 sps:$4 sm:$0xff]  }
 0x278   :  { %2673 = vmatprep.subr.bf16.mxu0 %v9615_v30  ;;  %2714 = vmatprep.subr.bf16.mxu1 %v9620_v38  ;;  %11139 = vst [vmem:[#allocation56_spill] sm:$0xff] %v9640_v18  ;;  %11142 = vst [vmem:[#allocation59_spill] sm:$0xff] %v9660_v31 }
 0x279   :  { %v9647_v27 = vadd.f32 %v2151_v55, %v2150_v47  ;;  %v9667_v55 = vld [vmem:[%s11060_s6 + $0xc4] ss:$16 sps:$4 sm:$0xff]   ;;  %v9679_v47 = vld [vmem:[%s11060_s6 + $0xc0] ss:$16 sps:$4 sm:$0xff]  }
 0x27a   :  { %11143 = vst [vmem:[#allocation60_spill] sm:$0xff] %v9667_v55 }
 0x27b   :  { %8129 = vtanh.f32 %v9647_v27  ;;  %2674 = vmatpush1.bf16.msra.mxu0 %v9628_v10  ;;  %2715 = vmatpush1.bf16.msra.mxu1 %v9633_v43 }
 0x27c   :  { %2675 = vmatprep.subr.bf16.mxu0 %v9640_v18  ;;  %2716 = vmatprep.subr.bf16.mxu1 %v9645_v51  ;;  %v9684_v51 = vld [vmem:[%s11060_s6 + $0xc8] ss:$16 sps:$4 sm:$0xff]   ;;  %v8128_v18 = vpop.eup %8127 }
 0x27d   :  { %11145 = vst [vmem:[#allocation62_spill] sm:$0xff] %v9684_v51 }
 0x27f   :  { %2676 = vmatpush1.bf16.msra.mxu0 %v9655_v42  ;;  %2717 = vmatpush1.bf16.msra.mxu1 %v9660_v31  ;;  %v9691_v42 = vld [vmem:[%s11060_s6 + $0xe4] ss:$16 sps:$4 sm:$0xff]   ;;  %v9696_v31 = vld [vmem:[%s11060_s6 + $0xec] ss:$16 sps:$4 sm:$0xff]  }
 0x280   :  { %2677 = vmatprep.subr.bf16.mxu0 %v9667_v55  ;;  %2718 = vmatprep.subr.bf16.mxu1 %v9672_v49  ;;  %v9703_v55 = vld [vmem:[%s11060_s6 + $0xe0] ss:$16 sps:$4 sm:$0xff]   ;;  %v9708_v49 = vld [vmem:[%s11060_s6 + $0xe8] ss:$16 sps:$4 sm:$0xff]  }
 0x283   :  { %2678 = vmatpush1.bf16.msra.mxu0 %v9679_v47  ;;  %2719 = vmatpush1.bf16.msra.mxu1 %v9684_v51 }
 0x284   :  { %2679 = vmatprep.subr.bf16.mxu0 %v9691_v42  ;;  %2720 = vmatprep.subr.bf16.mxu1 %v9696_v31 }
 0x285   :  { %v8130_v43 = vpop.eup %8129 }
 0x286   :  { %v2154_v10 = vmul.f32 %v8130_v43, %v8128_v18  ;;  %v11150_v43 = vld [vmem:[#allocation52_spill] sm:$0xff] }
 0x287   :  { %2680 = vmatpush1.bf16.msra.mxu0 %v9703_v55  ;;  %2721 = vmatpush1.bf16.msra.mxu1 %v9708_v49 }
 0x288   :  { %v2158_v51 = vpack.c.bf16 %v2154_v10, %v2154_v10  ;;  %2983 = vmatprep.subr.bf16.mxu0 %v9312_v8  ;;  %3024 = vmatprep.subr.bf16.mxu1 %v9317_v17 }
 0x28a   :  { %6969 = vst [vmem:[%s11064_s9 + $0x18] sm:$0xf] %v2158_v51  ;;  %2698 = vmatmul.mubr.bf16.vlgmr.msra.gmra.mrb[52].mxu0 %v2158_v51  ;;  %2739 = vmatmul.mubr.bf16.vlgmr.msra.gmra.mrb[52].mxu1 %v2158_v51  ;;  %v11151_v51 = vld [vmem:[#allocation53_spill] sm:$0xff] }
 0x28b   :  { %2984 = vmatpush1.bf16.msra.mxu0 %v9322_v26  ;;  %3025 = vmatpush1.bf16.msra.mxu1 %v9327_v35 }
 0x28c   :  { %2985 = vmatprep.subr.bf16.mxu0 %v9336_v44  ;;  %3026 = vmatprep.subr.bf16.mxu1 %v9341_v45 }
 0x28d   :  { %3015 = vmatprep.mubr.bf16.mxu0 %v11136_v32  ;;  %3056 = vmatprep.mubr.bf16.mxu1 %v11136_v32 }
 0x28f   :  { %2986 = vmatpush1.bf16.msra.mxu0 %v9346_v33  ;;  %3027 = vmatpush1.bf16.msra.mxu1 %v9351_v23  ;;  %v11146_v33 = vld [vmem:[#allocation8_spill] sm:$0xff] }
 0x290   :  { %2987 = vmatprep.subr.bf16.mxu0 %v9360_v15  ;;  %3028 = vmatprep.subr.bf16.mxu1 %v9365_v19  ;;  %v11147_v15 = vld [vmem:[#allocation9_spill] sm:$0xff] }
 0x293   :  { %2988 = vmatpush1.bf16.msra.mxu0 %v9370_v14  ;;  %3029 = vmatpush1.bf16.msra.mxu1 %v9375_v16 }
 0x294   :  { %2989 = vmatprep.subr.bf16.mxu0 %v9384_v20  ;;  %3030 = vmatprep.subr.bf16.mxu1 %v9389_v22 }
 0x297   :  { %2990 = vmatpush1.bf16.msra.mxu0 %v9394_v6  ;;  %3031 = vmatpush1.bf16.msra.mxu1 %v9399_v52 }
 0x298   :  { %2991 = vmatprep.subr.bf16.mxu0 %v9408_v54  ;;  %3032 = vmatprep.subr.bf16.mxu1 %v9413_v56 }
 0x29b   :  { %2992 = vmatpush1.bf16.msra.mxu0 %v9418_v24  ;;  %3033 = vmatpush1.bf16.msra.mxu1 %v9423_v58 }
 0x29c   :  { %2993 = vmatprep.subr.bf16.mxu0 %v9432_v7  ;;  %3034 = vmatprep.subr.bf16.mxu1 %v9437_v29 }
 0x29f   :  { %2994 = vmatpush1.bf16.msra.mxu0 %v9442_v21  ;;  %3035 = vmatpush1.bf16.msra.mxu1 %v9447_v3 }
 0x2a0   :  { %2995 = vmatprep.subr.bf16.mxu0 %v9456_v63  ;;  %3036 = vmatprep.subr.bf16.mxu1 %v9461_v61 }
 0x2a3   :  { %2996 = vmatpush1.bf16.msra.mxu0 %v9466_v62  ;;  %3037 = vmatpush1.bf16.msra.mxu1 %v9471_v5 }
 0x2a4   :  { %2997 = vmatprep.subr.bf16.mxu0 %v9480_v2  ;;  %3038 = vmatprep.subr.bf16.mxu1 %v9485_v59  ;;  %v11148_v59 = vld [vmem:[#allocation50_spill] sm:$0xff] }
 0x2a7   :  { %2998 = vmatpush1.bf16.msra.mxu0 %v9490_v0  ;;  %3039 = vmatpush1.bf16.msra.mxu1 %v9495_v46  ;;  %v11149_v46 = vld [vmem:[#allocation51_spill] sm:$0xff] }
 0x2a8   :  { %3281 = vmatprep.subr.bf16.mxu0 %v9504_v60  ;;  %3322 = vmatprep.subr.bf16.mxu1 %v9509_v48 }
 0x33d   :  { %v2401_v8 = vpop.f32.mrb[48].mxu0  ;;  %v2442_v17 = vpop.f32.mrb[48].mxu1 }
 0x33e   :  { %v2402_v26 = vadd.f32 %v2401_v8, %v9029_v34  ;;  %v2443_v35 = vadd.f32 %v2442_v17, %v9032_v37  ;;  %v2403_v44 = vpop.f32.mrb[49].mxu0  ;;  %v2444_v45 = vpop.f32.mrb[49].mxu1 }
 0x33f   :  { %v2404_v23 = vadd.f32 %v2403_v44, %v11146_v33  ;;  %v2445_v19 = vadd.f32 %v2444_v45, %v11147_v15  ;;  %v2405_v14 = vpop.f32.mrb[50].mxu0  ;;  %v2446_v16 = vpop.f32.mrb[50].mxu1 }
 0x340   :  { %v7002_v20 = vmul.f32 -1.442695, %v2402_v26  ;;  %v2406_v22 = vpop.f32.mrb[51].mxu0  ;;  %v2447_v6 = vpop.f32.mrb[51].mxu1  ;;  %v7004_v54 = vmul.f32 -1.442695, %v2443_v35 }
 0x341   :  { %v7003_v52 = vmul.f32 -1.442695, %v2404_v23 }
 0x342   :  { %8131 = vpow2.f32 %v7002_v20 }
 0x343   :  { %8133 = vpow2.f32 %v7003_v52 }
 0x344   :  { %8135 = vtanh.f32 %v2445_v19 }
 0x345   :  { %8137 = vpow2.f32 %v7004_v54 }
 0x34c   :  { %v8132_v56 = vpop.eup %8131 }
 0x34d   :  { %v2458_v24 = vadd.f32 1.0, %v8132_v56  ;;  %v8134_v34 = vpop.eup %8133 }
 0x34e   :  { %v2459_v37 = vadd.f32 1.0, %v8134_v34  ;;  %v8136_v58 = vpop.eup %8135  ;;  %v9841_v34 = vld [vmem:[%s11059_s3 + $0x2c] ss:$16 sps:$4 sm:$0xff]  }
 0x34f   :  { %8139 = vrcp.f32 %v2458_v24  ;;  %v8138_v7 = vpop.eup %8137 }
 0x350   :  { %8141 = vrcp.f32 %v2459_v37  ;;  %v2460_v63 = vadd.f32 1.0, %v8138_v7  ;;  %v9846_v37 = vld [vmem:[%s11059_s3 + $0x20] ss:$16 sps:$4 sm:$0xff]   ;;  %v9860_v7 = vld [vmem:[%s11059_s3 + $0x44] ss:$16 sps:$4 sm:$0xff]  }
 0x352   :  { %8143 = vrcp.f32 %v2460_v63  ;;  %v9884_v63 = vld [vmem:[%s11059_s3 + $0x64] ss:$16 sps:$4 sm:$0xff]  }
 0x359   :  { %v8140_v29 = vpop.eup %8139 }
 0x35a   :  { %v2469_v21 = vmul.f32 %v8140_v29, %v8136_v58  ;;  %v8142_v3 = vpop.eup %8141  ;;  %v9851_v58 = vld [vmem:[%s11059_s3 + $0x28] ss:$16 sps:$4 sm:$0xff]   ;;  %v9865_v29 = vld [vmem:[%s11059_s3 + $0x4c] ss:$16 sps:$4 sm:$0xff]  }
 0x35b   :  { %v2468_v61 = vmul.f32 %v8142_v3, %v9518_v12  ;;  %v9875_v3 = vld [vmem:[%s11059_s3 + $0x48] ss:$16 sps:$4 sm:$0xff]  }
 0x35c   :  { %v8144_v33 = vpop.eup %8143 }
 0x35d   :  { %v2699_v62 = vpop.f32.mrb[52].mxu0  ;;  %v2740_v5 = vpop.f32.mrb[52].mxu1  ;;  %v9758_v2 = vadd.f32 %v2469_v21, %v2468_v61  ;;  %v9870_v21 = vld [vmem:[%s11059_s3 + $0x40] ss:$16 sps:$4 sm:$0xff]   ;;  %v9889_v61 = vld [vmem:[%s11059_s3 + $0x6c] ss:$16 sps:$4 sm:$0xff]  }
 0x35e   :  { %v2700_v0 = vadd.f32 %v2699_v62, %v11148_v59  ;;  %v2741_v60 = vadd.f32 %v2740_v5, %v11149_v46  ;;  %v2701_v48 = vpop.f32.mrb[53].mxu0  ;;  %v2742_v10 = vpop.f32.mrb[53].mxu1  ;;  %v9894_v62 = vld [vmem:[%s11059_s3 + $0x60] ss:$16 sps:$4 sm:$0xff]   ;;  %v9899_v5 = vld [vmem:[%s11059_s3 + $0x68] ss:$16 sps:$4 sm:$0xff]  }
 0x35f   :  { %v2702_v18 = vadd.f32 %v2701_v48, %v11150_v43  ;;  %v2743_v8 = vadd.f32 %v2742_v10, %v11151_v51  ;;  %v2703_v17 = vpop.f32.mrb[54].mxu0  ;;  %v2744_v26 = vpop.f32.mrb[54].mxu1  ;;  %8145 = vtanh.f32 %v9758_v2  ;;  %v9908_v59 = vld [vmem:[%s11059_s3 + $0x84] ss:$16 sps:$4 sm:$0xff]   ;;  %v9918_v46 = vld [vmem:[%s11059_s3 + $0x80] ss:$16 sps:$4 sm:$0xff]  }
 0x360   :  { %v7037_v12 = vmul.f32 -1.442695, %v2700_v0  ;;  %v2704_v35 = vpop.f32.mrb[55].mxu0  ;;  %v2745_v44 = vpop.f32.mrb[55].mxu1  ;;  %v7039_v15 = vmul.f32 -1.442695, %v2741_v60 }
 0x361   :  { %v7038_v45 = vmul.f32 -1.442695, %v2702_v18  ;;  %v9913_v0 = vld [vmem:[%s11059_s3 + $0x8c] ss:$16 sps:$4 sm:$0xff]   ;;  %v9923_v60 = vld [vmem:[%s11059_s3 + $0x88] ss:$16 sps:$4 sm:$0xff]  }
 0x362   :  { %8147 = vpow2.f32 %v7037_v12  ;;  %v9932_v48 = vld [vmem:[%s11059_s3 + $0xa4] ss:$16 sps:$4 sm:$0xff]   ;;  %v9937_v10 = vld [vmem:[%s11059_s3 + $0xac] ss:$16 sps:$4 sm:$0xff]   ;;  %v9942_v43 = vld [vmem:[%s11059_s3 + $0xa0] ss:$16 sps:$4 sm:$0xff]  }
 0x363   :  { %8149 = vpow2.f32 %v7038_v45  ;;  %v9947_v18 = vld [vmem:[%s11059_s3 + $0xa8] ss:$16 sps:$4 sm:$0xff]   ;;  %v9956_v51 = vld [vmem:[%s11059_s3 + $0xc4] ss:$16 sps:$4 sm:$0xff]   ;;  %v9966_v17 = vld [vmem:[%s11059_s3 + $0xc0] ss:$16 sps:$4 sm:$0xff]  }
 0x364   :  { %8151 = vtanh.f32 %v2743_v8  ;;  %v9961_v8 = vld [vmem:[%s11059_s3 + $0xcc] ss:$16 sps:$4 sm:$0xff]   ;;  %v9971_v26 = vld [vmem:[%s11059_s3 + $0xc8] ss:$16 sps:$4 sm:$0xff]   ;;  %v9980_v12 = vld [vmem:[%s11059_s3 + $0xe4] ss:$16 sps:$4 sm:$0xff]  }
 0x365   :  { %8153 = vpow2.f32 %v7039_v15  ;;  %v9985_v35 = vld [vmem:[%s11059_s3 + $0xec] ss:$16 sps:$4 sm:$0xff]   ;;  %v9990_v44 = vld [vmem:[%s11059_s3 + $0xe0] ss:$16 sps:$4 sm:$0xff]   ;;  %v9995_v45 = vld [vmem:[%s11059_s3 + $0xe8] ss:$16 sps:$4 sm:$0xff]  }
 0x369   :  { %v8146_v23 = vpop.eup %8145 }
 0x36a   :  { %v2472_v19 = vmul.f32 %v8146_v23, %v8144_v33  ;;  %v10004_v33 = vld [vmem:[%s11060_s6 + $0x4] ss:$16 sps:$4 sm:$0xff]   ;;  %v10009_v23 = vld [vmem:[%s11060_s6 + $0xc] ss:$16 sps:$4 sm:$0xff]  }
 0x36c   :  { %v8148_v14 = vpop.eup %8147  ;;  %v2771_v20 = vpack.c.bf16 %v2472_v19, %v2472_v19 }
 0x36d   :  { %v2756_v16 = vadd.f32 1.0, %v8148_v14  ;;  %v8150_v22 = vpop.eup %8149  ;;  %v11161_v14 = vld [vmem:[#allocation10_spill] sm:$0xff] }
 0x36e   :  { %v2757_v6 = vadd.f32 1.0, %v8150_v22  ;;  %7040 = vst [vmem:[%s11063_s8 + $0x8] sm:$0xf] %v2771_v20  ;;  %3016 = vmatmul.mubr.bf16.vlgmr.msra.gmra.mrb[56].mxu0 %v2771_v20  ;;  %3057 = vmatmul.mubr.bf16.vlgmr.msra.gmra.mrb[56].mxu1 %v2771_v20  ;;  %v11162_v20 = vld [vmem:[#allocation11_spill] sm:$0xff] }
 0x36f   :  { %8155 = vrcp.f32 %v2756_v16  ;;  %3282 = vmatpush1.bf16.msra.mxu0 %v9528_v40  ;;  %3323 = vmatpush1.bf16.msra.mxu1 %v9533_v36  ;;  %v8152_v40 = vpop.eup %8151 }
 0x370   :  { %8157 = vrcp.f32 %v2757_v6  ;;  %3283 = vmatprep.subr.bf16.mxu0 %v9538_v53  ;;  %3324 = vmatprep.subr.bf16.mxu1 %v9543_v57  ;;  %v8154_v52 = vpop.eup %8153 }
 0x371   :  { %3313 = vmatprep.mubr.bf16.mxu0 %v11136_v32  ;;  %3354 = vmatprep.mubr.bf16.mxu1 %v11136_v32 }
 0x373   :  { %3284 = vmatpush1.bf16.msra.mxu0 %v9553_v41  ;;  %3325 = vmatpush1.bf16.msra.mxu1 %v9558_v50  ;;  %v2758_v41 = vadd.f32 1.0, %v8154_v52  ;;  %v11163_v52 = vld [vmem:[#allocation12_spill] sm:$0xff] }
 0x374   :  { %3285 = vmatprep.subr.bf16.mxu0 %v9565_v1  ;;  %3326 = vmatprep.subr.bf16.mxu1 %v9570_v39  ;;  %v11152_v39 = vld [vmem:[#allocation54_spill] sm:$0xff] }
 0x375   :  { %8159 = vrcp.f32 %v2758_v41 }
 0x377   :  { %3286 = vmatpush1.bf16.msra.mxu0 %v9579_v13  ;;  %3327 = vmatpush1.bf16.msra.mxu1 %v9584_v9  ;;  %v11153_v13 = vld [vmem:[#allocation55_spill] sm:$0xff]  ;;  %v11154_v9 = vld [vmem:[#allocation56_spill] sm:$0xff] }
 0x378   :  { %3287 = vmatprep.subr.bf16.mxu0 %v9591_v11  ;;  %3328 = vmatprep.subr.bf16.mxu1 %v9596_v4  ;;  %v11155_v11 = vld [vmem:[#allocation57_spill] sm:$0xff]  ;;  %v11156_v4 = vld [vmem:[#allocation58_spill] sm:$0xff] }
 0x379   :  { %v8156_v36 = vpop.eup %8155 }
 0x37a   :  { %v2767_v53 = vmul.f32 %v8156_v36, %v8152_v40  ;;  %v8158_v57 = vpop.eup %8157 }
 0x37b   :  { %v2766_v50 = vmul.f32 %v8158_v57, %v9647_v27  ;;  %3288 = vmatpush1.bf16.msra.mxu0 %v9603_v25  ;;  %3329 = vmatpush1.bf16.msra.mxu1 %v9608_v28  ;;  %v11157_v25 = vld [vmem:[#allocation59_spill] sm:$0xff]  ;;  %v11158_v28 = vld [vmem:[#allocation60_spill] sm:$0xff] }
 0x37c   :  { %3289 = vmatprep.subr.bf16.mxu0 %v9615_v30  ;;  %3330 = vmatprep.subr.bf16.mxu1 %v9620_v38  ;;  %v11159_v30 = vld [vmem:[#allocation61_spill] sm:$0xff]  ;;  %v11160_v38 = vld [vmem:[#allocation62_spill] sm:$0xff] }
 0x37d   :  { %v9787_v1 = vadd.f32 %v2767_v53, %v2766_v50  ;;  %v11164_v53 = vld [vmem:[#allocation13_spill] sm:$0xff] }
 0x37f   :  { %8161 = vtanh.f32 %v9787_v1  ;;  %3290 = vmatpush1.bf16.msra.mxu0 %v11152_v39  ;;  %3331 = vmatpush1.bf16.msra.mxu1 %v11153_v13  ;;  %v8160_v27 = vpop.eup %8159 }
 0x380   :  { %3291 = vmatprep.subr.bf16.mxu0 %v11154_v9  ;;  %3332 = vmatprep.subr.bf16.mxu1 %v11155_v11 }
 0x383   :  { %3292 = vmatpush1.bf16.msra.mxu0 %v11156_v4  ;;  %3333 = vmatpush1.bf16.msra.mxu1 %v11157_v25 }
 0x384   :  { %3293 = vmatprep.subr.bf16.mxu0 %v11158_v28  ;;  %3334 = vmatprep.subr.bf16.mxu1 %v11159_v30 }
 0x387   :  { %3294 = vmatpush1.bf16.msra.mxu0 %v9679_v47  ;;  %3335 = vmatpush1.bf16.msra.mxu1 %v11160_v38  ;;  %v9836_v47 = vld [vmem:[%s11059_s3 + $0x24] ss:$16 sps:$4 sm:$0xff]  }
 0x388   :  { %3295 = vmatprep.subr.bf16.mxu0 %v9691_v42  ;;  %3336 = vmatprep.subr.bf16.mxu1 %v9696_v31  ;;  %v9812_v42 = vld [vmem:[%s11059_s3 + $0x4] ss:$16 sps:$4 sm:$0xff]   ;;  %v9817_v31 = vld [vmem:[%s11059_s3 + $0xc] ss:$16 sps:$4 sm:$0xff]  }
 0x389   :  { %v8162_v54 = vpop.eup %8161 }
 0x38a   :  { %v2770_v56 = vmul.f32 %v8162_v54, %v8160_v27 }
 0x38b   :  { %3296 = vmatpush1.bf16.msra.mxu0 %v9703_v55  ;;  %3337 = vmatpush1.bf16.msra.mxu1 %v9708_v49  ;;  %v9822_v55 = vld [vmem:[%s11059_s3] ss:$16 sps:$4 sm:$0xff]   ;;  %v9827_v49 = vld [vmem:[%s11059_s3 + $0x8] ss:$16 sps:$4 sm:$0xff]  }
 0x38c   :  { %v2774_v24 = vpack.c.bf16 %v2770_v56, %v2770_v56  ;;  %3597 = vmatprep.subr.bf16.mxu0 %v9812_v42  ;;  %3638 = vmatprep.subr.bf16.mxu1 %v9817_v31 }
 0x38e   :  { %7041 = vst [vmem:[%s11064_s9 + $0x14] sm:$0xf] %v2774_v24  ;;  %3314 = vmatmul.mubr.bf16.vlgmr.msra.gmra.mrb[60].mxu0 %v2774_v24  ;;  %3355 = vmatmul.mubr.bf16.vlgmr.msra.gmra.mrb[60].mxu1 %v2774_v24 }
 0x38f   :  { %3629 = vmatprep.mubr.bf16.mxu0 %v11136_v32  ;;  %3670 = vmatprep.mubr.bf16.mxu1 %v11136_v32 }
 0x390   :  { %3598 = vmatpush1.bf16.msra.mxu0 %v9822_v55  ;;  %3639 = vmatpush1.bf16.msra.mxu1 %v9827_v49 }
 0x391   :  { %3599 = vmatprep.subr.bf16.mxu0 %v9836_v47  ;;  %3640 = vmatprep.subr.bf16.mxu1 %v9841_v34 }
 0x394   :  { %3600 = vmatpush1.bf16.msra.mxu0 %v9846_v37  ;;  %3641 = vmatpush1.bf16.msra.mxu1 %v9851_v58 }
 0x395   :  { %3601 = vmatprep.subr.bf16.mxu0 %v9860_v7  ;;  %3642 = vmatprep.subr.bf16.mxu1 %v9865_v29 }
 0x398   :  { %3602 = vmatpush1.bf16.msra.mxu0 %v9870_v21  ;;  %3643 = vmatpush1.bf16.msra.mxu1 %v9875_v3 }
 0x399   :  { %3603 = vmatprep.subr.bf16.mxu0 %v9884_v63  ;;  %3644 = vmatprep.subr.bf16.mxu1 %v9889_v61 }
 0x39c   :  { %3604 = vmatpush1.bf16.msra.mxu0 %v9894_v62  ;;  %3645 = vmatpush1.bf16.msra.mxu1 %v9899_v5 }
 0x39d   :  { %3605 = vmatprep.subr.bf16.mxu0 %v9908_v59  ;;  %3646 = vmatprep.subr.bf16.mxu1 %v9913_v0 }
 0x3a0   :  { %3606 = vmatpush1.bf16.msra.mxu0 %v9918_v46  ;;  %3647 = vmatpush1.bf16.msra.mxu1 %v9923_v60 }
 0x3a1   :  { %3607 = vmatprep.subr.bf16.mxu0 %v9932_v48  ;;  %3648 = vmatprep.subr.bf16.mxu1 %v9937_v10 }
 0x3a4   :  { %3608 = vmatpush1.bf16.msra.mxu0 %v9942_v43  ;;  %3649 = vmatpush1.bf16.msra.mxu1 %v9947_v18 }
 0x3a5   :  { %3609 = vmatprep.subr.bf16.mxu0 %v9956_v51  ;;  %3650 = vmatprep.subr.bf16.mxu1 %v9961_v8 }
 0x3a8   :  { %3610 = vmatpush1.bf16.msra.mxu0 %v9966_v17  ;;  %3651 = vmatpush1.bf16.msra.mxu1 %v9971_v26 }
 0x3a9   :  { %3611 = vmatprep.subr.bf16.mxu0 %v9980_v12  ;;  %3652 = vmatprep.subr.bf16.mxu1 %v9985_v35 }
 0x3ac   :  { %3612 = vmatpush1.bf16.msra.mxu0 %v9990_v44  ;;  %3653 = vmatpush1.bf16.msra.mxu1 %v9995_v45 }
 0x3ad   :  { %3895 = vmatprep.subr.bf16.mxu0 %v10004_v33  ;;  %3936 = vmatprep.subr.bf16.mxu1 %v10009_v23 }
 0x441   :  { %v3017_v15 = vpop.f32.mrb[56].mxu0  ;;  %v3058_v19 = vpop.f32.mrb[56].mxu1 }
 0x442   :  { %v3018_v16 = vadd.f32 %v3017_v15, %v11161_v14  ;;  %v3059_v22 = vadd.f32 %v3058_v19, %v11162_v20  ;;  %v3019_v6 = vpop.f32.mrb[57].mxu0  ;;  %v3060_v40 = vpop.f32.mrb[57].mxu1 }
 0x443   :  { %v3020_v36 = vadd.f32 %v3019_v6, %v11163_v52  ;;  %v3061_v57 = vadd.f32 %v3060_v40, %v11164_v53  ;;  %v3021_v41 = vpop.f32.mrb[58].mxu0  ;;  %v3062_v50 = vpop.f32.mrb[58].mxu1  ;;  %v11166_v52 = vld [vmem:[#allocation47_spill] sm:$0xff] }
 0x444   :  { %v7074_v39 = vmul.f32 -1.442695, %v3018_v16  ;;  %v3022_v13 = vpop.f32.mrb[59].mxu0  ;;  %v3063_v9 = vpop.f32.mrb[59].mxu1  ;;  %v7076_v4 = vmul.f32 -1.442695, %v3059_v22 }
 0x445   :  { %v7075_v11 = vmul.f32 -1.442695, %v3020_v36  ;;  %v11165_v22 = vld [vmem:[#allocation46_spill] sm:$0xff]  ;;  %v11167_v41 = vld [vmem:[#allocation48_spill] sm:$0xff] }
 0x446   :  { %8163 = vpow2.f32 %v7074_v39  ;;  %v11168_v39 = vld [vmem:[#allocation49_spill] sm:$0xff] }
 0x447   :  { %8165 = vpow2.f32 %v7075_v11 }
 0x448   :  { %8167 = vtanh.f32 %v3061_v57 }
 0x449   :  { %8169 = vpow2.f32 %v7076_v4 }
 0x450   :  { %v8164_v25 = vpop.eup %8163 }
 0x451   :  { %v3074_v28 = vadd.f32 1.0, %v8164_v25  ;;  %v8166_v30 = vpop.eup %8165 }
 0x452   :  { %v3075_v38 = vadd.f32 1.0, %v8166_v30  ;;  %v8168_v27 = vpop.eup %8167 }
 0x453   :  { %8171 = vrcp.f32 %v3074_v28  ;;  %v8170_v54 = vpop.eup %8169 }
 0x454   :  { %8173 = vrcp.f32 %v3075_v38  ;;  %v3076_v19 = vadd.f32 1.0, %v8170_v54 }
 0x456   :  { %8175 = vrcp.f32 %v3076_v19 }
 0x45d   :  { %v8172_v56 = vpop.eup %8171 }
 0x45e   :  { %v3085_v24 = vmul.f32 %v8172_v56, %v8168_v27  ;;  %v8174_v15 = vpop.eup %8173 }
 0x45f   :  { %v3084_v14 = vmul.f32 %v8174_v15, %v9758_v2  ;;  %v10033_v15 = vld [vmem:[%s11060_s6 + $0x8] ss:$16 sps:$4 sm:$0xff]  }
 0x460   :  { %v8176_v30 = vpop.eup %8175 }
 0x461   :  { %v3315_v16 = vpop.f32.mrb[60].mxu0  ;;  %v3356_v20 = vpop.f32.mrb[60].mxu1  ;;  %v10018_v6 = vadd.f32 %v3085_v24, %v3084_v14  ;;  %v10028_v24 = vld [vmem:[%s11060_s6] ss:$16 sps:$4 sm:$0xff]  }
 0x462   :  { %v3316_v40 = vadd.f32 %v3315_v16, %v11165_v22  ;;  %v3357_v36 = vadd.f32 %v3356_v20, %v11166_v52  ;;  %v3317_v53 = vpop.f32.mrb[61].mxu0  ;;  %v3358_v57 = vpop.f32.mrb[61].mxu1  ;;  %v10038_v16 = vld [vmem:[%s11060_s6 + $0x24] ss:$16 sps:$4 sm:$0xff]   ;;  %v10043_v20 = vld [vmem:[%s11060_s6 + $0x2c] ss:$16 sps:$4 sm:$0xff]  }
 0x463   :  { %v3318_v50 = vadd.f32 %v3317_v53, %v11167_v41  ;;  %v3359_v13 = vadd.f32 %v3358_v57, %v11168_v39  ;;  %v3319_v9 = vpop.f32.mrb[62].mxu0  ;;  %v3360_v11 = vpop.f32.mrb[62].mxu1  ;;  %8177 = vtanh.f32 %v10018_v6  ;;  %v10053_v52 = vld [vmem:[%s11060_s6 + $0x20] ss:$16 sps:$4 sm:$0xff]   ;;  %v10065_v53 = vld [vmem:[%s11060_s6 + $0x44] ss:$16 sps:$4 sm:$0xff]  }
 0x464   :  { %v7109_v2 = vmul.f32 -1.442695, %v3316_v40  ;;  %v3320_v4 = vpop.f32.mrb[63].mxu0  ;;  %v3361_v25 = vpop.f32.mrb[63].mxu1  ;;  %v7111_v27 = vmul.f32 -1.442695, %v3357_v36 }
 0x465   :  { %v7110_v28 = vmul.f32 -1.442695, %v3318_v50  ;;  %v10058_v36 = vld [vmem:[%s11060_s6 + $0x28] ss:$16 sps:$4 sm:$0xff]   ;;  %v10070_v57 = vld [vmem:[%s11060_s6 + $0x4c] ss:$16 sps:$4 sm:$0xff]  }
 0x466   :  { %8179 = vpow2.f32 %v7109_v2  ;;  %v10079_v41 = vld [vmem:[%s11060_s6 + $0x40] ss:$16 sps:$4 sm:$0xff]   ;;  %v10084_v50 = vld [vmem:[%s11060_s6 + $0x48] ss:$16 sps:$4 sm:$0xff]   ;;  %v10091_v39 = vld [vmem:[%s11060_s6 + $0x64] ss:$16 sps:$4 sm:$0xff]  }
 0x467   :  { %8181 = vpow2.f32 %v7110_v28  ;;  %v10103_v2 = vld [vmem:[%s11060_s6 + $0x60] ss:$16 sps:$4 sm:$0xff]   ;;  %v10108_v4 = vld [vmem:[%s11060_s6 + $0x68] ss:$16 sps:$4 sm:$0xff]   ;;  %v10115_v28 = vld [vmem:[%s11060_s6 + $0x84] ss:$16 sps:$4 sm:$0xff]  }
 0x468   :  { %8183 = vtanh.f32 %v3359_v13  ;;  %v10096_v13 = vld [vmem:[%s11060_s6 + $0x6c] ss:$16 sps:$4 sm:$0xff]  }
 0x469   :  { %8185 = vpow2.f32 %v7111_v27 }
 0x46d   :  { %v8178_v38 = vpop.eup %8177 }
 0x46e   :  { %v3088_v54 = vmul.f32 %v8178_v38, %v8176_v30  ;;  %v10120_v30 = vld [vmem:[%s11060_s6 + $0x8c] ss:$16 sps:$4 sm:$0xff]  }
 0x470   :  { %v8180_v56 = vpop.eup %8179  ;;  %v3387_v14 = vpack.c.bf16 %v3088_v54, %v3088_v54 }
 0x471   :  { %v3372_v19 = vadd.f32 1.0, %v8180_v56  ;;  %v8182_v22 = vpop.eup %8181 }
 0x472   :  { %v3373_v40 = vadd.f32 1.0, %v8182_v22  ;;  %7112 = vst [vmem:[%s11063_s8 + $0xc] sm:$0xf] %v3387_v14  ;;  %3630 = vmatmul.mubr.bf16.vlgmr.msra.gmra.mrb[64].mxu0 %v3387_v14  ;;  %3671 = vmatmul.mubr.bf16.vlgmr.msra.gmra.mrb[64].mxu1 %v3387_v14  ;;  %v8184_v9 = vpop.eup %8183  ;;  %v10133_v14 = vld [vmem:[%s11060_s6 + $0x88] ss:$16 sps:$4 sm:$0xff]  }
 0x473   :  { %8187 = vrcp.f32 %v3372_v19  ;;  %3896 = vmatpush1.bf16.msra.mxu0 %v10028_v24  ;;  %3937 = vmatpush1.bf16.msra.mxu1 %v10033_v15  ;;  %v8186_v11 = vpop.eup %8185  ;;  %v10128_v19 = vld [vmem:[%s11060_s6 + $0x80] ss:$16 sps:$4 sm:$0xff]   ;;  %v10145_v22 = vld [vmem:[%s11060_s6 + $0xac] ss:$16 sps:$4 sm:$0xff]  }
 0x474   :  { %8189 = vrcp.f32 %v3373_v40  ;;  %3897 = vmatprep.subr.bf16.mxu0 %v10038_v16  ;;  %3938 = vmatprep.subr.bf16.mxu1 %v10043_v20  ;;  %v3374_v54 = vadd.f32 1.0, %v8186_v11  ;;  %11170 = vst [vmem:[#allocation9_spill] sm:$0xff] %v10145_v22  ;;  %v10160_v11 = vld [vmem:[%s11060_s6 + $0xa8] ss:$16 sps:$4 sm:$0xff]  }
 0x475   :  { %3927 = vmatprep.mubr.bf16.mxu0 %v11136_v32  ;;  %3968 = vmatprep.mubr.bf16.mxu1 %v11136_v32  ;;  %11172 = vst [vmem:[#allocation51_spill] sm:$0xff] %v10160_v11 }
 0x476   :  { %8191 = vrcp.f32 %v3374_v54  ;;  %v10184_v54 = vld [vmem:[%s11060_s6 + $0xc8] ss:$16 sps:$4 sm:$0xff]  }
 0x477   :  { %3898 = vmatpush1.bf16.msra.mxu0 %v10053_v52  ;;  %3939 = vmatpush1.bf16.msra.mxu1 %v10058_v36  ;;  %11175 = vst [vmem:[#allocation54_spill] sm:$0xff] %v10184_v54 }
 0x478   :  { %3899 = vmatprep.subr.bf16.mxu0 %v10065_v53  ;;  %3940 = vmatprep.subr.bf16.mxu1 %v10070_v57 }
 0x47b   :  { %3900 = vmatpush1.bf16.msra.mxu0 %v10079_v41  ;;  %3941 = vmatpush1.bf16.msra.mxu1 %v10084_v50 }
 0x47c   :  { %3901 = vmatprep.subr.bf16.mxu0 %v10091_v39  ;;  %3942 = vmatprep.subr.bf16.mxu1 %v10096_v13 }
 0x47d   :  { %v8188_v25 = vpop.eup %8187 }
 0x47e   :  { %v3383_v38 = vmul.f32 %v8188_v25, %v8184_v9  ;;  %v8190_v27 = vpop.eup %8189  ;;  %v10155_v9 = vld [vmem:[%s11060_s6 + $0xa0] ss:$16 sps:$4 sm:$0xff]   ;;  %v10167_v25 = vld [vmem:[%s11060_s6 + $0xc4] ss:$16 sps:$4 sm:$0xff]  }
 0x47f   :  { %v3382_v56 = vmul.f32 %v8190_v27, %v9787_v1  ;;  %3902 = vmatpush1.bf16.msra.mxu0 %v10103_v2  ;;  %3943 = vmatpush1.bf16.msra.mxu1 %v10108_v4  ;;  %v10140_v1 = vld [vmem:[%s11060_s6 + $0xa4] ss:$16 sps:$4 sm:$0xff]   ;;  %11171 = vst [vmem:[#allocation50_spill] sm:$0xff] %v10155_v9  ;;  %11173 = vst [vmem:[#allocation52_spill] sm:$0xff] %v10167_v25  ;;  %v10179_v27 = vld [vmem:[%s11060_s6 + $0xc0] ss:$16 sps:$4 sm:$0xff]  }
 0x480   :  { %3903 = vmatprep.subr.bf16.mxu0 %v10115_v28  ;;  %3944 = vmatprep.subr.bf16.mxu1 %v10120_v30  ;;  %11169 = vst [vmem:[#allocation8_spill] sm:$0xff] %v10140_v1 }
 0x481   :  { %v10147_v40 = vadd.f32 %v3383_v38, %v3382_v56  ;;  %v10172_v38 = vld [vmem:[%s11060_s6 + $0xcc] ss:$16 sps:$4 sm:$0xff]   ;;  %v10191_v56 = vld [vmem:[%s11060_s6 + $0xe4] ss:$16 sps:$4 sm:$0xff]  }
 0x482   :  { %11174 = vst [vmem:[#allocation53_spill] sm:$0xff] %v10172_v38 }
 0x483   :  { %8193 = vtanh.f32 %v10147_v40  ;;  %3904 = vmatpush1.bf16.msra.mxu0 %v10128_v19  ;;  %3945 = vmatpush1.bf16.msra.mxu1 %v10133_v14 }
 0x484   :  { %3905 = vmatprep.subr.bf16.mxu0 %v10140_v1  ;;  %3946 = vmatprep.subr.bf16.mxu1 %v10145_v22 }
 0x487   :  { %3906 = vmatpush1.bf16.msra.mxu0 %v10155_v9  ;;  %3947 = vmatpush1.bf16.msra.mxu1 %v10160_v11  ;;  %v10196_v11 = vld [vmem:[%s11060_s6 + $0xec] ss:$16 sps:$4 sm:$0xff]   ;;  %v8192_v9 = vpop.eup %8191 }
 0x488   :  { %3907 = vmatprep.subr.bf16.mxu0 %v10167_v25  ;;  %3948 = vmatprep.subr.bf16.mxu1 %v10172_v38  ;;  %v10203_v25 = vld [vmem:[%s11060_s6 + $0xe0] ss:$16 sps:$4 sm:$0xff]   ;;  %v10208_v38 = vld [vmem:[%s11060_s6 + $0xe8] ss:$16 sps:$4 sm:$0xff]  }
 0x48b   :  { %3908 = vmatpush1.bf16.msra.mxu0 %v10179_v27  ;;  %3949 = vmatpush1.bf16.msra.mxu1 %v10184_v54 }
 0x48c   :  { %3909 = vmatprep.subr.bf16.mxu0 %v10191_v56  ;;  %3950 = vmatprep.subr.bf16.mxu1 %v10196_v11 }
 0x48d   :  { %v8194_v22 = vpop.eup %8193 }
 0x48e   :  { %v3386_v1 = vmul.f32 %v8194_v22, %v8192_v9  ;;  %v11181_v22 = vld [vmem:[#allocation43_spill] sm:$0xff] }
 0x48f   :  { %3910 = vmatpush1.bf16.msra.mxu0 %v10203_v25  ;;  %3951 = vmatpush1.bf16.msra.mxu1 %v10208_v38 }
 0x490   :  { %v3390_v54 = vpack.c.bf16 %v3386_v1, %v3386_v1  ;;  %4211 = vmatprep.subr.bf16.mxu0 %v9812_v42  ;;  %4252 = vmatprep.subr.bf16.mxu1 %v9817_v31 }
 0x492   :  { %7113 = vst [vmem:[%s11064_s9 + $0x10] sm:$0xf] %v3390_v54  ;;  %3928 = vmatmul.mubr.bf16.vlgmr.msra.gmra.mrb[68].mxu0 %v3390_v54  ;;  %3969 = vmatmul.mubr.bf16.vlgmr.msra.gmra.mrb[68].mxu1 %v3390_v54 }
 0x493   :  { %4212 = vmatpush1.bf16.msra.mxu0 %v9822_v55  ;;  %4253 = vmatpush1.bf16.msra.mxu1 %v9827_v49  ;;  %v11176_v55 = vld [vmem:[#allocation14_spill] sm:$0xff] }
 0x494   :  { %4213 = vmatprep.subr.bf16.mxu0 %v9836_v47  ;;  %4254 = vmatprep.subr.bf16.mxu1 %v9841_v34  ;;  %v11177_v47 = vld [vmem:[#allocation15_spill] sm:$0xff] }
 0x495   :  { %4243 = vmatprep.mubr.bf16.mxu0 %v11136_v32  ;;  %4284 = vmatprep.mubr.bf16.mxu1 %v11136_v32 }
 0x497   :  { %4214 = vmatpush1.bf16.msra.mxu0 %v9846_v37  ;;  %4255 = vmatpush1.bf16.msra.mxu1 %v9851_v58 }
 0x498   :  { %4215 = vmatprep.subr.bf16.mxu0 %v9860_v7  ;;  %4256 = vmatprep.subr.bf16.mxu1 %v9865_v29  ;;  %v11178_v7 = vld [vmem:[#allocation16_spill] sm:$0xff] }
 0x49b   :  { %4216 = vmatpush1.bf16.msra.mxu0 %v9870_v21  ;;  %4257 = vmatpush1.bf16.msra.mxu1 %v9875_v3  ;;  %v11179_v21 = vld [vmem:[#allocation17_spill] sm:$0xff] }
 0x49c   :  { %4217 = vmatprep.subr.bf16.mxu0 %v9884_v63  ;;  %4258 = vmatprep.subr.bf16.mxu1 %v9889_v61 }
 0x49f   :  { %4218 = vmatpush1.bf16.msra.mxu0 %v9894_v62  ;;  %4259 = vmatpush1.bf16.msra.mxu1 %v9899_v5 }
 0x4a0   :  { %4219 = vmatprep.subr.bf16.mxu0 %v9908_v59  ;;  %4260 = vmatprep.subr.bf16.mxu1 %v9913_v0 }
 0x4a3   :  { %4220 = vmatpush1.bf16.msra.mxu0 %v9918_v46  ;;  %4261 = vmatpush1.bf16.msra.mxu1 %v9923_v60 }
 0x4a4   :  { %4221 = vmatprep.subr.bf16.mxu0 %v9932_v48  ;;  %4262 = vmatprep.subr.bf16.mxu1 %v9937_v10 }
 0x4a7   :  { %4222 = vmatpush1.bf16.msra.mxu0 %v9942_v43  ;;  %4263 = vmatpush1.bf16.msra.mxu1 %v9947_v18 }
 0x4a8   :  { %4223 = vmatprep.subr.bf16.mxu0 %v9956_v51  ;;  %4264 = vmatprep.subr.bf16.mxu1 %v9961_v8 }
 0x4ab   :  { %4224 = vmatpush1.bf16.msra.mxu0 %v9966_v17  ;;  %4265 = vmatpush1.bf16.msra.mxu1 %v9971_v26 }
 0x4ac   :  { %4225 = vmatprep.subr.bf16.mxu0 %v9980_v12  ;;  %4266 = vmatprep.subr.bf16.mxu1 %v9985_v35 }
 0x4af   :  { %4226 = vmatpush1.bf16.msra.mxu0 %v9990_v44  ;;  %4267 = vmatpush1.bf16.msra.mxu1 %v9995_v45 }
 0x4b0   :  { %4509 = vmatprep.subr.bf16.mxu0 %v10004_v33  ;;  %4550 = vmatprep.subr.bf16.mxu1 %v10009_v23  ;;  %v11180_v23 = vld [vmem:[#allocation42_spill] sm:$0xff] }
 0x545   :  { %v3631_v42 = vpop.f32.mrb[64].mxu0  ;;  %v3672_v31 = vpop.f32.mrb[64].mxu1 }
 0x546   :  { %v3632_v49 = vadd.f32 %v3631_v42, %v11176_v55  ;;  %v3673_v34 = vadd.f32 %v3672_v31, %v11177_v47  ;;  %v3633_v37 = vpop.f32.mrb[65].mxu0  ;;  %v3674_v58 = vpop.f32.mrb[65].mxu1  ;;  %v11182_v31 = vld [vmem:[#allocation44_spill] sm:$0xff] }
 0x547   :  { %v3634_v29 = vadd.f32 %v3633_v37, %v11178_v7  ;;  %v3675_v3 = vadd.f32 %v3674_v58, %v11179_v21  ;;  %v3635_v63 = vpop.f32.mrb[66].mxu0  ;;  %v3676_v61 = vpop.f32.mrb[66].mxu1 }
 0x548   :  { %v7146_v62 = vmul.f32 -1.442695, %v3632_v49  ;;  %v3636_v5 = vpop.f32.mrb[67].mxu0  ;;  %v3677_v59 = vpop.f32.mrb[67].mxu1  ;;  %v7148_v46 = vmul.f32 -1.442695, %v3673_v34 }
 0x549   :  { %v7147_v0 = vmul.f32 -1.442695, %v3634_v29  ;;  %v11183_v49 = vld [vmem:[#allocation45_spill] sm:$0xff] }
 0x54a   :  { %8195 = vpow2.f32 %v7146_v62 }
 0x54b   :  { %8197 = vpow2.f32 %v7147_v0 }
 0x54c   :  { %8199 = vtanh.f32 %v3675_v3 }
 0x54d   :  { %8201 = vpow2.f32 %v7148_v46 }
 0x554   :  { %v8196_v60 = vpop.eup %8195 }
 0x555   :  { %v3688_v48 = vadd.f32 1.0, %v8196_v60  ;;  %v8198_v10 = vpop.eup %8197 }
 0x556   :  { %v3689_v43 = vadd.f32 1.0, %v8198_v10  ;;  %v8200_v18 = vpop.eup %8199  ;;  %v10351_v10 = vld [vmem:[%s11059_s3 + $0x28] ss:$16 sps:$4 sm:$0xff]  }
 0x557   :  { %8203 = vrcp.f32 %v3688_v48  ;;  %v8202_v51 = vpop.eup %8201  ;;  %v10346_v48 = vld [vmem:[%s11059_s3 + $0x20] ss:$16 sps:$4 sm:$0xff]  }
 0x558   :  { %8205 = vrcp.f32 %v3689_v43  ;;  %v3690_v12 = vadd.f32 1.0, %v8202_v51  ;;  %v10360_v43 = vld [vmem:[%s11059_s3 + $0x44] ss:$16 sps:$4 sm:$0xff]   ;;  %v10370_v51 = vld [vmem:[%s11059_s3 + $0x40] ss:$16 sps:$4 sm:$0xff]  }
 0x55a   :  { %8207 = vrcp.f32 %v3690_v12  ;;  %v10394_v12 = vld [vmem:[%s11059_s3 + $0x60] ss:$16 sps:$4 sm:$0xff]  }
 0x561   :  { %v8204_v8 = vpop.eup %8203 }
 0x562   :  { %v3699_v17 = vmul.f32 %v8204_v8, %v8200_v18  ;;  %v8206_v26 = vpop.eup %8205  ;;  %v10365_v18 = vld [vmem:[%s11059_s3 + $0x4c] ss:$16 sps:$4 sm:$0xff]   ;;  %v10375_v8 = vld [vmem:[%s11059_s3 + $0x48] ss:$16 sps:$4 sm:$0xff]  }
 0x563   :  { %v3698_v35 = vmul.f32 %v8206_v26, %v10018_v6  ;;  %v10389_v26 = vld [vmem:[%s11059_s3 + $0x6c] ss:$16 sps:$4 sm:$0xff]  }
 0x564   :  { %v8208_v21 = vpop.eup %8207 }
 0x565   :  { %v3929_v44 = vpop.f32.mrb[68].mxu0  ;;  %v3970_v45 = vpop.f32.mrb[68].mxu1  ;;  %v10258_v33 = vadd.f32 %v3699_v17, %v3698_v35  ;;  %v10384_v17 = vld [vmem:[%s11059_s3 + $0x64] ss:$16 sps:$4 sm:$0xff]   ;;  %v10399_v35 = vld [vmem:[%s11059_s3 + $0x68] ss:$16 sps:$4 sm:$0xff]  }
 0x566   :  { %v3930_v1 = vadd.f32 %v3929_v44, %v11180_v23  ;;  %v3971_v9 = vadd.f32 %v3970_v45, %v11181_v22  ;;  %v3931_v54 = vpop.f32.mrb[69].mxu0  ;;  %v3972_v42 = vpop.f32.mrb[69].mxu1  ;;  %v10408_v44 = vld [vmem:[%s11059_s3 + $0x84] ss:$16 sps:$4 sm:$0xff]   ;;  %v10413_v45 = vld [vmem:[%s11059_s3 + $0x8c] ss:$16 sps:$4 sm:$0xff]  }
 0x567   :  { %v3932_v55 = vadd.f32 %v3931_v54, %v11182_v31  ;;  %v3973_v47 = vadd.f32 %v3972_v42, %v11183_v49  ;;  %v3933_v34 = vpop.f32.mrb[70].mxu0  ;;  %v3974_v37 = vpop.f32.mrb[70].mxu1  ;;  %8209 = vtanh.f32 %v10258_v33  ;;  %v10418_v23 = vld [vmem:[%s11059_s3 + $0x80] ss:$16 sps:$4 sm:$0xff]   ;;  %v10432_v22 = vld [vmem:[%s11059_s3 + $0xa4] ss:$16 sps:$4 sm:$0xff]  }
 0x568   :  { %v7181_v6 = vmul.f32 -1.442695, %v3930_v1  ;;  %v3934_v58 = vpop.f32.mrb[71].mxu0  ;;  %v3975_v7 = vpop.f32.mrb[71].mxu1  ;;  %v7183_v63 = vmul.f32 -1.442695, %v3971_v9 }
 0x569   :  { %v7182_v29 = vmul.f32 -1.442695, %v3932_v55  ;;  %v10423_v1 = vld [vmem:[%s11059_s3 + $0x88] ss:$16 sps:$4 sm:$0xff]   ;;  %v10437_v9 = vld [vmem:[%s11059_s3 + $0xac] ss:$16 sps:$4 sm:$0xff]  }
 0x56a   :  { %8211 = vpow2.f32 %v7181_v6  ;;  %v10442_v54 = vld [vmem:[%s11059_s3 + $0xa0] ss:$16 sps:$4 sm:$0xff]   ;;  %v10447_v42 = vld [vmem:[%s11059_s3 + $0xa8] ss:$16 sps:$4 sm:$0xff]   ;;  %v10456_v31 = vld [vmem:[%s11059_s3 + $0xc4] ss:$16 sps:$4 sm:$0xff]  }
 0x56b   :  { %8213 = vpow2.f32 %v7182_v29  ;;  %v10461_v55 = vld [vmem:[%s11059_s3 + $0xcc] ss:$16 sps:$4 sm:$0xff]   ;;  %v10466_v49 = vld [vmem:[%s11059_s3 + $0xc0] ss:$16 sps:$4 sm:$0xff]   ;;  %v10480_v34 = vld [vmem:[%s11059_s3 + $0xe4] ss:$16 sps:$4 sm:$0xff]  }
 0x56c   :  { %8215 = vtanh.f32 %v3973_v47  ;;  %v10471_v47 = vld [vmem:[%s11059_s3 + $0xc8] ss:$16 sps:$4 sm:$0xff]   ;;  %v10485_v37 = vld [vmem:[%s11059_s3 + $0xec] ss:$16 sps:$4 sm:$0xff]   ;;  %v10490_v6 = vld [vmem:[%s11059_s3 + $0xe0] ss:$16 sps:$4 sm:$0xff]  }
 0x56d   :  { %8217 = vpow2.f32 %v7183_v63  ;;  %v10495_v58 = vld [vmem:[%s11059_s3 + $0xe8] ss:$16 sps:$4 sm:$0xff]   ;;  %v10504_v7 = vld [vmem:[%s11060_s6 + $0x4] ss:$16 sps:$4 sm:$0xff]   ;;  %v10509_v29 = vld [vmem:[%s11060_s6 + $0xc] ss:$16 sps:$4 sm:$0xff]  }
 0x56e   :  { %v11191_v63 = vld [vmem:[#allocation18_spill] sm:$0xff] }
 0x571   :  { %v8210_v3 = vpop.eup %8209 }
 0x572   :  { %v3702_v61 = vmul.f32 %v8210_v3, %v8208_v21 }
 0x574   :  { %v8212_v62 = vpop.eup %8211  ;;  %v4001_v59 = vpack.c.bf16 %v3702_v61, %v3702_v61 }
 0x575   :  { %v3986_v5 = vadd.f32 1.0, %v8212_v62  ;;  %v8214_v0 = vpop.eup %8213  ;;  %v11192_v62 = vld [vmem:[#allocation19_spill] sm:$0xff] }
 0x576   :  { %v3987_v46 = vadd.f32 1.0, %v8214_v0  ;;  %7184 = vst [vmem:[%s11063_s8 + $0x10] sm:$0xf] %v4001_v59  ;;  %4244 = vmatmul.mubr.bf16.vlgmr.msra.gmra.mrb[72].mxu0 %v4001_v59  ;;  %4285 = vmatmul.mubr.bf16.vlgmr.msra.gmra.mrb[72].mxu1 %v4001_v59 }
 0x577   :  { %8219 = vrcp.f32 %v3986_v5  ;;  %4510 = vmatpush1.bf16.msra.mxu0 %v10028_v24  ;;  %4551 = vmatpush1.bf16.msra.mxu1 %v10033_v15  ;;  %v8216_v24 = vpop.eup %8215 }
 0x578   :  { %8221 = vrcp.f32 %v3987_v46  ;;  %4511 = vmatprep.subr.bf16.mxu0 %v10038_v16  ;;  %4552 = vmatprep.subr.bf16.mxu1 %v10043_v20  ;;  %v8218_v60 = vpop.eup %8217  ;;  %v11193_v46 = vld [vmem:[#allocation20_spill] sm:$0xff] }
 0x579   :  { %4541 = vmatprep.mubr.bf16.mxu0 %v11136_v32  ;;  %4582 = vmatprep.mubr.bf16.mxu1 %v11136_v32 }
 0x57b   :  { %4512 = vmatpush1.bf16.msra.mxu0 %v10053_v52  ;;  %4553 = vmatpush1.bf16.msra.mxu1 %v10058_v36  ;;  %v3988_v52 = vadd.f32 1.0, %v8218_v60  ;;  %v11194_v60 = vld [vmem:[#allocation21_spill] sm:$0xff] }
 0x57c   :  { %4513 = vmatprep.subr.bf16.mxu0 %v10065_v53  ;;  %4554 = vmatprep.subr.bf16.mxu1 %v10070_v57  ;;  %v11184_v57 = vld [vmem:[#allocation8_spill] sm:$0xff] }
 0x57d   :  { %8223 = vrcp.f32 %v3988_v52 }
 0x57f   :  { %4514 = vmatpush1.bf16.msra.mxu0 %v10079_v41  ;;  %4555 = vmatpush1.bf16.msra.mxu1 %v10084_v50  ;;  %v11185_v41 = vld [vmem:[#allocation9_spill] sm:$0xff]  ;;  %v11186_v50 = vld [vmem:[#allocation50_spill] sm:$0xff] }
 0x580   :  { %4515 = vmatprep.subr.bf16.mxu0 %v10091_v39  ;;  %4556 = vmatprep.subr.bf16.mxu1 %v10096_v13  ;;  %v11187_v39 = vld [vmem:[#allocation51_spill] sm:$0xff]  ;;  %v11188_v13 = vld [vmem:[#allocation52_spill] sm:$0xff] }
 0x581   :  { %v8220_v15 = vpop.eup %8219 }
 0x582   :  { %v3997_v16 = vmul.f32 %v8220_v15, %v8216_v24  ;;  %v8222_v20 = vpop.eup %8221 }
 0x583   :  { %v3996_v36 = vmul.f32 %v8222_v20, %v10147_v40  ;;  %4516 = vmatpush1.bf16.msra.mxu0 %v10103_v2  ;;  %4557 = vmatpush1.bf16.msra.mxu1 %v10108_v4  ;;  %v11189_v2 = vld [vmem:[#allocation53_spill] sm:$0xff]  ;;  %v11190_v4 = vld [vmem:[#allocation54_spill] sm:$0xff] }
 0x584   :  { %4517 = vmatprep.subr.bf16.mxu0 %v10115_v28  ;;  %4558 = vmatprep.subr.bf16.mxu1 %v10120_v30  ;;  %v10312_v40 = vld [vmem:[%s11059_s3 + $0x4] ss:$16 sps:$4 sm:$0xff]  }
 0x585   :  { %v10287_v53 = vadd.f32 %v3997_v16, %v3996_v36 }
 0x587   :  { %8225 = vtanh.f32 %v10287_v53  ;;  %4518 = vmatpush1.bf16.msra.mxu0 %v10128_v19  ;;  %4559 = vmatpush1.bf16.msra.mxu1 %v10133_v14  ;;  %v8224_v28 = vpop.eup %8223 }
 0x588   :  { %4519 = vmatprep.subr.bf16.mxu0 %v11184_v57  ;;  %4560 = vmatprep.subr.bf16.mxu1 %v11185_v41 }
 0x58b   :  { %4520 = vmatpush1.bf16.msra.mxu0 %v11186_v50  ;;  %4561 = vmatpush1.bf16.msra.mxu1 %v11187_v39 }
 0x58c   :  { %4521 = vmatprep.subr.bf16.mxu0 %v11188_v13  ;;  %4562 = vmatprep.subr.bf16.mxu1 %v11189_v2 }
 0x58f   :  { %4522 = vmatpush1.bf16.msra.mxu0 %v10179_v27  ;;  %4563 = vmatpush1.bf16.msra.mxu1 %v11190_v4  ;;  %v10336_v27 = vld [vmem:[%s11059_s3 + $0x24] ss:$16 sps:$4 sm:$0xff]  }
 0x590   :  { %4523 = vmatprep.subr.bf16.mxu0 %v10191_v56  ;;  %4564 = vmatprep.subr.bf16.mxu1 %v10196_v11  ;;  %v10317_v11 = vld [vmem:[%s11059_s3 + $0xc] ss:$16 sps:$4 sm:$0xff]  }
 0x591   :  { %v8226_v30 = vpop.eup %8225  ;;  %v10341_v56 = vld [vmem:[%s11059_s3 + $0x2c] ss:$16 sps:$4 sm:$0xff]  }
 0x592   :  { %v4000_v19 = vmul.f32 %v8226_v30, %v8224_v28 }
 0x593   :  { %4524 = vmatpush1.bf16.msra.mxu0 %v10203_v25  ;;  %4565 = vmatpush1.bf16.msra.mxu1 %v10208_v38  ;;  %v10322_v25 = vld [vmem:[%s11059_s3] ss:$16 sps:$4 sm:$0xff]   ;;  %v10327_v38 = vld [vmem:[%s11059_s3 + $0x8] ss:$16 sps:$4 sm:$0xff]  }
 0x594   :  { %v4004_v14 = vpack.c.bf16 %v4000_v19, %v4000_v19  ;;  %4825 = vmatprep.subr.bf16.mxu0 %v10312_v40  ;;  %4866 = vmatprep.subr.bf16.mxu1 %v10317_v11 }
 0x596   :  { %7185 = vst [vmem:[%s11064_s9 + $0xc] sm:$0xf] %v4004_v14  ;;  %4542 = vmatmul.mubr.bf16.vlgmr.msra.gmra.mrb[76].mxu0 %v4004_v14  ;;  %4583 = vmatmul.mubr.bf16.vlgmr.msra.gmra.mrb[76].mxu1 %v4004_v14 }
 0x597   :  { %4857 = vmatprep.mubr.bf16.mxu0 %v11136_v32  ;;  %4898 = vmatprep.mubr.bf16.mxu1 %v11136_v32 }
 0x598   :  { %4826 = vmatpush1.bf16.msra.mxu0 %v10322_v25  ;;  %4867 = vmatpush1.bf16.msra.mxu1 %v10327_v38 }
 0x599   :  { %4827 = vmatprep.subr.bf16.mxu0 %v10336_v27  ;;  %4868 = vmatprep.subr.bf16.mxu1 %v10341_v56 }
 0x59c   :  { %4828 = vmatpush1.bf16.msra.mxu0 %v10346_v48  ;;  %4869 = vmatpush1.bf16.msra.mxu1 %v10351_v10 }
 0x59d   :  { %4829 = vmatprep.subr.bf16.mxu0 %v10360_v43  ;;  %4870 = vmatprep.subr.bf16.mxu1 %v10365_v18 }
 0x5a0   :  { %4830 = vmatpush1.bf16.msra.mxu0 %v10370_v51  ;;  %4871 = vmatpush1.bf16.msra.mxu1 %v10375_v8 }
 0x5a1   :  { %4831 = vmatprep.subr.bf16.mxu0 %v10384_v17  ;;  %4872 = vmatprep.subr.bf16.mxu1 %v10389_v26 }
 0x5a4   :  { %4832 = vmatpush1.bf16.msra.mxu0 %v10394_v12  ;;  %4873 = vmatpush1.bf16.msra.mxu1 %v10399_v35 }
 0x5a5   :  { %4833 = vmatprep.subr.bf16.mxu0 %v10408_v44  ;;  %4874 = vmatprep.subr.bf16.mxu1 %v10413_v45 }
 0x5a8   :  { %4834 = vmatpush1.bf16.msra.mxu0 %v10418_v23  ;;  %4875 = vmatpush1.bf16.msra.mxu1 %v10423_v1 }
 0x5a9   :  { %4835 = vmatprep.subr.bf16.mxu0 %v10432_v22  ;;  %4876 = vmatprep.subr.bf16.mxu1 %v10437_v9 }
 0x5ac   :  { %4836 = vmatpush1.bf16.msra.mxu0 %v10442_v54  ;;  %4877 = vmatpush1.bf16.msra.mxu1 %v10447_v42 }
 0x5ad   :  { %4837 = vmatprep.subr.bf16.mxu0 %v10456_v31  ;;  %4878 = vmatprep.subr.bf16.mxu1 %v10461_v55 }
 0x5b0   :  { %4838 = vmatpush1.bf16.msra.mxu0 %v10466_v49  ;;  %4879 = vmatpush1.bf16.msra.mxu1 %v10471_v47 }
 0x5b1   :  { %4839 = vmatprep.subr.bf16.mxu0 %v10480_v34  ;;  %4880 = vmatprep.subr.bf16.mxu1 %v10485_v37 }
 0x5b4   :  { %4840 = vmatpush1.bf16.msra.mxu0 %v10490_v6  ;;  %4881 = vmatpush1.bf16.msra.mxu1 %v10495_v58 }
 0x5b5   :  { %5123 = vmatprep.subr.bf16.mxu0 %v10504_v7  ;;  %5164 = vmatprep.subr.bf16.mxu1 %v10509_v29 }
 0x649   :  { %v4245_v21 = vpop.f32.mrb[72].mxu0  ;;  %v4286_v3 = vpop.f32.mrb[72].mxu1 }
 0x64a   :  { %v4246_v61 = vadd.f32 %v4245_v21, %v11191_v63  ;;  %v4287_v5 = vadd.f32 %v4286_v3, %v11192_v62  ;;  %v4247_v59 = vpop.f32.mrb[73].mxu0  ;;  %v4288_v0 = vpop.f32.mrb[73].mxu1 }
 0x64b   :  { %v4248_v24 = vadd.f32 %v4247_v59, %v11193_v46  ;;  %v4289_v15 = vadd.f32 %v4288_v0, %v11194_v60  ;;  %v4249_v16 = vpop.f32.mrb[74].mxu0  ;;  %v4290_v20 = vpop.f32.mrb[74].mxu1  ;;  %v11196_v46 = vld [vmem:[#allocation39_spill] sm:$0xff] }
 0x64c   :  { %v7218_v52 = vmul.f32 -1.442695, %v4246_v61  ;;  %v4250_v36 = vpop.f32.mrb[75].mxu0  ;;  %v4291_v57 = vpop.f32.mrb[75].mxu1  ;;  %v7220_v50 = vmul.f32 -1.442695, %v4287_v5 }
 0x64d   :  { %v7219_v41 = vmul.f32 -1.442695, %v4248_v24  ;;  %v11195_v5 = vld [vmem:[#allocation38_spill] sm:$0xff]  ;;  %v11197_v16 = vld [vmem:[#allocation40_spill] sm:$0xff] }
 0x64e   :  { %8227 = vpow2.f32 %v7218_v52  ;;  %v11198_v52 = vld [vmem:[#allocation41_spill] sm:$0xff] }
 0x64f   :  { %8229 = vpow2.f32 %v7219_v41 }
 0x650   :  { %8231 = vtanh.f32 %v4289_v15 }
 0x651   :  { %8233 = vpow2.f32 %v7220_v50 }
 0x658   :  { %v8228_v39 = vpop.eup %8227 }
 0x659   :  { %v4302_v13 = vadd.f32 1.0, %v8228_v39  ;;  %v8230_v2 = vpop.eup %8229 }
 0x65a   :  { %v4303_v4 = vadd.f32 1.0, %v8230_v2  ;;  %v8232_v28 = vpop.eup %8231 }
 0x65b   :  { %8235 = vrcp.f32 %v4302_v13  ;;  %v8234_v30 = vpop.eup %8233 }
 0x65c   :  { %8237 = vrcp.f32 %v4303_v4  ;;  %v4304_v3 = vadd.f32 1.0, %v8234_v30 }
 0x65e   :  { %8239 = vrcp.f32 %v4304_v3 }
 0x665   :  { %v8236_v19 = vpop.eup %8235 }
 0x666   :  { %v4313_v14 = vmul.f32 %v8236_v19, %v8232_v28  ;;  %v8238_v21 = vpop.eup %8237 }
 0x667   :  { %v4312_v63 = vmul.f32 %v8238_v21, %v10258_v33  ;;  %v10533_v21 = vld [vmem:[%s11060_s6 + $0x8] ss:$16 sps:$4 sm:$0xff]  }
 0x668   :  { %v8240_v2 = vpop.eup %8239 }
 0x669   :  { %v4543_v61 = vpop.f32.mrb[76].mxu0  ;;  %v4584_v62 = vpop.f32.mrb[76].mxu1  ;;  %v10518_v59 = vadd.f32 %v4313_v14, %v4312_v63  ;;  %v10528_v14 = vld [vmem:[%s11060_s6] ss:$16 sps:$4 sm:$0xff]  }
 0x66a   :  { %v4544_v0 = vadd.f32 %v4543_v61, %v11195_v5  ;;  %v4585_v24 = vadd.f32 %v4584_v62, %v11196_v46  ;;  %v4545_v60 = vpop.f32.mrb[77].mxu0  ;;  %v4586_v15 = vpop.f32.mrb[77].mxu1  ;;  %v10538_v61 = vld [vmem:[%s11060_s6 + $0x24] ss:$16 sps:$4 sm:$0xff]   ;;  %v10543_v62 = vld [vmem:[%s11060_s6 + $0x2c] ss:$16 sps:$4 sm:$0xff]  }
 0x66b   :  { %v4546_v20 = vadd.f32 %v4545_v60, %v11197_v16  ;;  %v4587_v36 = vadd.f32 %v4586_v15, %v11198_v52  ;;  %v4547_v57 = vpop.f32.mrb[78].mxu0  ;;  %v4588_v41 = vpop.f32.mrb[78].mxu1  ;;  %8241 = vtanh.f32 %v10518_v59  ;;  %v10553_v46 = vld [vmem:[%s11060_s6 + $0x20] ss:$16 sps:$4 sm:$0xff]   ;;  %v10565_v60 = vld [vmem:[%s11060_s6 + $0x44] ss:$16 sps:$4 sm:$0xff]  }
 0x66c   :  { %v7253_v33 = vmul.f32 -1.442695, %v4544_v0  ;;  %v4548_v50 = vpop.f32.mrb[79].mxu0  ;;  %v4589_v39 = vpop.f32.mrb[79].mxu1  ;;  %v7255_v28 = vmul.f32 -1.442695, %v4585_v24 }
 0x66d   :  { %v7254_v13 = vmul.f32 -1.442695, %v4546_v20  ;;  %v10558_v24 = vld [vmem:[%s11060_s6 + $0x28] ss:$16 sps:$4 sm:$0xff]   ;;  %v10570_v15 = vld [vmem:[%s11060_s6 + $0x4c] ss:$16 sps:$4 sm:$0xff]  }
 0x66e   :  { %8243 = vpow2.f32 %v7253_v33  ;;  %v10579_v16 = vld [vmem:[%s11060_s6 + $0x40] ss:$16 sps:$4 sm:$0xff]   ;;  %v10584_v20 = vld [vmem:[%s11060_s6 + $0x48] ss:$16 sps:$4 sm:$0xff]   ;;  %v10591_v52 = vld [vmem:[%s11060_s6 + $0x64] ss:$16 sps:$4 sm:$0xff]  }
 0x66f   :  { %8245 = vpow2.f32 %v7254_v13  ;;  %v10603_v33 = vld [vmem:[%s11060_s6 + $0x60] ss:$16 sps:$4 sm:$0xff]   ;;  %v10608_v50 = vld [vmem:[%s11060_s6 + $0x68] ss:$16 sps:$4 sm:$0xff]   ;;  %v10615_v13 = vld [vmem:[%s11060_s6 + $0x84] ss:$16 sps:$4 sm:$0xff]  }
 0x670   :  { %8247 = vtanh.f32 %v4587_v36  ;;  %v10596_v36 = vld [vmem:[%s11060_s6 + $0x6c] ss:$16 sps:$4 sm:$0xff]  }
 0x671   :  { %8249 = vpow2.f32 %v7255_v28 }
 0x675   :  { %v8242_v4 = vpop.eup %8241 }
 0x676   :  { %v4316_v30 = vmul.f32 %v8242_v4, %v8240_v2  ;;  %v10620_v2 = vld [vmem:[%s11060_s6 + $0x8c] ss:$16 sps:$4 sm:$0xff]  }
 0x678   :  { %v8244_v19 = vpop.eup %8243  ;;  %v4615_v63 = vpack.c.bf16 %v4316_v30, %v4316_v30 }
 0x679   :  { %v4600_v3 = vadd.f32 1.0, %v8244_v19  ;;  %v8246_v5 = vpop.eup %8245 }
 0x67a   :  { %v4601_v0 = vadd.f32 1.0, %v8246_v5  ;;  %7256 = vst [vmem:[%s11063_s8 + $0x14] sm:$0xf] %v4615_v63  ;;  %4858 = vmatmul.mubr.bf16.vlgmr.msra.gmra.mrb[80].mxu0 %v4615_v63  ;;  %4899 = vmatmul.mubr.bf16.vlgmr.msra.gmra.mrb[80].mxu1 %v4615_v63  ;;  %v8248_v57 = vpop.eup %8247  ;;  %v10633_v63 = vld [vmem:[%s11060_s6 + $0x88] ss:$16 sps:$4 sm:$0xff]  }
 0x67b   :  { %8251 = vrcp.f32 %v4600_v3  ;;  %5124 = vmatpush1.bf16.msra.mxu0 %v10528_v14  ;;  %5165 = vmatpush1.bf16.msra.mxu1 %v10533_v21  ;;  %v8250_v41 = vpop.eup %8249  ;;  %v10628_v3 = vld [vmem:[%s11060_s6 + $0x80] ss:$16 sps:$4 sm:$0xff]   ;;  %v10645_v5 = vld [vmem:[%s11060_s6 + $0xac] ss:$16 sps:$4 sm:$0xff]  }
 0x67c   :  { %8253 = vrcp.f32 %v4601_v0  ;;  %5125 = vmatprep.subr.bf16.mxu0 %v10538_v61  ;;  %5166 = vmatprep.subr.bf16.mxu1 %v10543_v62  ;;  %v4602_v30 = vadd.f32 1.0, %v8250_v41  ;;  %11200 = vst [vmem:[#allocation56_spill] sm:$0xff] %v10645_v5  ;;  %v10660_v41 = vld [vmem:[%s11060_s6 + $0xa8] ss:$16 sps:$4 sm:$0xff]  }
 0x67d   :  { %5155 = vmatprep.mubr.bf16.mxu0 %v11136_v32  ;;  %5196 = vmatprep.mubr.bf16.mxu1 %v11136_v32  ;;  %11202 = vst [vmem:[#allocation58_spill] sm:$0xff] %v10660_v41 }
 0x67e   :  { %8255 = vrcp.f32 %v4602_v30  ;;  %v10684_v30 = vld [vmem:[%s11060_s6 + $0xc8] ss:$16 sps:$4 sm:$0xff]  }
 0x67f   :  { %5126 = vmatpush1.bf16.msra.mxu0 %v10553_v46  ;;  %5167 = vmatpush1.bf16.msra.mxu1 %v10558_v24  ;;  %11205 = vst [vmem:[#allocation61_spill] sm:$0xff] %v10684_v30 }
 0x680   :  { %5127 = vmatprep.subr.bf16.mxu0 %v10565_v60  ;;  %5168 = vmatprep.subr.bf16.mxu1 %v10570_v15 }
 0x683   :  { %5128 = vmatpush1.bf16.msra.mxu0 %v10579_v16  ;;  %5169 = vmatpush1.bf16.msra.mxu1 %v10584_v20 }
 0x684   :  { %5129 = vmatprep.subr.bf16.mxu0 %v10591_v52  ;;  %5170 = vmatprep.subr.bf16.mxu1 %v10596_v36 }
 0x685   :  { %v8252_v39 = vpop.eup %8251 }
 0x686   :  { %v4611_v4 = vmul.f32 %v8252_v39, %v8248_v57  ;;  %v8254_v28 = vpop.eup %8253  ;;  %v10655_v57 = vld [vmem:[%s11060_s6 + $0xa0] ss:$16 sps:$4 sm:$0xff]   ;;  %v10667_v39 = vld [vmem:[%s11060_s6 + $0xc4] ss:$16 sps:$4 sm:$0xff]  }
 0x687   :  { %v4610_v19 = vmul.f32 %v8254_v28, %v10287_v53  ;;  %5130 = vmatpush1.bf16.msra.mxu0 %v10603_v33  ;;  %5171 = vmatpush1.bf16.msra.mxu1 %v10608_v50  ;;  %v10640_v53 = vld [vmem:[%s11060_s6 + $0xa4] ss:$16 sps:$4 sm:$0xff]   ;;  %11201 = vst [vmem:[#allocation57_spill] sm:$0xff] %v10655_v57  ;;  %11203 = vst [vmem:[#allocation59_spill] sm:$0xff] %v10667_v39  ;;  %v10679_v28 = vld [vmem:[%s11060_s6 + $0xc0] ss:$16 sps:$4 sm:$0xff]  }
 0x688   :  { %5131 = vmatprep.subr.bf16.mxu0 %v10615_v13  ;;  %5172 = vmatprep.subr.bf16.mxu1 %v10620_v2  ;;  %11199 = vst [vmem:[#allocation55_spill] sm:$0xff] %v10640_v53 }
 0x689   :  { %v10647_v0 = vadd.f32 %v4611_v4, %v4610_v19  ;;  %v10672_v4 = vld [vmem:[%s11060_s6 + $0xcc] ss:$16 sps:$4 sm:$0xff]   ;;  %v10691_v19 = vld [vmem:[%s11060_s6 + $0xe4] ss:$16 sps:$4 sm:$0xff]  }
 0x68a   :  { %11204 = vst [vmem:[#allocation60_spill] sm:$0xff] %v10672_v4 }
 0x68b   :  { %8257 = vtanh.f32 %v10647_v0  ;;  %5132 = vmatpush1.bf16.msra.mxu0 %v10628_v3  ;;  %5173 = vmatpush1.bf16.msra.mxu1 %v10633_v63 }
 0x68c   :  { %5133 = vmatprep.subr.bf16.mxu0 %v10640_v53  ;;  %5174 = vmatprep.subr.bf16.mxu1 %v10645_v5 }
 0x68f   :  { %5134 = vmatpush1.bf16.msra.mxu0 %v10655_v57  ;;  %5175 = vmatpush1.bf16.msra.mxu1 %v10660_v41  ;;  %v10696_v41 = vld [vmem:[%s11060_s6 + $0xec] ss:$16 sps:$4 sm:$0xff]   ;;  %v8256_v57 = vpop.eup %8255 }
 0x690   :  { %5135 = vmatprep.subr.bf16.mxu0 %v10667_v39  ;;  %5176 = vmatprep.subr.bf16.mxu1 %v10672_v4  ;;  %v10703_v39 = vld [vmem:[%s11060_s6 + $0xe0] ss:$16 sps:$4 sm:$0xff]   ;;  %v10708_v4 = vld [vmem:[%s11060_s6 + $0xe8] ss:$16 sps:$4 sm:$0xff]  }
 0x693   :  { %5136 = vmatpush1.bf16.msra.mxu0 %v10679_v28  ;;  %5177 = vmatpush1.bf16.msra.mxu1 %v10684_v30 }
 0x694   :  { %5137 = vmatprep.subr.bf16.mxu0 %v10691_v19  ;;  %5178 = vmatprep.subr.bf16.mxu1 %v10696_v41 }
 0x695   :  { %v8258_v5 = vpop.eup %8257 }
 0x696   :  { %v4614_v53 = vmul.f32 %v8258_v5, %v8256_v57  ;;  %v11211_v5 = vld [vmem:[#allocation35_spill] sm:$0xff] }
 0x697   :  { %5138 = vmatpush1.bf16.msra.mxu0 %v10703_v39  ;;  %5179 = vmatpush1.bf16.msra.mxu1 %v10708_v4 }
 0x698   :  { %v4618_v30 = vpack.c.bf16 %v4614_v53, %v4614_v53  ;;  %5439 = vmatprep.subr.bf16.mxu0 %v10312_v40  ;;  %5480 = vmatprep.subr.bf16.mxu1 %v10317_v11 }
 0x69a   :  { %7257 = vst [vmem:[%s11064_s9 + $0x8] sm:$0xf] %v4618_v30  ;;  %5156 = vmatmul.mubr.bf16.vlgmr.msra.gmra.mrb[84].mxu0 %v4618_v30  ;;  %5197 = vmatmul.mubr.bf16.vlgmr.msra.gmra.mrb[84].mxu1 %v4618_v30 }
 0x69b   :  { %5440 = vmatpush1.bf16.msra.mxu0 %v10322_v25  ;;  %5481 = vmatpush1.bf16.msra.mxu1 %v10327_v38  ;;  %v11206_v25 = vld [vmem:[#allocation22_spill] sm:$0xff] }
 0x69c   :  { %5441 = vmatprep.subr.bf16.mxu0 %v10336_v27  ;;  %5482 = vmatprep.subr.bf16.mxu1 %v10341_v56  ;;  %v11207_v27 = vld [vmem:[#allocation23_spill] sm:$0xff] }
 0x69d   :  { %5471 = vmatprep.mubr.bf16.mxu0 %v11136_v32  ;;  %5512 = vmatprep.mubr.bf16.mxu1 %v11136_v32 }
 0x69f   :  { %5442 = vmatpush1.bf16.msra.mxu0 %v10346_v48  ;;  %5483 = vmatpush1.bf16.msra.mxu1 %v10351_v10 }
 0x6a0   :  { %5443 = vmatprep.subr.bf16.mxu0 %v10360_v43  ;;  %5484 = vmatprep.subr.bf16.mxu1 %v10365_v18  ;;  %v11208_v43 = vld [vmem:[#allocation24_spill] sm:$0xff] }
 0x6a3   :  { %5444 = vmatpush1.bf16.msra.mxu0 %v10370_v51  ;;  %5485 = vmatpush1.bf16.msra.mxu1 %v10375_v8  ;;  %v11209_v51 = vld [vmem:[#allocation25_spill] sm:$0xff] }
 0x6a4   :  { %5445 = vmatprep.subr.bf16.mxu0 %v10384_v17  ;;  %5486 = vmatprep.subr.bf16.mxu1 %v10389_v26 }
 0x6a7   :  { %5446 = vmatpush1.bf16.msra.mxu0 %v10394_v12  ;;  %5487 = vmatpush1.bf16.msra.mxu1 %v10399_v35 }
 0x6a8   :  { %5447 = vmatprep.subr.bf16.mxu0 %v10408_v44  ;;  %5488 = vmatprep.subr.bf16.mxu1 %v10413_v45 }
 0x6ab   :  { %5448 = vmatpush1.bf16.msra.mxu0 %v10418_v23  ;;  %5489 = vmatpush1.bf16.msra.mxu1 %v10423_v1 }
 0x6ac   :  { %5449 = vmatprep.subr.bf16.mxu0 %v10432_v22  ;;  %5490 = vmatprep.subr.bf16.mxu1 %v10437_v9 }
 0x6af   :  { %5450 = vmatpush1.bf16.msra.mxu0 %v10442_v54  ;;  %5491 = vmatpush1.bf16.msra.mxu1 %v10447_v42 }
 0x6b0   :  { %5451 = vmatprep.subr.bf16.mxu0 %v10456_v31  ;;  %5492 = vmatprep.subr.bf16.mxu1 %v10461_v55 }
 0x6b3   :  { %5452 = vmatpush1.bf16.msra.mxu0 %v10466_v49  ;;  %5493 = vmatpush1.bf16.msra.mxu1 %v10471_v47 }
 0x6b4   :  { %5453 = vmatprep.subr.bf16.mxu0 %v10480_v34  ;;  %5494 = vmatprep.subr.bf16.mxu1 %v10485_v37 }
 0x6b7   :  { %5454 = vmatpush1.bf16.msra.mxu0 %v10490_v6  ;;  %5495 = vmatpush1.bf16.msra.mxu1 %v10495_v58 }
 0x6b8   :  { %5737 = vmatprep.subr.bf16.mxu0 %v10504_v7  ;;  %5778 = vmatprep.subr.bf16.mxu1 %v10509_v29  ;;  %v11210_v29 = vld [vmem:[#allocation34_spill] sm:$0xff] }
 0x74d   :  { %v4859_v40 = vpop.f32.mrb[80].mxu0  ;;  %v4900_v11 = vpop.f32.mrb[80].mxu1 }
 0x74e   :  { %v4860_v38 = vadd.f32 %v4859_v40, %v11206_v25  ;;  %v4901_v56 = vadd.f32 %v4900_v11, %v11207_v27  ;;  %v4861_v48 = vpop.f32.mrb[81].mxu0  ;;  %v4902_v10 = vpop.f32.mrb[81].mxu1  ;;  %v11212_v11 = vld [vmem:[#allocation36_spill] sm:$0xff] }
 0x74f   :  { %v4862_v18 = vadd.f32 %v4861_v48, %v11208_v43  ;;  %v4903_v8 = vadd.f32 %v4902_v10, %v11209_v51  ;;  %v4863_v17 = vpop.f32.mrb[82].mxu0  ;;  %v4904_v26 = vpop.f32.mrb[82].mxu1 }
 0x750   :  { %v7290_v12 = vmul.f32 -1.442695, %v4860_v38  ;;  %v4864_v35 = vpop.f32.mrb[83].mxu0  ;;  %v4905_v44 = vpop.f32.mrb[83].mxu1  ;;  %v7292_v23 = vmul.f32 -1.442695, %v4901_v56 }
 0x751   :  { %v7291_v45 = vmul.f32 -1.442695, %v4862_v18  ;;  %v11213_v38 = vld [vmem:[#allocation37_spill] sm:$0xff] }
 0x752   :  { %8259 = vpow2.f32 %v7290_v12 }
 0x753   :  { %8261 = vpow2.f32 %v7291_v45 }
 0x754   :  { %8263 = vtanh.f32 %v4903_v8 }
 0x755   :  { %8265 = vpow2.f32 %v7292_v23 }
 0x75c   :  { %v8260_v1 = vpop.eup %8259 }
 0x75d   :  { %v4916_v22 = vadd.f32 1.0, %v8260_v1  ;;  %v8262_v9 = vpop.eup %8261 }
 0x75e   :  { %v4917_v54 = vadd.f32 1.0, %v8262_v9  ;;  %v8264_v42 = vpop.eup %8263  ;;  %v7972_v9 = vld [vmem:[%s11055_s2 + $0x28] ss:$16 sps:$4 sm:$0xff]  }
 0x75f   :  { %8267 = vrcp.f32 %v4916_v22  ;;  %v8266_v31 = vpop.eup %8265  ;;  %v7971_v22 = vld [vmem:[%s11055_s2 + $0x24] ss:$16 sps:$4 sm:$0xff]  }
 0x760   :  { %8269 = vrcp.f32 %v4917_v54  ;;  %v4918_v34 = vadd.f32 1.0, %v8266_v31  ;;  %v7977_v54 = vld [vmem:[%s11055_s2 + $0x44] ss:$16 sps:$4 sm:$0xff]   ;;  %v7975_v31 = vld [vmem:[%s11055_s2 + $0x40] ss:$16 sps:$4 sm:$0xff]  }
 0x762   :  { %8271 = vrcp.f32 %v4918_v34  ;;  %v7981_v34 = vld [vmem:[%s11055_s2 + $0x60] ss:$16 sps:$4 sm:$0xff]  }
 0x769   :  { %v8268_v55 = vpop.eup %8267 }
 0x76a   :  { %v4927_v49 = vmul.f32 %v8268_v55, %v8264_v42  ;;  %v8270_v47 = vpop.eup %8269  ;;  %v7980_v42 = vld [vmem:[%s11055_s2 + $0x4c] ss:$16 sps:$4 sm:$0xff]   ;;  %v7978_v55 = vld [vmem:[%s11055_s2 + $0x48] ss:$16 sps:$4 sm:$0xff]  }
 0x76b   :  { %v4926_v37 = vmul.f32 %v8270_v47, %v10518_v59  ;;  %v7986_v47 = vld [vmem:[%s11055_s2 + $0x6c] ss:$16 sps:$4 sm:$0xff]  }
 0x76c   :  { %v8272_v51 = vpop.eup %8271 }
 0x76d   :  { %v5157_v6 = vpop.f32.mrb[84].mxu0  ;;  %v5198_v58 = vpop.f32.mrb[84].mxu1  ;;  %v10758_v7 = vadd.f32 %v4927_v49, %v4926_v37  ;;  %v7983_v49 = vld [vmem:[%s11055_s2 + $0x64] ss:$16 sps:$4 sm:$0xff]   ;;  %v7984_v37 = vld [vmem:[%s11055_s2 + $0x68] ss:$16 sps:$4 sm:$0xff]  }
 0x76e   :  { %v5158_v53 = vadd.f32 %v5157_v6, %v11210_v29  ;;  %v5199_v57 = vadd.f32 %v5198_v58, %v11211_v5  ;;  %v5159_v30 = vpop.f32.mrb[85].mxu0  ;;  %v5200_v40 = vpop.f32.mrb[85].mxu1  ;;  %v7989_v6 = vld [vmem:[%s11055_s2 + $0x84] ss:$16 sps:$4 sm:$0xff]   ;;  %v7992_v58 = vld [vmem:[%s11055_s2 + $0x8c] ss:$16 sps:$4 sm:$0xff]  }
 0x76f   :  { %v5160_v25 = vadd.f32 %v5159_v30, %v11212_v11  ;;  %v5201_v27 = vadd.f32 %v5200_v40, %v11213_v38  ;;  %v5161_v56 = vpop.f32.mrb[86].mxu0  ;;  %v5202_v48 = vpop.f32.mrb[86].mxu1  ;;  %8273 = vtanh.f32 %v10758_v7  ;;  %v7987_v29 = vld [vmem:[%s11055_s2 + $0x80] ss:$16 sps:$4 sm:$0xff]   ;;  %v7995_v5 = vld [vmem:[%s11055_s2 + $0xa4] ss:$16 sps:$4 sm:$0xff]  }
 0x770   :  { %v7325_v59 = vmul.f32 -1.442695, %v5158_v53  ;;  %v5162_v10 = vpop.f32.mrb[87].mxu0  ;;  %v5203_v43 = vpop.f32.mrb[87].mxu1  ;;  %v7327_v17 = vmul.f32 -1.442695, %v5199_v57 }
 0x771   :  { %v7326_v18 = vmul.f32 -1.442695, %v5160_v25  ;;  %v7990_v53 = vld [vmem:[%s11055_s2 + $0x88] ss:$16 sps:$4 sm:$0xff]   ;;  %v7998_v57 = vld [vmem:[%s11055_s2 + $0xac] ss:$16 sps:$4 sm:$0xff]  }
 0x772   :  { %8275 = vpow2.f32 %v7325_v59  ;;  %v7993_v30 = vld [vmem:[%s11055_s2 + $0xa0] ss:$16 sps:$4 sm:$0xff]   ;;  %v7996_v40 = vld [vmem:[%s11055_s2 + $0xa8] ss:$16 sps:$4 sm:$0xff]   ;;  %v8001_v11 = vld [vmem:[%s11055_s2 + $0xc4] ss:$16 sps:$4 sm:$0xff]  }
 0x773   :  { %8277 = vpow2.f32 %v7326_v18  ;;  %v8004_v25 = vld [vmem:[%s11055_s2 + $0xcc] ss:$16 sps:$4 sm:$0xff]   ;;  %v7999_v38 = vld [vmem:[%s11055_s2 + $0xc0] ss:$16 sps:$4 sm:$0xff]   ;;  %v8007_v56 = vld [vmem:[%s11055_s2 + $0xe4] ss:$16 sps:$4 sm:$0xff]  }
 0x774   :  { %8279 = vtanh.f32 %v5201_v27  ;;  %v8002_v27 = vld [vmem:[%s11055_s2 + $0xc8] ss:$16 sps:$4 sm:$0xff]   ;;  %v8010_v48 = vld [vmem:[%s11055_s2 + $0xec] ss:$16 sps:$4 sm:$0xff]   ;;  %v8005_v59 = vld [vmem:[%s11055_s2 + $0xe0] ss:$16 sps:$4 sm:$0xff]  }
 0x775   :  { %8281 = vpow2.f32 %v7327_v17  ;;  %v8008_v10 = vld [vmem:[%s11055_s2 + $0xe8] ss:$16 sps:$4 sm:$0xff]   ;;  %v8014_v43 = vld [vmem:[%s11057_s5 + $0x4] ss:$16 sps:$4 sm:$0xff]   ;;  %v8017_v18 = vld [vmem:[%s11057_s5 + $0xc] ss:$16 sps:$4 sm:$0xff]  }
 0x776   :  { %v8015_v17 = vld [vmem:[%s11057_s5 + $0x8] ss:$16 sps:$4 sm:$0xff]  }
 0x779   :  { %v8274_v8 = vpop.eup %8273 }
 0x77a   :  { %v4930_v26 = vmul.f32 %v8274_v8, %v8272_v51  ;;  %v8011_v51 = vld [vmem:[%s11056_s0] sm:$0xff]  }
 0x77b   :  { %v8012_v8 = vld [vmem:[%s11057_s5] ss:$16 sps:$4 sm:$0xff]  }
 0x77c   :  { %v8276_v12 = vpop.eup %8275  ;;  %v5229_v44 = vpack.c.bf16 %v4930_v26, %v4930_v26  ;;  %v8020_v26 = vld [vmem:[%s11057_s5 + $0x24] ss:$16 sps:$4 sm:$0xff]  }
 0x77d   :  { %v5214_v35 = vadd.f32 1.0, %v8276_v12  ;;  %v8278_v45 = vpop.eup %8277  ;;  %v8023_v12 = vld [vmem:[%s11057_s5 + $0x2c] ss:$16 sps:$4 sm:$0xff]  }
 0x77e   :  { %v5215_v23 = vadd.f32 1.0, %v8278_v45  ;;  %7328 = vst [vmem:[%s11063_s8 + $0x18] sm:$0xf] %v5229_v44  ;;  %5472 = vmatmul.mubr.bf16.vlgmr.msra.gmra.mrb[88].mxu0 %v5229_v44  ;;  %5513 = vmatmul.mubr.bf16.vlgmr.msra.gmra.mrb[88].mxu1 %v5229_v44  ;;  %v8021_v44 = vld [vmem:[%s11057_s5 + $0x28] ss:$16 sps:$4 sm:$0xff]  }
 0x77f   :  { %8283 = vrcp.f32 %v5214_v35  ;;  %5738 = vmatpush1.bf16.msra.mxu0 %v10528_v14  ;;  %5779 = vmatpush1.bf16.msra.mxu1 %v10533_v21  ;;  %v8280_v14 = vpop.eup %8279  ;;  %v8018_v35 = vld [vmem:[%s11057_s5 + $0x20] ss:$16 sps:$4 sm:$0xff]   ;;  %v8027_v45 = vld [vmem:[%s11057_s5 + $0x44] ss:$16 sps:$4 sm:$0xff]  }
 0x780   :  { %8285 = vrcp.f32 %v5215_v23  ;;  %5739 = vmatprep.subr.bf16.mxu0 %v10538_v61  ;;  %5780 = vmatprep.subr.bf16.mxu1 %v10543_v62  ;;  %v8282_v1 = vpop.eup %8281  ;;  %v8030_v23 = vld [vmem:[%s11057_s5 + $0x4c] ss:$16 sps:$4 sm:$0xff]  }
 0x781   :  { %5769 = vmatprep.mubr.bf16.mxu0 %v11136_v32  ;;  %5810 = vmatprep.mubr.bf16.mxu1 %v11136_v32 }
 0x783   :  { %5740 = vmatpush1.bf16.msra.mxu0 %v10553_v46  ;;  %5781 = vmatpush1.bf16.msra.mxu1 %v10558_v24  ;;  %v5216_v46 = vadd.f32 1.0, %v8282_v1  ;;  %v8025_v1 = vld [vmem:[%s11057_s5 + $0x40] ss:$16 sps:$4 sm:$0xff]  }
 0x784   :  { %5741 = vmatprep.subr.bf16.mxu0 %v10565_v60  ;;  %5782 = vmatprep.subr.bf16.mxu1 %v10570_v15  ;;  %v11214_v15 = vld [vmem:[#allocation55_spill] sm:$0xff] }
 0x785   :  { %8287 = vrcp.f32 %v5216_v46  ;;  %v8031_v46 = vld [vmem:[%s11057_s5 + $0x60] ss:$16 sps:$4 sm:$0xff]  }
 0x787   :  { %5742 = vmatpush1.bf16.msra.mxu0 %v10579_v16  ;;  %5783 = vmatpush1.bf16.msra.mxu1 %v10584_v20  ;;  %v11215_v16 = vld [vmem:[#allocation56_spill] sm:$0xff]  ;;  %v11216_v20 = vld [vmem:[#allocation57_spill] sm:$0xff] }
 0x788   :  { %5743 = vmatprep.subr.bf16.mxu0 %v10591_v52  ;;  %5784 = vmatprep.subr.bf16.mxu1 %v10596_v36  ;;  %v11217_v52 = vld [vmem:[#allocation58_spill] sm:$0xff]  ;;  %v11218_v36 = vld [vmem:[#allocation59_spill] sm:$0xff] }
 0x789   :  { %v8284_v21 = vpop.eup %8283 }
 0x78a   :  { %v5225_v61 = vmul.f32 %v8284_v21, %v8280_v14  ;;  %v8286_v62 = vpop.eup %8285  ;;  %v8024_v14 = vld [vmem:[%s11056_s0 + $0x8] sm:$0xff]  }
 0x78b   :  { %v5224_v24 = vmul.f32 %v8286_v62, %v10647_v0  ;;  %5744 = vmatpush1.bf16.msra.mxu0 %v10603_v33  ;;  %5785 = vmatpush1.bf16.msra.mxu1 %v10608_v50  ;;  %v11219_v33 = vld [vmem:[#allocation60_spill] sm:$0xff]  ;;  %v11220_v50 = vld [vmem:[#allocation61_spill] sm:$0xff] }
 0x78c   :  { %5745 = vmatprep.subr.bf16.mxu0 %v10615_v13  ;;  %5786 = vmatprep.subr.bf16.mxu1 %v10620_v2  ;;  %v7965_v2 = vld [vmem:[%s11055_s2 + $0x4] ss:$16 sps:$4 sm:$0xff]   ;;  %v8028_v21 = vld [vmem:[%s11057_s5 + $0x48] ss:$16 sps:$4 sm:$0xff]   ;;  %v8036_v62 = vld [vmem:[%s11057_s5 + $0x6c] ss:$16 sps:$4 sm:$0xff]  }
 0x78d   :  { %v10787_v60 = vadd.f32 %v5225_v61, %v5224_v24  ;;  %v8033_v61 = vld [vmem:[%s11057_s5 + $0x64] ss:$16 sps:$4 sm:$0xff]   ;;  %v8034_v24 = vld [vmem:[%s11057_s5 + $0x68] ss:$16 sps:$4 sm:$0xff]  }
 0x78f   :  { %8289 = vtanh.f32 %v10787_v60  ;;  %5746 = vmatpush1.bf16.msra.mxu0 %v10628_v3  ;;  %5787 = vmatpush1.bf16.msra.mxu1 %v10633_v63  ;;  %v8288_v13 = vpop.eup %8287  ;;  %v7968_v3 = vld [vmem:[%s11055_s2 + $0xc] ss:$16 sps:$4 sm:$0xff]  }
 0x790   :  { %5747 = vmatprep.subr.bf16.mxu0 %v11214_v15  ;;  %5788 = vmatprep.subr.bf16.mxu1 %v11215_v16  ;;  %v8040_v15 = vld [vmem:[%s11057_s5 + $0x84] ss:$16 sps:$4 sm:$0xff]   ;;  %v8043_v16 = vld [vmem:[%s11057_s5 + $0x8c] ss:$16 sps:$4 sm:$0xff]  }
 0x793   :  { %5748 = vmatpush1.bf16.msra.mxu0 %v11216_v20  ;;  %5789 = vmatpush1.bf16.msra.mxu1 %v11217_v52  ;;  %v8037_v20 = vld [vmem:[%s11056_s0 + $0x10] sm:$0xff]  }
 0x794   :  { %5749 = vmatprep.subr.bf16.mxu0 %v11218_v36  ;;  %5790 = vmatprep.subr.bf16.mxu1 %v11219_v33  ;;  %v8038_v52 = vld [vmem:[%s11057_s5 + $0x80] ss:$16 sps:$4 sm:$0xff]   ;;  %v8041_v36 = vld [vmem:[%s11057_s5 + $0x88] ss:$16 sps:$4 sm:$0xff]   ;;  %v8046_v33 = vld [vmem:[%s11057_s5 + $0xa4] ss:$16 sps:$4 sm:$0xff]  }
 0x797   :  { %5750 = vmatpush1.bf16.msra.mxu0 %v10679_v28  ;;  %5791 = vmatpush1.bf16.msra.mxu1 %v11220_v50  ;;  %v7963_v28 = vld [vmem:[%s11055_s2] ss:$16 sps:$4 sm:$0xff]   ;;  %v8049_v50 = vld [vmem:[%s11057_s5 + $0xac] ss:$16 sps:$4 sm:$0xff]  }
 0x798   :  { %5751 = vmatprep.subr.bf16.mxu0 %v10691_v19  ;;  %5792 = vmatprep.subr.bf16.mxu1 %v10696_v41  ;;  %v7966_v41 = vld [vmem:[%s11055_s2 + $0x8] ss:$16 sps:$4 sm:$0xff]  }
 0x799   :  { %v8290_v63 = vpop.eup %8289 }
 0x79a   :  { %v5228_v0 = vmul.f32 %v8290_v63, %v8288_v13  ;;  %v8044_v13 = vld [vmem:[%s11057_s5 + $0xa0] ss:$16 sps:$4 sm:$0xff]   ;;  %v8056_v63 = vld [vmem:[%s11057_s5 + $0xcc] ss:$16 sps:$4 sm:$0xff]  }
 0x79b   :  { %5752 = vmatpush1.bf16.msra.mxu0 %v10703_v39  ;;  %5793 = vmatpush1.bf16.msra.mxu1 %v10708_v4  ;;  %v7974_v39 = vld [vmem:[%s11055_s2 + $0x2c] ss:$16 sps:$4 sm:$0xff]   ;;  %v7969_v4 = vld [vmem:[%s11055_s2 + $0x20] ss:$16 sps:$4 sm:$0xff]  }
 0x79c   :  { %6094 = vmatprep.subr.bf16.mxu0 %v7965_v2  ;;  %6167 = vmatprep.subr.bf16.mxu1 %v7968_v3  ;;  %v5232_v19 = vpack.c.bf16 %v5228_v0, %v5228_v0  ;;  %v8047_v2 = vld [vmem:[%s11057_s5 + $0xa8] ss:$16 sps:$4 sm:$0xff]   ;;  %v8053_v3 = vld [vmem:[%s11057_s5 + $0xc4] ss:$16 sps:$4 sm:$0xff]  }
 0x79d   :  { %v8050_v0 = vld [vmem:[%s11056_s0 + $0x18] sm:$0xff]  }
 0x79e   :  { %7329 = vst [vmem:[%s11064_s9 + $0x4] sm:$0xf] %v5232_v19  ;;  %5770 = vmatmul.mubr.bf16.vlgmr.msra.gmra.mrb[92].mxu0 %v5232_v19  ;;  %5811 = vmatmul.mubr.bf16.vlgmr.msra.gmra.mrb[92].mxu1 %v5232_v19  ;;  %v8059_v19 = vld [vmem:[%s11057_s5 + $0xe4] ss:$16 sps:$4 sm:$0xff]  }
 0x79f   :  { %6095 = vmatpush1.bf16.msra.mxu0 %v7963_v28  ;;  %6168 = vmatpush1.bf16.msra.mxu1 %v7966_v41  ;;  %v8051_v28 = vld [vmem:[%s11057_s5 + $0xc0] ss:$16 sps:$4 sm:$0xff]   ;;  %v8054_v41 = vld [vmem:[%s11057_s5 + $0xc8] ss:$16 sps:$4 sm:$0xff]  }
 0x7a0   :  { %6096 = vmatprep.subr.bf16.mxu0 %v7971_v22  ;;  %6169 = vmatprep.subr.bf16.mxu1 %v7974_v39  ;;  %v8062_v22 = vld [vmem:[%s11057_s5 + $0xec] ss:$16 sps:$4 sm:$0xff]   ;;  %v8057_v39 = vld [vmem:[%s11057_s5 + $0xe0] ss:$16 sps:$4 sm:$0xff]  }
 0x7a1   :  { %6126 = vmatprep.mubr.bf16.mxu0 %v11136_v32  ;;  %6199 = vmatprep.mubr.bf16.mxu1 %v11136_v32 }
 0x7a3   :  { %6097 = vmatpush1.bf16.msra.mxu0 %v7969_v4  ;;  %6170 = vmatpush1.bf16.msra.mxu1 %v7972_v9  ;;  %v8060_v4 = vld [vmem:[%s11057_s5 + $0xe8] ss:$16 sps:$4 sm:$0xff]   ;;  %v8063_v9 = vld [vmem:[%s11058_s1] sm:$0xff]  }
 0x7a4   :  { %6098 = vmatprep.subr.bf16.mxu0 %v7977_v54  ;;  %6171 = vmatprep.subr.bf16.mxu1 %v7980_v42  ;;  %v8064_v54 = vld [vmem:[%s11058_s1 + $0x8] sm:$0xff]   ;;  %v8065_v42 = vld [vmem:[%s11058_s1 + $0x10] sm:$0xff]  }
 0x7a7   :  { %6099 = vmatpush1.bf16.msra.mxu0 %v7975_v31  ;;  %6172 = vmatpush1.bf16.msra.mxu1 %v7978_v55  ;;  %v8066_v31 = vld [vmem:[%s11058_s1 + $0x18] sm:$0xff]  }
 0x7a8   :  { %6100 = vmatprep.subr.bf16.mxu0 %v7983_v49  ;;  %6173 = vmatprep.subr.bf16.mxu1 %v7986_v47  ;;  %v11221_v47 = vld [vmem:[#allocation26_spill] sm:$0xff] }
 0x7ab   :  { %6101 = vmatpush1.bf16.msra.mxu0 %v7981_v34  ;;  %6174 = vmatpush1.bf16.msra.mxu1 %v7984_v37  ;;  %v11222_v37 = vld [vmem:[#allocation27_spill] sm:$0xff] }
 0x7ac   :  { %6102 = vmatprep.subr.bf16.mxu0 %v7989_v6  ;;  %6175 = vmatprep.subr.bf16.mxu1 %v7992_v58 }
 0x7af   :  { %6103 = vmatpush1.bf16.msra.mxu0 %v7987_v29  ;;  %6176 = vmatpush1.bf16.msra.mxu1 %v7990_v53  ;;  %v11223_v53 = vld [vmem:[#allocation28_spill] sm:$0xff] }
 0x7b0   :  { %6104 = vmatprep.subr.bf16.mxu0 %v7995_v5  ;;  %6177 = vmatprep.subr.bf16.mxu1 %v7998_v57  ;;  %v11224_v57 = vld [vmem:[#allocation29_spill] sm:$0xff] }
 0x7b3   :  { %6105 = vmatpush1.bf16.msra.mxu0 %v7993_v30  ;;  %6178 = vmatpush1.bf16.msra.mxu1 %v7996_v40 }
 0x7b4   :  { %6106 = vmatprep.subr.bf16.mxu0 %v8001_v11  ;;  %6179 = vmatprep.subr.bf16.mxu1 %v8004_v25 }
 0x7b7   :  { %6107 = vmatpush1.bf16.msra.mxu0 %v7999_v38  ;;  %6180 = vmatpush1.bf16.msra.mxu1 %v8002_v27 }
 0x7b8   :  { %6108 = vmatprep.subr.bf16.mxu0 %v8007_v56  ;;  %6181 = vmatprep.subr.bf16.mxu1 %v8010_v48 }
 0x7bb   :  { %6109 = vmatpush1.bf16.msra.mxu0 %v8005_v59  ;;  %6182 = vmatpush1.bf16.msra.mxu1 %v8008_v10 }
 0x7bc   :  { %6521 = vmatprep.subr.bf16.mxu0 %v8014_v43  ;;  %6594 = vmatprep.subr.bf16.mxu1 %v8017_v18 }
 0x7be   :  { %6127 = vmatmul.mubr.bf16.vlgmr.msra.gmra.mrb[96].mxu0 %v8011_v51  ;;  %6200 = vmatmul.mubr.bf16.vlgmr.msra.gmra.mrb[96].mxu1 %v8011_v51 }
 0x7bf   :  { %6522 = vmatpush1.bf16.msra.mxu0 %v8012_v8  ;;  %6595 = vmatpush1.bf16.msra.mxu1 %v8015_v17 }
 0x7c0   :  { %6523 = vmatprep.subr.bf16.mxu0 %v8020_v26  ;;  %6596 = vmatprep.subr.bf16.mxu1 %v8023_v12 }
 0x7c1   :  { %6136 = vmatprep.mubr.bf16.mxu0 %v11136_v32  ;;  %6209 = vmatprep.mubr.bf16.mxu1 %v11136_v32 }
 0x7c3   :  { %6524 = vmatpush1.bf16.msra.mxu0 %v8018_v35  ;;  %6597 = vmatpush1.bf16.msra.mxu1 %v8021_v44 }
 0x7c4   :  { %6525 = vmatprep.subr.bf16.mxu0 %v8027_v45  ;;  %6598 = vmatprep.subr.bf16.mxu1 %v8030_v23 }
 0x7c6   :  { %6137 = vmatmul.mubr.bf16.gmra.mrb[100].mxu0 %v8024_v14  ;;  %6210 = vmatmul.mubr.bf16.gmra.mrb[100].mxu1 %v8024_v14  ;;  %v11225_v14 = vld [vmem:[#allocation30_spill] sm:$0xff] }
 0x7c7   :  { %6526 = vmatpush1.bf16.msra.mxu0 %v8025_v1  ;;  %6599 = vmatpush1.bf16.msra.mxu1 %v8028_v21  ;;  %v11226_v21 = vld [vmem:[#allocation31_spill] sm:$0xff] }
 0x7c8   :  { %6527 = vmatprep.subr.bf16.mxu0 %v8033_v61  ;;  %6600 = vmatprep.subr.bf16.mxu1 %v8036_v62 }
 0x7c9   :  { %6146 = vmatprep.mubr.bf16.mxu0 %v11136_v32  ;;  %6219 = vmatprep.mubr.bf16.mxu1 %v11136_v32 }
 0x7cb   :  { %6528 = vmatpush1.bf16.msra.mxu0 %v8031_v46  ;;  %6601 = vmatpush1.bf16.msra.mxu1 %v8034_v24  ;;  %v11227_v24 = vld [vmem:[#allocation32_spill] sm:$0xff] }
 0x7cc   :  { %6529 = vmatprep.subr.bf16.mxu0 %v8040_v15  ;;  %6602 = vmatprep.subr.bf16.mxu1 %v8043_v16  ;;  %v11228_v16 = vld [vmem:[#allocation33_spill] sm:$0xff] }
 0x7ce   :  { %6147 = vmatmul.mubr.bf16.gmra.mrb[104].mxu0 %v8037_v20  ;;  %6220 = vmatmul.mubr.bf16.gmra.mrb[104].mxu1 %v8037_v20 }
 0x7cf   :  { %6530 = vmatpush1.bf16.msra.mxu0 %v8038_v52  ;;  %6603 = vmatpush1.bf16.msra.mxu1 %v8041_v36 }
 0x7d0   :  { %6531 = vmatprep.subr.bf16.mxu0 %v8046_v33  ;;  %6604 = vmatprep.subr.bf16.mxu1 %v8049_v50 }
 0x7d1   :  { %6156 = vmatprep.mubr.bf16.mxu0 %v11136_v32  ;;  %6229 = vmatprep.mubr.bf16.mxu1 %v11136_v32 }
 0x7d3   :  { %6532 = vmatpush1.bf16.msra.mxu0 %v8044_v13  ;;  %6605 = vmatpush1.bf16.msra.mxu1 %v8047_v2 }
 0x7d4   :  { %6533 = vmatprep.subr.bf16.mxu0 %v8053_v3  ;;  %6606 = vmatprep.subr.bf16.mxu1 %v8056_v63 }
 0x7d6   :  { %6157 = vmatmul.mubr.bf16.gmra.mrb[108].mxu0 %v8050_v0  ;;  %6230 = vmatmul.mubr.bf16.gmra.mrb[108].mxu1 %v8050_v0 }
 0x7d7   :  { %6534 = vmatpush1.bf16.msra.mxu0 %v8051_v28  ;;  %6607 = vmatpush1.bf16.msra.mxu1 %v8054_v41 }
 0x7d8   :  { %6535 = vmatprep.subr.bf16.mxu0 %v8059_v19  ;;  %6608 = vmatprep.subr.bf16.mxu1 %v8062_v22 }
 0x7d9   :  { %6553 = vmatprep.mubr.bf16.mxu0 %v11136_v32  ;;  %6626 = vmatprep.mubr.bf16.mxu1 %v11136_v32 }
 0x7db   :  { %6536 = vmatpush1.bf16.msra.mxu0 %v8057_v39  ;;  %6609 = vmatpush1.bf16.msra.mxu1 %v8060_v4 }
 0x7de   :  { %6554 = vmatmul.mubr.bf16.vlgmr.msra.gmra.mrb[112].mxu0 %v8063_v9  ;;  %6627 = vmatmul.mubr.bf16.vlgmr.msra.gmra.mrb[112].mxu1 %v8063_v9 }
 0x7df   :  { %6563 = vmatprep.mubr.bf16.mxu0 %v11136_v32  ;;  %6636 = vmatprep.mubr.bf16.mxu1 %v11136_v32 }
 0x7e6   :  { %6564 = vmatmul.mubr.bf16.gmra.mrb[116].mxu0 %v8064_v54  ;;  %6637 = vmatmul.mubr.bf16.gmra.mrb[116].mxu1 %v8064_v54 }
 0x7e7   :  { %6573 = vmatprep.mubr.bf16.mxu0 %v11136_v32  ;;  %6646 = vmatprep.mubr.bf16.mxu1 %v11136_v32 }
 0x7ee   :  { %6574 = vmatmul.mubr.bf16.gmra.mrb[120].mxu0 %v8065_v42  ;;  %6647 = vmatmul.mubr.bf16.gmra.mrb[120].mxu1 %v8065_v42 }
 0x7ef   :  { %6583 = vmatprep.mubr.bf16.mxu0 %v11136_v32  ;;  %6656 = vmatprep.mubr.bf16.mxu1 %v11136_v32 }
 0x7f6   :  { %6584 = vmatmul.mubr.bf16.gmra.mrb[124].mxu0 %v8066_v31  ;;  %6657 = vmatmul.mubr.bf16.gmra.mrb[124].mxu1 %v8066_v31 }
 0x851   :  { %v5473_v55 = vpop.f32.mrb[88].mxu0  ;;  %v5514_v49 = vpop.f32.mrb[88].mxu1 }
 0x852   :  { %v5474_v34 = vadd.f32 %v5473_v55, %v11221_v47  ;;  %v5515_v6 = vadd.f32 %v5514_v49, %v11222_v37  ;;  %v5475_v58 = vpop.f32.mrb[89].mxu0  ;;  %v5516_v29 = vpop.f32.mrb[89].mxu1 }
 0x853   :  { %v5476_v5 = vadd.f32 %v5475_v58, %v11223_v53  ;;  %v5517_v30 = vadd.f32 %v5516_v29, %v11224_v57  ;;  %v5477_v40 = vpop.f32.mrb[90].mxu0  ;;  %v5518_v32 = vpop.f32.mrb[90].mxu1 }
 0x854   :  { %v7362_v11 = vmul.f32 -1.442695, %v5474_v34  ;;  %v5478_v25 = vpop.f32.mrb[91].mxu0  ;;  %v5519_v38 = vpop.f32.mrb[91].mxu1  ;;  %v7364_v56 = vmul.f32 -1.442695, %v5515_v6 }
 0x855   :  { %v7363_v27 = vmul.f32 -1.442695, %v5476_v5 }
 0x856   :  { %8291 = vpow2.f32 %v7362_v11 }
 0x857   :  { %8293 = vpow2.f32 %v7363_v27 }
 0x858   :  { %8295 = vtanh.f32 %v5517_v30 }
 0x859   :  { %8297 = vpow2.f32 %v7364_v56 }
 0x860   :  { %v8292_v48 = vpop.eup %8291 }
 0x861   :  { %v5530_v59 = vadd.f32 1.0, %v8292_v48  ;;  %v8294_v10 = vpop.eup %8293 }
 0x862   :  { %v5531_v43 = vadd.f32 1.0, %v8294_v10  ;;  %v8296_v18 = vpop.eup %8295 }
 0x863   :  { %8299 = vrcp.f32 %v5530_v59  ;;  %v8298_v51 = vpop.eup %8297 }
 0x864   :  { %8301 = vrcp.f32 %v5531_v43  ;;  %v5532_v12 = vadd.f32 1.0, %v8298_v51 }
 0x866   :  { %8303 = vrcp.f32 %v5532_v12 }
 0x86d   :  { %v8300_v8 = vpop.eup %8299 }
 0x86e   :  { %v5541_v17 = vmul.f32 %v8300_v8, %v8296_v18  ;;  %v8302_v26 = vpop.eup %8301 }
 0x86f   :  { %v5540_v35 = vmul.f32 %v8302_v26, %v10758_v7 }
 0x870   :  { %v8304_v2 = vpop.eup %8303 }
 0x871   :  { %v5771_v44 = vpop.f32.mrb[92].mxu0  ;;  %v5812_v45 = vpop.f32.mrb[92].mxu1  ;;  %v5542_v23 = vadd.f32 %v5541_v17, %v5540_v35 }
 0x872   :  { %v5772_v1 = vadd.f32 %v5771_v44, %v11225_v14  ;;  %v5813_v61 = vadd.f32 %v5812_v45, %v11226_v21  ;;  %v5773_v62 = vpop.f32.mrb[93].mxu0  ;;  %v5814_v46 = vpop.f32.mrb[93].mxu1 }
 0x873   :  { %v5774_v15 = vadd.f32 %v5773_v62, %v11227_v24  ;;  %v5815_v20 = vadd.f32 %v5814_v46, %v11228_v16  ;;  %v5775_v52 = vpop.f32.mrb[94].mxu0  ;;  %v5816_v36 = vpop.f32.mrb[94].mxu1  ;;  %8305 = vtanh.f32 %v5542_v23 }
 0x874   :  { %v7397_v33 = vmul.f32 -1.442695, %v5772_v1  ;;  %v5776_v50 = vpop.f32.mrb[95].mxu0  ;;  %v5817_v7 = vpop.f32.mrb[95].mxu1  ;;  %v7399_v63 = vmul.f32 -1.442695, %v5813_v61 }
 0x875   :  { %v7398_v13 = vmul.f32 -1.442695, %v5774_v15 }
 0x876   :  { %8307 = vpow2.f32 %v7397_v33 }
 0x877   :  { %8309 = vpow2.f32 %v7398_v13 }
 0x878   :  { %8311 = vtanh.f32 %v5815_v20 }
 0x879   :  { %8313 = vpow2.f32 %v7399_v63 }
 0x87d   :  { %v8306_v3 = vpop.eup %8305 }
 0x87e   :  { %v5544_v0 = vmul.f32 %v8306_v3, %v8304_v2 }
 0x880   :  { %v8308_v28 = vpop.eup %8307  ;;  %v5843_v41 = vpack.c.bf16 %v5544_v0, %v5544_v0 }
 0x881   :  { %v5828_v19 = vadd.f32 1.0, %v8308_v28  ;;  %v8310_v22 = vpop.eup %8309 }
 0x882   :  { %7400 = vst [vmem:[%s11063_s8 + $0x1c] sm:$0xf] %v5843_v41  ;;  %v5829_v39 = vadd.f32 1.0, %v8310_v22  ;;  %v8312_v4 = vpop.eup %8311 }
 0x883   :  { %8315 = vrcp.f32 %v5828_v19  ;;  %v8314_v9 = vpop.eup %8313 }
 0x884   :  { %8317 = vrcp.f32 %v5829_v39  ;;  %v5830_v55 = vadd.f32 1.0, %v8314_v9 }
 0x886   :  { %8319 = vrcp.f32 %v5830_v55 }
 0x88d   :  { %v8316_v54 = vpop.eup %8315 }
 0x88e   :  { %v5839_v42 = vmul.f32 %v8316_v54, %v8312_v4  ;;  %v8318_v31 = vpop.eup %8317 }
 0x88f   :  { %v5838_v49 = vmul.f32 %v8318_v31, %v10787_v60 }
 0x890   :  { %v8320_v60 = vpop.eup %8319 }
 0x891   :  { %v6128_v47 = vpop.f32.mrb[96].mxu0  ;;  %v6201_v34 = vpop.f32.mrb[96].mxu1  ;;  %v5840_v37 = vadd.f32 %v5839_v42, %v5838_v49 }
 0x892   :  { %v6130_v6 = vpop.f32.mrb[97].mxu0  ;;  %v6203_v58 = vpop.f32.mrb[97].mxu1 }
 0x893   :  { %v6132_v29 = vpop.f32.mrb[98].mxu0  ;;  %v6205_v53 = vpop.f32.mrb[98].mxu1  ;;  %8321 = vtanh.f32 %v5840_v37 }
 0x894   :  { %v6134_v5 = vpop.f32.mrb[99].mxu0  ;;  %v6207_v57 = vpop.f32.mrb[99].mxu1 }
 0x899   :  { %v6138_v30 = vpop.f32.mrb[100].mxu0  ;;  %v6211_v40 = vpop.f32.mrb[100].mxu1 }
 0x89a   :  { %v6140_v32 = vpop.f32.mrb[101].mxu0  ;;  %v6213_v11 = vpop.f32.mrb[101].mxu1 }
 0x89b   :  { %v6142_v25 = vpop.f32.mrb[102].mxu0  ;;  %v6215_v38 = vpop.f32.mrb[102].mxu1 }
 0x89c   :  { %v6144_v27 = vpop.f32.mrb[103].mxu0  ;;  %v6217_v56 = vpop.f32.mrb[103].mxu1 }
 0x89d   :  { %v8322_v48 = vpop.eup %8321 }
 0x89e   :  { %v5842_v59 = vmul.f32 %v8322_v48, %v8320_v60 }
 0x8a0   :  { %v5846_v10 = vpack.c.bf16 %v5842_v59, %v5842_v59 }
 0x8a1   :  { %v6148_v43 = vpop.f32.mrb[104].mxu0  ;;  %v6221_v18 = vpop.f32.mrb[104].mxu1 }
 0x8a2   :  { %v6150_v51 = vpop.f32.mrb[105].mxu0  ;;  %v6223_v8 = vpop.f32.mrb[105].mxu1  ;;  %5847 = vst [vmem:[%s11064_s9] sm:$0xf] %v5846_v10 }
 0x8a3   :  { %v6152_v17 = vpop.f32.mrb[106].mxu0  ;;  %v6225_v26 = vpop.f32.mrb[106].mxu1 }
 0x8a4   :  { %v6154_v12 = vpop.f32.mrb[107].mxu0  ;;  %v6227_v35 = vpop.f32.mrb[107].mxu1 }
 0x8a9   :  { %v6158_v44 = vpop.f32.mrb[108].mxu0  ;;  %v6231_v45 = vpop.f32.mrb[108].mxu1 }
 0x8aa   :  { %v6160_v23 = vpop.f32.mrb[109].mxu0  ;;  %v6233_v14 = vpop.f32.mrb[109].mxu1 }
 0x8ab   :  { %v6162_v1 = vpop.f32.mrb[110].mxu0  ;;  %v6235_v21 = vpop.f32.mrb[110].mxu1 }
 0x8ac   :  { %v6164_v61 = vpop.f32.mrb[111].mxu0  ;;  %v6237_v62 = vpop.f32.mrb[111].mxu1 }
 0x8b1   :  { %v6555_v46 = vpop.f32.mrb[112].mxu0  ;;  %v6628_v24 = vpop.f32.mrb[112].mxu1 }
 0x8b2   :  { %v6557_v15 = vpop.f32.mrb[113].mxu0  ;;  %v6630_v16 = vpop.f32.mrb[113].mxu1 }
 0x8b3   :  { %v6559_v20 = vpop.f32.mrb[114].mxu0  ;;  %v6632_v52 = vpop.f32.mrb[114].mxu1 }
 0x8b4   :  { %v6561_v36 = vpop.f32.mrb[115].mxu0  ;;  %v6634_v33 = vpop.f32.mrb[115].mxu1 }
 0x8b9   :  { %v6565_v50 = vpop.f32.mrb[116].mxu0  ;;  %v6638_v7 = vpop.f32.mrb[116].mxu1 }
 0x8ba   :  { %v6567_v13 = vpop.f32.mrb[117].mxu0  ;;  %v6640_v2 = vpop.f32.mrb[117].mxu1 }
 0x8bb   :  { %v6569_v3 = vpop.f32.mrb[118].mxu0  ;;  %v6642_v63 = vpop.f32.mrb[118].mxu1 }
 0x8bc   :  { %v6571_v0 = vpop.f32.mrb[119].mxu0  ;;  %v6644_v28 = vpop.f32.mrb[119].mxu1 }
 0x8c1   :  { %v6575_v41 = vpop.f32.mrb[120].mxu0  ;;  %v6648_v19 = vpop.f32.mrb[120].mxu1 }
 0x8c2   :  { %v6577_v22 = vpop.f32.mrb[121].mxu0  ;;  %v6650_v39 = vpop.f32.mrb[121].mxu1 }
 0x8c3   :  { %v6579_v4 = vpop.f32.mrb[122].mxu0  ;;  %v6652_v9 = vpop.f32.mrb[122].mxu1 }
 0x8c4   :  { %v6581_v54 = vpop.f32.mrb[123].mxu0  ;;  %v6654_v42 = vpop.f32.mrb[123].mxu1 }
 0x8c9   :  { %v6585_v31 = vpop.f32.mrb[124].mxu0  ;;  %v6658_v55 = vpop.f32.mrb[124].mxu1 }
 0x8ca   :  { %v6587_v49 = vpop.f32.mrb[125].mxu0  ;;  %v6660_v47 = vpop.f32.mrb[125].mxu1 }
 0x8cb   :  { %v6589_v34 = vpop.f32.mrb[126].mxu0  ;;  %v6662_v37 = vpop.f32.mrb[126].mxu1 }
 0x8cc   :  { %v6591_v6 = vpop.f32.mrb[127].mxu0  ;;  %v6664_v58 = vpop.f32.mrb[127].mxu1 }

// kernel: rnn_encoder_forward.1
= control target key start
LH: loop header
LB: loop body
LE: loop exit
PB: predicated region body
PF: predicated region fallthrough
CT: control target
= control target key end

     0   :  { %v11065_v1 = vmov 0   ;;  %s11055_s2 = inlined_call_operand.vmem [shape: bf16[128,512], index: 2, kind: input, shape index: {}]   ;;  %s11056_s0 = inlined_call_operand.vmem [shape: bf16[64,128], index: 0, kind: input, shape index: {}, may-alias: {0,1}]   ;;  %s11057_s5 = inlined_call_operand.vmem [shape: bf16[128,512], index: 5, kind: input, shape index: {}]   ;;  %s11058_s1 = inlined_call_operand.vmem [shape: bf16[64,128], index: 1, kind: input, shape index: {}, may-alias: {0,1}]   ;;  %s11059_s3 = inlined_call_operand.vmem [shape: bf16[128,512], index: 3, kind: input, shape index: {}]   ;;  %s11060_s6 = inlined_call_operand.vmem [shape: bf16[128,512], index: 6, kind: input, shape index: {}]   ;;  %s11061_s4 = inlined_call_operand.vmem [shape: f32[1,512], index: 4, kind: input, shape index: {}]   ;;  %s11062_s7 = inlined_call_operand.vmem [shape: f32[1,512], index: 7, kind: input, shape index: {}]   ;;  %s11063_s8 = inlined_call_operand.vmem [shape: bf16[8,8,128], index: 8, kind: output, shape index: {0}]   ;;  %s11064_s9 = inlined_call_operand.vmem [shape: bf16[8,8,128], index: 9, kind: output, shape index: {1}]  }
   0x1   :  { %v7475_v0 = vld [vmem:[%s11055_s2 + $0x4] ss:$16 sps:$4 sm:$0xff]   ;;  %354 = vmatprep.mubr.bf16.mxu0 %v11065_v1  ;;  %427 = vmatprep.mubr.bf16.mxu1 %v11065_v1  ;;  %v7477_v2 = vld [vmem:[%s11055_s2 + $0xc] ss:$16 sps:$4 sm:$0xff]   ;;  %v7479_v3 = vld [vmem:[%s11055_s2] ss:$16 sps:$4 sm:$0xff]  }
   0x2   :  { %322 = vmatprep.subr.bf16.mxu0 %v7475_v0  ;;  %v7480_v4 = vld [vmem:[%s11055_s2 + $0x8] ss:$16 sps:$4 sm:$0xff]   ;;  %395 = vmatprep.subr.bf16.mxu1 %v7477_v2  ;;  %v7481_v5 = vld [vmem:[%s11055_s2 + $0x24] ss:$16 sps:$4 sm:$0xff]   ;;  %v7483_v6 = vld [vmem:[%s11055_s2 + $0x2c] ss:$16 sps:$4 sm:$0xff]  }
   0x3   :  { %323 = vmatpush1.bf16.msra.mxu0 %v7479_v3  ;;  %396 = vmatpush1.bf16.msra.mxu1 %v7480_v4  ;;  %v7485_v7 = vld [vmem:[%s11055_s2 + $0x20] ss:$16 sps:$4 sm:$0xff]   ;;  %v7486_v8 = vld [vmem:[%s11055_s2 + $0x28] ss:$16 sps:$4 sm:$0xff]   ;;  %v7487_v9 = vld [vmem:[%s11055_s2 + $0x44] ss:$16 sps:$4 sm:$0xff]  }
   0x4   :  { %324 = vmatprep.subr.bf16.mxu0 %v7481_v5  ;;  %397 = vmatprep.subr.bf16.mxu1 %v7483_v6  ;;  %v7489_v10 = vld [vmem:[%s11055_s2 + $0x4c] ss:$16 sps:$4 sm:$0xff]   ;;  %v7491_v11 = vld [vmem:[%s11055_s2 + $0x40] ss:$16 sps:$4 sm:$0xff]   ;;  %v7492_v12 = vld [vmem:[%s11055_s2 + $0x48] ss:$16 sps:$4 sm:$0xff]  }
   0x5   :  { %v7493_v13 = vld [vmem:[%s11055_s2 + $0x64] ss:$16 sps:$4 sm:$0xff]   ;;  %v7495_v14 = vld [vmem:[%s11055_s2 + $0x6c] ss:$16 sps:$4 sm:$0xff]   ;;  %v7497_v15 = vld [vmem:[%s11055_s2 + $0x60] ss:$16 sps:$4 sm:$0xff]  }
   0x6   :  { %v7498_v16 = vld [vmem:[%s11055_s2 + $0x68] ss:$16 sps:$4 sm:$0xff]   ;;  %v7499_v17 = vld [vmem:[%s11055_s2 + $0x84] ss:$16 sps:$4 sm:$0xff]   ;;  %v7501_v18 = vld [vmem:[%s11055_s2 + $0x8c] ss:$16 sps:$4 sm:$0xff]  }
   0x7   :  { %325 = vmatpush1.bf16.msra.mxu0 %v7485_v7  ;;  %398 = vmatpush1.bf16.msra.mxu1 %v7486_v8  ;;  %v7503_v19 = vld [vmem:[%s11055_s2 + $0x80] ss:$16 sps:$4 sm:$0xff]   ;;  %v7504_v20 = vld [vmem:[%s11055_s2 + $0x88] ss:$16 sps:$4 sm:$0xff]   ;;  %v7505_v21 = vld [vmem:[%s11055_s2 + $0xa4] ss:$16 sps:$4 sm:$0xff]  }
   0x8   :  { %326 = vmatprep.subr.bf16.mxu0 %v7487_v9  ;;  %399 = vmatprep.subr.bf16.mxu1 %v7489_v10  ;;  %v7507_v22 = vld [vmem:[%s11055_s2 + $0xac] ss:$16 sps:$4 sm:$0xff]   ;;  %v7509_v23 = vld [vmem:[%s11055_s2 + $0xa0] ss:$16 sps:$4 sm:$0xff]   ;;  %v7510_v24 = vld [vmem:[%s11055_s2 + $0xa8] ss:$16 sps:$4 sm:$0xff]  }
   0x9   :  { %v7511_v25 = vld [vmem:[%s11055_s2 + $0xc4] ss:$16 sps:$4 sm:$0xff]   ;;  %v7513_v26 = vld [vmem:[%s11055_s2 + $0xcc] ss:$16 sps:$4 sm:$0xff]   ;;  %v7515_v27 = vld [vmem:[%s11055_s2 + $0xc0] ss:$16 sps:$4 sm:$0xff]  }
   0xa   :  { %v7516_v28 = vld [vmem:[%s11055_s2 + $0xc8] ss:$16 sps:$4 sm:$0xff]   ;;  %v7517_v29 = vld [vmem:[%s11055_s2 + $0xe4] ss:$16 sps:$4 sm:$0xff]   ;;  %v7519_v30 = vld [vmem:[%s11055_s2 + $0xec] ss:$16 sps:$4 sm:$0xff]  }
   0xb   :  { %327 = vmatpush1.bf16.msra.mxu0 %v7491_v11  ;;  %400 = vmatpush1.bf16.msra.mxu1 %v7492_v12  ;;  %v7521_v31 = vld [vmem:[%s11055_s2 + $0xe0] ss:$16 sps:$4 sm:$0xff]   ;;  %v7522_v32 = vld [vmem:[%s11055_s2 + $0xe8] ss:$16 sps:$4 sm:$0xff]   ;;  %v7526_v33 = vld [vmem:[%s11057_s5 + $0x4] ss:$16 sps:$4 sm:$0xff]  }
   0xc   :  { %328 = vmatprep.subr.bf16.mxu0 %v7493_v13  ;;  %401 = vmatprep.subr.bf16.mxu1 %v7495_v14  ;;  %v7529_v34 = vld [vmem:[%s11057_s5 + $0xc] ss:$16 sps:$4 sm:$0xff]   ;;  %v7523_v35 = vld [vmem:[%s11056_s0] sm:$0xff]   ;;  %v7527_v37 = vld [vmem:[%s11057_s5 + $0x8] ss:$16 sps:$4 sm:$0xff]  }
   0xd   :  { %v7524_v36 = vld [vmem:[%s11057_s5] ss:$16 sps:$4 sm:$0xff]   ;;  %v7532_v38 = vld [vmem:[%s11057_s5 + $0x24] ss:$16 sps:$4 sm:$0xff]   ;;  %v7535_v39 = vld [vmem:[%s11057_s5 + $0x2c] ss:$16 sps:$4 sm:$0xff]  }
   0xe   :  { %v7530_v40 = vld [vmem:[%s11057_s5 + $0x20] ss:$16 sps:$4 sm:$0xff]   ;;  %v7533_v41 = vld [vmem:[%s11057_s5 + $0x28] ss:$16 sps:$4 sm:$0xff]   ;;  %v7539_v42 = vld [vmem:[%s11057_s5 + $0x44] ss:$16 sps:$4 sm:$0xff]  }
   0xf   :  { %329 = vmatpush1.bf16.msra.mxu0 %v7497_v15  ;;  %402 = vmatpush1.bf16.msra.mxu1 %v7498_v16  ;;  %v7542_v43 = vld [vmem:[%s11057_s5 + $0x4c] ss:$16 sps:$4 sm:$0xff]   ;;  %v7537_v45 = vld [vmem:[%s11057_s5 + $0x40] ss:$16 sps:$4 sm:$0xff]   ;;  %v7540_v46 = vld [vmem:[%s11057_s5 + $0x48] ss:$16 sps:$4 sm:$0xff]  }
  0x10   :  { %330 = vmatprep.subr.bf16.mxu0 %v7499_v17  ;;  %403 = vmatprep.subr.bf16.mxu1 %v7501_v18  ;;  %v7536_v44 = vld [vmem:[%s11056_s0 + $0x8] sm:$0xff]   ;;  %v7545_v47 = vld [vmem:[%s11057_s5 + $0x64] ss:$16 sps:$4 sm:$0xff]   ;;  %v7543_v49 = vld [vmem:[%s11057_s5 + $0x60] ss:$16 sps:$4 sm:$0xff]  }
  0x11   :  { %v7548_v48 = vld [vmem:[%s11057_s5 + $0x6c] ss:$16 sps:$4 sm:$0xff]   ;;  %v7546_v50 = vld [vmem:[%s11057_s5 + $0x68] ss:$16 sps:$4 sm:$0xff]   ;;  %v7552_v51 = vld [vmem:[%s11057_s5 + $0x84] ss:$16 sps:$4 sm:$0xff]  }
  0x12   :  { %v7555_v52 = vld [vmem:[%s11057_s5 + $0x8c] ss:$16 sps:$4 sm:$0xff]   ;;  %v7549_v53 = vld [vmem:[%s11056_s0 + $0x10] sm:$0xff]   ;;  %v7553_v55 = vld [vmem:[%s11057_s5 + $0x88] ss:$16 sps:$4 sm:$0xff]  }
  0x13   :  { %331 = vmatpush1.bf16.msra.mxu0 %v7503_v19  ;;  %404 = vmatpush1.bf16.msra.mxu1 %v7504_v20  ;;  %v7550_v54 = vld [vmem:[%s11057_s5 + $0x80] ss:$16 sps:$4 sm:$0xff]   ;;  %v7558_v56 = vld [vmem:[%s11057_s5 + $0xa4] ss:$16 sps:$4 sm:$0xff]   ;;  %v7561_v57 = vld [vmem:[%s11057_s5 + $0xac] ss:$16 sps:$4 sm:$0xff]  }
  0x14   :  { %332 = vmatprep.subr.bf16.mxu0 %v7505_v21  ;;  %405 = vmatprep.subr.bf16.mxu1 %v7507_v22  ;;  %v7556_v58 = vld [vmem:[%s11057_s5 + $0xa0] ss:$16 sps:$4 sm:$0xff]   ;;  %v7559_v59 = vld [vmem:[%s11057_s5 + $0xa8] ss:$16 sps:$4 sm:$0xff]   ;;  %v7565_v60 = vld [vmem:[%s11057_s5 + $0xc4] ss:$16 sps:$4 sm:$0xff]  }
  0x15   :  { %v7568_v61 = vld [vmem:[%s11057_s5 + $0xcc] ss:$16 sps:$4 sm:$0xff]   ;;  %v7563_v63 = vld [vmem:[%s11057_s5 + $0xc0] ss:$16 sps:$4 sm:$0xff]   ;;  %v7566_v0 = vld [vmem:[%s11057_s5 + $0xc8] ss:$16 sps:$4 sm:$0xff]  }
  0x16   :  { %v7562_v62 = vld [vmem:[%s11056_s0 + $0x18] sm:$0xff]   ;;  %v7571_v2 = vld [vmem:[%s11057_s5 + $0xe4] ss:$16 sps:$4 sm:$0xff]   ;;  %v7569_v4 = vld [vmem:[%s11057_s5 + $0xe0] ss:$16 sps:$4 sm:$0xff]  }
  0x17   :  { %333 = vmatpush1.bf16.msra.mxu0 %v7509_v23  ;;  %406 = vmatpush1.bf16.msra.mxu1 %v7510_v24  ;;  %v7574_v3 = vld [vmem:[%s11057_s5 + $0xec] ss:$16 sps:$4 sm:$0xff]   ;;  %v7572_v5 = vld [vmem:[%s11057_s5 + $0xe8] ss:$16 sps:$4 sm:$0xff]   ;;  %v8614_v6 = vld [vmem:[%s11059_s3 + $0x4] ss:$16 sps:$4 sm:$0xff]  }
  0x18   :  { %334 = vmatprep.subr.bf16.mxu0 %v7511_v25  ;;  %407 = vmatprep.subr.bf16.mxu1 %v7513_v26  ;;  %v8619_v7 = vld [vmem:[%s11059_s3 + $0xc] ss:$16 sps:$4 sm:$0xff]   ;;  %v7575_v8 = vld [vmem:[%s11058_s1] sm:$0xff]   ;;  %v8634_v10 = vld [vmem:[%s11059_s3 + $0x8] ss:$16 sps:$4 sm:$0xff]  }
  0x19   :  { %v8629_v9 = vld [vmem:[%s11059_s3] ss:$16 sps:$4 sm:$0xff]   ;;  %v8641_v11 = vld [vmem:[%s11059_s3 + $0x24] ss:$16 sps:$4 sm:$0xff]   ;;  %v8646_v12 = vld [vmem:[%s11059_s3 + $0x2c] ss:$16 sps:$4 sm:$0xff]  }
  0x1a   :  { %v8651_v13 = vld [vmem:[%s11059_s3 + $0x20] ss:$16 sps:$4 sm:$0xff]   ;;  %v8656_v14 = vld [vmem:[%s11059_s3 + $0x28] ss:$16 sps:$4 sm:$0xff]   ;;  %v8663_v15 = vld [vmem:[%s11059_s3 + $0x44] ss:$16 sps:$4 sm:$0xff]  }
  0x1b   :  { %335 = vmatpush1.bf16.msra.mxu0 %v7515_v27  ;;  %408 = vmatpush1.bf16.msra.mxu1 %v7516_v28  ;;  %v8670_v16 = vld [vmem:[%s11059_s3 + $0x4c] ss:$16 sps:$4 sm:$0xff]   ;;  %v8680_v18 = vld [vmem:[%s11059_s3 + $0x40] ss:$16 sps:$4 sm:$0xff]   ;;  %v8685_v19 = vld [vmem:[%s11059_s3 + $0x48] ss:$16 sps:$4 sm:$0xff]  }
  0x1c   :  { %336 = vmatprep.subr.bf16.mxu0 %v7517_v29  ;;  %409 = vmatprep.subr.bf16.mxu1 %v7519_v30  ;;  %v7588_v17 = vld [vmem:[%s11058_s1 + $0x8] sm:$0xff]   ;;  %v8692_v20 = vld [vmem:[%s11059_s3 + $0x64] ss:$16 sps:$4 sm:$0xff]   ;;  %v8704_v22 = vld [vmem:[%s11059_s3 + $0x60] ss:$16 sps:$4 sm:$0xff]  }
  0x1d   :  { %v8699_v21 = vld [vmem:[%s11059_s3 + $0x6c] ss:$16 sps:$4 sm:$0xff]   ;;  %v8709_v23 = vld [vmem:[%s11059_s3 + $0x68] ss:$16 sps:$4 sm:$0xff]   ;;  %v8716_v24 = vld [vmem:[%s11059_s3 + $0x84] ss:$16 sps:$4 sm:$0xff]  }
  0x1e   :  { %v8723_v25 = vld [vmem:[%s11059_s3 + $0x8c] ss:$16 sps:$4 sm:$0xff]   ;;  %v7601_v26 = vld [vmem:[%s11058_s1 + $0x10] sm:$0xff]   ;;  %v8738_v28 = vld [vmem:[%s11059_s3 + $0x88] ss:$16 sps:$4 sm:$0xff]  }
  0x1f   :  { %337 = vmatpush1.bf16.msra.mxu0 %v7521_v31  ;;  %410 = vmatpush1.bf16.msra.mxu1 %v7522_v32  ;;  %v8733_v27 = vld [vmem:[%s11059_s3 + $0x80] ss:$16 sps:$4 sm:$0xff]   ;;  %v8745_v29 = vld [vmem:[%s11059_s3 + $0xa4] ss:$16 sps:$4 sm:$0xff]   ;;  %v8752_v30 = vld [vmem:[%s11059_s3 + $0xac] ss:$16 sps:$4 sm:$0xff]  }
  0x20   :  { %746 = vmatprep.subr.bf16.mxu0 %v7526_v33  ;;  %819 = vmatprep.subr.bf16.mxu1 %v7529_v34  ;;  %v8757_v31 = vld [vmem:[%s11059_s3 + $0xa0] ss:$16 sps:$4 sm:$0xff]   ;;  %v8762_v32 = vld [vmem:[%s11059_s3 + $0xa8] ss:$16 sps:$4 sm:$0xff]   ;;  %v8769_v33 = vld [vmem:[%s11059_s3 + $0xc4] ss:$16 sps:$4 sm:$0xff]  }
  0x21   :  { %v8776_v34 = vld [vmem:[%s11059_s3 + $0xcc] ss:$16 sps:$4 sm:$0xff]  }
  0x22   :  { %355 = vmatmul.mubr.bf16.vlgmr.msra.gmra.mrb[0].mxu0 %v7523_v35  ;;  %428 = vmatmul.mubr.bf16.vlgmr.msra.gmra.mrb[0].mxu1 %v7523_v35  ;;  %v7614_v35 = vld [vmem:[%s11058_s1 + $0x18] sm:$0xff]  }
  0x23   :  { %747 = vmatpush1.bf16.msra.mxu0 %v7524_v36  ;;  %820 = vmatpush1.bf16.msra.mxu1 %v7527_v37  ;;  %v8786_v36 = vld [vmem:[%s11059_s3 + $0xc0] ss:$16 sps:$4 sm:$0xff]   ;;  %v8791_v37 = vld [vmem:[%s11059_s3 + $0xc8] ss:$16 sps:$4 sm:$0xff]  }
  0x24   :  { %748 = vmatprep.subr.bf16.mxu0 %v7532_v38  ;;  %821 = vmatprep.subr.bf16.mxu1 %v7535_v39  ;;  %v8798_v38 = vld [vmem:[%s11059_s3 + $0xe4] ss:$16 sps:$4 sm:$0xff]   ;;  %v8805_v39 = vld [vmem:[%s11059_s3 + $0xec] ss:$16 sps:$4 sm:$0xff]  }
  0x25   :  { %364 = vmatprep.mubr.bf16.mxu0 %v11065_v1  ;;  %437 = vmatprep.mubr.bf16.mxu1 %v11065_v1 }
  0x27   :  { %749 = vmatpush1.bf16.msra.mxu0 %v7530_v40  ;;  %822 = vmatpush1.bf16.msra.mxu1 %v7533_v41  ;;  %v8810_v40 = vld [vmem:[%s11059_s3 + $0xe0] ss:$16 sps:$4 sm:$0xff]   ;;  %v8817_v41 = vld [vmem:[%s11059_s3 + $0xe8] ss:$16 sps:$4 sm:$0xff]  }
  0x28   :  { %750 = vmatprep.subr.bf16.mxu0 %v7539_v42  ;;  %823 = vmatprep.subr.bf16.mxu1 %v7542_v43  ;;  %v8824_v42 = vld [vmem:[%s11060_s6 + $0x4] ss:$16 sps:$4 sm:$0xff]   ;;  %v8829_v43 = vld [vmem:[%s11060_s6 + $0xc] ss:$16 sps:$4 sm:$0xff]  }
  0x2a   :  { %365 = vmatmul.mubr.bf16.gmra.mrb[4].mxu0 %v7536_v44  ;;  %438 = vmatmul.mubr.bf16.gmra.mrb[4].mxu1 %v7536_v44  ;;  %v7627_v44 = vld [vmem:[%s11060_s6] ss:$16 sps:$4 sm:$0xff]  }
  0x2b   :  { %751 = vmatpush1.bf16.msra.mxu0 %v7537_v45  ;;  %824 = vmatpush1.bf16.msra.mxu1 %v7540_v46  ;;  %v7630_v45 = vld [vmem:[%s11060_s6 + $0x8] ss:$16 sps:$4 sm:$0xff]   ;;  %v7635_v46 = vld [vmem:[%s11060_s6 + $0x24] ss:$16 sps:$4 sm:$0xff]  }
  0x2c   :  { %752 = vmatprep.subr.bf16.mxu0 %v7545_v47  ;;  %825 = vmatprep.subr.bf16.mxu1 %v7548_v48  ;;  %v7638_v47 = vld [vmem:[%s11060_s6 + $0x2c] ss:$16 sps:$4 sm:$0xff]   ;;  %v7633_v48 = vld [vmem:[%s11060_s6 + $0x20] ss:$16 sps:$4 sm:$0xff]  }
  0x2d   :  { %374 = vmatprep.mubr.bf16.mxu0 %v11065_v1  ;;  %447 = vmatprep.mubr.bf16.mxu1 %v11065_v1 }
  0x2f   :  { %753 = vmatpush1.bf16.msra.mxu0 %v7543_v49  ;;  %826 = vmatpush1.bf16.msra.mxu1 %v7546_v50  ;;  %v7636_v49 = vld [vmem:[%s11060_s6 + $0x28] ss:$16 sps:$4 sm:$0xff]   ;;  %v8348_v50 = vmov 0.0|0.0  }
  0x30   :  { %754 = vmatprep.subr.bf16.mxu0 %v7552_v51  ;;  %827 = vmatprep.subr.bf16.mxu1 %v7555_v52  ;;  %v7641_v51 = vld [vmem:[%s11060_s6 + $0x44] ss:$16 sps:$4 sm:$0xff]   ;;  %v7644_v52 = vld [vmem:[%s11060_s6 + $0x4c] ss:$16 sps:$4 sm:$0xff]  }
  0x32   :  { %375 = vmatmul.mubr.bf16.gmra.mrb[8].mxu0 %v7549_v53  ;;  %448 = vmatmul.mubr.bf16.gmra.mrb[8].mxu1 %v7549_v53  ;;  %v7639_v53 = vld [vmem:[%s11060_s6 + $0x40] ss:$16 sps:$4 sm:$0xff]  }
  0x33   :  { %755 = vmatpush1.bf16.msra.mxu0 %v7550_v54  ;;  %828 = vmatpush1.bf16.msra.mxu1 %v7553_v55  ;;  %v7642_v54 = vld [vmem:[%s11060_s6 + $0x48] ss:$16 sps:$4 sm:$0xff]   ;;  %v7647_v55 = vld [vmem:[%s11060_s6 + $0x64] ss:$16 sps:$4 sm:$0xff]  }
  0x34   :  { %756 = vmatprep.subr.bf16.mxu0 %v7558_v56  ;;  %829 = vmatprep.subr.bf16.mxu1 %v7561_v57  ;;  %v7650_v56 = vld [vmem:[%s11060_s6 + $0x6c] ss:$16 sps:$4 sm:$0xff]   ;;  %v7645_v57 = vld [vmem:[%s11060_s6 + $0x60] ss:$16 sps:$4 sm:$0xff]  }
  0x35   :  { %384 = vmatprep.mubr.bf16.mxu0 %v11065_v1  ;;  %457 = vmatprep.mubr.bf16.mxu1 %v11065_v1 }
  0x37   :  { %757 = vmatpush1.bf16.msra.mxu0 %v7556_v58  ;;  %830 = vmatpush1.bf16.msra.mxu1 %v7559_v59  ;;  %v7648_v58 = vld [vmem:[%s11060_s6 + $0x68] ss:$16 sps:$4 sm:$0xff]   ;;  %v7653_v59 = vld [vmem:[%s11060_s6 + $0x84] ss:$16 sps:$4 sm:$0xff]  }
  0x38   :  { %758 = vmatprep.subr.bf16.mxu0 %v7565_v60  ;;  %831 = vmatprep.subr.bf16.mxu1 %v7568_v61  ;;  %v7656_v60 = vld [vmem:[%s11060_s6 + $0x8c] ss:$16 sps:$4 sm:$0xff]   ;;  %v7651_v61 = vld [vmem:[%s11060_s6 + $0x80] ss:$16 sps:$4 sm:$0xff]  }
  0x3a   :  { %385 = vmatmul.mubr.bf16.gmra.mrb[12].mxu0 %v7562_v62  ;;  %458 = vmatmul.mubr.bf16.gmra.mrb[12].mxu1 %v7562_v62  ;;  %v7654_v62 = vld [vmem:[%s11060_s6 + $0x88] ss:$16 sps:$4 sm:$0xff]  }
  0x3b   :  { %759 = vmatpush1.bf16.msra.mxu0 %v7563_v63  ;;  %832 = vmatpush1.bf16.msra.mxu1 %v7566_v0  ;;  %v7659_v63 = vld [vmem:[%s11060_s6 + $0xa4] ss:$16 sps:$4 sm:$0xff]   ;;  %v7662_v0 = vld [vmem:[%s11060_s6 + $0xac] ss:$16 sps:$4 sm:$0xff]  }
  0x3c   :  { %760 = vmatprep.subr.bf16.mxu0 %v7571_v2  ;;  %833 = vmatprep.subr.bf16.mxu1 %v7574_v3  ;;  %v7657_v2 = vld [vmem:[%s11060_s6 + $0xa0] ss:$16 sps:$4 sm:$0xff]   ;;  %v7660_v3 = vld [vmem:[%s11060_s6 + $0xa8] ss:$16 sps:$4 sm:$0xff]  }
  0x3d   :  { %778 = vmatprep.mubr.bf16.mxu0 %v11065_v1  ;;  %851 = vmatprep.mubr.bf16.mxu1 %v11065_v1 }
  0x3f   :  { %761 = vmatpush1.bf16.msra.mxu0 %v7569_v4  ;;  %834 = vmatpush1.bf16.msra.mxu1 %v7572_v5  ;;  %v7665_v4 = vld [vmem:[%s11060_s6 + $0xc4] ss:$16 sps:$4 sm:$0xff]   ;;  %v7668_v5 = vld [vmem:[%s11060_s6 + $0xcc] ss:$16 sps:$4 sm:$0xff]  }
  0x40   :  { %1135 = vmatprep.subr.bf16.mxu0 %v8614_v6  ;;  %1176 = vmatprep.subr.bf16.mxu1 %v8619_v7 }
  0x42   :  { %779 = vmatmul.mubr.bf16.vlgmr.msra.gmra.mrb[16].mxu0 %v7575_v8  ;;  %852 = vmatmul.mubr.bf16.vlgmr.msra.gmra.mrb[16].mxu1 %v7575_v8  ;;  %v8914_v8 = vld [vmem:[%s11060_s6 + $0xc0] ss:$16 sps:$4 sm:$0xff]  }
  0x43   :  { %1136 = vmatpush1.bf16.msra.mxu0 %v8629_v9  ;;  %1177 = vmatpush1.bf16.msra.mxu1 %v8634_v10 }
  0x44   :  { %1137 = vmatprep.subr.bf16.mxu0 %v8641_v11  ;;  %1178 = vmatprep.subr.bf16.mxu1 %v8646_v12 }
  0x45   :  { %788 = vmatprep.mubr.bf16.mxu0 %v11065_v1  ;;  %861 = vmatprep.mubr.bf16.mxu1 %v11065_v1 }
  0x47   :  { %1138 = vmatpush1.bf16.msra.mxu0 %v8651_v13  ;;  %1179 = vmatpush1.bf16.msra.mxu1 %v8656_v14 }
  0x48   :  { %1139 = vmatprep.subr.bf16.mxu0 %v8663_v15  ;;  %1180 = vmatprep.subr.bf16.mxu1 %v8670_v16 }
  0x4a   :  { %789 = vmatmul.mubr.bf16.gmra.mrb[20].mxu0 %v7588_v17  ;;  %862 = vmatmul.mubr.bf16.gmra.mrb[20].mxu1 %v7588_v17  ;;  %v8919_v17 = vld [vmem:[%s11060_s6 + $0xc8] ss:$16 sps:$4 sm:$0xff]  }
  0x4b   :  { %1140 = vmatpush1.bf16.msra.mxu0 %v8680_v18  ;;  %1181 = vmatpush1.bf16.msra.mxu1 %v8685_v19 }
  0x4c   :  { %1141 = vmatprep.subr.bf16.mxu0 %v8692_v20  ;;  %1182 = vmatprep.subr.bf16.mxu1 %v8699_v21 }
  0x4d   :  { %798 = vmatprep.mubr.bf16.mxu0 %v11065_v1  ;;  %871 = vmatprep.mubr.bf16.mxu1 %v11065_v1 }
  0x4f   :  { %1142 = vmatpush1.bf16.msra.mxu0 %v8704_v22  ;;  %1183 = vmatpush1.bf16.msra.mxu1 %v8709_v23 }
  0x50   :  { %1143 = vmatprep.subr.bf16.mxu0 %v8716_v24  ;;  %1184 = vmatprep.subr.bf16.mxu1 %v8723_v25 }
  0x52   :  { %799 = vmatmul.mubr.bf16.gmra.mrb[24].mxu0 %v7601_v26  ;;  %872 = vmatmul.mubr.bf16.gmra.mrb[24].mxu1 %v7601_v26  ;;  %v8924_v26 = vld [vmem:[%s11060_s6 + $0xe4] ss:$16 sps:$4 sm:$0xff]  }
  0x53   :  { %1144 = vmatpush1.bf16.msra.mxu0 %v8733_v27  ;;  %1185 = vmatpush1.bf16.msra.mxu1 %v8738_v28 }
  0x54   :  { %1145 = vmatprep.subr.bf16.mxu0 %v8745_v29  ;;  %1186 = vmatprep.subr.bf16.mxu1 %v8752_v30 }
  0x55   :  { %808 = vmatprep.mubr.bf16.mxu0 %v11065_v1  ;;  %881 = vmatprep.mubr.bf16.mxu1 %v11065_v1 }
  0x57   :  { %1146 = vmatpush1.bf16.msra.mxu0 %v8757_v31  ;;  %1187 = vmatpush1.bf16.msra.mxu1 %v8762_v32 }
  0x58   :  { %1147 = vmatprep.subr.bf16.mxu0 %v8769_v33  ;;  %1188 = vmatprep.subr.bf16.mxu1 %v8776_v34 }
  0x5a   :  { %809 = vmatmul.mubr.bf16.gmra.mrb[28].mxu0 %v7614_v35  ;;  %882 = vmatmul.mubr.bf16.gmra.mrb[28].mxu1 %v7614_v35  ;;  %v8929_v35 = vld [vmem:[%s11060_s6 + $0xec] ss:$16 sps:$4 sm:$0xff]  }
  0x5b   :  { %1148 = vmatpush1.bf16.msra.mxu0 %v8786_v36  ;;  %1189 = vmatpush1.bf16.msra.mxu1 %v8791_v37 }
  0x5c   :  { %1149 = vmatprep.subr.bf16.mxu0 %v8798_v38  ;;  %1190 = vmatprep.subr.bf16.mxu1 %v8805_v39 }
  0x5d   :  { %1167 = vmatprep.mubr.bf16.mxu0 %v11065_v1  ;;  %1208 = vmatprep.mubr.bf16.mxu1 %v11065_v1 }
  0x5f   :  { %1150 = vmatpush1.bf16.msra.mxu0 %v8810_v40  ;;  %1191 = vmatpush1.bf16.msra.mxu1 %v8817_v41 }
  0x60   :  { %1434 = vmatprep.subr.bf16.mxu0 %v8824_v42  ;;  %1475 = vmatprep.subr.bf16.mxu1 %v8829_v43 }
  0x62   :  { %1168 = vmatmul.mubr.bf16.vlgmr.msra.gmra.mrb[32].mxu0 %v8348_v50  ;;  %1209 = vmatmul.mubr.bf16.vlgmr.msra.gmra.mrb[32].mxu1 %v8348_v50 }
  0x63   :  { %1435 = vmatpush1.bf16.msra.mxu0 %v7627_v44  ;;  %1476 = vmatpush1.bf16.msra.mxu1 %v7630_v45  ;;  %v8934_v44 = vld [vmem:[%s11060_s6 + $0xe0] ss:$16 sps:$4 sm:$0xff]   ;;  %v8939_v45 = vld [vmem:[%s11060_s6 + $0xe8] ss:$16 sps:$4 sm:$0xff]  }
  0x64   :  { %1436 = vmatprep.subr.bf16.mxu0 %v7635_v46  ;;  %1477 = vmatprep.subr.bf16.mxu1 %v7638_v47 }
  0x65   :  { %1466 = vmatprep.mubr.bf16.mxu0 %v11065_v1  ;;  %1507 = vmatprep.mubr.bf16.mxu1 %v11065_v1 }
  0x67   :  { %1437 = vmatpush1.bf16.msra.mxu0 %v7633_v48  ;;  %1478 = vmatpush1.bf16.msra.mxu1 %v7636_v49 }
  0x68   :  { %1438 = vmatprep.subr.bf16.mxu0 %v7641_v51  ;;  %1479 = vmatprep.subr.bf16.mxu1 %v7644_v52 }
  0x6b   :  { %1439 = vmatpush1.bf16.msra.mxu0 %v7639_v53  ;;  %1480 = vmatpush1.bf16.msra.mxu1 %v7642_v54 }
  0x6c   :  { %1440 = vmatprep.subr.bf16.mxu0 %v7647_v55  ;;  %1481 = vmatprep.subr.bf16.mxu1 %v7650_v56 }
  0x6f   :  { %1441 = vmatpush1.bf16.msra.mxu0 %v7645_v57  ;;  %1482 = vmatpush1.bf16.msra.mxu1 %v7648_v58 }
  0x70   :  { %1442 = vmatprep.subr.bf16.mxu0 %v7653_v59  ;;  %1483 = vmatprep.subr.bf16.mxu1 %v7656_v60 }
  0x73   :  { %1443 = vmatpush1.bf16.msra.mxu0 %v7651_v61  ;;  %1484 = vmatpush1.bf16.msra.mxu1 %v7654_v62 }
  0x74   :  { %1444 = vmatprep.subr.bf16.mxu0 %v7659_v63  ;;  %1485 = vmatprep.subr.bf16.mxu1 %v7662_v0 }
  0x77   :  { %1445 = vmatpush1.bf16.msra.mxu0 %v7657_v2  ;;  %1486 = vmatpush1.bf16.msra.mxu1 %v7660_v3 }
  0x78   :  { %1446 = vmatprep.subr.bf16.mxu0 %v7665_v4  ;;  %1487 = vmatprep.subr.bf16.mxu1 %v7668_v5 }
  0x7b   :  { %1447 = vmatpush1.bf16.msra.mxu0 %v8914_v8  ;;  %1488 = vmatpush1.bf16.msra.mxu1 %v8919_v17 }
  0x7c   :  { %1448 = vmatprep.subr.bf16.mxu0 %v8924_v26  ;;  %1489 = vmatprep.subr.bf16.mxu1 %v8929_v35 }
  0x7f   :  { %1449 = vmatpush1.bf16.msra.mxu0 %v8934_v44  ;;  %1490 = vmatpush1.bf16.msra.mxu1 %v8939_v45 }
  0x80   :  { %1751 = vmatprep.subr.bf16.mxu0 %v8614_v6  ;;  %1792 = vmatprep.subr.bf16.mxu1 %v8619_v7  ;;  %v118_v6 = vlaneseq }
  0x82   :  { %1467 = vmatmul.mubr.bf16.vlgmr.msra.gmra.mrb[36].mxu0 %v8348_v50  ;;  %1508 = vmatmul.mubr.bf16.vlgmr.msra.gmra.mrb[36].mxu1 %v8348_v50  ;;  %v8983_v7 = vshrl.u32 %v118_v6, 7 }
  0x83   :  { %1752 = vmatpush1.bf16.msra.mxu0 %v8629_v9  ;;  %1793 = vmatpush1.bf16.msra.mxu1 %v8634_v10 }
  0x84   :  { %1753 = vmatprep.subr.bf16.mxu0 %v8641_v11  ;;  %1794 = vmatprep.subr.bf16.mxu1 %v8646_v12  ;;  %v128_v9 = vsub.s32 2, %v8983_v7  ;;  %v132_v10 = vsub.s32 3, %v8983_v7  ;;  %v120_v11 = vsub.s32 0, %v8983_v7  ;;  %v116_v12 = vld [vmem:[%s11061_s4] sm:$0xf] }
  0x85   :  { %1783 = vmatprep.mubr.bf16.mxu0 %v11065_v1  ;;  %1824 = vmatprep.mubr.bf16.mxu1 %v11065_v1 }
  0x87   :  { %1754 = vmatpush1.bf16.msra.mxu0 %v8651_v13  ;;  %1795 = vmatpush1.bf16.msra.mxu1 %v8656_v14  ;;  %v124_v13 = vsub.s32 1, %v8983_v7  ;;  %v8994_v14 = vrot.slane %v116_v12, %v128_v9 }
  0x88   :  { %1755 = vmatprep.subr.bf16.mxu0 %v8663_v15  ;;  %1796 = vmatprep.subr.bf16.mxu1 %v8670_v16 }
  0x8b   :  { %1756 = vmatpush1.bf16.msra.mxu0 %v8680_v18  ;;  %1797 = vmatpush1.bf16.msra.mxu1 %v8685_v19  ;;  %v9002_v18 = vrot.slane %v116_v12, %v132_v10  ;;  %v9006_v19 = vrot.slane %v116_v12, %v120_v11 }
  0x8c   :  { %1757 = vmatprep.subr.bf16.mxu0 %v8692_v20  ;;  %1798 = vmatprep.subr.bf16.mxu1 %v8699_v21 }
  0x8f   :  { %1758 = vmatpush1.bf16.msra.mxu0 %v8704_v22  ;;  %1799 = vmatpush1.bf16.msra.mxu1 %v8709_v23  ;;  %v9014_v22 = vrot.slane %v116_v12, %v124_v13 }
  0x90   :  { %1759 = vmatprep.subr.bf16.mxu0 %v8716_v24  ;;  %1800 = vmatprep.subr.bf16.mxu1 %v8723_v25 }
  0x93   :  { %1760 = vmatpush1.bf16.msra.mxu0 %v8733_v27  ;;  %1801 = vmatpush1.bf16.msra.mxu1 %v8738_v28 }
  0x94   :  { %1761 = vmatprep.subr.bf16.mxu0 %v8745_v29  ;;  %1802 = vmatprep.subr.bf16.mxu1 %v8752_v30 }
  0x97   :  { %1762 = vmatpush1.bf16.msra.mxu0 %v8757_v31  ;;  %1803 = vmatpush1.bf16.msra.mxu1 %v8762_v32 }
  0x98   :  { %1763 = vmatprep.subr.bf16.mxu0 %v8769_v33  ;;  %1804 = vmatprep.subr.bf16.mxu1 %v8776_v34 }
  0x9b   :  { %1764 = vmatpush1.bf16.msra.mxu0 %v8786_v36  ;;  %1805 = vmatpush1.bf16.msra.mxu1 %v8791_v37 }
  0x9c   :  { %1765 = vmatprep.subr.bf16.mxu0 %v8798_v38  ;;  %1806 = vmatprep.subr.bf16.mxu1 %v8805_v39 }
  0x9f   :  { %1766 = vmatpush1.bf16.msra.mxu0 %v8810_v40  ;;  %1807 = vmatpush1.bf16.msra.mxu1 %v8817_v41 }
  0xa0   :  { %2049 = vmatprep.subr.bf16.mxu0 %v8824_v42  ;;  %2090 = vmatprep.subr.bf16.mxu1 %v8829_v43 }
  0xf5   :  { %v8996_v15 = vpop.f32.mrb[0].mxu0  ;;  %v8998_v16 = vpop.f32.mrb[0].mxu1 }
  0xf6   :  { %v9008_v20 = vpop.f32.mrb[1].mxu0  ;;  %v9010_v21 = vpop.f32.mrb[1].mxu1 }
  0xf7   :  { %v360_v23 = vpop.f32.mrb[2].mxu0  ;;  %v433_v24 = vpop.f32.mrb[2].mxu1 }
  0xf8   :  { %v9017_v25 = vadd.f32 %v360_v23, %v9006_v19  ;;  %v362_v27 = vpop.f32.mrb[3].mxu0  ;;  %v9020_v28 = vadd.f32 %v433_v24, %v8994_v14  ;;  %v435_v29 = vpop.f32.mrb[3].mxu1 }
  0xf9   :  { %v9023_v30 = vadd.f32 %v362_v27, %v9014_v22  ;;  %v9026_v31 = vadd.f32 %v435_v29, %v9002_v18 }
  0xfd   :  { %v366_v32 = vpop.f32.mrb[4].mxu0  ;;  %v439_v33 = vpop.f32.mrb[4].mxu1 }
  0xfe   :  { %v9029_v34 = vadd.f32 %v366_v32, %v9006_v19  ;;  %v368_v36 = vpop.f32.mrb[5].mxu0  ;;  %v9032_v37 = vadd.f32 %v439_v33, %v8994_v14  ;;  %v441_v38 = vpop.f32.mrb[5].mxu1  ;;  %v540_v32 = vld [vmem:[%s11062_s7] sm:$0xf] }
  0xff   :  { %v9035_v39 = vadd.f32 %v368_v36, %v9014_v22  ;;  %v370_v40 = vpop.f32.mrb[6].mxu0  ;;  %v9038_v41 = vadd.f32 %v441_v38, %v9002_v18  ;;  %v443_v42 = vpop.f32.mrb[6].mxu1 }
 0x100   :  { %v9041_v43 = vadd.f32 %v370_v40, %v9006_v19  ;;  %v372_v46 = vpop.f32.mrb[7].mxu0  ;;  %v9044_v47 = vadd.f32 %v443_v42, %v8994_v14  ;;  %v445_v48 = vpop.f32.mrb[7].mxu1 }
 0x101   :  { %11090 = vst [vmem:[#allocation8_spill] sm:$0xff] %v9035_v39  ;;  %11091 = vst [vmem:[#allocation9_spill] sm:$0xff] %v9038_v41  ;;  %v9047_v49 = vadd.f32 %v372_v46, %v9014_v22  ;;  %v9050_v50 = vadd.f32 %v445_v48, %v9002_v18 }
 0x102   :  { %11092 = vst [vmem:[#allocation10_spill] sm:$0xff] %v9041_v43  ;;  %11093 = vst [vmem:[#allocation11_spill] sm:$0xff] %v9044_v47 }
 0x103   :  { %11094 = vst [vmem:[#allocation12_spill] sm:$0xff] %v9047_v49  ;;  %11095 = vst [vmem:[#allocation13_spill] sm:$0xff] %v9050_v50 }
 0x105   :  { %v376_v51 = vpop.f32.mrb[8].mxu0  ;;  %v449_v52 = vpop.f32.mrb[8].mxu1 }
 0x106   :  { %v9053_v53 = vadd.f32 %v376_v51, %v9006_v19  ;;  %v378_v54 = vpop.f32.mrb[9].mxu0  ;;  %v9056_v55 = vadd.f32 %v449_v52, %v8994_v14  ;;  %v451_v56 = vpop.f32.mrb[9].mxu1  ;;  %v9105_v52 = vrot.slane %v540_v32, %v120_v11 }
 0x107   :  { %v9059_v57 = vadd.f32 %v378_v54, %v9014_v22  ;;  %v380_v58 = vpop.f32.mrb[10].mxu0  ;;  %v9062_v59 = vadd.f32 %v451_v56, %v9002_v18  ;;  %v453_v60 = vpop.f32.mrb[10].mxu1  ;;  %v9109_v54 = vrot.slane %v540_v32, %v128_v9  ;;  %v9113_v56 = vrot.slane %v540_v32, %v124_v13 }
 0x108   :  { %11096 = vst [vmem:[#allocation14_spill] sm:$0xff] %v9053_v53  ;;  %11097 = vst [vmem:[#allocation15_spill] sm:$0xff] %v9056_v55  ;;  %v9065_v61 = vadd.f32 %v380_v58, %v9006_v19  ;;  %v382_v62 = vpop.f32.mrb[11].mxu0  ;;  %v9068_v63 = vadd.f32 %v453_v60, %v8994_v14  ;;  %v455_v0 = vpop.f32.mrb[11].mxu1  ;;  %v9117_v58 = vrot.slane %v540_v32, %v132_v10 }
 0x109   :  { %11098 = vst [vmem:[#allocation16_spill] sm:$0xff] %v9059_v57  ;;  %11099 = vst [vmem:[#allocation17_spill] sm:$0xff] %v9062_v59  ;;  %v9071_v2 = vadd.f32 %v382_v62, %v9014_v22  ;;  %v9074_v3 = vadd.f32 %v455_v0, %v9002_v18 }
 0x10a   :  { %11100 = vst [vmem:[#allocation18_spill] sm:$0xff] %v9065_v61  ;;  %11101 = vst [vmem:[#allocation19_spill] sm:$0xff] %v9068_v63 }
 0x10b   :  { %11102 = vst [vmem:[#allocation20_spill] sm:$0xff] %v9071_v2  ;;  %11103 = vst [vmem:[#allocation21_spill] sm:$0xff] %v9074_v3 }
 0x10d   :  { %v386_v4 = vpop.f32.mrb[12].mxu0  ;;  %v459_v5 = vpop.f32.mrb[12].mxu1 }
 0x10e   :  { %v9077_v6 = vadd.f32 %v386_v4, %v9006_v19  ;;  %v388_v12 = vpop.f32.mrb[13].mxu0  ;;  %v9080_v23 = vadd.f32 %v459_v5, %v8994_v14  ;;  %v461_v24 = vpop.f32.mrb[13].mxu1 }
 0x10f   :  { %v9083_v27 = vadd.f32 %v388_v12, %v9014_v22  ;;  %v390_v29 = vpop.f32.mrb[14].mxu0  ;;  %v9089_v33 = vadd.f32 %v461_v24, %v9002_v18  ;;  %v463_v36 = vpop.f32.mrb[14].mxu1 }
 0x110   :  { %11104 = vst [vmem:[#allocation22_spill] sm:$0xff] %v9077_v6  ;;  %11105 = vst [vmem:[#allocation23_spill] sm:$0xff] %v9080_v23  ;;  %v9092_v38 = vadd.f32 %v390_v29, %v9006_v19  ;;  %v392_v40 = vpop.f32.mrb[15].mxu0  ;;  %v9095_v42 = vadd.f32 %v463_v36, %v8994_v14  ;;  %v465_v46 = vpop.f32.mrb[15].mxu1 }
 0x111   :  { %11106 = vst [vmem:[#allocation24_spill] sm:$0xff] %v9083_v27  ;;  %11107 = vst [vmem:[#allocation25_spill] sm:$0xff] %v9089_v33  ;;  %v9098_v48 = vadd.f32 %v392_v40, %v9014_v22  ;;  %v9101_v51 = vadd.f32 %v465_v46, %v9002_v18 }
 0x112   :  { %11108 = vst [vmem:[#allocation26_spill] sm:$0xff] %v9092_v38  ;;  %11109 = vst [vmem:[#allocation27_spill] sm:$0xff] %v9095_v42 }
 0x113   :  { %11110 = vst [vmem:[#allocation28_spill] sm:$0xff] %v9098_v48  ;;  %11111 = vst [vmem:[#allocation29_spill] sm:$0xff] %v9101_v51 }
 0x115   :  { %v780_v60 = vpop.f32.mrb[16].mxu0  ;;  %v853_v62 = vpop.f32.mrb[16].mxu1 }
 0x116   :  { %v9120_v0 = vadd.f32 %v780_v60, %v9105_v52  ;;  %v782_v4 = vpop.f32.mrb[17].mxu0  ;;  %v9123_v11 = vadd.f32 %v853_v62, %v9109_v54  ;;  %v855_v5 = vpop.f32.mrb[17].mxu1 }
 0x117   :  { %v9126_v9 = vadd.f32 %v782_v4, %v9113_v56  ;;  %v784_v12 = vpop.f32.mrb[18].mxu0  ;;  %v9129_v13 = vadd.f32 %v855_v5, %v9117_v58  ;;  %v857_v7 = vpop.f32.mrb[18].mxu1 }
 0x118   :  { %11112 = vst [vmem:[#allocation30_spill] sm:$0xff] %v9120_v0  ;;  %11113 = vst [vmem:[#allocation31_spill] sm:$0xff] %v9123_v11  ;;  %v9132_v10 = vadd.f32 %v784_v12, %v9105_v52  ;;  %v786_v24 = vpop.f32.mrb[19].mxu0  ;;  %v9135_v29 = vadd.f32 %v857_v7, %v9109_v54  ;;  %v859_v32 = vpop.f32.mrb[19].mxu1 }
 0x119   :  { %11114 = vst [vmem:[#allocation32_spill] sm:$0xff] %v9126_v9  ;;  %11115 = vst [vmem:[#allocation33_spill] sm:$0xff] %v9129_v13  ;;  %v9138_v36 = vadd.f32 %v786_v24, %v9113_v56  ;;  %v9141_v40 = vadd.f32 %v859_v32, %v9117_v58 }
 0x11a   :  { %11116 = vst [vmem:[#allocation34_spill] sm:$0xff] %v9132_v10  ;;  %11117 = vst [vmem:[#allocation35_spill] sm:$0xff] %v9135_v29 }
 0x11b   :  { %11118 = vst [vmem:[#allocation36_spill] sm:$0xff] %v9138_v36  ;;  %11119 = vst [vmem:[#allocation37_spill] sm:$0xff] %v9141_v40 }
 0x11d   :  { %v790_v46 = vpop.f32.mrb[20].mxu0  ;;  %v863_v60 = vpop.f32.mrb[20].mxu1 }
 0x11e   :  { %v9144_v62 = vadd.f32 %v790_v46, %v9105_v52  ;;  %v792_v4 = vpop.f32.mrb[21].mxu0  ;;  %v9147_v5 = vadd.f32 %v863_v60, %v9109_v54  ;;  %v865_v12 = vpop.f32.mrb[21].mxu1 }
 0x11f   :  { %v9150_v7 = vadd.f32 %v792_v4, %v9113_v56  ;;  %v794_v1 = vpop.f32.mrb[22].mxu0  ;;  %v9153_v24 = vadd.f32 %v865_v12, %v9117_v58  ;;  %v867_v13 = vpop.f32.mrb[22].mxu1 }
 0x120   :  { %11120 = vst [vmem:[#allocation38_spill] sm:$0xff] %v9144_v62  ;;  %11121 = vst [vmem:[#allocation39_spill] sm:$0xff] %v9147_v5  ;;  %v9156_v32 = vadd.f32 %v794_v1, %v9105_v52  ;;  %v796_v9 = vpop.f32.mrb[23].mxu0  ;;  %v9159_v46 = vadd.f32 %v867_v13, %v9109_v54  ;;  %v869_v11 = vpop.f32.mrb[23].mxu1  ;;  %v357_v5 = vadd.f32 %v8996_v15, %v9006_v19 }
 0x121   :  { %11122 = vst [vmem:[#allocation40_spill] sm:$0xff] %v9150_v7  ;;  %11123 = vst [vmem:[#allocation41_spill] sm:$0xff] %v9153_v24  ;;  %v9162_v60 = vadd.f32 %v796_v9, %v9113_v56  ;;  %v9165_v0 = vadd.f32 %v869_v11, %v9117_v58 }
 0x122   :  { %11124 = vst [vmem:[#allocation42_spill] sm:$0xff] %v9156_v32  ;;  %11125 = vst [vmem:[#allocation43_spill] sm:$0xff] %v9159_v46 }
 0x123   :  { %11126 = vst [vmem:[#allocation44_spill] sm:$0xff] %v9162_v60  ;;  %11127 = vst [vmem:[#allocation45_spill] sm:$0xff] %v9165_v0 }
 0x125   :  { %v800_v4 = vpop.f32.mrb[24].mxu0  ;;  %v873_v51 = vpop.f32.mrb[24].mxu1 }
 0x126   :  { %v9168_v12 = vadd.f32 %v800_v4, %v9105_v52  ;;  %v802_v48 = vpop.f32.mrb[25].mxu0  ;;  %v9171_v1 = vadd.f32 %v873_v51, %v9109_v54  ;;  %v875_v42 = vpop.f32.mrb[25].mxu1 }
 0x127   :  { %v9174_v13 = vadd.f32 %v802_v48, %v9113_v56  ;;  %v804_v38 = vpop.f32.mrb[26].mxu0  ;;  %v9177_v9 = vadd.f32 %v875_v42, %v9117_v58  ;;  %v877_v40 = vpop.f32.mrb[26].mxu1 }
 0x128   :  { %11128 = vst [vmem:[#allocation46_spill] sm:$0xff] %v9168_v12  ;;  %11129 = vst [vmem:[#allocation47_spill] sm:$0xff] %v9171_v1  ;;  %v9180_v11 = vadd.f32 %v804_v38, %v9105_v52  ;;  %v806_v36 = vpop.f32.mrb[27].mxu0  ;;  %v9183_v4 = vadd.f32 %v877_v40, %v9109_v54  ;;  %v879_v29 = vpop.f32.mrb[27].mxu1 }
 0x129   :  { %11130 = vst [vmem:[#allocation48_spill] sm:$0xff] %v9174_v13  ;;  %11131 = vst [vmem:[#allocation49_spill] sm:$0xff] %v9177_v9  ;;  %v9186_v51 = vadd.f32 %v806_v36, %v9113_v56  ;;  %v9189_v10 = vadd.f32 %v879_v29, %v9117_v58 }
 0x12a   :  { %11132 = vst [vmem:[#allocation50_spill] sm:$0xff] %v9180_v11  ;;  %11133 = vst [vmem:[#allocation51_spill] sm:$0xff] %v9183_v4 }
 0x12b   :  { %11134 = vst [vmem:[#allocation52_spill] sm:$0xff] %v9186_v51  ;;  %11135 = vst [vmem:[#allocation53_spill] sm:$0xff] %v9189_v10 }
 0x12d   :  { %v810_v48 = vpop.f32.mrb[28].mxu0  ;;  %v883_v33 = vpop.f32.mrb[28].mxu1 }
 0x12e   :  { %v9192_v42 = vadd.f32 %v810_v48, %v9105_v52  ;;  %v812_v27 = vpop.f32.mrb[29].mxu0  ;;  %v9195_v38 = vadd.f32 %v883_v33, %v9109_v54  ;;  %v885_v23 = vpop.f32.mrb[29].mxu1  ;;  %v430_v48 = vadd.f32 %v8998_v16, %v8994_v14  ;;  %v359_v33 = vadd.f32 %v9008_v20, %v9014_v22 }
 0x12f   :  { %v9198_v40 = vadd.f32 %v812_v27, %v9113_v56  ;;  %v814_v6 = vpop.f32.mrb[30].mxu0  ;;  %v9201_v36 = vadd.f32 %v885_v23, %v9117_v58  ;;  %v887_v24 = vpop.f32.mrb[30].mxu1  ;;  %v432_v27 = vadd.f32 %v9010_v21, %v9002_v18 }
 0x130   :  { %v816_v29 = vpop.f32.mrb[31].mxu0  ;;  %v889_v7 = vpop.f32.mrb[31].mxu1 }
 0x135   :  { %v1169_v62 = vpop.f32.mrb[32].mxu0  ;;  %v1210_v3 = vpop.f32.mrb[32].mxu1 }
 0x136   :  { %v1170_v2 = vadd.f32 %v1169_v62, %v357_v5  ;;  %v1211_v23 = vadd.f32 %v1210_v3, %v430_v48  ;;  %v1171_v63 = vpop.f32.mrb[33].mxu0  ;;  %v1212_v61 = vpop.f32.mrb[33].mxu1 }
 0x137   :  { %v1172_v0 = vadd.f32 %v1171_v63, %v359_v33  ;;  %v1213_v60 = vadd.f32 %v1212_v61, %v432_v27  ;;  %v1173_v46 = vpop.f32.mrb[34].mxu0  ;;  %v1214_v32 = vpop.f32.mrb[34].mxu1 }
 0x138   :  { %v6859_v15 = vmul.f32 -1.442695, %v1170_v2  ;;  %v1174_v19 = vpop.f32.mrb[35].mxu0  ;;  %v1215_v59 = vpop.f32.mrb[35].mxu1  ;;  %v6861_v16 = vmul.f32 -1.442695, %v1211_v23  ;;  %v817_v46 = vadd.f32 %v816_v29, %v9113_v56 }
 0x139   :  { %v6860_v14 = vmul.f32 -1.442695, %v1172_v0  ;;  %v815_v59 = vadd.f32 %v814_v6, %v9105_v52  ;;  %v888_v0 = vadd.f32 %v887_v24, %v9109_v54 }
 0x13a   :  { %8067 = vpow2.f32 %v6859_v15 }
 0x13b   :  { %8069 = vpow2.f32 %v6860_v14 }
 0x13c   :  { %8071 = vtanh.f32 %v1213_v60  ;;  %v890_v60 = vadd.f32 %v889_v7, %v9117_v58 }
 0x13d   :  { %8073 = vpow2.f32 %v6861_v16 }
 0x144   :  { %v8068_v20 = vpop.eup %8067 }
 0x145   :  { %v1226_v22 = vadd.f32 1.0, %v8068_v20  ;;  %v8070_v18 = vpop.eup %8069 }
 0x146   :  { %v1227_v21 = vadd.f32 1.0, %v8070_v18  ;;  %v8072_v3 = vpop.eup %8071 }
 0x147   :  { %8075 = vrcp.f32 %v1226_v22  ;;  %v8074_v63 = vpop.eup %8073 }
 0x148   :  { %8077 = vrcp.f32 %v1227_v21  ;;  %v1228_v2 = vadd.f32 1.0, %v8074_v63 }
 0x14a   :  { %8079 = vrcp.f32 %v1228_v2  ;;  %v8324_v2 = vld [vmem:[%s11060_s6 + $0x8] ss:$16 sps:$4 sm:$0xff]  }
 0x151   :  { %v8076_v61 = vpop.eup %8075 }
 0x152   :  { %v1237_v62 = vmul.f32 %v8076_v61, %v8072_v3  ;;  %v8078_v5 = vpop.eup %8077 }
 0x153   :  { %v1236_v32 = vmul.f32 0.0, %v8078_v5  ;;  %v8323_v5 = vld [vmem:[%s11060_s6] ss:$16 sps:$4 sm:$0xff]  }
 0x154   :  { %v8080_v58 = vpop.eup %8079 }
 0x155   :  { %v1468_v48 = vpop.f32.mrb[36].mxu0  ;;  %v1509_v33 = vpop.f32.mrb[36].mxu1  ;;  %v9215_v27 = vadd.f32 %v1237_v62, %v1236_v32  ;;  %v11136_v32 = vmov 0  }
 0x156   :  { %v1469_v23 = vadd.f32 %v1468_v48, %v815_v59  ;;  %v1510_v15 = vadd.f32 %v1509_v33, %v888_v0  ;;  %v1470_v19 = vpop.f32.mrb[37].mxu0  ;;  %v1511_v14 = vpop.f32.mrb[37].mxu1  ;;  %v8325_v59 = vld [vmem:[%s11060_s6 + $0x24] ss:$16 sps:$4 sm:$0xff]   ;;  %v8326_v0 = vld [vmem:[%s11060_s6 + $0x2c] ss:$16 sps:$4 sm:$0xff]  }
 0x157   :  { %v1471_v16 = vadd.f32 %v1470_v19, %v817_v46  ;;  %v1512_v20 = vadd.f32 %v1511_v14, %v890_v60  ;;  %v1472_v22 = vpop.f32.mrb[38].mxu0  ;;  %v1513_v6 = vpop.f32.mrb[38].mxu1  ;;  %8081 = vtanh.f32 %v9215_v27  ;;  %v8327_v46 = vld [vmem:[%s11060_s6 + $0x20] ss:$16 sps:$4 sm:$0xff]   ;;  %v8328_v60 = vld [vmem:[%s11060_s6 + $0x28] ss:$16 sps:$4 sm:$0xff]  }
 0x158   :  { %v6894_v52 = vmul.f32 -1.442695, %v1469_v23  ;;  %v1473_v54 = vpop.f32.mrb[39].mxu0  ;;  %v1514_v56 = vpop.f32.mrb[39].mxu1  ;;  %v6896_v29 = vmul.f32 -1.442695, %v1510_v15 }
 0x159   :  { %v6895_v24 = vmul.f32 -1.442695, %v1471_v16  ;;  %v8329_v48 = vld [vmem:[%s11060_s6 + $0x44] ss:$16 sps:$4 sm:$0xff]   ;;  %v8330_v33 = vld [vmem:[%s11060_s6 + $0x4c] ss:$16 sps:$4 sm:$0xff]  }
 0x15a   :  { %8083 = vpow2.f32 %v6894_v52  ;;  %v8331_v19 = vld [vmem:[%s11060_s6 + $0x40] ss:$16 sps:$4 sm:$0xff]   ;;  %v8332_v14 = vld [vmem:[%s11060_s6 + $0x48] ss:$16 sps:$4 sm:$0xff]   ;;  %v8334_v22 = vld [vmem:[%s11060_s6 + $0x6c] ss:$16 sps:$4 sm:$0xff]  }
 0x15b   :  { %8085 = vpow2.f32 %v6895_v24  ;;  %v8335_v24 = vld [vmem:[%s11060_s6 + $0x60] ss:$16 sps:$4 sm:$0xff]  }
 0x15c   :  { %8087 = vtanh.f32 %v1512_v20  ;;  %v8333_v20 = vld [vmem:[%s11060_s6 + $0x64] ss:$16 sps:$4 sm:$0xff]  }
 0x15d   :  { %8089 = vpow2.f32 %v6896_v29  ;;  %v8338_v29 = vld [vmem:[%s11060_s6 + $0x8c] ss:$16 sps:$4 sm:$0xff]  }
 0x161   :  { %v8082_v7 = vpop.eup %8081 }
 0x162   :  { %v1240_v18 = vmul.f32 %v8082_v7, %v8080_v58  ;;  %v8336_v58 = vld [vmem:[%s11060_s6 + $0x68] ss:$16 sps:$4 sm:$0xff]   ;;  %v8337_v7 = vld [vmem:[%s11060_s6 + $0x84] ss:$16 sps:$4 sm:$0xff]  }
 0x164   :  { %v8084_v21 = vpop.eup %8083  ;;  %v1540_v63 = vpack.c.bf16 %v1240_v18, %v1240_v18 }
 0x165   :  { %v1525_v3 = vadd.f32 1.0, %v8084_v21  ;;  %v8086_v61 = vpop.eup %8085  ;;  %v8339_v21 = vld [vmem:[%s11060_s6 + $0x80] ss:$16 sps:$4 sm:$0xff]  }
 0x166   :  { %v1526_v62 = vadd.f32 1.0, %v8086_v61  ;;  %1541 = vst [vmem:[%s11063_s8] sm:$0xf] %v1540_v63  ;;  %1784 = vmatmul.mubr.bf16.vlgmr.msra.gmra.mrb[40].mxu0 %v1540_v63  ;;  %1825 = vmatmul.mubr.bf16.vlgmr.msra.gmra.mrb[40].mxu1 %v1540_v63  ;;  %v8088_v23 = vpop.eup %8087  ;;  %v8341_v63 = vld [vmem:[%s11060_s6 + $0xa4] ss:$16 sps:$4 sm:$0xff]   ;;  %v8342_v61 = vld [vmem:[%s11060_s6 + $0xac] ss:$16 sps:$4 sm:$0xff]  }
 0x167   :  { %8091 = vrcp.f32 %v1525_v3  ;;  %2050 = vmatpush1.bf16.msra.mxu0 %v8323_v5  ;;  %2091 = vmatpush1.bf16.msra.mxu1 %v8324_v2  ;;  %v8090_v15 = vpop.eup %8089  ;;  %v8340_v3 = vld [vmem:[%s11060_s6 + $0x88] ss:$16 sps:$4 sm:$0xff]   ;;  %v8345_v2 = vld [vmem:[%s11060_s6 + $0xc4] ss:$16 sps:$4 sm:$0xff]  }
 0x168   :  { %8093 = vrcp.f32 %v1526_v62  ;;  %2051 = vmatprep.subr.bf16.mxu0 %v8325_v59  ;;  %2092 = vmatprep.subr.bf16.mxu1 %v8326_v0  ;;  %v1527_v54 = vadd.f32 1.0, %v8090_v15  ;;  %v8343_v62 = vld [vmem:[%s11060_s6 + $0xa0] ss:$16 sps:$4 sm:$0xff]   ;;  %v8344_v5 = vld [vmem:[%s11060_s6 + $0xa8] ss:$16 sps:$4 sm:$0xff]  }
 0x169   :  { %2081 = vmatprep.mubr.bf16.mxu0 %v11136_v32  ;;  %2122 = vmatprep.mubr.bf16.mxu1 %v11136_v32  ;;  %v8346_v59 = vld [vmem:[%s11060_s6 + $0xcc] ss:$16 sps:$4 sm:$0xff]   ;;  %v9360_v15 = vld [vmem:[%s11059_s3 + $0x44] ss:$16 sps:$4 sm:$0xff]  }
 0x16a   :  { %8095 = vrcp.f32 %v1527_v54  ;;  %v9408_v54 = vld [vmem:[%s11059_s3 + $0x84] ss:$16 sps:$4 sm:$0xff]  }
 0x16b   :  { %2052 = vmatpush1.bf16.msra.mxu0 %v8327_v46  ;;  %2093 = vmatpush1.bf16.msra.mxu1 %v8328_v60 }
 0x16c   :  { %2053 = vmatprep.subr.bf16.mxu0 %v8329_v48  ;;  %2094 = vmatprep.subr.bf16.mxu1 %v8330_v33  ;;  %v9346_v33 = vld [vmem:[%s11059_s3 + $0x20] ss:$16 sps:$4 sm:$0xff]  }
 0x16f   :  { %2054 = vmatpush1.bf16.msra.mxu0 %v8331_v19  ;;  %2095 = vmatpush1.bf16.msra.mxu1 %v8332_v14  ;;  %v9365_v19 = vld [vmem:[%s11059_s3 + $0x4c] ss:$16 sps:$4 sm:$0xff]   ;;  %v9370_v14 = vld [vmem:[%s11059_s3 + $0x40] ss:$16 sps:$4 sm:$0xff]  }
 0x170   :  { %2055 = vmatprep.subr.bf16.mxu0 %v8333_v20  ;;  %2096 = vmatprep.subr.bf16.mxu1 %v8334_v22  ;;  %v9384_v20 = vld [vmem:[%s11059_s3 + $0x64] ss:$16 sps:$4 sm:$0xff]   ;;  %v9389_v22 = vld [vmem:[%s11059_s3 + $0x6c] ss:$16 sps:$4 sm:$0xff]  }
 0x171   :  { %v8092_v16 = vpop.eup %8091 }
 0x172   :  { %v1536_v6 = vmul.f32 %v8092_v16, %v8088_v23  ;;  %v8094_v52 = vpop.eup %8093  ;;  %v9351_v23 = vld [vmem:[%s11059_s3 + $0x28] ss:$16 sps:$4 sm:$0xff]  }
 0x173   :  { %v1535_v56 = vmul.f32 0.0, %v8094_v52  ;;  %2056 = vmatpush1.bf16.msra.mxu0 %v8335_v24  ;;  %2097 = vmatpush1.bf16.msra.mxu1 %v8336_v58  ;;  %v9375_v16 = vld [vmem:[%s11059_s3 + $0x48] ss:$16 sps:$4 sm:$0xff]   ;;  %v9418_v24 = vld [vmem:[%s11059_s3 + $0x80] ss:$16 sps:$4 sm:$0xff]  }
 0x174   :  { %2057 = vmatprep.subr.bf16.mxu0 %v8337_v7  ;;  %2098 = vmatprep.subr.bf16.mxu1 %v8338_v29  ;;  %v8096_v0 = vpop.eup %8095  ;;  %v9399_v52 = vld [vmem:[%s11059_s3 + $0x68] ss:$16 sps:$4 sm:$0xff]   ;;  %v9432_v7 = vld [vmem:[%s11059_s3 + $0xa4] ss:$16 sps:$4 sm:$0xff]   ;;  %v9437_v29 = vld [vmem:[%s11059_s3 + $0xac] ss:$16 sps:$4 sm:$0xff]  }
 0x175   :  { %v9271_v18 = vadd.f32 %v1536_v6, %v1535_v56  ;;  %v9394_v6 = vld [vmem:[%s11059_s3 + $0x60] ss:$16 sps:$4 sm:$0xff]   ;;  %v9413_v56 = vld [vmem:[%s11059_s3 + $0x8c] ss:$16 sps:$4 sm:$0xff]   ;;  %v9423_v58 = vld [vmem:[%s11059_s3 + $0x88] ss:$16 sps:$4 sm:$0xff]  }
 0x177   :  { %8097 = vtanh.f32 %v9271_v18  ;;  %2058 = vmatpush1.bf16.msra.mxu0 %v8339_v21  ;;  %2099 = vmatpush1.bf16.msra.mxu1 %v8340_v3  ;;  %v9442_v21 = vld [vmem:[%s11059_s3 + $0xa0] ss:$16 sps:$4 sm:$0xff]   ;;  %v9447_v3 = vld [vmem:[%s11059_s3 + $0xa8] ss:$16 sps:$4 sm:$0xff]  }
 0x178   :  { %2059 = vmatprep.subr.bf16.mxu0 %v8341_v63  ;;  %2100 = vmatprep.subr.bf16.mxu1 %v8342_v61  ;;  %v9456_v63 = vld [vmem:[%s11059_s3 + $0xc4] ss:$16 sps:$4 sm:$0xff]   ;;  %v9461_v61 = vld [vmem:[%s11059_s3 + $0xcc] ss:$16 sps:$4 sm:$0xff]  }
 0x17b   :  { %2060 = vmatpush1.bf16.msra.mxu0 %v8343_v62  ;;  %2101 = vmatpush1.bf16.msra.mxu1 %v8344_v5  ;;  %v9466_v62 = vld [vmem:[%s11059_s3 + $0xc0] ss:$16 sps:$4 sm:$0xff]   ;;  %v9471_v5 = vld [vmem:[%s11059_s3 + $0xc8] ss:$16 sps:$4 sm:$0xff]  }
 0x17c   :  { %2061 = vmatprep.subr.bf16.mxu0 %v8345_v2  ;;  %2102 = vmatprep.subr.bf16.mxu1 %v8346_v59  ;;  %v9480_v2 = vld [vmem:[%s11059_s3 + $0xe4] ss:$16 sps:$4 sm:$0xff]   ;;  %v9485_v59 = vld [vmem:[%s11059_s3 + $0xec] ss:$16 sps:$4 sm:$0xff]  }
 0x17f   :  { %2062 = vmatpush1.bf16.msra.mxu0 %v8914_v8  ;;  %2103 = vmatpush1.bf16.msra.mxu1 %v8919_v17  ;;  %v9312_v8 = vld [vmem:[%s11059_s3 + $0x4] ss:$16 sps:$4 sm:$0xff]   ;;  %v9317_v17 = vld [vmem:[%s11059_s3 + $0xc] ss:$16 sps:$4 sm:$0xff]  }
 0x180   :  { %2063 = vmatprep.subr.bf16.mxu0 %v8924_v26  ;;  %2104 = vmatprep.subr.bf16.mxu1 %v8929_v35  ;;  %v9322_v26 = vld [vmem:[%s11059_s3] ss:$16 sps:$4 sm:$0xff]   ;;  %v9327_v35 = vld [vmem:[%s11059_s3 + $0x8] ss:$16 sps:$4 sm:$0xff]  }
 0x181   :  { %v8098_v46 = vpop.eup %8097 }
 0x182   :  { %v1539_v60 = vmul.f32 %v8098_v46, %v8096_v0  ;;  %v9490_v0 = vld [vmem:[%s11059_s3 + $0xe0] ss:$16 sps:$4 sm:$0xff]   ;;  %v9495_v46 = vld [vmem:[%s11059_s3 + $0xe8] ss:$16 sps:$4 sm:$0xff]  }
 0x183   :  { %2064 = vmatpush1.bf16.msra.mxu0 %v8934_v44  ;;  %2105 = vmatpush1.bf16.msra.mxu1 %v8939_v45  ;;  %v9336_v44 = vld [vmem:[%s11059_s3 + $0x24] ss:$16 sps:$4 sm:$0xff]   ;;  %v9341_v45 = vld [vmem:[%s11059_s3 + $0x2c] ss:$16 sps:$4 sm:$0xff]  }
 0x184   :  { %v1542_v48 = vpack.c.bf16 %v1539_v60, %v1539_v60  ;;  %2367 = vmatprep.subr.bf16.mxu0 %v9312_v8  ;;  %2408 = vmatprep.subr.bf16.mxu1 %v9317_v17  ;;  %v9504_v60 = vld [vmem:[%s11060_s6 + $0x4] ss:$16 sps:$4 sm:$0xff]  }
 0x186   :  { %6897 = vst [vmem:[%s11064_s9 + $0x1c] sm:$0xf] %v1542_v48  ;;  %2082 = vmatmul.mubr.bf16.vlgmr.msra.gmra.mrb[44].mxu0 %v1542_v48  ;;  %2123 = vmatmul.mubr.bf16.vlgmr.msra.gmra.mrb[44].mxu1 %v1542_v48  ;;  %v9509_v48 = vld [vmem:[%s11060_s6 + $0xc] ss:$16 sps:$4 sm:$0xff]  }
 0x187   :  { %2399 = vmatprep.mubr.bf16.mxu0 %v11136_v32  ;;  %2440 = vmatprep.mubr.bf16.mxu1 %v11136_v32 }
 0x188   :  { %2368 = vmatpush1.bf16.msra.mxu0 %v9322_v26  ;;  %2409 = vmatpush1.bf16.msra.mxu1 %v9327_v35 }
 0x189   :  { %2369 = vmatprep.subr.bf16.mxu0 %v9336_v44  ;;  %2410 = vmatprep.subr.bf16.mxu1 %v9341_v45 }
 0x18c   :  { %2370 = vmatpush1.bf16.msra.mxu0 %v9346_v33  ;;  %2411 = vmatpush1.bf16.msra.mxu1 %v9351_v23 }
 0x18d   :  { %2371 = vmatprep.subr.bf16.mxu0 %v9360_v15  ;;  %2412 = vmatprep.subr.bf16.mxu1 %v9365_v19 }
 0x190   :  { %2372 = vmatpush1.bf16.msra.mxu0 %v9370_v14  ;;  %2413 = vmatpush1.bf16.msra.mxu1 %v9375_v16 }
 0x191   :  { %2373 = vmatprep.subr.bf16.mxu0 %v9384_v20  ;;  %2414 = vmatprep.subr.bf16.mxu1 %v9389_v22 }
 0x194   :  { %2374 = vmatpush1.bf16.msra.mxu0 %v9394_v6  ;;  %2415 = vmatpush1.bf16.msra.mxu1 %v9399_v52 }
 0x195   :  { %2375 = vmatprep.subr.bf16.mxu0 %v9408_v54  ;;  %2416 = vmatprep.subr.bf16.mxu1 %v9413_v56 }
 0x198   :  { %2376 = vmatpush1.bf16.msra.mxu0 %v9418_v24  ;;  %2417 = vmatpush1.bf16.msra.mxu1 %v9423_v58 }
 0x199   :  { %2377 = vmatprep.subr.bf16.mxu0 %v9432_v7  ;;  %2418 = vmatprep.subr.bf16.mxu1 %v9437_v29 }
 0x19c   :  { %2378 = vmatpush1.bf16.msra.mxu0 %v9442_v21  ;;  %2419 = vmatpush1.bf16.msra.mxu1 %v9447_v3 }
 0x19d   :  { %2379 = vmatprep.subr.bf16.mxu0 %v9456_v63  ;;  %2420 = vmatprep.subr.bf16.mxu1 %v9461_v61 }
 0x1a0   :  { %2380 = vmatpush1.bf16.msra.mxu0 %v9466_v62  ;;  %2421 = vmatpush1.bf16.msra.mxu1 %v9471_v5 }
 0x1a1   :  { %2381 = vmatprep.subr.bf16.mxu0 %v9480_v2  ;;  %2422 = vmatprep.subr.bf16.mxu1 %v9485_v59 }
 0x1a4   :  { %2382 = vmatpush1.bf16.msra.mxu0 %v9490_v0  ;;  %2423 = vmatpush1.bf16.msra.mxu1 %v9495_v46 }
 0x1a5   :  { %2665 = vmatprep.subr.bf16.mxu0 %v9504_v60  ;;  %2706 = vmatprep.subr.bf16.mxu1 %v9509_v48 }
 0x239   :  { %v1785_v57 = vpop.f32.mrb[40].mxu0  ;;  %v1826_v55 = vpop.f32.mrb[40].mxu1 }
 0x23a   :  { %v1786_v53 = vadd.f32 %v1785_v57, %v9017_v25  ;;  %v1827_v9 = vadd.f32 %v1826_v55, %v9020_v28  ;;  %v1787_v13 = vpop.f32.mrb[41].mxu0  ;;  %v1828_v1 = vpop.f32.mrb[41].mxu1 }
 0x23b   :  { %v1788_v12 = vadd.f32 %v1787_v13, %v9023_v30  ;;  %v1829_v50 = vadd.f32 %v1828_v1, %v9026_v31  ;;  %v1789_v49 = vpop.f32.mrb[42].mxu0  ;;  %v1830_v47 = vpop.f32.mrb[42].mxu1 }
 0x23c   :  { %v6930_v43 = vmul.f32 -1.442695, %v1786_v53  ;;  %v1790_v10 = vpop.f32.mrb[43].mxu0  ;;  %v1831_v51 = vpop.f32.mrb[43].mxu1  ;;  %v6932_v11 = vmul.f32 -1.442695, %v1827_v9 }
 0x23d   :  { %v6931_v4 = vmul.f32 -1.442695, %v1788_v12 }
 0x23e   :  { %8099 = vpow2.f32 %v6930_v43 }
 0x23f   :  { %8101 = vpow2.f32 %v6931_v4 }
 0x240   :  { %8103 = vtanh.f32 %v1829_v50 }
 0x241   :  { %8105 = vpow2.f32 %v6932_v11 }
 0x248   :  { %v8100_v41 = vpop.eup %8099 }
 0x249   :  { %v1842_v39 = vadd.f32 1.0, %v8100_v41  ;;  %v8102_v25 = vpop.eup %8101 }
 0x24a   :  { %v1843_v28 = vadd.f32 1.0, %v8102_v25  ;;  %v8104_v30 = vpop.eup %8103 }
 0x24b   :  { %8107 = vrcp.f32 %v1842_v39  ;;  %v8106_v55 = vpop.eup %8105 }
 0x24c   :  { %8109 = vrcp.f32 %v1843_v28  ;;  %v1844_v53 = vadd.f32 1.0, %v8106_v55 }
 0x24e   :  { %8111 = vrcp.f32 %v1844_v53  ;;  %v9538_v53 = vld [vmem:[%s11060_s6 + $0x24] ss:$16 sps:$4 sm:$0xff]  }
 0x255   :  { %v8108_v31 = vpop.eup %8107 }
 0x256   :  { %v1853_v49 = vmul.f32 %v8108_v31, %v8104_v30  ;;  %v8110_v47 = vpop.eup %8109 }
 0x257   :  { %v1852_v57 = vmul.f32 %v8110_v47, %v9215_v27 }
 0x259   :  { %v2083_v10 = vpop.f32.mrb[44].mxu0  ;;  %v2124_v43 = vpop.f32.mrb[44].mxu1  ;;  %v9518_v12 = vadd.f32 %v1853_v49, %v1852_v57  ;;  %v9543_v57 = vld [vmem:[%s11060_s6 + $0x2c] ss:$16 sps:$4 sm:$0xff]  }
 0x25a   :  { %v2084_v41 = vadd.f32 %v2083_v10, %v9192_v42  ;;  %v2125_v50 = vadd.f32 %v2124_v43, %v9195_v38  ;;  %v2085_v1 = vpop.f32.mrb[45].mxu0  ;;  %v2126_v39 = vpop.f32.mrb[45].mxu1 }
 0x25b   :  { %v2086_v13 = vadd.f32 %v2085_v1, %v9198_v40  ;;  %v2127_v9 = vadd.f32 %v2126_v39, %v9201_v36  ;;  %v2087_v11 = vpop.f32.mrb[46].mxu0  ;;  %v2128_v4 = vpop.f32.mrb[46].mxu1  ;;  %8113 = vtanh.f32 %v9518_v12  ;;  %v9528_v40 = vld [vmem:[%s11060_s6] ss:$16 sps:$4 sm:$0xff]   ;;  %v9533_v36 = vld [vmem:[%s11060_s6 + $0x8] ss:$16 sps:$4 sm:$0xff]  }
 0x25c   :  { %v6965_v51 = vmul.f32 -1.442695, %v2084_v41  ;;  %v2088_v27 = vpop.f32.mrb[47].mxu0  ;;  %v2129_v25 = vpop.f32.mrb[47].mxu1  ;;  %v6967_v38 = vmul.f32 -1.442695, %v2125_v50 }
 0x25d   :  { %v6966_v28 = vmul.f32 -1.442695, %v2086_v13  ;;  %v8112_v42 = vpop.eup %8111  ;;  %v9553_v41 = vld [vmem:[%s11060_s6 + $0x20] ss:$16 sps:$4 sm:$0xff]   ;;  %v9558_v50 = vld [vmem:[%s11060_s6 + $0x28] ss:$16 sps:$4 sm:$0xff]  }
 0x25e   :  { %8115 = vpow2.f32 %v6965_v51  ;;  %v9565_v1 = vld [vmem:[%s11060_s6 + $0x44] ss:$16 sps:$4 sm:$0xff]   ;;  %v9570_v39 = vld [vmem:[%s11060_s6 + $0x4c] ss:$16 sps:$4 sm:$0xff]   ;;  %v9579_v13 = vld [vmem:[%s11060_s6 + $0x40] ss:$16 sps:$4 sm:$0xff]  }
 0x25f   :  { %8117 = vpow2.f32 %v6966_v28  ;;  %v9591_v11 = vld [vmem:[%s11060_s6 + $0x64] ss:$16 sps:$4 sm:$0xff]   ;;  %v9596_v4 = vld [vmem:[%s11060_s6 + $0x6c] ss:$16 sps:$4 sm:$0xff]   ;;  %v9603_v25 = vld [vmem:[%s11060_s6 + $0x60] ss:$16 sps:$4 sm:$0xff]  }
 0x260   :  { %8119 = vtanh.f32 %v2127_v9  ;;  %v9584_v9 = vld [vmem:[%s11060_s6 + $0x48] ss:$16 sps:$4 sm:$0xff]  }
 0x261   :  { %8121 = vpow2.f32 %v6967_v38  ;;  %v9608_v28 = vld [vmem:[%s11060_s6 + $0x68] ss:$16 sps:$4 sm:$0xff]   ;;  %v9620_v38 = vld [vmem:[%s11060_s6 + $0x8c] ss:$16 sps:$4 sm:$0xff]  }
 0x265   :  { %v8114_v30 = vpop.eup %8113 }
 0x266   :  { %v1856_v55 = vmul.f32 %v8114_v30, %v8112_v42  ;;  %v9615_v30 = vld [vmem:[%s11060_s6 + $0x84] ss:$16 sps:$4 sm:$0xff]  }
 0x268   :  { %v8116_v31 = vpop.eup %8115  ;;  %v2155_v47 = vpack.c.bf16 %v1856_v55, %v1856_v55 }
 0x269   :  { %v2140_v49 = vadd.f32 1.0, %v8116_v31  ;;  %v8118_v10 = vpop.eup %8117 }
 0x26a   :  { %v2141_v43 = vadd.f32 1.0, %v8118_v10  ;;  %6968 = vst [vmem:[%s11063_s8 + $0x4] sm:$0xf] %v2155_v47  ;;  %2400 = vmatmul.mubr.bf16.vlgmr.msra.gmra.mrb[48].mxu0 %v2155_v47  ;;  %2441 = vmatmul.mubr.bf16.vlgmr.msra.gmra.mrb[48].mxu1 %v2155_v47  ;;  %v8120_v51 = vpop.eup %8119  ;;  %v9628_v10 = vld [vmem:[%s11060_s6 + $0x80] ss:$16 sps:$4 sm:$0xff]  }
 0x26b   :  { %8123 = vrcp.f32 %v2140_v49  ;;  %2666 = vmatpush1.bf16.msra.mxu0 %v9528_v40  ;;  %2707 = vmatpush1.bf16.msra.mxu1 %v9533_v36  ;;  %v8122_v27 = vpop.eup %8121  ;;  %11137 = vst [vmem:[#allocation54_spill] sm:$0xff] %v9628_v10 }
 0x26c   :  { %8125 = vrcp.f32 %v2141_v43  ;;  %2667 = vmatprep.subr.bf16.mxu0 %v9538_v53  ;;  %2708 = vmatprep.subr.bf16.mxu1 %v9543_v57  ;;  %v2142_v49 = vadd.f32 1.0, %v8122_v27  ;;  %v9633_v43 = vld [vmem:[%s11060_s6 + $0x88] ss:$16 sps:$4 sm:$0xff]  }
 0x26d   :  { %2697 = vmatprep.mubr.bf16.mxu0 %v11136_v32  ;;  %2738 = vmatprep.mubr.bf16.mxu1 %v11136_v32  ;;  %11138 = vst [vmem:[#allocation55_spill] sm:$0xff] %v9633_v43 }
 0x26e   :  { %8127 = vrcp.f32 %v2142_v49  ;;  %v9672_v49 = vld [vmem:[%s11060_s6 + $0xcc] ss:$16 sps:$4 sm:$0xff]  }
 0x26f   :  { %2668 = vmatpush1.bf16.msra.mxu0 %v9553_v41  ;;  %2709 = vmatpush1.bf16.msra.mxu1 %v9558_v50  ;;  %11144 = vst [vmem:[#allocation61_spill] sm:$0xff] %v9672_v49 }
 0x270   :  { %2669 = vmatprep.subr.bf16.mxu0 %v9565_v1  ;;  %2710 = vmatprep.subr.bf16.mxu1 %v9570_v39 }
 0x273   :  { %2670 = vmatpush1.bf16.msra.mxu0 %v9579_v13  ;;  %2711 = vmatpush1.bf16.msra.mxu1 %v9584_v9 }
 0x274   :  { %2671 = vmatprep.subr.bf16.mxu0 %v9591_v11  ;;  %2712 = vmatprep.subr.bf16.mxu1 %v9596_v4 }
 0x275   :  { %v8124_v42 = vpop.eup %8123 }
 0x276   :  { %v2151_v55 = vmul.f32 %v8124_v42, %v8120_v51  ;;  %v8126_v31 = vpop.eup %8125  ;;  %v9645_v51 = vld [vmem:[%s11060_s6 + $0xac] ss:$16 sps:$4 sm:$0xff]   ;;  %v9655_v42 = vld [vmem:[%s11060_s6 + $0xa0] ss:$16 sps:$4 sm:$0xff]  }
 0x277   :  { %v2150_v47 = vmul.f32 %v8126_v31, %v9271_v18  ;;  %2672 = vmatpush1.bf16.msra.mxu0 %v9603_v25  ;;  %2713 = vmatpush1.bf16.msra.mxu1 %v9608_v28  ;;  %v9640_v18 = vld [vmem:[%s11060_s6 + $0xa4] ss:$16 sps:$4 sm:$0xff]   ;;  %11140 = vst [vmem:[#allocation57_spill] sm:$0xff] %v9645_v51  ;;  %11141 = vst [vmem:[#allocation58_spill] sm:$0xff] %v9655_v42  ;;  %v9660_v31 = vld [vmem:[%s11060_s6 + $0xa8] ss:$16 sps:$4 sm:$0xff]  }
 0x278   :  { %2673 = vmatprep.subr.bf16.mxu0 %v9615_v30  ;;  %2714 = vmatprep.subr.bf16.mxu1 %v9620_v38  ;;  %11139 = vst [vmem:[#allocation56_spill] sm:$0xff] %v9640_v18  ;;  %11142 = vst [vmem:[#allocation59_spill] sm:$0xff] %v9660_v31 }
 0x279   :  { %v9647_v27 = vadd.f32 %v2151_v55, %v2150_v47  ;;  %v9667_v55 = vld [vmem:[%s11060_s6 + $0xc4] ss:$16 sps:$4 sm:$0xff]   ;;  %v9679_v47 = vld [vmem:[%s11060_s6 + $0xc0] ss:$16 sps:$4 sm:$0xff]  }
 0x27a   :  { %11143 = vst [vmem:[#allocation60_spill] sm:$0xff] %v9667_v55 }
 0x27b   :  { %8129 = vtanh.f32 %v9647_v27  ;;  %2674 = vmatpush1.bf16.msra.mxu0 %v9628_v10  ;;  %2715 = vmatpush1.bf16.msra.mxu1 %v9633_v43 }
 0x27c   :  { %2675 = vmatprep.subr.bf16.mxu0 %v9640_v18  ;;  %2716 = vmatprep.subr.bf16.mxu1 %v9645_v51  ;;  %v9684_v51 = vld [vmem:[%s11060_s6 + $0xc8] ss:$16 sps:$4 sm:$0xff]   ;;  %v8128_v18 = vpop.eup %8127 }
 0x27d   :  { %11145 = vst [vmem:[#allocation62_spill] sm:$0xff] %v9684_v51 }
 0x27f   :  { %2676 = vmatpush1.bf16.msra.mxu0 %v9655_v42  ;;  %2717 = vmatpush1.bf16.msra.mxu1 %v9660_v31  ;;  %v9691_v42 = vld [vmem:[%s11060_s6 + $0xe4] ss:$16 sps:$4 sm:$0xff]   ;;  %v9696_v31 = vld [vmem:[%s11060_s6 + $0xec] ss:$16 sps:$4 sm:$0xff]  }
 0x280   :  { %2677 = vmatprep.subr.bf16.mxu0 %v9667_v55  ;;  %2718 = vmatprep.subr.bf16.mxu1 %v9672_v49  ;;  %v9703_v55 = vld [vmem:[%s11060_s6 + $0xe0] ss:$16 sps:$4 sm:$0xff]   ;;  %v9708_v49 = vld [vmem:[%s11060_s6 + $0xe8] ss:$16 sps:$4 sm:$0xff]  }
 0x283   :  { %2678 = vmatpush1.bf16.msra.mxu0 %v9679_v47  ;;  %2719 = vmatpush1.bf16.msra.mxu1 %v9684_v51 }
 0x284   :  { %2679 = vmatprep.subr.bf16.mxu0 %v9691_v42  ;;  %2720 = vmatprep.subr.bf16.mxu1 %v9696_v31 }
 0x285   :  { %v8130_v43 = vpop.eup %8129 }
 0x286   :  { %v2154_v10 = vmul.f32 %v8130_v43, %v8128_v18  ;;  %v11150_v43 = vld [vmem:[#allocation52_spill] sm:$0xff] }
 0x287   :  { %2680 = vmatpush1.bf16.msra.mxu0 %v9703_v55  ;;  %2721 = vmatpush1.bf16.msra.mxu1 %v9708_v49 }
 0x288   :  { %v2158_v51 = vpack.c.bf16 %v2154_v10, %v2154_v10  ;;  %2983 = vmatprep.subr.bf16.mxu0 %v9312_v8  ;;  %3024 = vmatprep.subr.bf16.mxu1 %v9317_v17 }
 0x28a   :  { %6969 = vst [vmem:[%s11064_s9 + $0x18] sm:$0xf] %v2158_v51  ;;  %2698 = vmatmul.mubr.bf16.vlgmr.msra.gmra.mrb[52].mxu0 %v2158_v51  ;;  %2739 = vmatmul.mubr.bf16.vlgmr.msra.gmra.mrb[52].mxu1 %v2158_v51  ;;  %v11151_v51 = vld [vmem:[#allocation53_spill] sm:$0xff] }
 0x28b   :  { %2984 = vmatpush1.bf16.msra.mxu0 %v9322_v26  ;;  %3025 = vmatpush1.bf16.msra.mxu1 %v9327_v35 }
 0x28c   :  { %2985 = vmatprep.subr.bf16.mxu0 %v9336_v44  ;;  %3026 = vmatprep.subr.bf16.mxu1 %v9341_v45 }
 0x28d   :  { %3015 = vmatprep.mubr.bf16.mxu0 %v11136_v32  ;;  %3056 = vmatprep.mubr.bf16.mxu1 %v11136_v32 }
 0x28f   :  { %2986 = vmatpush1.bf16.msra.mxu0 %v9346_v33  ;;  %3027 = vmatpush1.bf16.msra.mxu1 %v9351_v23  ;;  %v11146_v33 = vld [vmem:[#allocation8_spill] sm:$0xff] }
 0x290   :  { %2987 = vmatprep.subr.bf16.mxu0 %v9360_v15  ;;  %3028 = vmatprep.subr.bf16.mxu1 %v9365_v19  ;;  %v11147_v15 = vld [vmem:[#allocation9_spill] sm:$0xff] }
 0x293   :  { %2988 = vmatpush1.bf16.msra.mxu0 %v9370_v14  ;;  %3029 = vmatpush1.bf16.msra.mxu1 %v9375_v16 }
 0x294   :  { %2989 = vmatprep.subr.bf16.mxu0 %v9384_v20  ;;  %3030 = vmatprep.subr.bf16.mxu1 %v9389_v22 }
 0x297   :  { %2990 = vmatpush1.bf16.msra.mxu0 %v9394_v6  ;;  %3031 = vmatpush1.bf16.msra.mxu1 %v9399_v52 }
 0x298   :  { %2991 = vmatprep.subr.bf16.mxu0 %v9408_v54  ;;  %3032 = vmatprep.subr.bf16.mxu1 %v9413_v56 }
 0x29b   :  { %2992 = vmatpush1.bf16.msra.mxu0 %v9418_v24  ;;  %3033 = vmatpush1.bf16.msra.mxu1 %v9423_v58 }
 0x29c   :  { %2993 = vmatprep.subr.bf16.mxu0 %v9432_v7  ;;  %3034 = vmatprep.subr.bf16.mxu1 %v9437_v29 }
 0x29f   :  { %2994 = vmatpush1.bf16.msra.mxu0 %v9442_v21  ;;  %3035 = vmatpush1.bf16.msra.mxu1 %v9447_v3 }
 0x2a0   :  { %2995 = vmatprep.subr.bf16.mxu0 %v9456_v63  ;;  %3036 = vmatprep.subr.bf16.mxu1 %v9461_v61 }
 0x2a3   :  { %2996 = vmatpush1.bf16.msra.mxu0 %v9466_v62  ;;  %3037 = vmatpush1.bf16.msra.mxu1 %v9471_v5 }
 0x2a4   :  { %2997 = vmatprep.subr.bf16.mxu0 %v9480_v2  ;;  %3038 = vmatprep.subr.bf16.mxu1 %v9485_v59  ;;  %v11148_v59 = vld [vmem:[#allocation50_spill] sm:$0xff] }
 0x2a7   :  { %2998 = vmatpush1.bf16.msra.mxu0 %v9490_v0  ;;  %3039 = vmatpush1.bf16.msra.mxu1 %v9495_v46  ;;  %v11149_v46 = vld [vmem:[#allocation51_spill] sm:$0xff] }
 0x2a8   :  { %3281 = vmatprep.subr.bf16.mxu0 %v9504_v60  ;;  %3322 = vmatprep.subr.bf16.mxu1 %v9509_v48 }
 0x33d   :  { %v2401_v8 = vpop.f32.mrb[48].mxu0  ;;  %v2442_v17 = vpop.f32.mrb[48].mxu1 }
 0x33e   :  { %v2402_v26 = vadd.f32 %v2401_v8, %v9029_v34  ;;  %v2443_v35 = vadd.f32 %v2442_v17, %v9032_v37  ;;  %v2403_v44 = vpop.f32.mrb[49].mxu0  ;;  %v2444_v45 = vpop.f32.mrb[49].mxu1 }
 0x33f   :  { %v2404_v23 = vadd.f32 %v2403_v44, %v11146_v33  ;;  %v2445_v19 = vadd.f32 %v2444_v45, %v11147_v15  ;;  %v2405_v14 = vpop.f32.mrb[50].mxu0  ;;  %v2446_v16 = vpop.f32.mrb[50].mxu1 }
 0x340   :  { %v7002_v20 = vmul.f32 -1.442695, %v2402_v26  ;;  %v2406_v22 = vpop.f32.mrb[51].mxu0  ;;  %v2447_v6 = vpop.f32.mrb[51].mxu1  ;;  %v7004_v54 = vmul.f32 -1.442695, %v2443_v35 }
 0x341   :  { %v7003_v52 = vmul.f32 -1.442695, %v2404_v23 }
 0x342   :  { %8131 = vpow2.f32 %v7002_v20 }
 0x343   :  { %8133 = vpow2.f32 %v7003_v52 }
 0x344   :  { %8135 = vtanh.f32 %v2445_v19 }
 0x345   :  { %8137 = vpow2.f32 %v7004_v54 }
 0x34c   :  { %v8132_v56 = vpop.eup %8131 }
 0x34d   :  { %v2458_v24 = vadd.f32 1.0, %v8132_v56  ;;  %v8134_v34 = vpop.eup %8133 }
 0x34e   :  { %v2459_v37 = vadd.f32 1.0, %v8134_v34  ;;  %v8136_v58 = vpop.eup %8135  ;;  %v9841_v34 = vld [vmem:[%s11059_s3 + $0x2c] ss:$16 sps:$4 sm:$0xff]  }
 0x34f   :  { %8139 = vrcp.f32 %v2458_v24  ;;  %v8138_v7 = vpop.eup %8137 }
 0x350   :  { %8141 = vrcp.f32 %v2459_v37  ;;  %v2460_v63 = vadd.f32 1.0, %v8138_v7  ;;  %v9846_v37 = vld [vmem:[%s11059_s3 + $0x20] ss:$16 sps:$4 sm:$0xff]   ;;  %v9860_v7 = vld [vmem:[%s11059_s3 + $0x44] ss:$16 sps:$4 sm:$0xff]  }
 0x352   :  { %8143 = vrcp.f32 %v2460_v63  ;;  %v9884_v63 = vld [vmem:[%s11059_s3 + $0x64] ss:$16 sps:$4 sm:$0xff]  }
 0x359   :  { %v8140_v29 = vpop.eup %8139 }
 0x35a   :  { %v2469_v21 = vmul.f32 %v8140_v29, %v8136_v58  ;;  %v8142_v3 = vpop.eup %8141  ;;  %v9851_v58 = vld [vmem:[%s11059_s3 + $0x28] ss:$16 sps:$4 sm:$0xff]   ;;  %v9865_v29 = vld [vmem:[%s11059_s3 + $0x4c] ss:$16 sps:$4 sm:$0xff]  }
 0x35b   :  { %v2468_v61 = vmul.f32 %v8142_v3, %v9518_v12  ;;  %v9875_v3 = vld [vmem:[%s11059_s3 + $0x48] ss:$16 sps:$4 sm:$0xff]  }
 0x35c   :  { %v8144_v33 = vpop.eup %8143 }
 0x35d   :  { %v2699_v62 = vpop.f32.mrb[52].mxu0  ;;  %v2740_v5 = vpop.f32.mrb[52].mxu1  ;;  %v9758_v2 = vadd.f32 %v2469_v21, %v2468_v61  ;;  %v9870_v21 = vld [vmem:[%s11059_s3 + $0x40] ss:$16 sps:$4 sm:$0xff]   ;;  %v9889_v61 = vld [vmem:[%s11059_s3 + $0x6c] ss:$16 sps:$4 sm:$0xff]  }
 0x35e   :  { %v2700_v0 = vadd.f32 %v2699_v62, %v11148_v59  ;;  %v2741_v60 = vadd.f32 %v2740_v5, %v11149_v46  ;;  %v2701_v48 = vpop.f32.mrb[53].mxu0  ;;  %v2742_v10 = vpop.f32.mrb[53].mxu1  ;;  %v9894_v62 = vld [vmem:[%s11059_s3 + $0x60] ss:$16 sps:$4 sm:$0xff]   ;;  %v9899_v5 = vld [vmem:[%s11059_s3 + $0x68] ss:$16 sps:$4 sm:$0xff]  }
 0x35f   :  { %v2702_v18 = vadd.f32 %v2701_v48, %v11150_v43  ;;  %v2743_v8 = vadd.f32 %v2742_v10, %v11151_v51  ;;  %v2703_v17 = vpop.f32.mrb[54].mxu0  ;;  %v2744_v26 = vpop.f32.mrb[54].mxu1  ;;  %8145 = vtanh.f32 %v9758_v2  ;;  %v9908_v59 = vld [vmem:[%s11059_s3 + $0x84] ss:$16 sps:$4 sm:$0xff]   ;;  %v9918_v46 = vld [vmem:[%s11059_s3 + $0x80] ss:$16 sps:$4 sm:$0xff]  }
 0x360   :  { %v7037_v12 = vmul.f32 -1.442695, %v2700_v0  ;;  %v2704_v35 = vpop.f32.mrb[55].mxu0  ;;  %v2745_v44 = vpop.f32.mrb[55].mxu1  ;;  %v7039_v15 = vmul.f32 -1.442695, %v2741_v60 }
 0x361   :  { %v7038_v45 = vmul.f32 -1.442695, %v2702_v18  ;;  %v9913_v0 = vld [vmem:[%s11059_s3 + $0x8c] ss:$16 sps:$4 sm:$0xff]   ;;  %v9923_v60 = vld [vmem:[%s11059_s3 + $0x88] ss:$16 sps:$4 sm:$0xff]  }
 0x362   :  { %8147 = vpow2.f32 %v7037_v12  ;;  %v9932_v48 = vld [vmem:[%s11059_s3 + $0xa4] ss:$16 sps:$4 sm:$0xff]   ;;  %v9937_v10 = vld [vmem:[%s11059_s3 + $0xac] ss:$16 sps:$4 sm:$0xff]   ;;  %v9942_v43 = vld [vmem:[%s11059_s3 + $0xa0] ss:$16 sps:$4 sm:$0xff]  }
 0x363   :  { %8149 = vpow2.f32 %v7038_v45  ;;  %v9947_v18 = vld [vmem:[%s11059_s3 + $0xa8] ss:$16 sps:$4 sm:$0xff]   ;;  %v9956_v51 = vld [vmem:[%s11059_s3 + $0xc4] ss:$16 sps:$4 sm:$0xff]   ;;  %v9966_v17 = vld [vmem:[%s11059_s3 + $0xc0] ss:$16 sps:$4 sm:$0xff]  }
 0x364   :  { %8151 = vtanh.f32 %v2743_v8  ;;  %v9961_v8 = vld [vmem:[%s11059_s3 + $0xcc] ss:$16 sps:$4 sm:$0xff]   ;;  %v9971_v26 = vld [vmem:[%s11059_s3 + $0xc8] ss:$16 sps:$4 sm:$0xff]   ;;  %v9980_v12 = vld [vmem:[%s11059_s3 + $0xe4] ss:$16 sps:$4 sm:$0xff]  }
 0x365   :  { %8153 = vpow2.f32 %v7039_v15  ;;  %v9985_v35 = vld [vmem:[%s11059_s3 + $0xec] ss:$16 sps:$4 sm:$0xff]   ;;  %v9990_v44 = vld [vmem:[%s11059_s3 + $0xe0] ss:$16 sps:$4 sm:$0xff]   ;;  %v9995_v45 = vld [vmem:[%s11059_s3 + $0xe8] ss:$16 sps:$4 sm:$0xff]  }
 0x369   :  { %v8146_v23 = vpop.eup %8145 }
 0x36a   :  { %v2472_v19 = vmul.f32 %v8146_v23, %v8144_v33  ;;  %v10004_v33 = vld [vmem:[%s11060_s6 + $0x4] ss:$16 sps:$4 sm:$0xff]   ;;  %v10009_v23 = vld [vmem:[%s11060_s6 + $0xc] ss:$16 sps:$4 sm:$0xff]  }
 0x36c   :  { %v8148_v14 = vpop.eup %8147  ;;  %v2771_v20 = vpack.c.bf16 %v2472_v19, %v2472_v19 }
 0x36d   :  { %v2756_v16 = vadd.f32 1.0, %v8148_v14  ;;  %v8150_v22 = vpop.eup %8149  ;;  %v11161_v14 = vld [vmem:[#allocation10_spill] sm:$0xff] }
 0x36e   :  { %v2757_v6 = vadd.f32 1.0, %v8150_v22  ;;  %7040 = vst [vmem:[%s11063_s8 + $0x8] sm:$0xf] %v2771_v20  ;;  %3016 = vmatmul.mubr.bf16.vlgmr.msra.gmra.mrb[56].mxu0 %v2771_v20  ;;  %3057 = vmatmul.mubr.bf16.vlgmr.msra.gmra.mrb[56].mxu1 %v2771_v20  ;;  %v11162_v20 = vld [vmem:[#allocation11_spill] sm:$0xff] }
 0x36f   :  { %8155 = vrcp.f32 %v2756_v16  ;;  %3282 = vmatpush1.bf16.msra.mxu0 %v9528_v40  ;;  %3323 = vmatpush1.bf16.msra.mxu1 %v9533_v36  ;;  %v8152_v40 = vpop.eup %8151 }
 0x370   :  { %8157 = vrcp.f32 %v2757_v6  ;;  %3283 = vmatprep.subr.bf16.mxu0 %v9538_v53  ;;  %3324 = vmatprep.subr.bf16.mxu1 %v9543_v57  ;;  %v8154_v52 = vpop.eup %8153 }
 0x371   :  { %3313 = vmatprep.mubr.bf16.mxu0 %v11136_v32  ;;  %3354 = vmatprep.mubr.bf16.mxu1 %v11136_v32 }
 0x373   :  { %3284 = vmatpush1.bf16.msra.mxu0 %v9553_v41  ;;  %3325 = vmatpush1.bf16.msra.mxu1 %v9558_v50  ;;  %v2758_v41 = vadd.f32 1.0, %v8154_v52  ;;  %v11163_v52 = vld [vmem:[#allocation12_spill] sm:$0xff] }
 0x374   :  { %3285 = vmatprep.subr.bf16.mxu0 %v9565_v1  ;;  %3326 = vmatprep.subr.bf16.mxu1 %v9570_v39  ;;  %v11152_v39 = vld [vmem:[#allocation54_spill] sm:$0xff] }
 0x375   :  { %8159 = vrcp.f32 %v2758_v41 }
 0x377   :  { %3286 = vmatpush1.bf16.msra.mxu0 %v9579_v13  ;;  %3327 = vmatpush1.bf16.msra.mxu1 %v9584_v9  ;;  %v11153_v13 = vld [vmem:[#allocation55_spill] sm:$0xff]  ;;  %v11154_v9 = vld [vmem:[#allocation56_spill] sm:$0xff] }
 0x378   :  { %3287 = vmatprep.subr.bf16.mxu0 %v9591_v11  ;;  %3328 = vmatprep.subr.bf16.mxu1 %v9596_v4  ;;  %v11155_v11 = vld [vmem:[#allocation57_spill] sm:$0xff]  ;;  %v11156_v4 = vld [vmem:[#allocation58_spill] sm:$0xff] }
 0x379   :  { %v8156_v36 = vpop.eup %8155 }
 0x37a   :  { %v2767_v53 = vmul.f32 %v8156_v36, %v8152_v40  ;;  %v8158_v57 = vpop.eup %8157 }
 0x37b   :  { %v2766_v50 = vmul.f32 %v8158_v57, %v9647_v27  ;;  %3288 = vmatpush1.bf16.msra.mxu0 %v9603_v25  ;;  %3329 = vmatpush1.bf16.msra.mxu1 %v9608_v28  ;;  %v11157_v25 = vld [vmem:[#allocation59_spill] sm:$0xff]  ;;  %v11158_v28 = vld [vmem:[#allocation60_spill] sm:$0xff] }
 0x37c   :  { %3289 = vmatprep.subr.bf16.mxu0 %v9615_v30  ;;  %3330 = vmatprep.subr.bf16.mxu1 %v9620_v38  ;;  %v11159_v30 = vld [vmem:[#allocation61_spill] sm:$0xff]  ;;  %v11160_v38 = vld [vmem:[#allocation62_spill] sm:$0xff] }
 0x37d   :  { %v9787_v1 = vadd.f32 %v2767_v53, %v2766_v50  ;;  %v11164_v53 = vld [vmem:[#allocation13_spill] sm:$0xff] }
 0x37f   :  { %8161 = vtanh.f32 %v9787_v1  ;;  %3290 = vmatpush1.bf16.msra.mxu0 %v11152_v39  ;;  %3331 = vmatpush1.bf16.msra.mxu1 %v11153_v13  ;;  %v8160_v27 = vpop.eup %8159 }
 0x380   :  { %3291 = vmatprep.subr.bf16.mxu0 %v11154_v9  ;;  %3332 = vmatprep.subr.bf16.mxu1 %v11155_v11 }
 0x383   :  { %3292 = vmatpush1.bf16.msra.mxu0 %v11156_v4  ;;  %3333 = vmatpush1.bf16.msra.mxu1 %v11157_v25 }
 0x384   :  { %3293 = vmatprep.subr.bf16.mxu0 %v11158_v28  ;;  %3334 = vmatprep.subr.bf16.mxu1 %v11159_v30 }
 0x387   :  { %3294 = vmatpush1.bf16.msra.mxu0 %v9679_v47  ;;  %3335 = vmatpush1.bf16.msra.mxu1 %v11160_v38  ;;  %v9836_v47 = vld [vmem:[%s11059_s3 + $0x24] ss:$16 sps:$4 sm:$0xff]  }
 0x388   :  { %3295 = vmatprep.subr.bf16.mxu0 %v9691_v42  ;;  %3336 = vmatprep.subr.bf16.mxu1 %v9696_v31  ;;  %v9812_v42 = vld [vmem:[%s11059_s3 + $0x4] ss:$16 sps:$4 sm:$0xff]   ;;  %v9817_v31 = vld [vmem:[%s11059_s3 + $0xc] ss:$16 sps:$4 sm:$0xff]  }
 0x389   :  { %v8162_v54 = vpop.eup %8161 }
 0x38a   :  { %v2770_v56 = vmul.f32 %v8162_v54, %v8160_v27 }
 0x38b   :  { %3296 = vmatpush1.bf16.msra.mxu0 %v9703_v55  ;;  %3337 = vmatpush1.bf16.msra.mxu1 %v9708_v49  ;;  %v9822_v55 = vld [vmem:[%s11059_s3] ss:$16 sps:$4 sm:$0xff]   ;;  %v9827_v49 = vld [vmem:[%s11059_s3 + $0x8] ss:$16 sps:$4 sm:$0xff]  }
 0x38c   :  { %v2774_v24 = vpack.c.bf16 %v2770_v56, %v2770_v56  ;;  %3597 = vmatprep.subr.bf16.mxu0 %v9812_v42  ;;  %3638 = vmatprep.subr.bf16.mxu1 %v9817_v31 }
 0x38e   :  { %7041 = vst [vmem:[%s11064_s9 + $0x14] sm:$0xf] %v2774_v24  ;;  %3314 = vmatmul.mubr.bf16.vlgmr.msra.gmra.mrb[60].mxu0 %v2774_v24  ;;  %3355 = vmatmul.mubr.bf16.vlgmr.msra.gmra.mrb[60].mxu1 %v2774_v24 }
 0x38f   :  { %3629 = vmatprep.mubr.bf16.mxu0 %v11136_v32  ;;  %3670 = vmatprep.mubr.bf16.mxu1 %v11136_v32 }
 0x390   :  { %3598 = vmatpush1.bf16.msra.mxu0 %v9822_v55  ;;  %3639 = vmatpush1.bf16.msra.mxu1 %v9827_v49 }
 0x391   :  { %3599 = vmatprep.subr.bf16.mxu0 %v9836_v47  ;;  %3640 = vmatprep.subr.bf16.mxu1 %v9841_v34 }
 0x394   :  { %3600 = vmatpush1.bf16.msra.mxu0 %v9846_v37  ;;  %3641 = vmatpush1.bf16.msra.mxu1 %v9851_v58 }
 0x395   :  { %3601 = vmatprep.subr.bf16.mxu0 %v9860_v7  ;;  %3642 = vmatprep.subr.bf16.mxu1 %v9865_v29 }
 0x398   :  { %3602 = vmatpush1.bf16.msra.mxu0 %v9870_v21  ;;  %3643 = vmatpush1.bf16.msra.mxu1 %v9875_v3 }
 0x399   :  { %3603 = vmatprep.subr.bf16.mxu0 %v9884_v63  ;;  %3644 = vmatprep.subr.bf16.mxu1 %v9889_v61 }
 0x39c   :  { %3604 = vmatpush1.bf16.msra.mxu0 %v9894_v62  ;;  %3645 = vmatpush1.bf16.msra.mxu1 %v9899_v5 }
 0x39d   :  { %3605 = vmatprep.subr.bf16.mxu0 %v9908_v59  ;;  %3646 = vmatprep.subr.bf16.mxu1 %v9913_v0 }
 0x3a0   :  { %3606 = vmatpush1.bf16.msra.mxu0 %v9918_v46  ;;  %3647 = vmatpush1.bf16.msra.mxu1 %v9923_v60 }
 0x3a1   :  { %3607 = vmatprep.subr.bf16.mxu0 %v9932_v48  ;;  %3648 = vmatprep.subr.bf16.mxu1 %v9937_v10 }
 0x3a4   :  { %3608 = vmatpush1.bf16.msra.mxu0 %v9942_v43  ;;  %3649 = vmatpush1.bf16.msra.mxu1 %v9947_v18 }
 0x3a5   :  { %3609 = vmatprep.subr.bf16.mxu0 %v9956_v51  ;;  %3650 = vmatprep.subr.bf16.mxu1 %v9961_v8 }
 0x3a8   :  { %3610 = vmatpush1.bf16.msra.mxu0 %v9966_v17  ;;  %3651 = vmatpush1.bf16.msra.mxu1 %v9971_v26 }
 0x3a9   :  { %3611 = vmatprep.subr.bf16.mxu0 %v9980_v12  ;;  %3652 = vmatprep.subr.bf16.mxu1 %v9985_v35 }
 0x3ac   :  { %3612 = vmatpush1.bf16.msra.mxu0 %v9990_v44  ;;  %3653 = vmatpush1.bf16.msra.mxu1 %v9995_v45 }
 0x3ad   :  { %3895 = vmatprep.subr.bf16.mxu0 %v10004_v33  ;;  %3936 = vmatprep.subr.bf16.mxu1 %v10009_v23 }
 0x441   :  { %v3017_v15 = vpop.f32.mrb[56].mxu0  ;;  %v3058_v19 = vpop.f32.mrb[56].mxu1 }
 0x442   :  { %v3018_v16 = vadd.f32 %v3017_v15, %v11161_v14  ;;  %v3059_v22 = vadd.f32 %v3058_v19, %v11162_v20  ;;  %v3019_v6 = vpop.f32.mrb[57].mxu0  ;;  %v3060_v40 = vpop.f32.mrb[57].mxu1 }
 0x443   :  { %v3020_v36 = vadd.f32 %v3019_v6, %v11163_v52  ;;  %v3061_v57 = vadd.f32 %v3060_v40, %v11164_v53  ;;  %v3021_v41 = vpop.f32.mrb[58].mxu0  ;;  %v3062_v50 = vpop.f32.mrb[58].mxu1  ;;  %v11166_v52 = vld [vmem:[#allocation47_spill] sm:$0xff] }
 0x444   :  { %v7074_v39 = vmul.f32 -1.442695, %v3018_v16  ;;  %v3022_v13 = vpop.f32.mrb[59].mxu0  ;;  %v3063_v9 = vpop.f32.mrb[59].mxu1  ;;  %v7076_v4 = vmul.f32 -1.442695, %v3059_v22 }
 0x445   :  { %v7075_v11 = vmul.f32 -1.442695, %v3020_v36  ;;  %v11165_v22 = vld [vmem:[#allocation46_spill] sm:$0xff]  ;;  %v11167_v41 = vld [vmem:[#allocation48_spill] sm:$0xff] }
 0x446   :  { %8163 = vpow2.f32 %v7074_v39  ;;  %v11168_v39 = vld [vmem:[#allocation49_spill] sm:$0xff] }
 0x447   :  { %8165 = vpow2.f32 %v7075_v11 }
 0x448   :  { %8167 = vtanh.f32 %v3061_v57 }
 0x449   :  { %8169 = vpow2.f32 %v7076_v4 }
 0x450   :  { %v8164_v25 = vpop.eup %8163 }
 0x451   :  { %v3074_v28 = vadd.f32 1.0, %v8164_v25  ;;  %v8166_v30 = vpop.eup %8165 }
 0x452   :  { %v3075_v38 = vadd.f32 1.0, %v8166_v30  ;;  %v8168_v27 = vpop.eup %8167 }
 0x453   :  { %8171 = vrcp.f32 %v3074_v28  ;;  %v8170_v54 = vpop.eup %8169 }
 0x454   :  { %8173 = vrcp.f32 %v3075_v38  ;;  %v3076_v19 = vadd.f32 1.0, %v8170_v54 }
 0x456   :  { %8175 = vrcp.f32 %v3076_v19 }
 0x45d   :  { %v8172_v56 = vpop.eup %8171 }
 0x45e   :  { %v3085_v24 = vmul.f32 %v8172_v56, %v8168_v27  ;;  %v8174_v15 = vpop.eup %8173 }
 0x45f   :  { %v3084_v14 = vmul.f32 %v8174_v15, %v9758_v2  ;;  %v10033_v15 = vld [vmem:[%s11060_s6 + $0x8] ss:$16 sps:$4 sm:$0xff]  }
 0x460   :  { %v8176_v30 = vpop.eup %8175 }
 0x461   :  { %v3315_v16 = vpop.f32.mrb[60].mxu0  ;;  %v3356_v20 = vpop.f32.mrb[60].mxu1  ;;  %v10018_v6 = vadd.f32 %v3085_v24, %v3084_v14  ;;  %v10028_v24 = vld [vmem:[%s11060_s6] ss:$16 sps:$4 sm:$0xff]  }
 0x462   :  { %v3316_v40 = vadd.f32 %v3315_v16, %v11165_v22  ;;  %v3357_v36 = vadd.f32 %v3356_v20, %v11166_v52  ;;  %v3317_v53 = vpop.f32.mrb[61].mxu0  ;;  %v3358_v57 = vpop.f32.mrb[61].mxu1  ;;  %v10038_v16 = vld [vmem:[%s11060_s6 + $0x24] ss:$16 sps:$4 sm:$0xff]   ;;  %v10043_v20 = vld [vmem:[%s11060_s6 + $0x2c] ss:$16 sps:$4 sm:$0xff]  }
 0x463   :  { %v3318_v50 = vadd.f32 %v3317_v53, %v11167_v41  ;;  %v3359_v13 = vadd.f32 %v3358_v57, %v11168_v39  ;;  %v3319_v9 = vpop.f32.mrb[62].mxu0  ;;  %v3360_v11 = vpop.f32.mrb[62].mxu1  ;;  %8177 = vtanh.f32 %v10018_v6  ;;  %v10053_v52 = vld [vmem:[%s11060_s6 + $0x20] ss:$16 sps:$4 sm:$0xff]   ;;  %v10065_v53 = vld [vmem:[%s11060_s6 + $0x44] ss:$16 sps:$4 sm:$0xff]  }
 0x464   :  { %v7109_v2 = vmul.f32 -1.442695, %v3316_v40  ;;  %v3320_v4 = vpop.f32.mrb[63].mxu0  ;;  %v3361_v25 = vpop.f32.mrb[63].mxu1  ;;  %v7111_v27 = vmul.f32 -1.442695, %v3357_v36 }
 0x465   :  { %v7110_v28 = vmul.f32 -1.442695, %v3318_v50  ;;  %v10058_v36 = vld [vmem:[%s11060_s6 + $0x28] ss:$16 sps:$4 sm:$0xff]   ;;  %v10070_v57 = vld [vmem:[%s11060_s6 + $0x4c] ss:$16 sps:$4 sm:$0xff]  }
 0x466   :  { %8179 = vpow2.f32 %v7109_v2  ;;  %v10079_v41 = vld [vmem:[%s11060_s6 + $0x40] ss:$16 sps:$4 sm:$0xff]   ;;  %v10084_v50 = vld [vmem:[%s11060_s6 + $0x48] ss:$16 sps:$4 sm:$0xff]   ;;  %v10091_v39 = vld [vmem:[%s11060_s6 + $0x64] ss:$16 sps:$4 sm:$0xff]  }
 0x467   :  { %8181 = vpow2.f32 %v7110_v28  ;;  %v10103_v2 = vld [vmem:[%s11060_s6 + $0x60] ss:$16 sps:$4 sm:$0xff]   ;;  %v10108_v4 = vld [vmem:[%s11060_s6 + $0x68] ss:$16 sps:$4 sm:$0xff]   ;;  %v10115_v28 = vld [vmem:[%s11060_s6 + $0x84] ss:$16 sps:$4 sm:$0xff]  }
 0x468   :  { %8183 = vtanh.f32 %v3359_v13  ;;  %v10096_v13 = vld [vmem:[%s11060_s6 + $0x6c] ss:$16 sps:$4 sm:$0xff]  }
 0x469   :  { %8185 = vpow2.f32 %v7111_v27 }
 0x46d   :  { %v8178_v38 = vpop.eup %8177 }
 0x46e   :  { %v3088_v54 = vmul.f32 %v8178_v38, %v8176_v30  ;;  %v10120_v30 = vld [vmem:[%s11060_s6 + $0x8c] ss:$16 sps:$4 sm:$0xff]  }
 0x470   :  { %v8180_v56 = vpop.eup %8179  ;;  %v3387_v14 = vpack.c.bf16 %v3088_v54, %v3088_v54 }
 0x471   :  { %v3372_v19 = vadd.f32 1.0, %v8180_v56  ;;  %v8182_v22 = vpop.eup %8181 }
 0x472   :  { %v3373_v40 = vadd.f32 1.0, %v8182_v22  ;;  %7112 = vst [vmem:[%s11063_s8 + $0xc] sm:$0xf] %v3387_v14  ;;  %3630 = vmatmul.mubr.bf16.vlgmr.msra.gmra.mrb[64].mxu0 %v3387_v14  ;;  %3671 = vmatmul.mubr.bf16.vlgmr.msra.gmra.mrb[64].mxu1 %v3387_v14  ;;  %v8184_v9 = vpop.eup %8183  ;;  %v10133_v14 = vld [vmem:[%s11060_s6 + $0x88] ss:$16 sps:$4 sm:$0xff]  }
 0x473   :  { %8187 = vrcp.f32 %v3372_v19  ;;  %3896 = vmatpush1.bf16.msra.mxu0 %v10028_v24  ;;  %3937 = vmatpush1.bf16.msra.mxu1 %v10033_v15  ;;  %v8186_v11 = vpop.eup %8185  ;;  %v10128_v19 = vld [vmem:[%s11060_s6 + $0x80] ss:$16 sps:$4 sm:$0xff]   ;;  %v10145_v22 = vld [vmem:[%s11060_s6 + $0xac] ss:$16 sps:$4 sm:$0xff]  }
 0x474   :  { %8189 = vrcp.f32 %v3373_v40  ;;  %3897 = vmatprep.subr.bf16.mxu0 %v10038_v16  ;;  %3938 = vmatprep.subr.bf16.mxu1 %v10043_v20  ;;  %v3374_v54 = vadd.f32 1.0, %v8186_v11  ;;  %11170 = vst [vmem:[#allocation9_spill] sm:$0xff] %v10145_v22  ;;  %v10160_v11 = vld [vmem:[%s11060_s6 + $0xa8] ss:$16 sps:$4 sm:$0xff]  }
 0x475   :  { %3927 = vmatprep.mubr.bf16.mxu0 %v11136_v32  ;;  %3968 = vmatprep.mubr.bf16.mxu1 %v11136_v32  ;;  %11172 = vst [vmem:[#allocation51_spill] sm:$0xff] %v10160_v11 }
 0x476   :  { %8191 = vrcp.f32 %v3374_v54  ;;  %v10184_v54 = vld [vmem:[%s11060_s6 + $0xc8] ss:$16 sps:$4 sm:$0xff]  }
 0x477   :  { %3898 = vmatpush1.bf16.msra.mxu0 %v10053_v52  ;;  %3939 = vmatpush1.bf16.msra.mxu1 %v10058_v36  ;;  %11175 = vst [vmem:[#allocation54_spill] sm:$0xff] %v10184_v54 }
 0x478   :  { %3899 = vmatprep.subr.bf16.mxu0 %v10065_v53  ;;  %3940 = vmatprep.subr.bf16.mxu1 %v10070_v57 }
 0x47b   :  { %3900 = vmatpush1.bf16.msra.mxu0 %v10079_v41  ;;  %3941 = vmatpush1.bf16.msra.mxu1 %v10084_v50 }
 0x47c   :  { %3901 = vmatprep.subr.bf16.mxu0 %v10091_v39  ;;  %3942 = vmatprep.subr.bf16.mxu1 %v10096_v13 }
 0x47d   :  { %v8188_v25 = vpop.eup %8187 }
 0x47e   :  { %v3383_v38 = vmul.f32 %v8188_v25, %v8184_v9  ;;  %v8190_v27 = vpop.eup %8189  ;;  %v10155_v9 = vld [vmem:[%s11060_s6 + $0xa0] ss:$16 sps:$4 sm:$0xff]   ;;  %v10167_v25 = vld [vmem:[%s11060_s6 + $0xc4] ss:$16 sps:$4 sm:$0xff]  }
 0x47f   :  { %v3382_v56 = vmul.f32 %v8190_v27, %v9787_v1  ;;  %3902 = vmatpush1.bf16.msra.mxu0 %v10103_v2  ;;  %3943 = vmatpush1.bf16.msra.mxu1 %v10108_v4  ;;  %v10140_v1 = vld [vmem:[%s11060_s6 + $0xa4] ss:$16 sps:$4 sm:$0xff]   ;;  %11171 = vst [vmem:[#allocation50_spill] sm:$0xff] %v10155_v9  ;;  %11173 = vst [vmem:[#allocation52_spill] sm:$0xff] %v10167_v25  ;;  %v10179_v27 = vld [vmem:[%s11060_s6 + $0xc0] ss:$16 sps:$4 sm:$0xff]  }
 0x480   :  { %3903 = vmatprep.subr.bf16.mxu0 %v10115_v28  ;;  %3944 = vmatprep.subr.bf16.mxu1 %v10120_v30  ;;  %11169 = vst [vmem:[#allocation8_spill] sm:$0xff] %v10140_v1 }
 0x481   :  { %v10147_v40 = vadd.f32 %v3383_v38, %v3382_v56  ;;  %v10172_v38 = vld [vmem:[%s11060_s6 + $0xcc] ss:$16 sps:$4 sm:$0xff]   ;;  %v10191_v56 = vld [vmem:[%s11060_s6 + $0xe4] ss:$16 sps:$4 sm:$0xff]  }
 0x482   :  { %11174 = vst [vmem:[#allocation53_spill] sm:$0xff] %v10172_v38 }
 0x483   :  { %8193 = vtanh.f32 %v10147_v40  ;;  %3904 = vmatpush1.bf16.msra.mxu0 %v10128_v19  ;;  %3945 = vmatpush1.bf16.msra.mxu1 %v10133_v14 }
 0x484   :  { %3905 = vmatprep.subr.bf16.mxu0 %v10140_v1  ;;  %3946 = vmatprep.subr.bf16.mxu1 %v10145_v22 }
 0x487   :  { %3906 = vmatpush1.bf16.msra.mxu0 %v10155_v9  ;;  %3947 = vmatpush1.bf16.msra.mxu1 %v10160_v11  ;;  %v10196_v11 = vld [vmem:[%s11060_s6 + $0xec] ss:$16 sps:$4 sm:$0xff]   ;;  %v8192_v9 = vpop.eup %8191 }
 0x488   :  { %3907 = vmatprep.subr.bf16.mxu0 %v10167_v25  ;;  %3948 = vmatprep.subr.bf16.mxu1 %v10172_v38  ;;  %v10203_v25 = vld [vmem:[%s11060_s6 + $0xe0] ss:$16 sps:$4 sm:$0xff]   ;;  %v10208_v38 = vld [vmem:[%s11060_s6 + $0xe8] ss:$16 sps:$4 sm:$0xff]  }
 0x48b   :  { %3908 = vmatpush1.bf16.msra.mxu0 %v10179_v27  ;;  %3949 = vmatpush1.bf16.msra.mxu1 %v10184_v54 }
 0x48c   :  { %3909 = vmatprep.subr.bf16.mxu0 %v10191_v56  ;;  %3950 = vmatprep.subr.bf16.mxu1 %v10196_v11 }
 0x48d   :  { %v8194_v22 = vpop.eup %8193 }
 0x48e   :  { %v3386_v1 = vmul.f32 %v8194_v22, %v8192_v9  ;;  %v11181_v22 = vld [vmem:[#allocation43_spill] sm:$0xff] }
 0x48f   :  { %3910 = vmatpush1.bf16.msra.mxu0 %v10203_v25  ;;  %3951 = vmatpush1.bf16.msra.mxu1 %v10208_v38 }
 0x490   :  { %v3390_v54 = vpack.c.bf16 %v3386_v1, %v3386_v1  ;;  %4211 = vmatprep.subr.bf16.mxu0 %v9812_v42  ;;  %4252 = vmatprep.subr.bf16.mxu1 %v9817_v31 }
 0x492   :  { %7113 = vst [vmem:[%s11064_s9 + $0x10] sm:$0xf] %v3390_v54  ;;  %3928 = vmatmul.mubr.bf16.vlgmr.msra.gmra.mrb[68].mxu0 %v3390_v54  ;;  %3969 = vmatmul.mubr.bf16.vlgmr.msra.gmra.mrb[68].mxu1 %v3390_v54 }
 0x493   :  { %4212 = vmatpush1.bf16.msra.mxu0 %v9822_v55  ;;  %4253 = vmatpush1.bf16.msra.mxu1 %v9827_v49  ;;  %v11176_v55 = vld [vmem:[#allocation14_spill] sm:$0xff] }
 0x494   :  { %4213 = vmatprep.subr.bf16.mxu0 %v9836_v47  ;;  %4254 = vmatprep.subr.bf16.mxu1 %v9841_v34  ;;  %v11177_v47 = vld [vmem:[#allocation15_spill] sm:$0xff] }
 0x495   :  { %4243 = vmatprep.mubr.bf16.mxu0 %v11136_v32  ;;  %4284 = vmatprep.mubr.bf16.mxu1 %v11136_v32 }
 0x497   :  { %4214 = vmatpush1.bf16.msra.mxu0 %v9846_v37  ;;  %4255 = vmatpush1.bf16.msra.mxu1 %v9851_v58 }
 0x498   :  { %4215 = vmatprep.subr.bf16.mxu0 %v9860_v7  ;;  %4256 = vmatprep.subr.bf16.mxu1 %v9865_v29  ;;  %v11178_v7 = vld [vmem:[#allocation16_spill] sm:$0xff] }
 0x49b   :  { %4216 = vmatpush1.bf16.msra.mxu0 %v9870_v21  ;;  %4257 = vmatpush1.bf16.msra.mxu1 %v9875_v3  ;;  %v11179_v21 = vld [vmem:[#allocation17_spill] sm:$0xff] }
 0x49c   :  { %4217 = vmatprep.subr.bf16.mxu0 %v9884_v63  ;;  %4258 = vmatprep.subr.bf16.mxu1 %v9889_v61 }
 0x49f   :  { %4218 = vmatpush1.bf16.msra.mxu0 %v9894_v62  ;;  %4259 = vmatpush1.bf16.msra.mxu1 %v9899_v5 }
 0x4a0   :  { %4219 = vmatprep.subr.bf16.mxu0 %v9908_v59  ;;  %4260 = vmatprep.subr.bf16.mxu1 %v9913_v0 }
 0x4a3   :  { %4220 = vmatpush1.bf16.msra.mxu0 %v9918_v46  ;;  %4261 = vmatpush1.bf16.msra.mxu1 %v9923_v60 }
 0x4a4   :  { %4221 = vmatprep.subr.bf16.mxu0 %v9932_v48  ;;  %4262 = vmatprep.subr.bf16.mxu1 %v9937_v10 }
 0x4a7   :  { %4222 = vmatpush1.bf16.msra.mxu0 %v9942_v43  ;;  %4263 = vmatpush1.bf16.msra.mxu1 %v9947_v18 }
 0x4a8   :  { %4223 = vmatprep.subr.bf16.mxu0 %v9956_v51  ;;  %4264 = vmatprep.subr.bf16.mxu1 %v9961_v8 }
 0x4ab   :  { %4224 = vmatpush1.bf16.msra.mxu0 %v9966_v17  ;;  %4265 = vmatpush1.bf16.msra.mxu1 %v9971_v26 }
 0x4ac   :  { %4225 = vmatprep.subr.bf16.mxu0 %v9980_v12  ;;  %4266 = vmatprep.subr.bf16.mxu1 %v9985_v35 }
 0x4af   :  { %4226 = vmatpush1.bf16.msra.mxu0 %v9990_v44  ;;  %4267 = vmatpush1.bf16.msra.mxu1 %v9995_v45 }
 0x4b0   :  { %4509 = vmatprep.subr.bf16.mxu0 %v10004_v33  ;;  %4550 = vmatprep.subr.bf16.mxu1 %v10009_v23  ;;  %v11180_v23 = vld [vmem:[#allocation42_spill] sm:$0xff] }
 0x545   :  { %v3631_v42 = vpop.f32.mrb[64].mxu0  ;;  %v3672_v31 = vpop.f32.mrb[64].mxu1 }
 0x546   :  { %v3632_v49 = vadd.f32 %v3631_v42, %v11176_v55  ;;  %v3673_v34 = vadd.f32 %v3672_v31, %v11177_v47  ;;  %v3633_v37 = vpop.f32.mrb[65].mxu0  ;;  %v3674_v58 = vpop.f32.mrb[65].mxu1  ;;  %v11182_v31 = vld [vmem:[#allocation44_spill] sm:$0xff] }
 0x547   :  { %v3634_v29 = vadd.f32 %v3633_v37, %v11178_v7  ;;  %v3675_v3 = vadd.f32 %v3674_v58, %v11179_v21  ;;  %v3635_v63 = vpop.f32.mrb[66].mxu0  ;;  %v3676_v61 = vpop.f32.mrb[66].mxu1 }
 0x548   :  { %v7146_v62 = vmul.f32 -1.442695, %v3632_v49  ;;  %v3636_v5 = vpop.f32.mrb[67].mxu0  ;;  %v3677_v59 = vpop.f32.mrb[67].mxu1  ;;  %v7148_v46 = vmul.f32 -1.442695, %v3673_v34 }
 0x549   :  { %v7147_v0 = vmul.f32 -1.442695, %v3634_v29  ;;  %v11183_v49 = vld [vmem:[#allocation45_spill] sm:$0xff] }
 0x54a   :  { %8195 = vpow2.f32 %v7146_v62 }
 0x54b   :  { %8197 = vpow2.f32 %v7147_v0 }
 0x54c   :  { %8199 = vtanh.f32 %v3675_v3 }
 0x54d   :  { %8201 = vpow2.f32 %v7148_v46 }
 0x554   :  { %v8196_v60 = vpop.eup %8195 }
 0x555   :  { %v3688_v48 = vadd.f32 1.0, %v8196_v60  ;;  %v8198_v10 = vpop.eup %8197 }
 0x556   :  { %v3689_v43 = vadd.f32 1.0, %v8198_v10  ;;  %v8200_v18 = vpop.eup %8199  ;;  %v10351_v10 = vld [vmem:[%s11059_s3 + $0x28] ss:$16 sps:$4 sm:$0xff]  }
 0x557   :  { %8203 = vrcp.f32 %v3688_v48  ;;  %v8202_v51 = vpop.eup %8201  ;;  %v10346_v48 = vld [vmem:[%s11059_s3 + $0x20] ss:$16 sps:$4 sm:$0xff]  }
 0x558   :  { %8205 = vrcp.f32 %v3689_v43  ;;  %v3690_v12 = vadd.f32 1.0, %v8202_v51  ;;  %v10360_v43 = vld [vmem:[%s11059_s3 + $0x44] ss:$16 sps:$4 sm:$0xff]   ;;  %v10370_v51 = vld [vmem:[%s11059_s3 + $0x40] ss:$16 sps:$4 sm:$0xff]  }
 0x55a   :  { %8207 = vrcp.f32 %v3690_v12  ;;  %v10394_v12 = vld [vmem:[%s11059_s3 + $0x60] ss:$16 sps:$4 sm:$0xff]  }
 0x561   :  { %v8204_v8 = vpop.eup %8203 }
 0x562   :  { %v3699_v17 = vmul.f32 %v8204_v8, %v8200_v18  ;;  %v8206_v26 = vpop.eup %8205  ;;  %v10365_v18 = vld [vmem:[%s11059_s3 + $0x4c] ss:$16 sps:$4 sm:$0xff]   ;;  %v10375_v8 = vld [vmem:[%s11059_s3 + $0x48] ss:$16 sps:$4 sm:$0xff]  }
 0x563   :  { %v3698_v35 = vmul.f32 %v8206_v26, %v10018_v6  ;;  %v10389_v26 = vld [vmem:[%s11059_s3 + $0x6c] ss:$16 sps:$4 sm:$0xff]  }
 0x564   :  { %v8208_v21 = vpop.eup %8207 }
 0x565   :  { %v3929_v44 = vpop.f32.mrb[68].mxu0  ;;  %v3970_v45 = vpop.f32.mrb[68].mxu1  ;;  %v10258_v33 = vadd.f32 %v3699_v17, %v3698_v35  ;;  %v10384_v17 = vld [vmem:[%s11059_s3 + $0x64] ss:$16 sps:$4 sm:$0xff]   ;;  %v10399_v35 = vld [vmem:[%s11059_s3 + $0x68] ss:$16 sps:$4 sm:$0xff]  }
 0x566   :  { %v3930_v1 = vadd.f32 %v3929_v44, %v11180_v23  ;;  %v3971_v9 = vadd.f32 %v3970_v45, %v11181_v22  ;;  %v3931_v54 = vpop.f32.mrb[69].mxu0  ;;  %v3972_v42 = vpop.f32.mrb[69].mxu1  ;;  %v10408_v44 = vld [vmem:[%s11059_s3 + $0x84] ss:$16 sps:$4 sm:$0xff]   ;;  %v10413_v45 = vld [vmem:[%s11059_s3 + $0x8c] ss:$16 sps:$4 sm:$0xff]  }
 0x567   :  { %v3932_v55 = vadd.f32 %v3931_v54, %v11182_v31  ;;  %v3973_v47 = vadd.f32 %v3972_v42, %v11183_v49  ;;  %v3933_v34 = vpop.f32.mrb[70].mxu0  ;;  %v3974_v37 = vpop.f32.mrb[70].mxu1  ;;  %8209 = vtanh.f32 %v10258_v33  ;;  %v10418_v23 = vld [vmem:[%s11059_s3 + $0x80] ss:$16 sps:$4 sm:$0xff]   ;;  %v10432_v22 = vld [vmem:[%s11059_s3 + $0xa4] ss:$16 sps:$4 sm:$0xff]  }
 0x568   :  { %v7181_v6 = vmul.f32 -1.442695, %v3930_v1  ;;  %v3934_v58 = vpop.f32.mrb[71].mxu0  ;;  %v3975_v7 = vpop.f32.mrb[71].mxu1  ;;  %v7183_v63 = vmul.f32 -1.442695, %v3971_v9 }
 0x569   :  { %v7182_v29 = vmul.f32 -1.442695, %v3932_v55  ;;  %v10423_v1 = vld [vmem:[%s11059_s3 + $0x88] ss:$16 sps:$4 sm:$0xff]   ;;  %v10437_v9 = vld [vmem:[%s11059_s3 + $0xac] ss:$16 sps:$4 sm:$0xff]  }
 0x56a   :  { %8211 = vpow2.f32 %v7181_v6  ;;  %v10442_v54 = vld [vmem:[%s11059_s3 + $0xa0] ss:$16 sps:$4 sm:$0xff]   ;;  %v10447_v42 = vld [vmem:[%s11059_s3 + $0xa8] ss:$16 sps:$4 sm:$0xff]   ;;  %v10456_v31 = vld [vmem:[%s11059_s3 + $0xc4] ss:$16 sps:$4 sm:$0xff]  }
 0x56b   :  { %8213 = vpow2.f32 %v7182_v29  ;;  %v10461_v55 = vld [vmem:[%s11059_s3 + $0xcc] ss:$16 sps:$4 sm:$0xff]   ;;  %v10466_v49 = vld [vmem:[%s11059_s3 + $0xc0] ss:$16 sps:$4 sm:$0xff]   ;;  %v10480_v34 = vld [vmem:[%s11059_s3 + $0xe4] ss:$16 sps:$4 sm:$0xff]  }
 0x56c   :  { %8215 = vtanh.f32 %v3973_v47  ;;  %v10471_v47 = vld [vmem:[%s11059_s3 + $0xc8] ss:$16 sps:$4 sm:$0xff]   ;;  %v10485_v37 = vld [vmem:[%s11059_s3 + $0xec] ss:$16 sps:$4 sm:$0xff]   ;;  %v10490_v6 = vld [vmem:[%s11059_s3 + $0xe0] ss:$16 sps:$4 sm:$0xff]  }
 0x56d   :  { %8217 = vpow2.f32 %v7183_v63  ;;  %v10495_v58 = vld [vmem:[%s11059_s3 + $0xe8] ss:$16 sps:$4 sm:$0xff]   ;;  %v10504_v7 = vld [vmem:[%s11060_s6 + $0x4] ss:$16 sps:$4 sm:$0xff]   ;;  %v10509_v29 = vld [vmem:[%s11060_s6 + $0xc] ss:$16 sps:$4 sm:$0xff]  }
 0x56e   :  { %v11191_v63 = vld [vmem:[#allocation18_spill] sm:$0xff] }
 0x571   :  { %v8210_v3 = vpop.eup %8209 }
 0x572   :  { %v3702_v61 = vmul.f32 %v8210_v3, %v8208_v21 }
 0x574   :  { %v8212_v62 = vpop.eup %8211  ;;  %v4001_v59 = vpack.c.bf16 %v3702_v61, %v3702_v61 }
 0x575   :  { %v3986_v5 = vadd.f32 1.0, %v8212_v62  ;;  %v8214_v0 = vpop.eup %8213  ;;  %v11192_v62 = vld [vmem:[#allocation19_spill] sm:$0xff] }
 0x576   :  { %v3987_v46 = vadd.f32 1.0, %v8214_v0  ;;  %7184 = vst [vmem:[%s11063_s8 + $0x10] sm:$0xf] %v4001_v59  ;;  %4244 = vmatmul.mubr.bf16.vlgmr.msra.gmra.mrb[72].mxu0 %v4001_v59  ;;  %4285 = vmatmul.mubr.bf16.vlgmr.msra.gmra.mrb[72].mxu1 %v4001_v59 }
 0x577   :  { %8219 = vrcp.f32 %v3986_v5  ;;  %4510 = vmatpush1.bf16.msra.mxu0 %v10028_v24  ;;  %4551 = vmatpush1.bf16.msra.mxu1 %v10033_v15  ;;  %v8216_v24 = vpop.eup %8215 }
 0x578   :  { %8221 = vrcp.f32 %v3987_v46  ;;  %4511 = vmatprep.subr.bf16.mxu0 %v10038_v16  ;;  %4552 = vmatprep.subr.bf16.mxu1 %v10043_v20  ;;  %v8218_v60 = vpop.eup %8217  ;;  %v11193_v46 = vld [vmem:[#allocation20_spill] sm:$0xff] }
 0x579   :  { %4541 = vmatprep.mubr.bf16.mxu0 %v11136_v32  ;;  %4582 = vmatprep.mubr.bf16.mxu1 %v11136_v32 }
 0x57b   :  { %4512 = vmatpush1.bf16.msra.mxu0 %v10053_v52  ;;  %4553 = vmatpush1.bf16.msra.mxu1 %v10058_v36  ;;  %v3988_v52 = vadd.f32 1.0, %v8218_v60  ;;  %v11194_v60 = vld [vmem:[#allocation21_spill] sm:$0xff] }
 0x57c   :  { %4513 = vmatprep.subr.bf16.mxu0 %v10065_v53  ;;  %4554 = vmatprep.subr.bf16.mxu1 %v10070_v57  ;;  %v11184_v57 = vld [vmem:[#allocation8_spill] sm:$0xff] }
 0x57d   :  { %8223 = vrcp.f32 %v3988_v52 }
 0x57f   :  { %4514 = vmatpush1.bf16.msra.mxu0 %v10079_v41  ;;  %4555 = vmatpush1.bf16.msra.mxu1 %v10084_v50  ;;  %v11185_v41 = vld [vmem:[#allocation9_spill] sm:$0xff]  ;;  %v11186_v50 = vld [vmem:[#allocation50_spill] sm:$0xff] }
 0x580   :  { %4515 = vmatprep.subr.bf16.mxu0 %v10091_v39  ;;  %4556 = vmatprep.subr.bf16.mxu1 %v10096_v13  ;;  %v11187_v39 = vld [vmem:[#allocation51_spill] sm:$0xff]  ;;  %v11188_v13 = vld [vmem:[#allocation52_spill] sm:$0xff] }
 0x581   :  { %v8220_v15 = vpop.eup %8219 }
 0x582   :  { %v3997_v16 = vmul.f32 %v8220_v15, %v8216_v24  ;;  %v8222_v20 = vpop.eup %8221 }
 0x583   :  { %v3996_v36 = vmul.f32 %v8222_v20, %v10147_v40  ;;  %4516 = vmatpush1.bf16.msra.mxu0 %v10103_v2  ;;  %4557 = vmatpush1.bf16.msra.mxu1 %v10108_v4  ;;  %v11189_v2 = vld [vmem:[#allocation53_spill] sm:$0xff]  ;;  %v11190_v4 = vld [vmem:[#allocation54_spill] sm:$0xff] }
 0x584   :  { %4517 = vmatprep.subr.bf16.mxu0 %v10115_v28  ;;  %4558 = vmatprep.subr.bf16.mxu1 %v10120_v30  ;;  %v10312_v40 = vld [vmem:[%s11059_s3 + $0x4] ss:$16 sps:$4 sm:$0xff]  }
 0x585   :  { %v10287_v53 = vadd.f32 %v3997_v16, %v3996_v36 }
 0x587   :  { %8225 = vtanh.f32 %v10287_v53  ;;  %4518 = vmatpush1.bf16.msra.mxu0 %v10128_v19  ;;  %4559 = vmatpush1.bf16.msra.mxu1 %v10133_v14  ;;  %v8224_v28 = vpop.eup %8223 }
 0x588   :  { %4519 = vmatprep.subr.bf16.mxu0 %v11184_v57  ;;  %4560 = vmatprep.subr.bf16.mxu1 %v11185_v41 }
 0x58b   :  { %4520 = vmatpush1.bf16.msra.mxu0 %v11186_v50  ;;  %4561 = vmatpush1.bf16.msra.mxu1 %v11187_v39 }
 0x58c   :  { %4521 = vmatprep.subr.bf16.mxu0 %v11188_v13  ;;  %4562 = vmatprep.subr.bf16.mxu1 %v11189_v2 }
 0x58f   :  { %4522 = vmatpush1.bf16.msra.mxu0 %v10179_v27  ;;  %4563 = vmatpush1.bf16.msra.mxu1 %v11190_v4  ;;  %v10336_v27 = vld [vmem:[%s11059_s3 + $0x24] ss:$16 sps:$4 sm:$0xff]  }
 0x590   :  { %4523 = vmatprep.subr.bf16.mxu0 %v10191_v56  ;;  %4564 = vmatprep.subr.bf16.mxu1 %v10196_v11  ;;  %v10317_v11 = vld [vmem:[%s11059_s3 + $0xc] ss:$16 sps:$4 sm:$0xff]  }
 0x591   :  { %v8226_v30 = vpop.eup %8225  ;;  %v10341_v56 = vld [vmem:[%s11059_s3 + $0x2c] ss:$16 sps:$4 sm:$0xff]  }
 0x592   :  { %v4000_v19 = vmul.f32 %v8226_v30, %v8224_v28 }
 0x593   :  { %4524 = vmatpush1.bf16.msra.mxu0 %v10203_v25  ;;  %4565 = vmatpush1.bf16.msra.mxu1 %v10208_v38  ;;  %v10322_v25 = vld [vmem:[%s11059_s3] ss:$16 sps:$4 sm:$0xff]   ;;  %v10327_v38 = vld [vmem:[%s11059_s3 + $0x8] ss:$16 sps:$4 sm:$0xff]  }
 0x594   :  { %v4004_v14 = vpack.c.bf16 %v4000_v19, %v4000_v19  ;;  %4825 = vmatprep.subr.bf16.mxu0 %v10312_v40  ;;  %4866 = vmatprep.subr.bf16.mxu1 %v10317_v11 }
 0x596   :  { %7185 = vst [vmem:[%s11064_s9 + $0xc] sm:$0xf] %v4004_v14  ;;  %4542 = vmatmul.mubr.bf16.vlgmr.msra.gmra.mrb[76].mxu0 %v4004_v14  ;;  %4583 = vmatmul.mubr.bf16.vlgmr.msra.gmra.mrb[76].mxu1 %v4004_v14 }
 0x597   :  { %4857 = vmatprep.mubr.bf16.mxu0 %v11136_v32  ;;  %4898 = vmatprep.mubr.bf16.mxu1 %v11136_v32 }
 0x598   :  { %4826 = vmatpush1.bf16.msra.mxu0 %v10322_v25  ;;  %4867 = vmatpush1.bf16.msra.mxu1 %v10327_v38 }
 0x599   :  { %4827 = vmatprep.subr.bf16.mxu0 %v10336_v27  ;;  %4868 = vmatprep.subr.bf16.mxu1 %v10341_v56 }
 0x59c   :  { %4828 = vmatpush1.bf16.msra.mxu0 %v10346_v48  ;;  %4869 = vmatpush1.bf16.msra.mxu1 %v10351_v10 }
 0x59d   :  { %4829 = vmatprep.subr.bf16.mxu0 %v10360_v43  ;;  %4870 = vmatprep.subr.bf16.mxu1 %v10365_v18 }
 0x5a0   :  { %4830 = vmatpush1.bf16.msra.mxu0 %v10370_v51  ;;  %4871 = vmatpush1.bf16.msra.mxu1 %v10375_v8 }
 0x5a1   :  { %4831 = vmatprep.subr.bf16.mxu0 %v10384_v17  ;;  %4872 = vmatprep.subr.bf16.mxu1 %v10389_v26 }
 0x5a4   :  { %4832 = vmatpush1.bf16.msra.mxu0 %v10394_v12  ;;  %4873 = vmatpush1.bf16.msra.mxu1 %v10399_v35 }
 0x5a5   :  { %4833 = vmatprep.subr.bf16.mxu0 %v10408_v44  ;;  %4874 = vmatprep.subr.bf16.mxu1 %v10413_v45 }
 0x5a8   :  { %4834 = vmatpush1.bf16.msra.mxu0 %v10418_v23  ;;  %4875 = vmatpush1.bf16.msra.mxu1 %v10423_v1 }
 0x5a9   :  { %4835 = vmatprep.subr.bf16.mxu0 %v10432_v22  ;;  %4876 = vmatprep.subr.bf16.mxu1 %v10437_v9 }
 0x5ac   :  { %4836 = vmatpush1.bf16.msra.mxu0 %v10442_v54  ;;  %4877 = vmatpush1.bf16.msra.mxu1 %v10447_v42 }
 0x5ad   :  { %4837 = vmatprep.subr.bf16.mxu0 %v10456_v31  ;;  %4878 = vmatprep.subr.bf16.mxu1 %v10461_v55 }
 0x5b0   :  { %4838 = vmatpush1.bf16.msra.mxu0 %v10466_v49  ;;  %4879 = vmatpush1.bf16.msra.mxu1 %v10471_v47 }
 0x5b1   :  { %4839 = vmatprep.subr.bf16.mxu0 %v10480_v34  ;;  %4880 = vmatprep.subr.bf16.mxu1 %v10485_v37 }
 0x5b4   :  { %4840 = vmatpush1.bf16.msra.mxu0 %v10490_v6  ;;  %4881 = vmatpush1.bf16.msra.mxu1 %v10495_v58 }
 0x5b5   :  { %5123 = vmatprep.subr.bf16.mxu0 %v10504_v7  ;;  %5164 = vmatprep.subr.bf16.mxu1 %v10509_v29 }
 0x649   :  { %v4245_v21 = vpop.f32.mrb[72].mxu0  ;;  %v4286_v3 = vpop.f32.mrb[72].mxu1 }
 0x64a   :  { %v4246_v61 = vadd.f32 %v4245_v21, %v11191_v63  ;;  %v4287_v5 = vadd.f32 %v4286_v3, %v11192_v62  ;;  %v4247_v59 = vpop.f32.mrb[73].mxu0  ;;  %v4288_v0 = vpop.f32.mrb[73].mxu1 }
 0x64b   :  { %v4248_v24 = vadd.f32 %v4247_v59, %v11193_v46  ;;  %v4289_v15 = vadd.f32 %v4288_v0, %v11194_v60  ;;  %v4249_v16 = vpop.f32.mrb[74].mxu0  ;;  %v4290_v20 = vpop.f32.mrb[74].mxu1  ;;  %v11196_v46 = vld [vmem:[#allocation39_spill] sm:$0xff] }
 0x64c   :  { %v7218_v52 = vmul.f32 -1.442695, %v4246_v61  ;;  %v4250_v36 = vpop.f32.mrb[75].mxu0  ;;  %v4291_v57 = vpop.f32.mrb[75].mxu1  ;;  %v7220_v50 = vmul.f32 -1.442695, %v4287_v5 }
 0x64d   :  { %v7219_v41 = vmul.f32 -1.442695, %v4248_v24  ;;  %v11195_v5 = vld [vmem:[#allocation38_spill] sm:$0xff]  ;;  %v11197_v16 = vld [vmem:[#allocation40_spill] sm:$0xff] }
 0x64e   :  { %8227 = vpow2.f32 %v7218_v52  ;;  %v11198_v52 = vld [vmem:[#allocation41_spill] sm:$0xff] }
 0x64f   :  { %8229 = vpow2.f32 %v7219_v41 }
 0x650   :  { %8231 = vtanh.f32 %v4289_v15 }
 0x651   :  { %8233 = vpow2.f32 %v7220_v50 }
 0x658   :  { %v8228_v39 = vpop.eup %8227 }
 0x659   :  { %v4302_v13 = vadd.f32 1.0, %v8228_v39  ;;  %v8230_v2 = vpop.eup %8229 }
 0x65a   :  { %v4303_v4 = vadd.f32 1.0, %v8230_v2  ;;  %v8232_v28 = vpop.eup %8231 }
 0x65b   :  { %8235 = vrcp.f32 %v4302_v13  ;;  %v8234_v30 = vpop.eup %8233 }
 0x65c   :  { %8237 = vrcp.f32 %v4303_v4  ;;  %v4304_v3 = vadd.f32 1.0, %v8234_v30 }
 0x65e   :  { %8239 = vrcp.f32 %v4304_v3 }
 0x665   :  { %v8236_v19 = vpop.eup %8235 }
 0x666   :  { %v4313_v14 = vmul.f32 %v8236_v19, %v8232_v28  ;;  %v8238_v21 = vpop.eup %8237 }
 0x667   :  { %v4312_v63 = vmul.f32 %v8238_v21, %v10258_v33  ;;  %v10533_v21 = vld [vmem:[%s11060_s6 + $0x8] ss:$16 sps:$4 sm:$0xff]  }
 0x668   :  { %v8240_v2 = vpop.eup %8239 }
 0x669   :  { %v4543_v61 = vpop.f32.mrb[76].mxu0  ;;  %v4584_v62 = vpop.f32.mrb[76].mxu1  ;;  %v10518_v59 = vadd.f32 %v4313_v14, %v4312_v63  ;;  %v10528_v14 = vld [vmem:[%s11060_s6] ss:$16 sps:$4 sm:$0xff]  }
 0x66a   :  { %v4544_v0 = vadd.f32 %v4543_v61, %v11195_v5  ;;  %v4585_v24 = vadd.f32 %v4584_v62, %v11196_v46  ;;  %v4545_v60 = vpop.f32.mrb[77].mxu0  ;;  %v4586_v15 = vpop.f32.mrb[77].mxu1  ;;  %v10538_v61 = vld [vmem:[%s11060_s6 + $0x24] ss:$16 sps:$4 sm:$0xff]   ;;  %v10543_v62 = vld [vmem:[%s11060_s6 + $0x2c] ss:$16 sps:$4 sm:$0xff]  }
 0x66b   :  { %v4546_v20 = vadd.f32 %v4545_v60, %v11197_v16  ;;  %v4587_v36 = vadd.f32 %v4586_v15, %v11198_v52  ;;  %v4547_v57 = vpop.f32.mrb[78].mxu0  ;;  %v4588_v41 = vpop.f32.mrb[78].mxu1  ;;  %8241 = vtanh.f32 %v10518_v59  ;;  %v10553_v46 = vld [vmem:[%s11060_s6 + $0x20] ss:$16 sps:$4 sm:$0xff]   ;;  %v10565_v60 = vld [vmem:[%s11060_s6 + $0x44] ss:$16 sps:$4 sm:$0xff]  }
 0x66c   :  { %v7253_v33 = vmul.f32 -1.442695, %v4544_v0  ;;  %v4548_v50 = vpop.f32.mrb[79].mxu0  ;;  %v4589_v39 = vpop.f32.mrb[79].mxu1  ;;  %v7255_v28 = vmul.f32 -1.442695, %v4585_v24 }
 0x66d   :  { %v7254_v13 = vmul.f32 -1.442695, %v4546_v20  ;;  %v10558_v24 = vld [vmem:[%s11060_s6 + $0x28] ss:$16 sps:$4 sm:$0xff]   ;;  %v10570_v15 = vld [vmem:[%s11060_s6 + $0x4c] ss:$16 sps:$4 sm:$0xff]  }
 0x66e   :  { %8243 = vpow2.f32 %v7253_v33  ;;  %v10579_v16 = vld [vmem:[%s11060_s6 + $0x40] ss:$16 sps:$4 sm:$0xff]   ;;  %v10584_v20 = vld [vmem:[%s11060_s6 + $0x48] ss:$16 sps:$4 sm:$0xff]   ;;  %v10591_v52 = vld [vmem:[%s11060_s6 + $0x64] ss:$16 sps:$4 sm:$0xff]  }
 0x66f   :  { %8245 = vpow2.f32 %v7254_v13  ;;  %v10603_v33 = vld [vmem:[%s11060_s6 + $0x60] ss:$16 sps:$4 sm:$0xff]   ;;  %v10608_v50 = vld [vmem:[%s11060_s6 + $0x68] ss:$16 sps:$4 sm:$0xff]   ;;  %v10615_v13 = vld [vmem:[%s11060_s6 + $0x84] ss:$16 sps:$4 sm:$0xff]  }
 0x670   :  { %8247 = vtanh.f32 %v4587_v36  ;;  %v10596_v36 = vld [vmem:[%s11060_s6 + $0x6c] ss:$16 sps:$4 sm:$0xff]  }
 0x671   :  { %8249 = vpow2.f32 %v7255_v28 }
 0x675   :  { %v8242_v4 = vpop.eup %8241 }
 0x676   :  { %v4316_v30 = vmul.f32 %v8242_v4, %v8240_v2  ;;  %v10620_v2 = vld [vmem:[%s11060_s6 + $0x8c] ss:$16 sps:$4 sm:$0xff]  }
 0x678   :  { %v8244_v19 = vpop.eup %8243  ;;  %v4615_v63 = vpack.c.bf16 %v4316_v30, %v4316_v30 }
 0x679   :  { %v4600_v3 = vadd.f32 1.0, %v8244_v19  ;;  %v8246_v5 = vpop.eup %8245 }
 0x67a   :  { %v4601_v0 = vadd.f32 1.0, %v8246_v5  ;;  %7256 = vst [vmem:[%s11063_s8 + $0x14] sm:$0xf] %v4615_v63  ;;  %4858 = vmatmul.mubr.bf16.vlgmr.msra.gmra.mrb[80].mxu0 %v4615_v63  ;;  %4899 = vmatmul.mubr.bf16.vlgmr.msra.gmra.mrb[80].mxu1 %v4615_v63  ;;  %v8248_v57 = vpop.eup %8247  ;;  %v10633_v63 = vld [vmem:[%s11060_s6 + $0x88] ss:$16 sps:$4 sm:$0xff]  }
 0x67b   :  { %8251 = vrcp.f32 %v4600_v3  ;;  %5124 = vmatpush1.bf16.msra.mxu0 %v10528_v14  ;;  %5165 = vmatpush1.bf16.msra.mxu1 %v10533_v21  ;;  %v8250_v41 = vpop.eup %8249  ;;  %v10628_v3 = vld [vmem:[%s11060_s6 + $0x80] ss:$16 sps:$4 sm:$0xff]   ;;  %v10645_v5 = vld [vmem:[%s11060_s6 + $0xac] ss:$16 sps:$4 sm:$0xff]  }
 0x67c   :  { %8253 = vrcp.f32 %v4601_v0  ;;  %5125 = vmatprep.subr.bf16.mxu0 %v10538_v61  ;;  %5166 = vmatprep.subr.bf16.mxu1 %v10543_v62  ;;  %v4602_v30 = vadd.f32 1.0, %v8250_v41  ;;  %11200 = vst [vmem:[#allocation56_spill] sm:$0xff] %v10645_v5  ;;  %v10660_v41 = vld [vmem:[%s11060_s6 + $0xa8] ss:$16 sps:$4 sm:$0xff]  }
 0x67d   :  { %5155 = vmatprep.mubr.bf16.mxu0 %v11136_v32  ;;  %5196 = vmatprep.mubr.bf16.mxu1 %v11136_v32  ;;  %11202 = vst [vmem:[#allocation58_spill] sm:$0xff] %v10660_v41 }
 0x67e   :  { %8255 = vrcp.f32 %v4602_v30  ;;  %v10684_v30 = vld [vmem:[%s11060_s6 + $0xc8] ss:$16 sps:$4 sm:$0xff]  }
 0x67f   :  { %5126 = vmatpush1.bf16.msra.mxu0 %v10553_v46  ;;  %5167 = vmatpush1.bf16.msra.mxu1 %v10558_v24  ;;  %11205 = vst [vmem:[#allocation61_spill] sm:$0xff] %v10684_v30 }
 0x680   :  { %5127 = vmatprep.subr.bf16.mxu0 %v10565_v60  ;;  %5168 = vmatprep.subr.bf16.mxu1 %v10570_v15 }
 0x683   :  { %5128 = vmatpush1.bf16.msra.mxu0 %v10579_v16  ;;  %5169 = vmatpush1.bf16.msra.mxu1 %v10584_v20 }
 0x684   :  { %5129 = vmatprep.subr.bf16.mxu0 %v10591_v52  ;;  %5170 = vmatprep.subr.bf16.mxu1 %v10596_v36 }
 0x685   :  { %v8252_v39 = vpop.eup %8251 }
 0x686   :  { %v4611_v4 = vmul.f32 %v8252_v39, %v8248_v57  ;;  %v8254_v28 = vpop.eup %8253  ;;  %v10655_v57 = vld [vmem:[%s11060_s6 + $0xa0] ss:$16 sps:$4 sm:$0xff]   ;;  %v10667_v39 = vld [vmem:[%s11060_s6 + $0xc4] ss:$16 sps:$4 sm:$0xff]  }
 0x687   :  { %v4610_v19 = vmul.f32 %v8254_v28, %v10287_v53  ;;  %5130 = vmatpush1.bf16.msra.mxu0 %v10603_v33  ;;  %5171 = vmatpush1.bf16.msra.mxu1 %v10608_v50  ;;  %v10640_v53 = vld [vmem:[%s11060_s6 + $0xa4] ss:$16 sps:$4 sm:$0xff]   ;;  %11201 = vst [vmem:[#allocation57_spill] sm:$0xff] %v10655_v57  ;;  %11203 = vst [vmem:[#allocation59_spill] sm:$0xff] %v10667_v39  ;;  %v10679_v28 = vld [vmem:[%s11060_s6 + $0xc0] ss:$16 sps:$4 sm:$0xff]  }
 0x688   :  { %5131 = vmatprep.subr.bf16.mxu0 %v10615_v13  ;;  %5172 = vmatprep.subr.bf16.mxu1 %v10620_v2  ;;  %11199 = vst [vmem:[#allocation55_spill] sm:$0xff] %v10640_v53 }
 0x689   :  { %v10647_v0 = vadd.f32 %v4611_v4, %v4610_v19  ;;  %v10672_v4 = vld [vmem:[%s11060_s6 + $0xcc] ss:$16 sps:$4 sm:$0xff]   ;;  %v10691_v19 = vld [vmem:[%s11060_s6 + $0xe4] ss:$16 sps:$4 sm:$0xff]  }
 0x68a   :  { %11204 = vst [vmem:[#allocation60_spill] sm:$0xff] %v10672_v4 }
 0x68b   :  { %8257 = vtanh.f32 %v10647_v0  ;;  %5132 = vmatpush1.bf16.msra.mxu0 %v10628_v3  ;;  %5173 = vmatpush1.bf16.msra.mxu1 %v10633_v63 }
 0x68c   :  { %5133 = vmatprep.subr.bf16.mxu0 %v10640_v53  ;;  %5174 = vmatprep.subr.bf16.mxu1 %v10645_v5 }
 0x68f   :  { %5134 = vmatpush1.bf16.msra.mxu0 %v10655_v57  ;;  %5175 = vmatpush1.bf16.msra.mxu1 %v10660_v41  ;;  %v10696_v41 = vld [vmem:[%s11060_s6 + $0xec] ss:$16 sps:$4 sm:$0xff]   ;;  %v8256_v57 = vpop.eup %8255 }
 0x690   :  { %5135 = vmatprep.subr.bf16.mxu0 %v10667_v39  ;;  %5176 = vmatprep.subr.bf16.mxu1 %v10672_v4  ;;  %v10703_v39 = vld [vmem:[%s11060_s6 + $0xe0] ss:$16 sps:$4 sm:$0xff]   ;;  %v10708_v4 = vld [vmem:[%s11060_s6 + $0xe8] ss:$16 sps:$4 sm:$0xff]  }
 0x693   :  { %5136 = vmatpush1.bf16.msra.mxu0 %v10679_v28  ;;  %5177 = vmatpush1.bf16.msra.mxu1 %v10684_v30 }
 0x694   :  { %5137 = vmatprep.subr.bf16.mxu0 %v10691_v19  ;;  %5178 = vmatprep.subr.bf16.mxu1 %v10696_v41 }
 0x695   :  { %v8258_v5 = vpop.eup %8257 }
 0x696   :  { %v4614_v53 = vmul.f32 %v8258_v5, %v8256_v57  ;;  %v11211_v5 = vld [vmem:[#allocation35_spill] sm:$0xff] }
 0x697   :  { %5138 = vmatpush1.bf16.msra.mxu0 %v10703_v39  ;;  %5179 = vmatpush1.bf16.msra.mxu1 %v10708_v4 }
 0x698   :  { %v4618_v30 = vpack.c.bf16 %v4614_v53, %v4614_v53  ;;  %5439 = vmatprep.subr.bf16.mxu0 %v10312_v40  ;;  %5480 = vmatprep.subr.bf16.mxu1 %v10317_v11 }
 0x69a   :  { %7257 = vst [vmem:[%s11064_s9 + $0x8] sm:$0xf] %v4618_v30  ;;  %5156 = vmatmul.mubr.bf16.vlgmr.msra.gmra.mrb[84].mxu0 %v4618_v30  ;;  %5197 = vmatmul.mubr.bf16.vlgmr.msra.gmra.mrb[84].mxu1 %v4618_v30 }
 0x69b   :  { %5440 = vmatpush1.bf16.msra.mxu0 %v10322_v25  ;;  %5481 = vmatpush1.bf16.msra.mxu1 %v10327_v38  ;;  %v11206_v25 = vld [vmem:[#allocation22_spill] sm:$0xff] }
 0x69c   :  { %5441 = vmatprep.subr.bf16.mxu0 %v10336_v27  ;;  %5482 = vmatprep.subr.bf16.mxu1 %v10341_v56  ;;  %v11207_v27 = vld [vmem:[#allocation23_spill] sm:$0xff] }
 0x69d   :  { %5471 = vmatprep.mubr.bf16.mxu0 %v11136_v32  ;;  %5512 = vmatprep.mubr.bf16.mxu1 %v11136_v32 }
 0x69f   :  { %5442 = vmatpush1.bf16.msra.mxu0 %v10346_v48  ;;  %5483 = vmatpush1.bf16.msra.mxu1 %v10351_v10 }
 0x6a0   :  { %5443 = vmatprep.subr.bf16.mxu0 %v10360_v43  ;;  %5484 = vmatprep.subr.bf16.mxu1 %v10365_v18  ;;  %v11208_v43 = vld [vmem:[#allocation24_spill] sm:$0xff] }
 0x6a3   :  { %5444 = vmatpush1.bf16.msra.mxu0 %v10370_v51  ;;  %5485 = vmatpush1.bf16.msra.mxu1 %v10375_v8  ;;  %v11209_v51 = vld [vmem:[#allocation25_spill] sm:$0xff] }
 0x6a4   :  { %5445 = vmatprep.subr.bf16.mxu0 %v10384_v17  ;;  %5486 = vmatprep.subr.bf16.mxu1 %v10389_v26 }
 0x6a7   :  { %5446 = vmatpush1.bf16.msra.mxu0 %v10394_v12  ;;  %5487 = vmatpush1.bf16.msra.mxu1 %v10399_v35 }
 0x6a8   :  { %5447 = vmatprep.subr.bf16.mxu0 %v10408_v44  ;;  %5488 = vmatprep.subr.bf16.mxu1 %v10413_v45 }
 0x6ab   :  { %5448 = vmatpush1.bf16.msra.mxu0 %v10418_v23  ;;  %5489 = vmatpush1.bf16.msra.mxu1 %v10423_v1 }
 0x6ac   :  { %5449 = vmatprep.subr.bf16.mxu0 %v10432_v22  ;;  %5490 = vmatprep.subr.bf16.mxu1 %v10437_v9 }
 0x6af   :  { %5450 = vmatpush1.bf16.msra.mxu0 %v10442_v54  ;;  %5491 = vmatpush1.bf16.msra.mxu1 %v10447_v42 }
 0x6b0   :  { %5451 = vmatprep.subr.bf16.mxu0 %v10456_v31  ;;  %5492 = vmatprep.subr.bf16.mxu1 %v10461_v55 }
 0x6b3   :  { %5452 = vmatpush1.bf16.msra.mxu0 %v10466_v49  ;;  %5493 = vmatpush1.bf16.msra.mxu1 %v10471_v47 }
 0x6b4   :  { %5453 = vmatprep.subr.bf16.mxu0 %v10480_v34  ;;  %5494 = vmatprep.subr.bf16.mxu1 %v10485_v37 }
 0x6b7   :  { %5454 = vmatpush1.bf16.msra.mxu0 %v10490_v6  ;;  %5495 = vmatpush1.bf16.msra.mxu1 %v10495_v58 }
 0x6b8   :  { %5737 = vmatprep.subr.bf16.mxu0 %v10504_v7  ;;  %5778 = vmatprep.subr.bf16.mxu1 %v10509_v29  ;;  %v11210_v29 = vld [vmem:[#allocation34_spill] sm:$0xff] }
 0x74d   :  { %v4859_v40 = vpop.f32.mrb[80].mxu0  ;;  %v4900_v11 = vpop.f32.mrb[80].mxu1 }
 0x74e   :  { %v4860_v38 = vadd.f32 %v4859_v40, %v11206_v25  ;;  %v4901_v56 = vadd.f32 %v4900_v11, %v11207_v27  ;;  %v4861_v48 = vpop.f32.mrb[81].mxu0  ;;  %v4902_v10 = vpop.f32.mrb[81].mxu1  ;;  %v11212_v11 = vld [vmem:[#allocation36_spill] sm:$0xff] }
 0x74f   :  { %v4862_v18 = vadd.f32 %v4861_v48, %v11208_v43  ;;  %v4903_v8 = vadd.f32 %v4902_v10, %v11209_v51  ;;  %v4863_v17 = vpop.f32.mrb[82].mxu0  ;;  %v4904_v26 = vpop.f32.mrb[82].mxu1 }
 0x750   :  { %v7290_v12 = vmul.f32 -1.442695, %v4860_v38  ;;  %v4864_v35 = vpop.f32.mrb[83].mxu0  ;;  %v4905_v44 = vpop.f32.mrb[83].mxu1  ;;  %v7292_v23 = vmul.f32 -1.442695, %v4901_v56 }
 0x751   :  { %v7291_v45 = vmul.f32 -1.442695, %v4862_v18  ;;  %v11213_v38 = vld [vmem:[#allocation37_spill] sm:$0xff] }
 0x752   :  { %8259 = vpow2.f32 %v7290_v12 }
 0x753   :  { %8261 = vpow2.f32 %v7291_v45 }
 0x754   :  { %8263 = vtanh.f32 %v4903_v8 }
 0x755   :  { %8265 = vpow2.f32 %v7292_v23 }
 0x75c   :  { %v8260_v1 = vpop.eup %8259 }
 0x75d   :  { %v4916_v22 = vadd.f32 1.0, %v8260_v1  ;;  %v8262_v9 = vpop.eup %8261 }
 0x75e   :  { %v4917_v54 = vadd.f32 1.0, %v8262_v9  ;;  %v8264_v42 = vpop.eup %8263  ;;  %v7972_v9 = vld [vmem:[%s11055_s2 + $0x28] ss:$16 sps:$4 sm:$0xff]  }
 0x75f   :  { %8267 = vrcp.f32 %v4916_v22  ;;  %v8266_v31 = vpop.eup %8265  ;;  %v7971_v22 = vld [vmem:[%s11055_s2 + $0x24] ss:$16 sps:$4 sm:$0xff]  }
 0x760   :  { %8269 = vrcp.f32 %v4917_v54  ;;  %v4918_v34 = vadd.f32 1.0, %v8266_v31  ;;  %v7977_v54 = vld [vmem:[%s11055_s2 + $0x44] ss:$16 sps:$4 sm:$0xff]   ;;  %v7975_v31 = vld [vmem:[%s11055_s2 + $0x40] ss:$16 sps:$4 sm:$0xff]  }
 0x762   :  { %8271 = vrcp.f32 %v4918_v34  ;;  %v7981_v34 = vld [vmem:[%s11055_s2 + $0x60] ss:$16 sps:$4 sm:$0xff]  }
 0x769   :  { %v8268_v55 = vpop.eup %8267 }
 0x76a   :  { %v4927_v49 = vmul.f32 %v8268_v55, %v8264_v42  ;;  %v8270_v47 = vpop.eup %8269  ;;  %v7980_v42 = vld [vmem:[%s11055_s2 + $0x4c] ss:$16 sps:$4 sm:$0xff]   ;;  %v7978_v55 = vld [vmem:[%s11055_s2 + $0x48] ss:$16 sps:$4 sm:$0xff]  }
 0x76b   :  { %v4926_v37 = vmul.f32 %v8270_v47, %v10518_v59  ;;  %v7986_v47 = vld [vmem:[%s11055_s2 + $0x6c] ss:$16 sps:$4 sm:$0xff]  }
 0x76c   :  { %v8272_v51 = vpop.eup %8271 }
 0x76d   :  { %v5157_v6 = vpop.f32.mrb[84].mxu0  ;;  %v5198_v58 = vpop.f32.mrb[84].mxu1  ;;  %v10758_v7 = vadd.f32 %v4927_v49, %v4926_v37  ;;  %v7983_v49 = vld [vmem:[%s11055_s2 + $0x64] ss:$16 sps:$4 sm:$0xff]   ;;  %v7984_v37 = vld [vmem:[%s11055_s2 + $0x68] ss:$16 sps:$4 sm:$0xff]  }
 0x76e   :  { %v5158_v53 = vadd.f32 %v5157_v6, %v11210_v29  ;;  %v5199_v57 = vadd.f32 %v5198_v58, %v11211_v5  ;;  %v5159_v30 = vpop.f32.mrb[85].mxu0  ;;  %v5200_v40 = vpop.f32.mrb[85].mxu1  ;;  %v7989_v6 = vld [vmem:[%s11055_s2 + $0x84] ss:$16 sps:$4 sm:$0xff]   ;;  %v7992_v58 = vld [vmem:[%s11055_s2 + $0x8c] ss:$16 sps:$4 sm:$0xff]  }
 0x76f   :  { %v5160_v25 = vadd.f32 %v5159_v30, %v11212_v11  ;;  %v5201_v27 = vadd.f32 %v5200_v40, %v11213_v38  ;;  %v5161_v56 = vpop.f32.mrb[86].mxu0  ;;  %v5202_v48 = vpop.f32.mrb[86].mxu1  ;;  %8273 = vtanh.f32 %v10758_v7  ;;  %v7987_v29 = vld [vmem:[%s11055_s2 + $0x80] ss:$16 sps:$4 sm:$0xff]   ;;  %v7995_v5 = vld [vmem:[%s11055_s2 + $0xa4] ss:$16 sps:$4 sm:$0xff]  }
 0x770   :  { %v7325_v59 = vmul.f32 -1.442695, %v5158_v53  ;;  %v5162_v10 = vpop.f32.mrb[87].mxu0  ;;  %v5203_v43 = vpop.f32.mrb[87].mxu1  ;;  %v7327_v17 = vmul.f32 -1.442695, %v5199_v57 }
 0x771   :  { %v7326_v18 = vmul.f32 -1.442695, %v5160_v25  ;;  %v7990_v53 = vld [vmem:[%s11055_s2 + $0x88] ss:$16 sps:$4 sm:$0xff]   ;;  %v7998_v57 = vld [vmem:[%s11055_s2 + $0xac] ss:$16 sps:$4 sm:$0xff]  }
 0x772   :  { %8275 = vpow2.f32 %v7325_v59  ;;  %v7993_v30 = vld [vmem:[%s11055_s2 + $0xa0] ss:$16 sps:$4 sm:$0xff]   ;;  %v7996_v40 = vld [vmem:[%s11055_s2 + $0xa8] ss:$16 sps:$4 sm:$0xff]   ;;  %v8001_v11 = vld [vmem:[%s11055_s2 + $0xc4] ss:$16 sps:$4 sm:$0xff]  }
 0x773   :  { %8277 = vpow2.f32 %v7326_v18  ;;  %v8004_v25 = vld [vmem:[%s11055_s2 + $0xcc] ss:$16 sps:$4 sm:$0xff]   ;;  %v7999_v38 = vld [vmem:[%s11055_s2 + $0xc0] ss:$16 sps:$4 sm:$0xff]   ;;  %v8007_v56 = vld [vmem:[%s11055_s2 + $0xe4] ss:$16 sps:$4 sm:$0xff]  }
 0x774   :  { %8279 = vtanh.f32 %v5201_v27  ;;  %v8002_v27 = vld [vmem:[%s11055_s2 + $0xc8] ss:$16 sps:$4 sm:$0xff]   ;;  %v8010_v48 = vld [vmem:[%s11055_s2 + $0xec] ss:$16 sps:$4 sm:$0xff]   ;;  %v8005_v59 = vld [vmem:[%s11055_s2 + $0xe0] ss:$16 sps:$4 sm:$0xff]  }
 0x775   :  { %8281 = vpow2.f32 %v7327_v17  ;;  %v8008_v10 = vld [vmem:[%s11055_s2 + $0xe8] ss:$16 sps:$4 sm:$0xff]   ;;  %v8014_v43 = vld [vmem:[%s11057_s5 + $0x4] ss:$16 sps:$4 sm:$0xff]   ;;  %v8017_v18 = vld [vmem:[%s11057_s5 + $0xc] ss:$16 sps:$4 sm:$0xff]  }
 0x776   :  { %v8015_v17 = vld [vmem:[%s11057_s5 + $0x8] ss:$16 sps:$4 sm:$0xff]  }
 0x779   :  { %v8274_v8 = vpop.eup %8273 }
 0x77a   :  { %v4930_v26 = vmul.f32 %v8274_v8, %v8272_v51  ;;  %v8011_v51 = vld [vmem:[%s11056_s0] sm:$0xff]  }
 0x77b   :  { %v8012_v8 = vld [vmem:[%s11057_s5] ss:$16 sps:$4 sm:$0xff]  }
 0x77c   :  { %v8276_v12 = vpop.eup %8275  ;;  %v5229_v44 = vpack.c.bf16 %v4930_v26, %v4930_v26  ;;  %v8020_v26 = vld [vmem:[%s11057_s5 + $0x24] ss:$16 sps:$4 sm:$0xff]  }
 0x77d   :  { %v5214_v35 = vadd.f32 1.0, %v8276_v12  ;;  %v8278_v45 = vpop.eup %8277  ;;  %v8023_v12 = vld [vmem:[%s11057_s5 + $0x2c] ss:$16 sps:$4 sm:$0xff]  }
 0x77e   :  { %v5215_v23 = vadd.f32 1.0, %v8278_v45  ;;  %7328 = vst [vmem:[%s11063_s8 + $0x18] sm:$0xf] %v5229_v44  ;;  %5472 = vmatmul.mubr.bf16.vlgmr.msra.gmra.mrb[88].mxu0 %v5229_v44  ;;  %5513 = vmatmul.mubr.bf16.vlgmr.msra.gmra.mrb[88].mxu1 %v5229_v44  ;;  %v8021_v44 = vld [vmem:[%s11057_s5 + $0x28] ss:$16 sps:$4 sm:$0xff]  }
 0x77f   :  { %8283 = vrcp.f32 %v5214_v35  ;;  %5738 = vmatpush1.bf16.msra.mxu0 %v10528_v14  ;;  %5779 = vmatpush1.bf16.msra.mxu1 %v10533_v21  ;;  %v8280_v14 = vpop.eup %8279  ;;  %v8018_v35 = vld [vmem:[%s11057_s5 + $0x20] ss:$16 sps:$4 sm:$0xff]   ;;  %v8027_v45 = vld [vmem:[%s11057_s5 + $0x44] ss:$16 sps:$4 sm:$0xff]  }
 0x780   :  { %8285 = vrcp.f32 %v5215_v23  ;;  %5739 = vmatprep.subr.bf16.mxu0 %v10538_v61  ;;  %5780 = vmatprep.subr.bf16.mxu1 %v10543_v62  ;;  %v8282_v1 = vpop.eup %8281  ;;  %v8030_v23 = vld [vmem:[%s11057_s5 + $0x4c] ss:$16 sps:$4 sm:$0xff]  }
 0x781   :  { %5769 = vmatprep.mubr.bf16.mxu0 %v11136_v32  ;;  %5810 = vmatprep.mubr.bf16.mxu1 %v11136_v32 }
 0x783   :  { %5740 = vmatpush1.bf16.msra.mxu0 %v10553_v46  ;;  %5781 = vmatpush1.bf16.msra.mxu1 %v10558_v24  ;;  %v5216_v46 = vadd.f32 1.0, %v8282_v1  ;;  %v8025_v1 = vld [vmem:[%s11057_s5 + $0x40] ss:$16 sps:$4 sm:$0xff]  }
 0x784   :  { %5741 = vmatprep.subr.bf16.mxu0 %v10565_v60  ;;  %5782 = vmatprep.subr.bf16.mxu1 %v10570_v15  ;;  %v11214_v15 = vld [vmem:[#allocation55_spill] sm:$0xff] }
 0x785   :  { %8287 = vrcp.f32 %v5216_v46  ;;  %v8031_v46 = vld [vmem:[%s11057_s5 + $0x60] ss:$16 sps:$4 sm:$0xff]  }
 0x787   :  { %5742 = vmatpush1.bf16.msra.mxu0 %v10579_v16  ;;  %5783 = vmatpush1.bf16.msra.mxu1 %v10584_v20  ;;  %v11215_v16 = vld [vmem:[#allocation56_spill] sm:$0xff]  ;;  %v11216_v20 = vld [vmem:[#allocation57_spill] sm:$0xff] }
 0x788   :  { %5743 = vmatprep.subr.bf16.mxu0 %v10591_v52  ;;  %5784 = vmatprep.subr.bf16.mxu1 %v10596_v36  ;;  %v11217_v52 = vld [vmem:[#allocation58_spill] sm:$0xff]  ;;  %v11218_v36 = vld [vmem:[#allocation59_spill] sm:$0xff] }
 0x789   :  { %v8284_v21 = vpop.eup %8283 }
 0x78a   :  { %v5225_v61 = vmul.f32 %v8284_v21, %v8280_v14  ;;  %v8286_v62 = vpop.eup %8285  ;;  %v8024_v14 = vld [vmem:[%s11056_s0 + $0x8] sm:$0xff]  }
 0x78b   :  { %v5224_v24 = vmul.f32 %v8286_v62, %v10647_v0  ;;  %5744 = vmatpush1.bf16.msra.mxu0 %v10603_v33  ;;  %5785 = vmatpush1.bf16.msra.mxu1 %v10608_v50  ;;  %v11219_v33 = vld [vmem:[#allocation60_spill] sm:$0xff]  ;;  %v11220_v50 = vld [vmem:[#allocation61_spill] sm:$0xff] }
 0x78c   :  { %5745 = vmatprep.subr.bf16.mxu0 %v10615_v13  ;;  %5786 = vmatprep.subr.bf16.mxu1 %v10620_v2  ;;  %v7965_v2 = vld [vmem:[%s11055_s2 + $0x4] ss:$16 sps:$4 sm:$0xff]   ;;  %v8028_v21 = vld [vmem:[%s11057_s5 + $0x48] ss:$16 sps:$4 sm:$0xff]   ;;  %v8036_v62 = vld [vmem:[%s11057_s5 + $0x6c] ss:$16 sps:$4 sm:$0xff]  }
 0x78d   :  { %v10787_v60 = vadd.f32 %v5225_v61, %v5224_v24  ;;  %v8033_v61 = vld [vmem:[%s11057_s5 + $0x64] ss:$16 sps:$4 sm:$0xff]   ;;  %v8034_v24 = vld [vmem:[%s11057_s5 + $0x68] ss:$16 sps:$4 sm:$0xff]  }
 0x78f   :  { %8289 = vtanh.f32 %v10787_v60  ;;  %5746 = vmatpush1.bf16.msra.mxu0 %v10628_v3  ;;  %5787 = vmatpush1.bf16.msra.mxu1 %v10633_v63  ;;  %v8288_v13 = vpop.eup %8287  ;;  %v7968_v3 = vld [vmem:[%s11055_s2 + $0xc] ss:$16 sps:$4 sm:$0xff]  }
 0x790   :  { %5747 = vmatprep.subr.bf16.mxu0 %v11214_v15  ;;  %5788 = vmatprep.subr.bf16.mxu1 %v11215_v16  ;;  %v8040_v15 = vld [vmem:[%s11057_s5 + $0x84] ss:$16 sps:$4 sm:$0xff]   ;;  %v8043_v16 = vld [vmem:[%s11057_s5 + $0x8c] ss:$16 sps:$4 sm:$0xff]  }
 0x793   :  { %5748 = vmatpush1.bf16.msra.mxu0 %v11216_v20  ;;  %5789 = vmatpush1.bf16.msra.mxu1 %v11217_v52  ;;  %v8037_v20 = vld [vmem:[%s11056_s0 + $0x10] sm:$0xff]  }
 0x794   :  { %5749 = vmatprep.subr.bf16.mxu0 %v11218_v36  ;;  %5790 = vmatprep.subr.bf16.mxu1 %v11219_v33  ;;  %v8038_v52 = vld [vmem:[%s11057_s5 + $0x80] ss:$16 sps:$4 sm:$0xff]   ;;  %v8041_v36 = vld [vmem:[%s11057_s5 + $0x88] ss:$16 sps:$4 sm:$0xff]   ;;  %v8046_v33 = vld [vmem:[%s11057_s5 + $0xa4] ss:$16 sps:$4 sm:$0xff]  }
 0x797   :  { %5750 = vmatpush1.bf16.msra.mxu0 %v10679_v28  ;;  %5791 = vmatpush1.bf16.msra.mxu1 %v11220_v50  ;;  %v7963_v28 = vld [vmem:[%s11055_s2] ss:$16 sps:$4 sm:$0xff]   ;;  %v8049_v50 = vld [vmem:[%s11057_s5 + $0xac] ss:$16 sps:$4 sm:$0xff]  }
 0x798   :  { %5751 = vmatprep.subr.bf16.mxu0 %v10691_v19  ;;  %5792 = vmatprep.subr.bf16.mxu1 %v10696_v41  ;;  %v7966_v41 = vld [vmem:[%s11055_s2 + $0x8] ss:$16 sps:$4 sm:$0xff]  }
 0x799   :  { %v8290_v63 = vpop.eup %8289 }
 0x79a   :  { %v5228_v0 = vmul.f32 %v8290_v63, %v8288_v13  ;;  %v8044_v13 = vld [vmem:[%s11057_s5 + $0xa0] ss:$16 sps:$4 sm:$0xff]   ;;  %v8056_v63 = vld [vmem:[%s11057_s5 + $0xcc] ss:$16 sps:$4 sm:$0xff]  }
 0x79b   :  { %5752 = vmatpush1.bf16.msra.mxu0 %v10703_v39  ;;  %5793 = vmatpush1.bf16.msra.mxu1 %v10708_v4  ;;  %v7974_v39 = vld [vmem:[%s11055_s2 + $0x2c] ss:$16 sps:$4 sm:$0xff]   ;;  %v7969_v4 = vld [vmem:[%s11055_s2 + $0x20] ss:$16 sps:$4 sm:$0xff]  }
 0x79c   :  { %6094 = vmatprep.subr.bf16.mxu0 %v7965_v2  ;;  %6167 = vmatprep.subr.bf16.mxu1 %v7968_v3  ;;  %v5232_v19 = vpack.c.bf16 %v5228_v0, %v5228_v0  ;;  %v8047_v2 = vld [vmem:[%s11057_s5 + $0xa8] ss:$16 sps:$4 sm:$0xff]   ;;  %v8053_v3 = vld [vmem:[%s11057_s5 + $0xc4] ss:$16 sps:$4 sm:$0xff]  }
 0x79d   :  { %v8050_v0 = vld [vmem:[%s11056_s0 + $0x18] sm:$0xff]  }
 0x79e   :  { %7329 = vst [vmem:[%s11064_s9 + $0x4] sm:$0xf] %v5232_v19  ;;  %5770 = vmatmul.mubr.bf16.vlgmr.msra.gmra.mrb[92].mxu0 %v5232_v19  ;;  %5811 = vmatmul.mubr.bf16.vlgmr.msra.gmra.mrb[92].mxu1 %v5232_v19  ;;  %v8059_v19 = vld [vmem:[%s11057_s5 + $0xe4] ss:$16 sps:$4 sm:$0xff]  }
 0x79f   :  { %6095 = vmatpush1.bf16.msra.mxu0 %v7963_v28  ;;  %6168 = vmatpush1.bf16.msra.mxu1 %v7966_v41  ;;  %v8051_v28 = vld [vmem:[%s11057_s5 + $0xc0] ss:$16 sps:$4 sm:$0xff]   ;;  %v8054_v41 = vld [vmem:[%s11057_s5 + $0xc8] ss:$16 sps:$4 sm:$0xff]  }
 0x7a0   :  { %6096 = vmatprep.subr.bf16.mxu0 %v7971_v22  ;;  %6169 = vmatprep.subr.bf16.mxu1 %v7974_v39  ;;  %v8062_v22 = vld [vmem:[%s11057_s5 + $0xec] ss:$16 sps:$4 sm:$0xff]   ;;  %v8057_v39 = vld [vmem:[%s11057_s5 + $0xe0] ss:$16 sps:$4 sm:$0xff]  }
 0x7a1   :  { %6126 = vmatprep.mubr.bf16.mxu0 %v11136_v32  ;;  %6199 = vmatprep.mubr.bf16.mxu1 %v11136_v32 }
 0x7a3   :  { %6097 = vmatpush1.bf16.msra.mxu0 %v7969_v4  ;;  %6170 = vmatpush1.bf16.msra.mxu1 %v7972_v9  ;;  %v8060_v4 = vld [vmem:[%s11057_s5 + $0xe8] ss:$16 sps:$4 sm:$0xff]   ;;  %v8063_v9 = vld [vmem:[%s11058_s1] sm:$0xff]  }
 0x7a4   :  { %6098 = vmatprep.subr.bf16.mxu0 %v7977_v54  ;;  %6171 = vmatprep.subr.bf16.mxu1 %v7980_v42  ;;  %v8064_v54 = vld [vmem:[%s11058_s1 + $0x8] sm:$0xff]   ;;  %v8065_v42 = vld [vmem:[%s11058_s1 + $0x10] sm:$0xff]  }
 0x7a7   :  { %6099 = vmatpush1.bf16.msra.mxu0 %v7975_v31  ;;  %6172 = vmatpush1.bf16.msra.mxu1 %v7978_v55  ;;  %v8066_v31 = vld [vmem:[%s11058_s1 + $0x18] sm:$0xff]  }
 0x7a8   :  { %6100 = vmatprep.subr.bf16.mxu0 %v7983_v49  ;;  %6173 = vmatprep.subr.bf16.mxu1 %v7986_v47  ;;  %v11221_v47 = vld [vmem:[#allocation26_spill] sm:$0xff] }
 0x7ab   :  { %6101 = vmatpush1.bf16.msra.mxu0 %v7981_v34  ;;  %6174 = vmatpush1.bf16.msra.mxu1 %v7984_v37  ;;  %v11222_v37 = vld [vmem:[#allocation27_spill] sm:$0xff] }
 0x7ac   :  { %6102 = vmatprep.subr.bf16.mxu0 %v7989_v6  ;;  %6175 = vmatprep.subr.bf16.mxu1 %v7992_v58 }
 0x7af   :  { %6103 = vmatpush1.bf16.msra.mxu0 %v7987_v29  ;;  %6176 = vmatpush1.bf16.msra.mxu1 %v7990_v53  ;;  %v11223_v53 = vld [vmem:[#allocation28_spill] sm:$0xff] }
 0x7b0   :  { %6104 = vmatprep.subr.bf16.mxu0 %v7995_v5  ;;  %6177 = vmatprep.subr.bf16.mxu1 %v7998_v57  ;;  %v11224_v57 = vld [vmem:[#allocation29_spill] sm:$0xff] }
 0x7b3   :  { %6105 = vmatpush1.bf16.msra.mxu0 %v7993_v30  ;;  %6178 = vmatpush1.bf16.msra.mxu1 %v7996_v40 }
 0x7b4   :  { %6106 = vmatprep.subr.bf16.mxu0 %v8001_v11  ;;  %6179 = vmatprep.subr.bf16.mxu1 %v8004_v25 }
 0x7b7   :  { %6107 = vmatpush1.bf16.msra.mxu0 %v7999_v38  ;;  %6180 = vmatpush1.bf16.msra.mxu1 %v8002_v27 }
 0x7b8   :  { %6108 = vmatprep.subr.bf16.mxu0 %v8007_v56  ;;  %6181 = vmatprep.subr.bf16.mxu1 %v8010_v48 }
 0x7bb   :  { %6109 = vmatpush1.bf16.msra.mxu0 %v8005_v59  ;;  %6182 = vmatpush1.bf16.msra.mxu1 %v8008_v10 }
 0x7bc   :  { %6521 = vmatprep.subr.bf16.mxu0 %v8014_v43  ;;  %6594 = vmatprep.subr.bf16.mxu1 %v8017_v18 }
 0x7be   :  { %6127 = vmatmul.mubr.bf16.vlgmr.msra.gmra.mrb[96].mxu0 %v8011_v51  ;;  %6200 = vmatmul.mubr.bf16.vlgmr.msra.gmra.mrb[96].mxu1 %v8011_v51 }
 0x7bf   :  { %6522 = vmatpush1.bf16.msra.mxu0 %v8012_v8  ;;  %6595 = vmatpush1.bf16.msra.mxu1 %v8015_v17 }
 0x7c0   :  { %6523 = vmatprep.subr.bf16.mxu0 %v8020_v26  ;;  %6596 = vmatprep.subr.bf16.mxu1 %v8023_v12 }
 0x7c1   :  { %6136 = vmatprep.mubr.bf16.mxu0 %v11136_v32  ;;  %6209 = vmatprep.mubr.bf16.mxu1 %v11136_v32 }
 0x7c3   :  { %6524 = vmatpush1.bf16.msra.mxu0 %v8018_v35  ;;  %6597 = vmatpush1.bf16.msra.mxu1 %v8021_v44 }
 0x7c4   :  { %6525 = vmatprep.subr.bf16.mxu0 %v8027_v45  ;;  %6598 = vmatprep.subr.bf16.mxu1 %v8030_v23 }
 0x7c6   :  { %6137 = vmatmul.mubr.bf16.gmra.mrb[100].mxu0 %v8024_v14  ;;  %6210 = vmatmul.mubr.bf16.gmra.mrb[100].mxu1 %v8024_v14  ;;  %v11225_v14 = vld [vmem:[#allocation30_spill] sm:$0xff] }
 0x7c7   :  { %6526 = vmatpush1.bf16.msra.mxu0 %v8025_v1  ;;  %6599 = vmatpush1.bf16.msra.mxu1 %v8028_v21  ;;  %v11226_v21 = vld [vmem:[#allocation31_spill] sm:$0xff] }
 0x7c8   :  { %6527 = vmatprep.subr.bf16.mxu0 %v8033_v61  ;;  %6600 = vmatprep.subr.bf16.mxu1 %v8036_v62 }
 0x7c9   :  { %6146 = vmatprep.mubr.bf16.mxu0 %v11136_v32  ;;  %6219 = vmatprep.mubr.bf16.mxu1 %v11136_v32 }
 0x7cb   :  { %6528 = vmatpush1.bf16.msra.mxu0 %v8031_v46  ;;  %6601 = vmatpush1.bf16.msra.mxu1 %v8034_v24  ;;  %v11227_v24 = vld [vmem:[#allocation32_spill] sm:$0xff] }
 0x7cc   :  { %6529 = vmatprep.subr.bf16.mxu0 %v8040_v15  ;;  %6602 = vmatprep.subr.bf16.mxu1 %v8043_v16  ;;  %v11228_v16 = vld [vmem:[#allocation33_spill] sm:$0xff] }
 0x7ce   :  { %6147 = vmatmul.mubr.bf16.gmra.mrb[104].mxu0 %v8037_v20  ;;  %6220 = vmatmul.mubr.bf16.gmra.mrb[104].mxu1 %v8037_v20 }
 0x7cf   :  { %6530 = vmatpush1.bf16.msra.mxu0 %v8038_v52  ;;  %6603 = vmatpush1.bf16.msra.mxu1 %v8041_v36 }
 0x7d0   :  { %6531 = vmatprep.subr.bf16.mxu0 %v8046_v33  ;;  %6604 = vmatprep.subr.bf16.mxu1 %v8049_v50 }
 0x7d1   :  { %6156 = vmatprep.mubr.bf16.mxu0 %v11136_v32  ;;  %6229 = vmatprep.mubr.bf16.mxu1 %v11136_v32 }
 0x7d3   :  { %6532 = vmatpush1.bf16.msra.mxu0 %v8044_v13  ;;  %6605 = vmatpush1.bf16.msra.mxu1 %v8047_v2 }
 0x7d4   :  { %6533 = vmatprep.subr.bf16.mxu0 %v8053_v3  ;;  %6606 = vmatprep.subr.bf16.mxu1 %v8056_v63 }
 0x7d6   :  { %6157 = vmatmul.mubr.bf16.gmra.mrb[108].mxu0 %v8050_v0  ;;  %6230 = vmatmul.mubr.bf16.gmra.mrb[108].mxu1 %v8050_v0 }
 0x7d7   :  { %6534 = vmatpush1.bf16.msra.mxu0 %v8051_v28  ;;  %6607 = vmatpush1.bf16.msra.mxu1 %v8054_v41 }
 0x7d8   :  { %6535 = vmatprep.subr.bf16.mxu0 %v8059_v19  ;;  %6608 = vmatprep.subr.bf16.mxu1 %v8062_v22 }
 0x7d9   :  { %6553 = vmatprep.mubr.bf16.mxu0 %v11136_v32  ;;  %6626 = vmatprep.mubr.bf16.mxu1 %v11136_v32 }
 0x7db   :  { %6536 = vmatpush1.bf16.msra.mxu0 %v8057_v39  ;;  %6609 = vmatpush1.bf16.msra.mxu1 %v8060_v4 }
 0x7de   :  { %6554 = vmatmul.mubr.bf16.vlgmr.msra.gmra.mrb[112].mxu0 %v8063_v9  ;;  %6627 = vmatmul.mubr.bf16.vlgmr.msra.gmra.mrb[112].mxu1 %v8063_v9 }
 0x7df   :  { %6563 = vmatprep.mubr.bf16.mxu0 %v11136_v32  ;;  %6636 = vmatprep.mubr.bf16.mxu1 %v11136_v32 }
 0x7e6   :  { %6564 = vmatmul.mubr.bf16.gmra.mrb[116].mxu0 %v8064_v54  ;;  %6637 = vmatmul.mubr.bf16.gmra.mrb[116].mxu1 %v8064_v54 }
 0x7e7   :  { %6573 = vmatprep.mubr.bf16.mxu0 %v11136_v32  ;;  %6646 = vmatprep.mubr.bf16.mxu1 %v11136_v32 }
 0x7ee   :  { %6574 = vmatmul.mubr.bf16.gmra.mrb[120].mxu0 %v8065_v42  ;;  %6647 = vmatmul.mubr.bf16.gmra.mrb[120].mxu1 %v8065_v42 }
 0x7ef   :  { %6583 = vmatprep.mubr.bf16.mxu0 %v11136_v32  ;;  %6656 = vmatprep.mubr.bf16.mxu1 %v11136_v32 }
 0x7f6   :  { %6584 = vmatmul.mubr.bf16.gmra.mrb[124].mxu0 %v8066_v31  ;;  %6657 = vmatmul.mubr.bf16.gmra.mrb[124].mxu1 %v8066_v31 }
 0x851   :  { %v5473_v55 = vpop.f32.mrb[88].mxu0  ;;  %v5514_v49 = vpop.f32.mrb[88].mxu1 }
 0x852   :  { %v5474_v34 = vadd.f32 %v5473_v55, %v11221_v47  ;;  %v5515_v6 = vadd.f32 %v5514_v49, %v11222_v37  ;;  %v5475_v58 = vpop.f32.mrb[89].mxu0  ;;  %v5516_v29 = vpop.f32.mrb[89].mxu1 }
 0x853   :  { %v5476_v5 = vadd.f32 %v5475_v58, %v11223_v53  ;;  %v5517_v30 = vadd.f32 %v5516_v29, %v11224_v57  ;;  %v5477_v40 = vpop.f32.mrb[90].mxu0  ;;  %v5518_v32 = vpop.f32.mrb[90].mxu1 }
 0x854   :  { %v7362_v11 = vmul.f32 -1.442695, %v5474_v34  ;;  %v5478_v25 = vpop.f32.mrb[91].mxu0  ;;  %v5519_v38 = vpop.f32.mrb[91].mxu1  ;;  %v7364_v56 = vmul.f32 -1.442695, %v5515_v6 }
 0x855   :  { %v7363_v27 = vmul.f32 -1.442695, %v5476_v5 }
 0x856   :  { %8291 = vpow2.f32 %v7362_v11 }
 0x857   :  { %8293 = vpow2.f32 %v7363_v27 }
 0x858   :  { %8295 = vtanh.f32 %v5517_v30 }
 0x859   :  { %8297 = vpow2.f32 %v7364_v56 }
 0x860   :  { %v8292_v48 = vpop.eup %8291 }
 0x861   :  { %v5530_v59 = vadd.f32 1.0, %v8292_v48  ;;  %v8294_v10 = vpop.eup %8293 }
 0x862   :  { %v5531_v43 = vadd.f32 1.0, %v8294_v10  ;;  %v8296_v18 = vpop.eup %8295 }
 0x863   :  { %8299 = vrcp.f32 %v5530_v59  ;;  %v8298_v51 = vpop.eup %8297 }
 0x864   :  { %8301 = vrcp.f32 %v5531_v43  ;;  %v5532_v12 = vadd.f32 1.0, %v8298_v51 }
 0x866   :  { %8303 = vrcp.f32 %v5532_v12 }
 0x86d   :  { %v8300_v8 = vpop.eup %8299 }
 0x86e   :  { %v5541_v17 = vmul.f32 %v8300_v8, %v8296_v18  ;;  %v8302_v26 = vpop.eup %8301 }
 0x86f   :  { %v5540_v35 = vmul.f32 %v8302_v26, %v10758_v7 }
 0x870   :  { %v8304_v2 = vpop.eup %8303 }
 0x871   :  { %v5771_v44 = vpop.f32.mrb[92].mxu0  ;;  %v5812_v45 = vpop.f32.mrb[92].mxu1  ;;  %v5542_v23 = vadd.f32 %v5541_v17, %v5540_v35 }
 0x872   :  { %v5772_v1 = vadd.f32 %v5771_v44, %v11225_v14  ;;  %v5813_v61 = vadd.f32 %v5812_v45, %v11226_v21  ;;  %v5773_v62 = vpop.f32.mrb[93].mxu0  ;;  %v5814_v46 = vpop.f32.mrb[93].mxu1 }
 0x873   :  { %v5774_v15 = vadd.f32 %v5773_v62, %v11227_v24  ;;  %v5815_v20 = vadd.f32 %v5814_v46, %v11228_v16  ;;  %v5775_v52 = vpop.f32.mrb[94].mxu0  ;;  %v5816_v36 = vpop.f32.mrb[94].mxu1  ;;  %8305 = vtanh.f32 %v5542_v23 }
 0x874   :  { %v7397_v33 = vmul.f32 -1.442695, %v5772_v1  ;;  %v5776_v50 = vpop.f32.mrb[95].mxu0  ;;  %v5817_v7 = vpop.f32.mrb[95].mxu1  ;;  %v7399_v63 = vmul.f32 -1.442695, %v5813_v61 }
 0x875   :  { %v7398_v13 = vmul.f32 -1.442695, %v5774_v15 }
 0x876   :  { %8307 = vpow2.f32 %v7397_v33 }
 0x877   :  { %8309 = vpow2.f32 %v7398_v13 }
 0x878   :  { %8311 = vtanh.f32 %v5815_v20 }
 0x879   :  { %8313 = vpow2.f32 %v7399_v63 }
 0x87d   :  { %v8306_v3 = vpop.eup %8305 }
 0x87e   :  { %v5544_v0 = vmul.f32 %v8306_v3, %v8304_v2 }
 0x880   :  { %v8308_v28 = vpop.eup %8307  ;;  %v5843_v41 = vpack.c.bf16 %v5544_v0, %v5544_v0 }
 0x881   :  { %v5828_v19 = vadd.f32 1.0, %v8308_v28  ;;  %v8310_v22 = vpop.eup %8309 }
 0x882   :  { %7400 = vst [vmem:[%s11063_s8 + $0x1c] sm:$0xf] %v5843_v41  ;;  %v5829_v39 = vadd.f32 1.0, %v8310_v22  ;;  %v8312_v4 = vpop.eup %8311 }
 0x883   :  { %8315 = vrcp.f32 %v5828_v19  ;;  %v8314_v9 = vpop.eup %8313 }
 0x884   :  { %8317 = vrcp.f32 %v5829_v39  ;;  %v5830_v55 = vadd.f32 1.0, %v8314_v9 }
 0x886   :  { %8319 = vrcp.f32 %v5830_v55 }
 0x88d   :  { %v8316_v54 = vpop.eup %8315 }
 0x88e   :  { %v5839_v42 = vmul.f32 %v8316_v54, %v8312_v4  ;;  %v8318_v31 = vpop.eup %8317 }
 0x88f   :  { %v5838_v49 = vmul.f32 %v8318_v31, %v10787_v60 }
 0x890   :  { %v8320_v60 = vpop.eup %8319 }
 0x891   :  { %v6128_v47 = vpop.f32.mrb[96].mxu0  ;;  %v6201_v34 = vpop.f32.mrb[96].mxu1  ;;  %v5840_v37 = vadd.f32 %v5839_v42, %v5838_v49 }
 0x892   :  { %v6130_v6 = vpop.f32.mrb[97].mxu0  ;;  %v6203_v58 = vpop.f32.mrb[97].mxu1 }
 0x893   :  { %v6132_v29 = vpop.f32.mrb[98].mxu0  ;;  %v6205_v53 = vpop.f32.mrb[98].mxu1  ;;  %8321 = vtanh.f32 %v5840_v37 }
 0x894   :  { %v6134_v5 = vpop.f32.mrb[99].mxu0  ;;  %v6207_v57 = vpop.f32.mrb[99].mxu1 }
 0x899   :  { %v6138_v30 = vpop.f32.mrb[100].mxu0  ;;  %v6211_v40 = vpop.f32.mrb[100].mxu1 }
 0x89a   :  { %v6140_v32 = vpop.f32.mrb[101].mxu0  ;;  %v6213_v11 = vpop.f32.mrb[101].mxu1 }
 0x89b   :  { %v6142_v25 = vpop.f32.mrb[102].mxu0  ;;  %v6215_v38 = vpop.f32.mrb[102].mxu1 }
 0x89c   :  { %v6144_v27 = vpop.f32.mrb[103].mxu0  ;;  %v6217_v56 = vpop.f32.mrb[103].mxu1 }
 0x89d   :  { %v8322_v48 = vpop.eup %8321 }
 0x89e   :  { %v5842_v59 = vmul.f32 %v8322_v48, %v8320_v60 }
 0x8a0   :  { %v5846_v10 = vpack.c.bf16 %v5842_v59, %v5842_v59 }
 0x8a1   :  { %v6148_v43 = vpop.f32.mrb[104].mxu0  ;;  %v6221_v18 = vpop.f32.mrb[104].mxu1 }
 0x8a2   :  { %v6150_v51 = vpop.f32.mrb[105].mxu0  ;;  %v6223_v8 = vpop.f32.mrb[105].mxu1  ;;  %5847 = vst [vmem:[%s11064_s9] sm:$0xf] %v5846_v10 }
 0x8a3   :  { %v6152_v17 = vpop.f32.mrb[106].mxu0  ;;  %v6225_v26 = vpop.f32.mrb[106].mxu1 }
 0x8a4   :  { %v6154_v12 = vpop.f32.mrb[107].mxu0  ;;  %v6227_v35 = vpop.f32.mrb[107].mxu1 }
 0x8a9   :  { %v6158_v44 = vpop.f32.mrb[108].mxu0  ;;  %v6231_v45 = vpop.f32.mrb[108].mxu1 }
 0x8aa   :  { %v6160_v23 = vpop.f32.mrb[109].mxu0  ;;  %v6233_v14 = vpop.f32.mrb[109].mxu1 }
 0x8ab   :  { %v6162_v1 = vpop.f32.mrb[110].mxu0  ;;  %v6235_v21 = vpop.f32.mrb[110].mxu1 }
 0x8ac   :  { %v6164_v61 = vpop.f32.mrb[111].mxu0  ;;  %v6237_v62 = vpop.f32.mrb[111].mxu1 }
 0x8b1   :  { %v6555_v46 = vpop.f32.mrb[112].mxu0  ;;  %v6628_v24 = vpop.f32.mrb[112].mxu1 }
 0x8b2   :  { %v6557_v15 = vpop.f32.mrb[113].mxu0  ;;  %v6630_v16 = vpop.f32.mrb[113].mxu1 }
 0x8b3   :  { %v6559_v20 = vpop.f32.mrb[114].mxu0  ;;  %v6632_v52 = vpop.f32.mrb[114].mxu1 }
 0x8b4   :  { %v6561_v36 = vpop.f32.mrb[115].mxu0  ;;  %v6634_v33 = vpop.f32.mrb[115].mxu1 }
 0x8b9   :  { %v6565_v50 = vpop.f32.mrb[116].mxu0  ;;  %v6638_v7 = vpop.f32.mrb[116].mxu1 }
 0x8ba   :  { %v6567_v13 = vpop.f32.mrb[117].mxu0  ;;  %v6640_v2 = vpop.f32.mrb[117].mxu1 }
 0x8bb   :  { %v6569_v3 = vpop.f32.mrb[118].mxu0  ;;  %v6642_v63 = vpop.f32.mrb[118].mxu1 }
 0x8bc   :  { %v6571_v0 = vpop.f32.mrb[119].mxu0  ;;  %v6644_v28 = vpop.f32.mrb[119].mxu1 }
 0x8c1   :  { %v6575_v41 = vpop.f32.mrb[120].mxu0  ;;  %v6648_v19 = vpop.f32.mrb[120].mxu1 }
 0x8c2   :  { %v6577_v22 = vpop.f32.mrb[121].mxu0  ;;  %v6650_v39 = vpop.f32.mrb[121].mxu1 }
 0x8c3   :  { %v6579_v4 = vpop.f32.mrb[122].mxu0  ;;  %v6652_v9 = vpop.f32.mrb[122].mxu1 }
 0x8c4   :  { %v6581_v54 = vpop.f32.mrb[123].mxu0  ;;  %v6654_v42 = vpop.f32.mrb[123].mxu1 }
 0x8c9   :  { %v6585_v31 = vpop.f32.mrb[124].mxu0  ;;  %v6658_v55 = vpop.f32.mrb[124].mxu1 }
 0x8ca   :  { %v6587_v49 = vpop.f32.mrb[125].mxu0  ;;  %v6660_v47 = vpop.f32.mrb[125].mxu1 }
 0x8cb   :  { %v6589_v34 = vpop.f32.mrb[126].mxu0  ;;  %v6662_v37 = vpop.f32.mrb[126].mxu1 }
 0x8cc   :  { %v6591_v6 = vpop.f32.mrb[127].mxu0  ;;  %v6664_v58 = vpop.f32.mrb[127].mxu1 }

</bundles_post_ra>
